<compile_context>
chip_gen: v7x
topology: tpu7x:2x2x1
jax: 0.10.0
libtpu: 0.0.40
codegen_flags: <defaults>
</compile_context>

<pallas_src>
import jax
import jax.numpy as jnp
from jax.experimental import pallas as pl
from jax.experimental.pallas import tpu as pltpu

_TAP_STRIDE = 128  # each of the 9 taps owns one 128-lane tile of the im2col K axis


def _fused_kernel(x_ref, w1_ref, b1_ref, w2_ref, b2_ref, w3_ref, b3_ref,
                  w4_ref, b4_ref, o_ref,
                  xpad1, xpad2, xpad3, xpad4, p2, p3, p4):
    """Whole BoatDetector forward for one image, all intermediates in VMEM."""
    H, W = x_ref.shape[1], x_ref.shape[2]
    c1 = w1_ref.shape[1]

    def pad_into(pad_ref, a):
        # zero-pad `a` (h, w, c) by 1 on each spatial side, entirely in VMEM.
        h, w = a.shape[0], a.shape[1]
        pad_ref[...] = jnp.zeros_like(pad_ref)
        pad_ref[1:h + 1, 1:w + 1, :] = a

    def maxpool2(y):
        # 2x2 / stride-2 max pool as two pairwise max steps.  The H split only
        # regroups the leading (slab) axis (layout no-op); the W split is a
        # tiny sublane regroup.  Channels stay on the lane axis throughout.
        h, w, c = y.shape
        y = y.reshape(h // 2, 2, w, c).max(axis=1)
        y = y.reshape(h // 2, w // 2, 2, c).max(axis=2)
        return y

    def conv_im2col(pad_ref, patch_ref, w_ref, b_ref, h, w):
        # One MXU matmul per layer: im2col the 9 shifted windows into a VMEM
        # patch matrix.  Each tap writes into its own 128-lane tile so every
        # store is an aligned masked store; the weight matrix is zero-padded
        # identically, so the extra (garbage-free, zeroed) K lanes contribute 0.
        cin = pad_ref.shape[2]
        patch_ref[...] = jnp.zeros_like(patch_ref)  # keep unused lanes at 0.0
        tap = 0
        for dy in range(3):
            for dx in range(3):
                win = pad_ref[dy:dy + h, dx:dx + w, :]       # (h, w, cin)
                patch_ref[:, tap * _TAP_STRIDE:tap * _TAP_STRIDE + cin] = (
                    win.reshape(h * w, cin))
                tap += 1
        acc = jnp.dot(patch_ref[...], w_ref[...],
                      preferred_element_type=jnp.float32)
        return acc + b_ref[0][None, :]                        # (h*w, cout)

    # ---- layer 1: Cin = 1, so the conv is 9 broadcast-FMAs on the VPU
    # (a K=1 MXU matmul per tap would waste an entire systolic pass).
    pad_into(xpad1, x_ref[0])
    w1 = w1_ref[...]                                          # (9, c1)
    y = jnp.zeros((H, W, c1), jnp.float32) + b1_ref[0][None, None, :]
    tap = 0
    for dy in range(3):
        for dx in range(3):
            y = y + xpad1[dy:dy + H, dx:dx + W, :] * w1[tap][None, None, :]
            tap += 1
    y = jnp.maximum(maxpool2(y), 0.0)                         # (H/2, W/2, c1)

    # ---- layer 2: 30 -> 30
    pad_into(xpad2, y)
    y = conv_im2col(xpad2, p2, w2_ref, b2_ref, H // 2, W // 2)
    y = jnp.maximum(maxpool2(y.reshape(H // 2, W // 2, w2_ref.shape[1])), 0.0)

    # ---- layer 3: 30 -> 30
    pad_into(xpad3, y)
    y = conv_im2col(xpad3, p3, w3_ref, b3_ref, H // 4, W // 4)
    y = jnp.maximum(maxpool2(y.reshape(H // 4, W // 4, w3_ref.shape[1])), 0.0)

    # ---- layer 4: 30 -> 1, no pool, sigmoid; single tiny final store.
    pad_into(xpad4, y)
    y = conv_im2col(xpad4, p4, w4_ref, b4_ref, H // 8, W // 8)  # (H/8*W/8, 1)
    o_ref[0] = jax.nn.sigmoid(y).astype(o_ref.dtype)


def _pack_w(w):
    """(3,3,cin,cout) -> (9*_TAP_STRIDE, cout): tap t at rows [t*128, t*128+cin)."""
    _, _, cin, cout = w.shape
    assert cin <= _TAP_STRIDE
    w9 = w.reshape(9, cin, cout).astype(jnp.float32)
    wp = jnp.zeros((9, _TAP_STRIDE, cout), jnp.float32).at[:, :cin, :].set(w9)
    return wp.reshape(9 * _TAP_STRIDE, cout)


def boat_detector_forward(x_nchw, params):
    """Matches BoatDetector.forward (NCHW in, NCHW out)."""
    N, C, H, W = x_nchw.shape
    if C != 1:
        # TODO(synk): the VPU conv1 path assumes n_channels == 1 (the module
        # default); general Cin would route conv1 through the im2col path.
        raise NotImplementedError("fused kernel assumes n_channels == 1")
    assert H % 8 == 0 and W % 8 == 0, "needs 3 rounds of 2x2 pooling"

    # NCHW -> NHWC is a free reshape for C == 1.
    x_nhwc = jnp.transpose(x_nchw, (0, 2, 3, 1)).astype(jnp.float32)

    (w1, b1) = params["conv1"]
    (w2, b2) = params["conv2"]
    (w3, b3) = params["conv3"]
    (w4, b4) = params["conv4"]
    c1, c4 = w1.shape[-1], w4.shape[-1]

    w1f = w1.reshape(9, c1).astype(jnp.float32)          # (tap, cout)
    w2p, w3p, w4p = _pack_w(w2), _pack_w(w3), _pack_w(w4)
    b1f = b1.reshape(1, -1).astype(jnp.float32)
    b2f = b2.reshape(1, -1).astype(jnp.float32)
    b3f = b3.reshape(1, -1).astype(jnp.float32)
    b4f = b4.reshape(1, -1).astype(jnp.float32)

    H2, W2, H4, W4, H8, W8 = H // 2, W // 2, H // 4, W // 4, H // 8, W // 8

    out = pl.pallas_call(
        _fused_kernel,
        out_shape=jax.ShapeDtypeStruct((N, H8 * W8, c4), jnp.float32),
        grid=(N,),
        in_specs=[
            pl.BlockSpec((1, H, W, 1), lambda n: (n, 0, 0, 0)),
            pl.BlockSpec(w1f.shape, lambda n: (0, 0)),
            pl.BlockSpec(b1f.shape, lambda n: (0, 0)),
            pl.BlockSpec(w2p.shape, lambda n: (0, 0)),
            pl.BlockSpec(b2f.shape, lambda n: (0, 0)),
            pl.BlockSpec(w3p.shape, lambda n: (0, 0)),
            pl.BlockSpec(b3f.shape, lambda n: (0, 0)),
            pl.BlockSpec(w4p.shape, lambda n: (0, 0)),
            pl.BlockSpec(b4f.shape, lambda n: (0, 0)),
        ],
        out_specs=pl.BlockSpec((1, H8 * W8, c4), lambda n: (n, 0, 0)),
        scratch_shapes=[
            pltpu.VMEM((H + 2, W + 2, 1), jnp.float32),      # padded layer-1 in
            pltpu.VMEM((H2 + 2, W2 + 2, c1), jnp.float32),   # padded layer-2 in
            pltpu.VMEM((H4 + 2, W4 + 2, c1), jnp.float32),   # padded layer-3 in
            pltpu.VMEM((H8 + 2, W8 + 2, c1), jnp.float32),   # padded layer-4 in
            pltpu.VMEM((H2 * W2, 9 * _TAP_STRIDE), jnp.float32),  # im2col L2
            pltpu.VMEM((H4 * W4, 9 * _TAP_STRIDE), jnp.float32),  # im2col L3
            pltpu.VMEM((H8 * W8, 9 * _TAP_STRIDE), jnp.float32),  # im2col L4
        ],
        compiler_params=pltpu.CompilerParams(
            dimension_semantics=("parallel",)),
    )(x_nhwc, w1f, b1f, w2p, b2f, w3p, b3f, w4p, b4f)

    # (N, H8*W8, c4) -> NCHW (N, c4, H8, W8)
    return jnp.transpose(out, (0, 2, 1)).reshape(N, c4, H8, W8)


def init_params(key, n_channels=1):
    """Deterministic synthetic parameters (shapes follow BoatDetector.__init__)."""
    ks = jax.random.split(key, 8)

    def conv_p(kw, kb, cin, cout, ksz=3):
        scale = 1.0 / jnp.sqrt(cin * ksz * ksz)
        w = jax.random.normal(kw, (ksz, ksz, cin, cout), jnp.float32) * scale
        b = jax.random.normal(kb, (cout,), jnp.float32) * scale
        return w, b

    return {
        "conv1": conv_p(ks[0], ks[1], n_channels, 30),
        "conv2": conv_p(ks[2], ks[3], 30, 30),
        "conv3": conv_p(ks[4], ks[5], 30, 30),
        "conv4": conv_p(ks[6], ks[7], 30, 1),
        # conv5 / upsample exist in __init__ but are unused in forward().
    }


def _reference_forward(x_nchw, params):
    """Pure-JAX reference (lax conv / reduce_window) for correctness check."""
    def conv(x, w, b):
        w_oihw = jnp.transpose(w, (3, 2, 0, 1))
        y = jax.lax.conv_general_dilated(
            x, w_oihw, window_strides=(1, 1), padding=((1, 1), (1, 1)),
            dimension_numbers=("NCHW", "OIHW", "NCHW"))
        return y + b[None, :, None, None]

    def pool(x):
        return jax.lax.reduce_window(x, -jnp.inf, jax.lax.max,
                                     (1, 1, 2, 2), (1, 1, 2, 2), "VALID")

    x = jax.nn.relu(pool(conv(x_nchw, *params["conv1"])))
    x = jax.nn.relu(pool(conv(x, *params["conv2"])))
    x = jax.nn.relu(pool(conv(x, *params["conv3"])))
    x = jax.nn.sigmoid(conv(x, *params["conv4"]))
    return x


if __name__ == "__main__":
    key = jax.random.PRNGKey(0)
    k_x, k_p = jax.random.split(key)

    # Input follows nn.Conv2d NCHW convention: (batch=2, channels=1, 16, 16).
    x = jax.random.normal(k_x, (2, 1, 16, 16), jnp.float32)
    params = init_params(k_p, n_channels=1)

    out = jax.block_until_ready(boat_detector_forward(x, params))
    assert out.shape == (2, 1, 2, 2), out.shape

    ref = jax.block_until_ready(_reference_forward(x, params))
    assert jnp.allclose(out, ref, rtol=1e-4, atol=1e-5), (
        float(jnp.max(jnp.abs(out - ref))))

    print("KERNEL_OK")
</pallas_src>

<mosaic_0001>
module attributes {stable_mosaic.version = 11 : i64} {
  func.func @_fused_kernel(%arg0: i32, %arg1: memref<1x16x16x1xf32, #tpu.memory_space<vmem>>, %arg2: memref<9x30xf32, #tpu.memory_space<vmem>>, %arg3: memref<1x30xf32, #tpu.memory_space<vmem>>, %arg4: memref<1152x30xf32, #tpu.memory_space<vmem>>, %arg5: memref<1x30xf32, #tpu.memory_space<vmem>>, %arg6: memref<1152x30xf32, #tpu.memory_space<vmem>>, %arg7: memref<1x30xf32, #tpu.memory_space<vmem>>, %arg8: memref<1152x1xf32, #tpu.memory_space<vmem>>, %arg9: memref<1x1xf32, #tpu.memory_space<vmem>>, %arg10: memref<1x4x1xf32, #tpu.memory_space<vmem>>, %arg11: memref<18x18x1xf32, #tpu.memory_space<vmem>>, %arg12: memref<10x10x30xf32, #tpu.memory_space<vmem>>, %arg13: memref<6x6x30xf32, #tpu.memory_space<vmem>>, %arg14: memref<4x4x30xf32, #tpu.memory_space<vmem>>, %arg15: memref<64x1152xf32, #tpu.memory_space<vmem>>, %arg16: memref<16x1152xf32, #tpu.memory_space<vmem>>, %arg17: memref<4x1152xf32, #tpu.memory_space<vmem>>) attributes {dimension_semantics = [#tpu.dimension_semantics<parallel>], iteration_bounds = array<i64: 2>, scalar_prefetch = 0 : i64, scratch_operands = 7 : i64, tpu.core_type = #tpu.core_type<tc>, window_params = [{transform_indices = @transform_0, window_bounds = array<i64: 1, 16, 16, 1>}, {pipeline_mode = #tpu.pipeline_mode<synchronous>, transform_indices = @transform_1, window_bounds = array<i64: 9, 30>}, {pipeline_mode = #tpu.pipeline_mode<synchronous>, transform_indices = @transform_2, window_bounds = array<i64: 1, 30>}, {pipeline_mode = #tpu.pipeline_mode<synchronous>, transform_indices = @transform_3, window_bounds = array<i64: 1152, 30>}, {pipeline_mode = #tpu.pipeline_mode<synchronous>, transform_indices = @transform_4, window_bounds = array<i64: 1, 30>}, {pipeline_mode = #tpu.pipeline_mode<synchronous>, transform_indices = @transform_5, window_bounds = array<i64: 1152, 30>}, {pipeline_mode = #tpu.pipeline_mode<synchronous>, transform_indices = @transform_6, window_bounds = array<i64: 1, 30>}, {pipeline_mode = #tpu.pipeline_mode<synchronous>, transform_indices = @transform_7, window_bounds = array<i64: 1152, 1>}, {pipeline_mode = #tpu.pipeline_mode<synchronous>, transform_indices = @transform_8, window_bounds = array<i64: 1, 1>}, {transform_indices = @transform_9, window_bounds = array<i64: 1, 4, 1>}]} {
    %c0 = arith.constant 0 : index
    %c0_0 = arith.constant 0 : index
    %c0_1 = arith.constant 0 : index
    %c0_2 = arith.constant 0 : index
    %0 = vector.load %arg1[%c0, %c0_0, %c0_1, %c0_2] : memref<1x16x16x1xf32, #tpu.memory_space<vmem>>, vector<1x16x16x1xf32>
    %1 = vector.shape_cast %0 : vector<1x16x16x1xf32> to vector<16x16x1xf32>
    %cst = arith.constant 0.000000e+00 : f32
    %2 = vector.broadcast %cst : f32 to vector<18x18x1xf32>
    %c0_3 = arith.constant 0 : index
    %c0_4 = arith.constant 0 : index
    %c0_5 = arith.constant 0 : index
    %3 = vector.load %arg11[%c0_3, %c0_4, %c0_5] : memref<18x18x1xf32, #tpu.memory_space<vmem>>, vector<18x18x1xf32>
    tpu.vector_store %arg11[%c0_3, %c0_4, %c0_5], %2 {strides = array<i32>} : memref<18x18x1xf32, #tpu.memory_space<vmem>>, vector<18x18x1xf32>,
    %c1 = arith.constant 1 : index
    %c1_6 = arith.constant 1 : index
    %c0_7 = arith.constant 0 : index
    %4 = vector.load %arg11[%c1, %c1_6, %c0_7] : memref<18x18x1xf32, #tpu.memory_space<vmem>>, vector<16x16x1xf32>
    tpu.vector_store %arg11[%c1, %c1_6, %c0_7], %1 {strides = array<i32>} : memref<18x18x1xf32, #tpu.memory_space<vmem>>, vector<16x16x1xf32>,
    %c0_8 = arith.constant 0 : index
    %c0_9 = arith.constant 0 : index
    %5 = vector.load %arg2[%c0_8, %c0_9] : memref<9x30xf32, #tpu.memory_space<vmem>>, vector<9x30xf32>
    %cst_10 = arith.constant 0.000000e+00 : f32
    %6 = vector.broadcast %cst_10 : f32 to vector<16x16x30xf32>
    %c0_11 = arith.constant 0 : index
    %c0_12 = arith.constant 0 : index
    %7 = vector.load %arg3[%c0_11, %c0_12] : memref<1x30xf32, #tpu.memory_space<vmem>>, vector<1x30xf32>
    %8 = vector.shape_cast %7 : vector<1x30xf32> to vector<30xf32>
    %9 = vector.shape_cast %8 : vector<30xf32> to vector<1x1x30xf32>
    %10 = vector.broadcast %9 : vector<1x1x30xf32> to vector<16x16x30xf32>
    %11 = arith.addf %6, %10 : vector<16x16x30xf32>
    %c0_13 = arith.constant 0 : index
    %c0_14 = arith.constant 0 : index
    %c0_15 = arith.constant 0 : index
    %12 = vector.load %arg11[%c0_13, %c0_14, %c0_15] : memref<18x18x1xf32, #tpu.memory_space<vmem>>, vector<16x16x1xf32>
    %13 = vector.extract_strided_slice %5 {offsets = [0, 0], sizes = [1, 30], strides = [1, 1]} : vector<9x30xf32> to vector<1x30xf32>
    %14 = vector.shape_cast %13 : vector<1x30xf32> to vector<30xf32>
    %15 = vector.shape_cast %14 : vector<30xf32> to vector<1x1x30xf32>
    %16 = vector.broadcast %12 : vector<16x16x1xf32> to vector<16x16x30xf32>
    %17 = vector.broadcast %15 : vector<1x1x30xf32> to vector<16x16x30xf32>
    %18 = arith.mulf %16, %17 : vector<16x16x30xf32>
    %19 = arith.addf %11, %18 : vector<16x16x30xf32>
    %c0_16 = arith.constant 0 : index
    %c1_17 = arith.constant 1 : index
    %c0_18 = arith.constant 0 : index
    %20 = vector.load %arg11[%c0_16, %c1_17, %c0_18] : memref<18x18x1xf32, #tpu.memory_space<vmem>>, vector<16x16x1xf32>
    %21 = vector.extract_strided_slice %5 {offsets = [1, 0], sizes = [1, 30], strides = [1, 1]} : vector<9x30xf32> to vector<1x30xf32>
    %22 = vector.shape_cast %21 : vector<1x30xf32> to vector<30xf32>
    %23 = vector.shape_cast %22 : vector<30xf32> to vector<1x1x30xf32>
    %24 = vector.broadcast %20 : vector<16x16x1xf32> to vector<16x16x30xf32>
    %25 = vector.broadcast %23 : vector<1x1x30xf32> to vector<16x16x30xf32>
    %26 = arith.mulf %24, %25 : vector<16x16x30xf32>
    %27 = arith.addf %19, %26 : vector<16x16x30xf32>
    %c0_19 = arith.constant 0 : index
    %c2 = arith.constant 2 : index
    %c0_20 = arith.constant 0 : index
    %28 = vector.load %arg11[%c0_19, %c2, %c0_20] : memref<18x18x1xf32, #tpu.memory_space<vmem>>, vector<16x16x1xf32>
    %29 = vector.extract_strided_slice %5 {offsets = [2, 0], sizes = [1, 30], strides = [1, 1]} : vector<9x30xf32> to vector<1x30xf32>
    %30 = vector.shape_cast %29 : vector<1x30xf32> to vector<30xf32>
    %31 = vector.shape_cast %30 : vector<30xf32> to vector<1x1x30xf32>
    %32 = vector.broadcast %28 : vector<16x16x1xf32> to vector<16x16x30xf32>
    %33 = vector.broadcast %31 : vector<1x1x30xf32> to vector<16x16x30xf32>
    %34 = arith.mulf %32, %33 : vector<16x16x30xf32>
    %35 = arith.addf %27, %34 : vector<16x16x30xf32>
    %c1_21 = arith.constant 1 : index
    %c0_22 = arith.constant 0 : index
    %c0_23 = arith.constant 0 : index
    %36 = vector.load %arg11[%c1_21, %c0_22, %c0_23] : memref<18x18x1xf32, #tpu.memory_space<vmem>>, vector<16x16x1xf32>
    %37 = vector.extract_strided_slice %5 {offsets = [3, 0], sizes = [1, 30], strides = [1, 1]} : vector<9x30xf32> to vector<1x30xf32>
    %38 = vector.shape_cast %37 : vector<1x30xf32> to vector<30xf32>
    %39 = vector.shape_cast %38 : vector<30xf32> to vector<1x1x30xf32>
    %40 = vector.broadcast %36 : vector<16x16x1xf32> to vector<16x16x30xf32>
    %41 = vector.broadcast %39 : vector<1x1x30xf32> to vector<16x16x30xf32>
    %42 = arith.mulf %40, %41 : vector<16x16x30xf32>
    %43 = arith.addf %35, %42 : vector<16x16x30xf32>
    %c1_24 = arith.constant 1 : index
    %c1_25 = arith.constant 1 : index
    %c0_26 = arith.constant 0 : index
    %44 = vector.load %arg11[%c1_24, %c1_25, %c0_26] : memref<18x18x1xf32, #tpu.memory_space<vmem>>, vector<16x16x1xf32>
    %45 = vector.extract_strided_slice %5 {offsets = [4, 0], sizes = [1, 30], strides = [1, 1]} : vector<9x30xf32> to vector<1x30xf32>
    %46 = vector.shape_cast %45 : vector<1x30xf32> to vector<30xf32>
    %47 = vector.shape_cast %46 : vector<30xf32> to vector<1x1x30xf32>
    %48 = vector.broadcast %44 : vector<16x16x1xf32> to vector<16x16x30xf32>
    %49 = vector.broadcast %47 : vector<1x1x30xf32> to vector<16x16x30xf32>
    %50 = arith.mulf %48, %49 : vector<16x16x30xf32>
    %51 = arith.addf %43, %50 : vector<16x16x30xf32>
    %c1_27 = arith.constant 1 : index
    %c2_28 = arith.constant 2 : index
    %c0_29 = arith.constant 0 : index
    %52 = vector.load %arg11[%c1_27, %c2_28, %c0_29] : memref<18x18x1xf32, #tpu.memory_space<vmem>>, vector<16x16x1xf32>
    %53 = vector.extract_strided_slice %5 {offsets = [5, 0], sizes = [1, 30], strides = [1, 1]} : vector<9x30xf32> to vector<1x30xf32>
    %54 = vector.shape_cast %53 : vector<1x30xf32> to vector<30xf32>
    %55 = vector.shape_cast %54 : vector<30xf32> to vector<1x1x30xf32>
    %56 = vector.broadcast %52 : vector<16x16x1xf32> to vector<16x16x30xf32>
    %57 = vector.broadcast %55 : vector<1x1x30xf32> to vector<16x16x30xf32>
    %58 = arith.mulf %56, %57 : vector<16x16x30xf32>
    %59 = arith.addf %51, %58 : vector<16x16x30xf32>
    %c2_30 = arith.constant 2 : index
    %c0_31 = arith.constant 0 : index
    %c0_32 = arith.constant 0 : index
    %60 = vector.load %arg11[%c2_30, %c0_31, %c0_32] : memref<18x18x1xf32, #tpu.memory_space<vmem>>, vector<16x16x1xf32>
    %61 = vector.extract_strided_slice %5 {offsets = [6, 0], sizes = [1, 30], strides = [1, 1]} : vector<9x30xf32> to vector<1x30xf32>
    %62 = vector.shape_cast %61 : vector<1x30xf32> to vector<30xf32>
    %63 = vector.shape_cast %62 : vector<30xf32> to vector<1x1x30xf32>
    %64 = vector.broadcast %60 : vector<16x16x1xf32> to vector<16x16x30xf32>
    %65 = vector.broadcast %63 : vector<1x1x30xf32> to vector<16x16x30xf32>
    %66 = arith.mulf %64, %65 : vector<16x16x30xf32>
    %67 = arith.addf %59, %66 : vector<16x16x30xf32>
    %c2_33 = arith.constant 2 : index
    %c1_34 = arith.constant 1 : index
    %c0_35 = arith.constant 0 : index
    %68 = vector.load %arg11[%c2_33, %c1_34, %c0_35] : memref<18x18x1xf32, #tpu.memory_space<vmem>>, vector<16x16x1xf32>
    %69 = vector.extract_strided_slice %5 {offsets = [7, 0], sizes = [1, 30], strides = [1, 1]} : vector<9x30xf32> to vector<1x30xf32>
    %70 = vector.shape_cast %69 : vector<1x30xf32> to vector<30xf32>
    %71 = vector.shape_cast %70 : vector<30xf32> to vector<1x1x30xf32>
    %72 = vector.broadcast %68 : vector<16x16x1xf32> to vector<16x16x30xf32>
    %73 = vector.broadcast %71 : vector<1x1x30xf32> to vector<16x16x30xf32>
    %74 = arith.mulf %72, %73 : vector<16x16x30xf32>
    %75 = arith.addf %67, %74 : vector<16x16x30xf32>
    %c2_36 = arith.constant 2 : index
    %c2_37 = arith.constant 2 : index
    %c0_38 = arith.constant 0 : index
    %76 = vector.load %arg11[%c2_36, %c2_37, %c0_38] : memref<18x18x1xf32, #tpu.memory_space<vmem>>, vector<16x16x1xf32>
    %77 = vector.extract_strided_slice %5 {offsets = [8, 0], sizes = [1, 30], strides = [1, 1]} : vector<9x30xf32> to vector<1x30xf32>
    %78 = vector.shape_cast %77 : vector<1x30xf32> to vector<30xf32>
    %79 = vector.shape_cast %78 : vector<30xf32> to vector<1x1x30xf32>
    %80 = vector.broadcast %76 : vector<16x16x1xf32> to vector<16x16x30xf32>
    %81 = vector.broadcast %79 : vector<1x1x30xf32> to vector<16x16x30xf32>
    %82 = arith.mulf %80, %81 : vector<16x16x30xf32>
    %83 = arith.addf %75, %82 : vector<16x16x30xf32>
    %84 = vector.shape_cast %83 : vector<16x16x30xf32> to vector<8x2x16x30xf32>
    %cst_39 = arith.constant dense<0xFF800000> : vector<8x16x30xf32>
    %85 = vector.multi_reduction <maximumf>, %84, %cst_39 [1] : vector<8x2x16x30xf32> to vector<8x16x30xf32>
    %86 = vector.shape_cast %85 : vector<8x16x30xf32> to vector<8x8x2x30xf32>
    %cst_40 = arith.constant dense<0xFF800000> : vector<8x8x30xf32>
    %87 = vector.multi_reduction <maximumf>, %86, %cst_40 [2] : vector<8x8x2x30xf32> to vector<8x8x30xf32>
    %cst_41 = arith.constant 0.000000e+00 : f32
    %88 = vector.broadcast %cst_41 : f32 to vector<8x8x30xf32>
    %89 = arith.maximumf %87, %88 : vector<8x8x30xf32>
    %cst_42 = arith.constant 0.000000e+00 : f32
    %90 = vector.broadcast %cst_42 : f32 to vector<10x10x30xf32>
    %c0_43 = arith.constant 0 : index
    %c0_44 = arith.constant 0 : index
    %c0_45 = arith.constant 0 : index
    %91 = vector.load %arg12[%c0_43, %c0_44, %c0_45] : memref<10x10x30xf32, #tpu.memory_space<vmem>>, vector<10x10x30xf32>
    tpu.vector_store %arg12[%c0_43, %c0_44, %c0_45], %90 {strides = array<i32>} : memref<10x10x30xf32, #tpu.memory_space<vmem>>, vector<10x10x30xf32>,
    %c1_46 = arith.constant 1 : index
    %c1_47 = arith.constant 1 : index
    %c0_48 = arith.constant 0 : index
    %92 = vector.load %arg12[%c1_46, %c1_47, %c0_48] : memref<10x10x30xf32, #tpu.memory_space<vmem>>, vector<8x8x30xf32>
    tpu.vector_store %arg12[%c1_46, %c1_47, %c0_48], %89 {strides = array<i32>} : memref<10x10x30xf32, #tpu.memory_space<vmem>>, vector<8x8x30xf32>,
    %cst_49 = arith.constant 0.000000e+00 : f32
    %93 = vector.broadcast %cst_49 : f32 to vector<64x1152xf32>
    %c0_50 = arith.constant 0 : index
    %c0_51 = arith.constant 0 : index
    %94 = vector.load %arg15[%c0_50, %c0_51] : memref<64x1152xf32, #tpu.memory_space<vmem>>, vector<64x1152xf32>
    tpu.vector_store %arg15[%c0_50, %c0_51], %93 {strides = array<i32>} : memref<64x1152xf32, #tpu.memory_space<vmem>>, vector<64x1152xf32>,
    %c0_52 = arith.constant 0 : index
    %c0_53 = arith.constant 0 : index
    %c0_54 = arith.constant 0 : index
    %95 = vector.load %arg12[%c0_52, %c0_53, %c0_54] : memref<10x10x30xf32, #tpu.memory_space<vmem>>, vector<8x8x30xf32>
    %96 = vector.shape_cast %95 : vector<8x8x30xf32> to vector<64x30xf32>
    %c0_55 = arith.constant 0 : index
    %c0_56 = arith.constant 0 : index
    %97 = vector.load %arg15[%c0_55, %c0_56] : memref<64x1152xf32, #tpu.memory_space<vmem>>, vector<64x30xf32>
    tpu.vector_store %arg15[%c0_55, %c0_56], %96 {strides = array<i32>} : memref<64x1152xf32, #tpu.memory_space<vmem>>, vector<64x30xf32>,
    %c0_57 = arith.constant 0 : index
    %c1_58 = arith.constant 1 : index
    %c0_59 = arith.constant 0 : index
    %98 = vector.load %arg12[%c0_57, %c1_58, %c0_59] : memref<10x10x30xf32, #tpu.memory_space<vmem>>, vector<8x8x30xf32>
    %99 = vector.shape_cast %98 : vector<8x8x30xf32> to vector<64x30xf32>
    %c0_60 = arith.constant 0 : index
    %c128 = arith.constant 128 : index
    %100 = vector.load %arg15[%c0_60, %c128] : memref<64x1152xf32, #tpu.memory_space<vmem>>, vector<64x30xf32>
    tpu.vector_store %arg15[%c0_60, %c128], %99 {strides = array<i32>} : memref<64x1152xf32, #tpu.memory_space<vmem>>, vector<64x30xf32>,
    %c0_61 = arith.constant 0 : index
    %c2_62 = arith.constant 2 : index
    %c0_63 = arith.constant 0 : index
    %101 = vector.load %arg12[%c0_61, %c2_62, %c0_63] : memref<10x10x30xf32, #tpu.memory_space<vmem>>, vector<8x8x30xf32>
    %102 = vector.shape_cast %101 : vector<8x8x30xf32> to vector<64x30xf32>
    %c0_64 = arith.constant 0 : index
    %c256 = arith.constant 256 : index
    %103 = vector.load %arg15[%c0_64, %c256] : memref<64x1152xf32, #tpu.memory_space<vmem>>, vector<64x30xf32>
    tpu.vector_store %arg15[%c0_64, %c256], %102 {strides = array<i32>} : memref<64x1152xf32, #tpu.memory_space<vmem>>, vector<64x30xf32>,
    %c1_65 = arith.constant 1 : index
    %c0_66 = arith.constant 0 : index
    %c0_67 = arith.constant 0 : index
    %104 = vector.load %arg12[%c1_65, %c0_66, %c0_67] : memref<10x10x30xf32, #tpu.memory_space<vmem>>, vector<8x8x30xf32>
    %105 = vector.shape_cast %104 : vector<8x8x30xf32> to vector<64x30xf32>
    %c0_68 = arith.constant 0 : index
    %c384 = arith.constant 384 : index
    %106 = vector.load %arg15[%c0_68, %c384] : memref<64x1152xf32, #tpu.memory_space<vmem>>, vector<64x30xf32>
    tpu.vector_store %arg15[%c0_68, %c384], %105 {strides = array<i32>} : memref<64x1152xf32, #tpu.memory_space<vmem>>, vector<64x30xf32>,
    %c1_69 = arith.constant 1 : index
    %c1_70 = arith.constant 1 : index
    %c0_71 = arith.constant 0 : index
    %107 = vector.load %arg12[%c1_69, %c1_70, %c0_71] : memref<10x10x30xf32, #tpu.memory_space<vmem>>, vector<8x8x30xf32>
    %108 = vector.shape_cast %107 : vector<8x8x30xf32> to vector<64x30xf32>
    %c0_72 = arith.constant 0 : index
    %c512 = arith.constant 512 : index
    %109 = vector.load %arg15[%c0_72, %c512] : memref<64x1152xf32, #tpu.memory_space<vmem>>, vector<64x30xf32>
    tpu.vector_store %arg15[%c0_72, %c512], %108 {strides = array<i32>} : memref<64x1152xf32, #tpu.memory_space<vmem>>, vector<64x30xf32>,
    %c1_73 = arith.constant 1 : index
    %c2_74 = arith.constant 2 : index
    %c0_75 = arith.constant 0 : index
    %110 = vector.load %arg12[%c1_73, %c2_74, %c0_75] : memref<10x10x30xf32, #tpu.memory_space<vmem>>, vector<8x8x30xf32>
    %111 = vector.shape_cast %110 : vector<8x8x30xf32> to vector<64x30xf32>
    %c0_76 = arith.constant 0 : index
    %c640 = arith.constant 640 : index
    %112 = vector.load %arg15[%c0_76, %c640] : memref<64x1152xf32, #tpu.memory_space<vmem>>, vector<64x30xf32>
    tpu.vector_store %arg15[%c0_76, %c640], %111 {strides = array<i32>} : memref<64x1152xf32, #tpu.memory_space<vmem>>, vector<64x30xf32>,
    %c2_77 = arith.constant 2 : index
    %c0_78 = arith.constant 0 : index
    %c0_79 = arith.constant 0 : index
    %113 = vector.load %arg12[%c2_77, %c0_78, %c0_79] : memref<10x10x30xf32, #tpu.memory_space<vmem>>, vector<8x8x30xf32>
    %114 = vector.shape_cast %113 : vector<8x8x30xf32> to vector<64x30xf32>
    %c0_80 = arith.constant 0 : index
    %c768 = arith.constant 768 : index
    %115 = vector.load %arg15[%c0_80, %c768] : memref<64x1152xf32, #tpu.memory_space<vmem>>, vector<64x30xf32>
    tpu.vector_store %arg15[%c0_80, %c768], %114 {strides = array<i32>} : memref<64x1152xf32, #tpu.memory_space<vmem>>, vector<64x30xf32>,
    %c2_81 = arith.constant 2 : index
    %c1_82 = arith.constant 1 : index
    %c0_83 = arith.constant 0 : index
    %116 = vector.load %arg12[%c2_81, %c1_82, %c0_83] : memref<10x10x30xf32, #tpu.memory_space<vmem>>, vector<8x8x30xf32>
    %117 = vector.shape_cast %116 : vector<8x8x30xf32> to vector<64x30xf32>
    %c0_84 = arith.constant 0 : index
    %c896 = arith.constant 896 : index
    %118 = vector.load %arg15[%c0_84, %c896] : memref<64x1152xf32, #tpu.memory_space<vmem>>, vector<64x30xf32>
    tpu.vector_store %arg15[%c0_84, %c896], %117 {strides = array<i32>} : memref<64x1152xf32, #tpu.memory_space<vmem>>, vector<64x30xf32>,
    %c2_85 = arith.constant 2 : index
    %c2_86 = arith.constant 2 : index
    %c0_87 = arith.constant 0 : index
    %119 = vector.load %arg12[%c2_85, %c2_86, %c0_87] : memref<10x10x30xf32, #tpu.memory_space<vmem>>, vector<8x8x30xf32>
    %120 = vector.shape_cast %119 : vector<8x8x30xf32> to vector<64x30xf32>
    %c0_88 = arith.constant 0 : index
    %c1024 = arith.constant 1024 : index
    %121 = vector.load %arg15[%c0_88, %c1024] : memref<64x1152xf32, #tpu.memory_space<vmem>>, vector<64x30xf32>
    tpu.vector_store %arg15[%c0_88, %c1024], %120 {strides = array<i32>} : memref<64x1152xf32, #tpu.memory_space<vmem>>, vector<64x30xf32>,
    %c0_89 = arith.constant 0 : index
    %c0_90 = arith.constant 0 : index
    %122 = vector.load %arg15[%c0_89, %c0_90] : memref<64x1152xf32, #tpu.memory_space<vmem>>, vector<64x1152xf32>
    %c0_91 = arith.constant 0 : index
    %c0_92 = arith.constant 0 : index
    %123 = vector.load %arg4[%c0_91, %c0_92] : memref<1152x30xf32, #tpu.memory_space<vmem>>, vector<1152x30xf32>
    %cst_93 = arith.constant dense<0.000000e+00> : vector<64x30xf32>
    %124 = tpu.matmul %122, %123, %cst_93 {dimension_numbers = #tpu.dot_dimension_numbers<[1], [0], [0], [1], [0, 0, 1, 1], [], []>} : vector<64x1152xf32>, vector<1152x30xf32>, vector<64x30xf32> -> vector<64x30xf32>
    %c0_94 = arith.constant 0 : index
    %c0_95 = arith.constant 0 : index
    %125 = vector.load %arg5[%c0_94, %c0_95] : memref<1x30xf32, #tpu.memory_space<vmem>>, vector<1x30xf32>
    %126 = vector.shape_cast %125 : vector<1x30xf32> to vector<30xf32>
    %127 = vector.shape_cast %126 : vector<30xf32> to vector<1x30xf32>
    %128 = vector.broadcast %127 : vector<1x30xf32> to vector<64x30xf32>
    %129 = arith.addf %124, %128 : vector<64x30xf32>
    %130 = vector.shape_cast %129 : vector<64x30xf32> to vector<8x8x30xf32>
    %131 = vector.shape_cast %130 : vector<8x8x30xf32> to vector<4x2x8x30xf32>
    %cst_96 = arith.constant dense<0xFF800000> : vector<4x8x30xf32>
    %132 = vector.multi_reduction <maximumf>, %131, %cst_96 [1] : vector<4x2x8x30xf32> to vector<4x8x30xf32>
    %133 = vector.shape_cast %132 : vector<4x8x30xf32> to vector<4x4x2x30xf32>
    %cst_97 = arith.constant dense<0xFF800000> : vector<4x4x30xf32>
    %134 = vector.multi_reduction <maximumf>, %133, %cst_97 [2] : vector<4x4x2x30xf32> to vector<4x4x30xf32>
    %cst_98 = arith.constant 0.000000e+00 : f32
    %135 = vector.broadcast %cst_98 : f32 to vector<4x4x30xf32>
    %136 = arith.maximumf %134, %135 : vector<4x4x30xf32>
    %cst_99 = arith.constant 0.000000e+00 : f32
    %137 = vector.broadcast %cst_99 : f32 to vector<6x6x30xf32>
    %c0_100 = arith.constant 0 : index
    %c0_101 = arith.constant 0 : index
    %c0_102 = arith.constant 0 : index
    %138 = vector.load %arg13[%c0_100, %c0_101, %c0_102] : memref<6x6x30xf32, #tpu.memory_space<vmem>>, vector<6x6x30xf32>
    tpu.vector_store %arg13[%c0_100, %c0_101, %c0_102], %137 {strides = array<i32>} : memref<6x6x30xf32, #tpu.memory_space<vmem>>, vector<6x6x30xf32>,
    %c1_103 = arith.constant 1 : index
    %c1_104 = arith.constant 1 : index
    %c0_105 = arith.constant 0 : index
    %139 = vector.load %arg13[%c1_103, %c1_104, %c0_105] : memref<6x6x30xf32, #tpu.memory_space<vmem>>, vector<4x4x30xf32>
    tpu.vector_store %arg13[%c1_103, %c1_104, %c0_105], %136 {strides = array<i32>} : memref<6x6x30xf32, #tpu.memory_space<vmem>>, vector<4x4x30xf32>,
    %cst_106 = arith.constant 0.000000e+00 : f32
    %140 = vector.broadcast %cst_106 : f32 to vector<16x1152xf32>
    %c0_107 = arith.constant 0 : index
    %c0_108 = arith.constant 0 : index
    %141 = vector.load %arg16[%c0_107, %c0_108] : memref<16x1152xf32, #tpu.memory_space<vmem>>, vector<16x1152xf32>
    tpu.vector_store %arg16[%c0_107, %c0_108], %140 {strides = array<i32>} : memref<16x1152xf32, #tpu.memory_space<vmem>>, vector<16x1152xf32>,
    %c0_109 = arith.constant 0 : index
    %c0_110 = arith.constant 0 : index
    %c0_111 = arith.constant 0 : index
    %142 = vector.load %arg13[%c0_109, %c0_110, %c0_111] : memref<6x6x30xf32, #tpu.memory_space<vmem>>, vector<4x4x30xf32>
    %143 = vector.shape_cast %142 : vector<4x4x30xf32> to vector<16x30xf32>
    %c0_112 = arith.constant 0 : index
    %c0_113 = arith.constant 0 : index
    %144 = vector.load %arg16[%c0_112, %c0_113] : memref<16x1152xf32, #tpu.memory_space<vmem>>, vector<16x30xf32>
    tpu.vector_store %arg16[%c0_112, %c0_113], %143 {strides = array<i32>} : memref<16x1152xf32, #tpu.memory_space<vmem>>, vector<16x30xf32>,
    %c0_114 = arith.constant 0 : index
    %c1_115 = arith.constant 1 : index
    %c0_116 = arith.constant 0 : index
    %145 = vector.load %arg13[%c0_114, %c1_115, %c0_116] : memref<6x6x30xf32, #tpu.memory_space<vmem>>, vector<4x4x30xf32>
    %146 = vector.shape_cast %145 : vector<4x4x30xf32> to vector<16x30xf32>
    %c0_117 = arith.constant 0 : index
    %c128_118 = arith.constant 128 : index
    %147 = vector.load %arg16[%c0_117, %c128_118] : memref<16x1152xf32, #tpu.memory_space<vmem>>, vector<16x30xf32>
    tpu.vector_store %arg16[%c0_117, %c128_118], %146 {strides = array<i32>} : memref<16x1152xf32, #tpu.memory_space<vmem>>, vector<16x30xf32>,
    %c0_119 = arith.constant 0 : index
    %c2_120 = arith.constant 2 : index
    %c0_121 = arith.constant 0 : index
    %148 = vector.load %arg13[%c0_119, %c2_120, %c0_121] : memref<6x6x30xf32, #tpu.memory_space<vmem>>, vector<4x4x30xf32>
    %149 = vector.shape_cast %148 : vector<4x4x30xf32> to vector<16x30xf32>
    %c0_122 = arith.constant 0 : index
    %c256_123 = arith.constant 256 : index
    %150 = vector.load %arg16[%c0_122, %c256_123] : memref<16x1152xf32, #tpu.memory_space<vmem>>, vector<16x30xf32>
    tpu.vector_store %arg16[%c0_122, %c256_123], %149 {strides = array<i32>} : memref<16x1152xf32, #tpu.memory_space<vmem>>, vector<16x30xf32>,
    %c1_124 = arith.constant 1 : index
    %c0_125 = arith.constant 0 : index
    %c0_126 = arith.constant 0 : index
    %151 = vector.load %arg13[%c1_124, %c0_125, %c0_126] : memref<6x6x30xf32, #tpu.memory_space<vmem>>, vector<4x4x30xf32>
    %152 = vector.shape_cast %151 : vector<4x4x30xf32> to vector<16x30xf32>
    %c0_127 = arith.constant 0 : index
    %c384_128 = arith.constant 384 : index
    %153 = vector.load %arg16[%c0_127, %c384_128] : memref<16x1152xf32, #tpu.memory_space<vmem>>, vector<16x30xf32>
    tpu.vector_store %arg16[%c0_127, %c384_128], %152 {strides = array<i32>} : memref<16x1152xf32, #tpu.memory_space<vmem>>, vector<16x30xf32>,
    %c1_129 = arith.constant 1 : index
    %c1_130 = arith.constant 1 : index
    %c0_131 = arith.constant 0 : index
    %154 = vector.load %arg13[%c1_129, %c1_130, %c0_131] : memref<6x6x30xf32, #tpu.memory_space<vmem>>, vector<4x4x30xf32>
    %155 = vector.shape_cast %154 : vector<4x4x30xf32> to vector<16x30xf32>
    %c0_132 = arith.constant 0 : index
    %c512_133 = arith.constant 512 : index
    %156 = vector.load %arg16[%c0_132, %c512_133] : memref<16x1152xf32, #tpu.memory_space<vmem>>, vector<16x30xf32>
    tpu.vector_store %arg16[%c0_132, %c512_133], %155 {strides = array<i32>} : memref<16x1152xf32, #tpu.memory_space<vmem>>, vector<16x30xf32>,
    %c1_134 = arith.constant 1 : index
    %c2_135 = arith.constant 2 : index
    %c0_136 = arith.constant 0 : index
    %157 = vector.load %arg13[%c1_134, %c2_135, %c0_136] : memref<6x6x30xf32, #tpu.memory_space<vmem>>, vector<4x4x30xf32>
    %158 = vector.shape_cast %157 : vector<4x4x30xf32> to vector<16x30xf32>
    %c0_137 = arith.constant 0 : index
    %c640_138 = arith.constant 640 : index
    %159 = vector.load %arg16[%c0_137, %c640_138] : memref<16x1152xf32, #tpu.memory_space<vmem>>, vector<16x30xf32>
    tpu.vector_store %arg16[%c0_137, %c640_138], %158 {strides = array<i32>} : memref<16x1152xf32, #tpu.memory_space<vmem>>, vector<16x30xf32>,
    %c2_139 = arith.constant 2 : index
    %c0_140 = arith.constant 0 : index
    %c0_141 = arith.constant 0 : index
    %160 = vector.load %arg13[%c2_139, %c0_140, %c0_141] : memref<6x6x30xf32, #tpu.memory_space<vmem>>, vector<4x4x30xf32>
    %161 = vector.shape_cast %160 : vector<4x4x30xf32> to vector<16x30xf32>
    %c0_142 = arith.constant 0 : index
    %c768_143 = arith.constant 768 : index
    %162 = vector.load %arg16[%c0_142, %c768_143] : memref<16x1152xf32, #tpu.memory_space<vmem>>, vector<16x30xf32>
    tpu.vector_store %arg16[%c0_142, %c768_143], %161 {strides = array<i32>} : memref<16x1152xf32, #tpu.memory_space<vmem>>, vector<16x30xf32>,
    %c2_144 = arith.constant 2 : index
    %c1_145 = arith.constant 1 : index
    %c0_146 = arith.constant 0 : index
    %163 = vector.load %arg13[%c2_144, %c1_145, %c0_146] : memref<6x6x30xf32, #tpu.memory_space<vmem>>, vector<4x4x30xf32>
    %164 = vector.shape_cast %163 : vector<4x4x30xf32> to vector<16x30xf32>
    %c0_147 = arith.constant 0 : index
    %c896_148 = arith.constant 896 : index
    %165 = vector.load %arg16[%c0_147, %c896_148] : memref<16x1152xf32, #tpu.memory_space<vmem>>, vector<16x30xf32>
    tpu.vector_store %arg16[%c0_147, %c896_148], %164 {strides = array<i32>} : memref<16x1152xf32, #tpu.memory_space<vmem>>, vector<16x30xf32>,
    %c2_149 = arith.constant 2 : index
    %c2_150 = arith.constant 2 : index
    %c0_151 = arith.constant 0 : index
    %166 = vector.load %arg13[%c2_149, %c2_150, %c0_151] : memref<6x6x30xf32, #tpu.memory_space<vmem>>, vector<4x4x30xf32>
    %167 = vector.shape_cast %166 : vector<4x4x30xf32> to vector<16x30xf32>
    %c0_152 = arith.constant 0 : index
    %c1024_153 = arith.constant 1024 : index
    %168 = vector.load %arg16[%c0_152, %c1024_153] : memref<16x1152xf32, #tpu.memory_space<vmem>>, vector<16x30xf32>
    tpu.vector_store %arg16[%c0_152, %c1024_153], %167 {strides = array<i32>} : memref<16x1152xf32, #tpu.memory_space<vmem>>, vector<16x30xf32>,
    %c0_154 = arith.constant 0 : index
    %c0_155 = arith.constant 0 : index
    %169 = vector.load %arg16[%c0_154, %c0_155] : memref<16x1152xf32, #tpu.memory_space<vmem>>, vector<16x1152xf32>
    %c0_156 = arith.constant 0 : index
    %c0_157 = arith.constant 0 : index
    %170 = vector.load %arg6[%c0_156, %c0_157] : memref<1152x30xf32, #tpu.memory_space<vmem>>, vector<1152x30xf32>
    %cst_158 = arith.constant dense<0.000000e+00> : vector<16x30xf32>
    %171 = tpu.matmul %169, %170, %cst_158 {dimension_numbers = #tpu.dot_dimension_numbers<[1], [0], [0], [1], [0, 0, 1, 1], [], []>} : vector<16x1152xf32>, vector<1152x30xf32>, vector<16x30xf32> -> vector<16x30xf32>
    %c0_159 = arith.constant 0 : index
    %c0_160 = arith.constant 0 : index
    %172 = vector.load %arg7[%c0_159, %c0_160] : memref<1x30xf32, #tpu.memory_space<vmem>>, vector<1x30xf32>
    %173 = vector.shape_cast %172 : vector<1x30xf32> to vector<30xf32>
    %174 = vector.shape_cast %173 : vector<30xf32> to vector<1x30xf32>
    %175 = vector.broadcast %174 : vector<1x30xf32> to vector<16x30xf32>
    %176 = arith.addf %171, %175 : vector<16x30xf32>
    %177 = vector.shape_cast %176 : vector<16x30xf32> to vector<4x4x30xf32>
    %178 = vector.shape_cast %177 : vector<4x4x30xf32> to vector<2x2x4x30xf32>
    %cst_161 = arith.constant dense<0xFF800000> : vector<2x4x30xf32>
    %179 = vector.multi_reduction <maximumf>, %178, %cst_161 [1] : vector<2x2x4x30xf32> to vector<2x4x30xf32>
    %180 = vector.shape_cast %179 : vector<2x4x30xf32> to vector<2x2x2x30xf32>
    %cst_162 = arith.constant dense<0xFF800000> : vector<2x2x30xf32>
    %181 = vector.multi_reduction <maximumf>, %180, %cst_162 [2] : vector<2x2x2x30xf32> to vector<2x2x30xf32>
    %cst_163 = arith.constant 0.000000e+00 : f32
    %182 = vector.broadcast %cst_163 : f32 to vector<2x2x30xf32>
    %183 = arith.maximumf %181, %182 : vector<2x2x30xf32>
    %cst_164 = arith.constant 0.000000e+00 : f32
    %184 = vector.broadcast %cst_164 : f32 to vector<4x4x30xf32>
    %c0_165 = arith.constant 0 : index
    %c0_166 = arith.constant 0 : index
    %c0_167 = arith.constant 0 : index
    %185 = vector.load %arg14[%c0_165, %c0_166, %c0_167] : memref<4x4x30xf32, #tpu.memory_space<vmem>>, vector<4x4x30xf32>
    tpu.vector_store %arg14[%c0_165, %c0_166, %c0_167], %184 {strides = array<i32>} : memref<4x4x30xf32, #tpu.memory_space<vmem>>, vector<4x4x30xf32>,
    %c1_168 = arith.constant 1 : index
    %c1_169 = arith.constant 1 : index
    %c0_170 = arith.constant 0 : index
    %186 = vector.load %arg14[%c1_168, %c1_169, %c0_170] : memref<4x4x30xf32, #tpu.memory_space<vmem>>, vector<2x2x30xf32>
    tpu.vector_store %arg14[%c1_168, %c1_169, %c0_170], %183 {strides = array<i32>} : memref<4x4x30xf32, #tpu.memory_space<vmem>>, vector<2x2x30xf32>,
    %cst_171 = arith.constant 0.000000e+00 : f32
    %187 = vector.broadcast %cst_171 : f32 to vector<4x1152xf32>
    %c0_172 = arith.constant 0 : index
    %c0_173 = arith.constant 0 : index
    %188 = vector.load %arg17[%c0_172, %c0_173] : memref<4x1152xf32, #tpu.memory_space<vmem>>, vector<4x1152xf32>
    tpu.vector_store %arg17[%c0_172, %c0_173], %187 {strides = array<i32>} : memref<4x1152xf32, #tpu.memory_space<vmem>>, vector<4x1152xf32>,
    %c0_174 = arith.constant 0 : index
    %c0_175 = arith.constant 0 : index
    %c0_176 = arith.constant 0 : index
    %189 = vector.load %arg14[%c0_174, %c0_175, %c0_176] : memref<4x4x30xf32, #tpu.memory_space<vmem>>, vector<2x2x30xf32>
    %190 = vector.shape_cast %189 : vector<2x2x30xf32> to vector<4x30xf32>
    %c0_177 = arith.constant 0 : index
    %c0_178 = arith.constant 0 : index
    %191 = vector.load %arg17[%c0_177, %c0_178] : memref<4x1152xf32, #tpu.memory_space<vmem>>, vector<4x30xf32>
    tpu.vector_store %arg17[%c0_177, %c0_178], %190 {strides = array<i32>} : memref<4x1152xf32, #tpu.memory_space<vmem>>, vector<4x30xf32>,
    %c0_179 = arith.constant 0 : index
    %c1_180 = arith.constant 1 : index
    %c0_181 = arith.constant 0 : index
    %192 = vector.load %arg14[%c0_179, %c1_180, %c0_181] : memref<4x4x30xf32, #tpu.memory_space<vmem>>, vector<2x2x30xf32>
    %193 = vector.shape_cast %192 : vector<2x2x30xf32> to vector<4x30xf32>
    %c0_182 = arith.constant 0 : index
    %c128_183 = arith.constant 128 : index
    %194 = vector.load %arg17[%c0_182, %c128_183] : memref<4x1152xf32, #tpu.memory_space<vmem>>, vector<4x30xf32>
    tpu.vector_store %arg17[%c0_182, %c128_183], %193 {strides = array<i32>} : memref<4x1152xf32, #tpu.memory_space<vmem>>, vector<4x30xf32>,
    %c0_184 = arith.constant 0 : index
    %c2_185 = arith.constant 2 : index
    %c0_186 = arith.constant 0 : index
    %195 = vector.load %arg14[%c0_184, %c2_185, %c0_186] : memref<4x4x30xf32, #tpu.memory_space<vmem>>, vector<2x2x30xf32>
    %196 = vector.shape_cast %195 : vector<2x2x30xf32> to vector<4x30xf32>
    %c0_187 = arith.constant 0 : index
    %c256_188 = arith.constant 256 : index
    %197 = vector.load %arg17[%c0_187, %c256_188] : memref<4x1152xf32, #tpu.memory_space<vmem>>, vector<4x30xf32>
    tpu.vector_store %arg17[%c0_187, %c256_188], %196 {strides = array<i32>} : memref<4x1152xf32, #tpu.memory_space<vmem>>, vector<4x30xf32>,
    %c1_189 = arith.constant 1 : index
    %c0_190 = arith.constant 0 : index
    %c0_191 = arith.constant 0 : index
    %198 = vector.load %arg14[%c1_189, %c0_190, %c0_191] : memref<4x4x30xf32, #tpu.memory_space<vmem>>, vector<2x2x30xf32>
    %199 = vector.shape_cast %198 : vector<2x2x30xf32> to vector<4x30xf32>
    %c0_192 = arith.constant 0 : index
    %c384_193 = arith.constant 384 : index
    %200 = vector.load %arg17[%c0_192, %c384_193] : memref<4x1152xf32, #tpu.memory_space<vmem>>, vector<4x30xf32>
    tpu.vector_store %arg17[%c0_192, %c384_193], %199 {strides = array<i32>} : memref<4x1152xf32, #tpu.memory_space<vmem>>, vector<4x30xf32>,
    %c1_194 = arith.constant 1 : index
    %c1_195 = arith.constant 1 : index
    %c0_196 = arith.constant 0 : index
    %201 = vector.load %arg14[%c1_194, %c1_195, %c0_196] : memref<4x4x30xf32, #tpu.memory_space<vmem>>, vector<2x2x30xf32>
    %202 = vector.shape_cast %201 : vector<2x2x30xf32> to vector<4x30xf32>
    %c0_197 = arith.constant 0 : index
    %c512_198 = arith.constant 512 : index
    %203 = vector.load %arg17[%c0_197, %c512_198] : memref<4x1152xf32, #tpu.memory_space<vmem>>, vector<4x30xf32>
    tpu.vector_store %arg17[%c0_197, %c512_198], %202 {strides = array<i32>} : memref<4x1152xf32, #tpu.memory_space<vmem>>, vector<4x30xf32>,
    %c1_199 = arith.constant 1 : index
    %c2_200 = arith.constant 2 : index
    %c0_201 = arith.constant 0 : index
    %204 = vector.load %arg14[%c1_199, %c2_200, %c0_201] : memref<4x4x30xf32, #tpu.memory_space<vmem>>, vector<2x2x30xf32>
    %205 = vector.shape_cast %204 : vector<2x2x30xf32> to vector<4x30xf32>
    %c0_202 = arith.constant 0 : index
    %c640_203 = arith.constant 640 : index
    %206 = vector.load %arg17[%c0_202, %c640_203] : memref<4x1152xf32, #tpu.memory_space<vmem>>, vector<4x30xf32>
    tpu.vector_store %arg17[%c0_202, %c640_203], %205 {strides = array<i32>} : memref<4x1152xf32, #tpu.memory_space<vmem>>, vector<4x30xf32>,
    %c2_204 = arith.constant 2 : index
    %c0_205 = arith.constant 0 : index
    %c0_206 = arith.constant 0 : index
    %207 = vector.load %arg14[%c2_204, %c0_205, %c0_206] : memref<4x4x30xf32, #tpu.memory_space<vmem>>, vector<2x2x30xf32>
    %208 = vector.shape_cast %207 : vector<2x2x30xf32> to vector<4x30xf32>
    %c0_207 = arith.constant 0 : index
    %c768_208 = arith.constant 768 : index
    %209 = vector.load %arg17[%c0_207, %c768_208] : memref<4x1152xf32, #tpu.memory_space<vmem>>, vector<4x30xf32>
    tpu.vector_store %arg17[%c0_207, %c768_208], %208 {strides = array<i32>} : memref<4x1152xf32, #tpu.memory_space<vmem>>, vector<4x30xf32>,
    %c2_209 = arith.constant 2 : index
    %c1_210 = arith.constant 1 : index
    %c0_211 = arith.constant 0 : index
    %210 = vector.load %arg14[%c2_209, %c1_210, %c0_211] : memref<4x4x30xf32, #tpu.memory_space<vmem>>, vector<2x2x30xf32>
    %211 = vector.shape_cast %210 : vector<2x2x30xf32> to vector<4x30xf32>
    %c0_212 = arith.constant 0 : index
    %c896_213 = arith.constant 896 : index
    %212 = vector.load %arg17[%c0_212, %c896_213] : memref<4x1152xf32, #tpu.memory_space<vmem>>, vector<4x30xf32>
    tpu.vector_store %arg17[%c0_212, %c896_213], %211 {strides = array<i32>} : memref<4x1152xf32, #tpu.memory_space<vmem>>, vector<4x30xf32>,
    %c2_214 = arith.constant 2 : index
    %c2_215 = arith.constant 2 : index
    %c0_216 = arith.constant 0 : index
    %213 = vector.load %arg14[%c2_214, %c2_215, %c0_216] : memref<4x4x30xf32, #tpu.memory_space<vmem>>, vector<2x2x30xf32>
    %214 = vector.shape_cast %213 : vector<2x2x30xf32> to vector<4x30xf32>
    %c0_217 = arith.constant 0 : index
    %c1024_218 = arith.constant 1024 : index
    %215 = vector.load %arg17[%c0_217, %c1024_218] : memref<4x1152xf32, #tpu.memory_space<vmem>>, vector<4x30xf32>
    tpu.vector_store %arg17[%c0_217, %c1024_218], %214 {strides = array<i32>} : memref<4x1152xf32, #tpu.memory_space<vmem>>, vector<4x30xf32>,
    %c0_219 = arith.constant 0 : index
    %c0_220 = arith.constant 0 : index
    %216 = vector.load %arg17[%c0_219, %c0_220] : memref<4x1152xf32, #tpu.memory_space<vmem>>, vector<4x1152xf32>
    %c0_221 = arith.constant 0 : index
    %c0_222 = arith.constant 0 : index
    %217 = vector.load %arg8[%c0_221, %c0_222] : memref<1152x1xf32, #tpu.memory_space<vmem>>, vector<1152x1xf32>
    %cst_223 = arith.constant dense<0.000000e+00> : vector<4x1xf32>
    %218 = tpu.matmul %216, %217, %cst_223 {dimension_numbers = #tpu.dot_dimension_numbers<[1], [0], [0], [1], [0, 0, 1, 1], [], []>} : vector<4x1152xf32>, vector<1152x1xf32>, vector<4x1xf32> -> vector<4x1xf32>
    %c0_224 = arith.constant 0 : index
    %c0_225 = arith.constant 0 : index
    %219 = vector.load %arg9[%c0_224, %c0_225] : memref<1x1xf32, #tpu.memory_space<vmem>>, vector<1x1xf32>
    %220 = vector.shape_cast %219 : vector<1x1xf32> to vector<1xf32>
    %221 = vector.shape_cast %220 : vector<1xf32> to vector<1x1xf32>
    %222 = vector.broadcast %221 : vector<1x1xf32> to vector<4x1xf32>
    %223 = arith.addf %218, %222 : vector<4x1xf32>
    %224 = arith.negf %223 : vector<4x1xf32>
    %225 = math.exp %224 : vector<4x1xf32>
    %cst_226 = arith.constant 1.000000e+00 : f32
    %226 = vector.broadcast %cst_226 : f32 to vector<4x1xf32>
    %227 = arith.addf %226, %225 : vector<4x1xf32>
    %228 = arith.divf %226, %227 : vector<4x1xf32>
    %c0_227 = arith.constant 0 : index
    %c0_228 = arith.constant 0 : index
    %c0_229 = arith.constant 0 : index
    %229 = vector.load %arg10[%c0_227, %c0_228, %c0_229] : memref<1x4x1xf32, #tpu.memory_space<vmem>>, vector<1x4x1xf32>
    %230 = vector.shape_cast %229 : vector<1x4x1xf32> to vector<4x1xf32>
    %231 = vector.shape_cast %228 : vector<4x1xf32> to vector<1x4x1xf32>
    tpu.vector_store %arg10[%c0_227, %c0_228, %c0_229], %231 {strides = array<i32>} : memref<1x4x1xf32, #tpu.memory_space<vmem>>, vector<1x4x1xf32>,
    return
  }
  func.func @transform_0(%arg0: i32) -> (i32, i32, i32, i32) {
    %c0_i32 = arith.constant 0 : i32
    %c0_i32_0 = arith.constant 0 : i32
    %c0_i32_1 = arith.constant 0 : i32
    %c0_i32_2 = arith.constant 0 : i32
    return %arg0, %c0_i32, %c0_i32_0, %c0_i32_1 : i32, i32, i32, i32
  }
  func.func @transform_1(%arg0: i32) -> (i32, i32) {
    %c0_i32 = arith.constant 0 : i32
    %c0_i32_0 = arith.constant 0 : i32
    %c0_i32_1 = arith.constant 0 : i32
    return %c0_i32, %c0_i32_0 : i32, i32
  }
  func.func @transform_2(%arg0: i32) -> (i32, i32) {
    %c0_i32 = arith.constant 0 : i32
    %c0_i32_0 = arith.constant 0 : i32
    %c0_i32_1 = arith.constant 0 : i32
    return %c0_i32, %c0_i32_0 : i32, i32
  }
  func.func @transform_3(%arg0: i32) -> (i32, i32) {
    %c0_i32 = arith.constant 0 : i32
    %c0_i32_0 = arith.constant 0 : i32
    %c0_i32_1 = arith.constant 0 : i32
    return %c0_i32, %c0_i32_0 : i32, i32
  }
  func.func @transform_4(%arg0: i32) -> (i32, i32) {
    %c0_i32 = arith.constant 0 : i32
    %c0_i32_0 = arith.constant 0 : i32
    %c0_i32_1 = arith.constant 0 : i32
    return %c0_i32, %c0_i32_0 : i32, i32
  }
  func.func @transform_5(%arg0: i32) -> (i32, i32) {
    %c0_i32 = arith.constant 0 : i32
    %c0_i32_0 = arith.constant 0 : i32
    %c0_i32_1 = arith.constant 0 : i32
    return %c0_i32, %c0_i32_0 : i32, i32
  }
  func.func @transform_6(%arg0: i32) -> (i32, i32) {
    %c0_i32 = arith.constant 0 : i32
    %c0_i32_0 = arith.constant 0 : i32
    %c0_i32_1 = arith.constant 0 : i32
    return %c0_i32, %c0_i32_0 : i32, i32
  }
  func.func @transform_7(%arg0: i32) -> (i32, i32) {
    %c0_i32 = arith.constant 0 : i32
    %c0_i32_0 = arith.constant 0 : i32
    %c0_i32_1 = arith.constant 0 : i32
    return %c0_i32, %c0_i32_0 : i32, i32
  }
  func.func @transform_8(%arg0: i32) -> (i32, i32) {
    %c0_i32 = arith.constant 0 : i32
    %c0_i32_0 = arith.constant 0 : i32
    %c0_i32_1 = arith.constant 0 : i32
    return %c0_i32, %c0_i32_0 : i32, i32
  }
  func.func @transform_9(%arg0: i32) -> (i32, i32, i32) {
    %c0_i32 = arith.constant 0 : i32
    %c0_i32_0 = arith.constant 0 : i32
    %c0_i32_1 = arith.constant 0 : i32
    return %arg0, %c0_i32, %c0_i32_0 : i32, i32, i32
  }
}

</mosaic_0001>

<bundles_post_ra>
// kernel: tpu_custom_call.1
= control target key start
LH: loop header
LB: loop body
LE: loop exit
PB: predicated region body
PF: predicated region fallthrough
CT: control target
= control target key end

     0   :  { %s7913_s11 = smov 0   ;;  %s11719_s0 = inlined_call_operand.vmem [shape: f32[2,16,16,1], index: 0, kind: input, shape index: {}]   ;;  %s11720_s1 = inlined_call_operand.vmem [shape: f32[9,30], index: 1, kind: input, shape index: {}]   ;;  %s11721_s2 = inlined_call_operand.vmem [shape: f32[1,30], index: 2, kind: input, shape index: {}]   ;;  %s11722_s3 = inlined_call_operand.vmem [shape: f32[1152,30], index: 3, kind: input, shape index: {}]   ;;  %s11723_s4 = inlined_call_operand.vmem [shape: f32[1,30], index: 4, kind: input, shape index: {}]   ;;  %s11724_s5 = inlined_call_operand.vmem [shape: f32[1152,30], index: 5, kind: input, shape index: {}]   ;;  %s11725_s6 = inlined_call_operand.vmem [shape: f32[1,30], index: 6, kind: input, shape index: {}]   ;;  %s11726_s7 = inlined_call_operand.vmem [shape: f32[1152,1], index: 7, kind: input, shape index: {}]   ;;  %s11727_s8 = inlined_call_operand.<no memory space> [shape: f32[1,1], index: 8, kind: input, shape index: {}]   ;;  %s11728_s9 = inlined_call_operand.vmem [shape: f32[2,4,1], index: 9, kind: output, shape index: {}]  }
   0x1   :  { %v14_v0 = vstv %s11727_s8 }
   0x2   :  { %15 = vst [vmem:[#allocation9] sm:$0x1] %v14_v0 }
   0x3 LB: > { %s6602_s12 = sadd.s32 4294967295, %s7853_s11   ;;  %p6606_p0 = scmp.ge.s32.totalorder %s7853_s11, 1  ;;  %s7853_s11 = sphi %s7913_s11, %s21_s11  }
   0x4   : > { %p289_p1 = scmp.lt.s32.totalorder %s7853_s11, 3 }
   0x6   : > { %p290_p2 = pnand %p6606_p0, %p289_p1 }
   0x8   : > { %293 = sbr.rel (%p290_p2) target bundleno = 1747 (0x6d3), region = 56 }
   0xf   : > { %vm365_vm0 = vcmask 7168   ;;  %p7923_p3 = scmp.lt.s32.totalorder %s6602_s12, 1  ;;  %vm368_vm1 = vcmask 1024   ;;  %v7855_v1 = vmov 0   ;;  %v7856_v2 = vmov 0.0  }
  0x10   : > { %7793 = vset.pattern.permute.xlu0 %v7855_v1  ;;  %366 = vst.msk [vmem:[#allocation2] sm:$0xff] %vm365_vm0, %v7856_v2  ;;  %367 = vst.msk [vmem:[#allocation2 + $0x8] sm:$0xff] %vm365_vm0, %v7856_v2  ;;  %7794 = vset.pattern.permute.xlu1 %v7855_v1  ;;  %vm2805_vm2 = vcmask 244736   ;;  %vm3206_vm3 = vcmask 238592   ;;  %vm3803_vm4 = vcmask 1041409   ;;  %vm3805_vm5 = vcmask 1042434  }
  0x11   : > { %370 = vst.msk [vmem:[#allocation2 + $0x18] sm:$0xff] %vm365_vm0, %v7856_v2  ;;  %371 = vst.msk [vmem:[#allocation2 + $0x20] sm:$0xff] %vm365_vm0, %v7856_v2  ;;  %s12014_s12 = smov (!%p7923_p3, %s6602_s12), 1  ;;  %vm3807_vm6 = vcmask 1043459   ;;  %vm3809_vm7 = vcmask 1044484   ;;  %vm3811_vm8 = vcmask 1045509  }
  0x12   : > { %373 = vst.msk [vmem:[#allocation2 + $0x30] sm:$0xff] %vm365_vm0, %v7856_v2  ;;  %374 = vst.msk [vmem:[#allocation2 + $0x38] sm:$0xff] %vm365_vm0, %v7856_v2  ;;  %s6618_s13 = sshll.u32 %s12014_s12, 8  ;;  %vm3813_vm9 = vcmask 1046534   ;;  %vm3815_vm10 = vcmask 1047559   ;;  %vm5076_vm11 = vcmask 242688  }
  0x13   : > { %376 = vst.msk [vmem:[#allocation2 + $0x48] sm:$0xff] %vm365_vm0, %v7856_v2  ;;  %377 = vst.msk [vmem:[#allocation2 + $0x50] sm:$0xff] %vm365_vm0, %v7856_v2  ;;  %s8142_s16 = scalar_lea.vmem %s11719_s0, %s6618_s13  ;;  %vm5116_vm12 = vcmask 240640   ;;  %vm7859_vm13 = vmmov 0   ;;  %s6609_s10 = sshll.u32 %s12014_s12, 2  ;;  %vm6547_vm14 = vcmask 3072  }
  0x14   : > { %379 = vst.msk [vmem:[#allocation2 + $0x60] sm:$0xff] %vm365_vm0, %v7856_v2  ;;  %380 = vst.msk [vmem:[#allocation2 + $0x68] sm:$0xff] %vm365_vm0, %v7856_v2  ;;  %v333_v3 = vld [vmem:[%s8142_s16] sm:$0xff]  ;;  %v335_v4 = vld [vmem:[%s8142_s16 + $0x10] sm:$0xff]  ;;  %s332_s14 = scalar_lea.vmem %s11728_s9, %s6609_s10 }
  0x15   : > { %382 = vst.msk [vmem:[#allocation2 + $0x78] sm:$0xff] %vm365_vm0, %v7856_v2  ;;  %383 = vst.msk [vmem:[#allocation2 + $0x80] sm:$0xff] %vm365_vm0, %v7856_v2  ;;  %v334_v5 = vld [vmem:[%s8142_s16 + $0x8] sm:$0xff]  ;;  %v337_v6 = vld [vmem:[%s8142_s16 + $0x20] sm:$0xff] }
  0x16   : > { %385 = vst.msk [vmem:[#allocation2 + $0x90] sm:$0xff] %vm365_vm0, %v7856_v2  ;;  %386 = vst.msk [vmem:[#allocation2 + $0x98] sm:$0xff] %vm365_vm0, %v7856_v2  ;;  %v336_v7 = vld [vmem:[%s8142_s16 + $0x18] sm:$0xff]  ;;  %v339_v8 = vld [vmem:[%s8142_s16 + $0x30] sm:$0xff] }
  0x17   : > { %388 = vst.msk [vmem:[#allocation2 + $0xa8] sm:$0xff] %vm365_vm0, %v7856_v2  ;;  %389 = vst.msk [vmem:[#allocation2 + $0xb0] sm:$0xff] %vm365_vm0, %v7856_v2  ;;  %v464_v9 = vld [vmem:[#allocation2] sm:$0xff]  ;;  %v465_v10 = vld [vmem:[#allocation2 + $0x8] sm:$0xff] }
  0x18   : > { %391 = vst.msk [vmem:[#allocation2 + $0xc0] sm:$0xff] %vm365_vm0, %v7856_v2  ;;  %392 = vst.msk [vmem:[#allocation2 + $0xc8] sm:$0xff] %vm365_vm0, %v7856_v2  ;;  %v338_v11 = vld [vmem:[%s8142_s16 + $0x28] sm:$0xff]  ;;  %498 = vperm.xlu0 %7793, %v464_v9   ;;  %v341_v12 = vld [vmem:[%s8142_s16 + $0x40] sm:$0xff] }
  0x19   : > { %394 = vst.msk [vmem:[#allocation2 + $0xd8] sm:$0xff] %vm365_vm0, %v7856_v2  ;;  %395 = vst.msk [vmem:[#allocation2 + $0xe0] sm:$0xff] %vm365_vm0, %v7856_v2  ;;  %v340_v13 = vld [vmem:[%s8142_s16 + $0x38] sm:$0xff]  ;;  %v343_v14 = vld [vmem:[%s8142_s16 + $0x50] sm:$0xff] }
  0x1a   : > { %397 = vst.msk [vmem:[#allocation2 + $0xf0] sm:$0xff] %vm365_vm0, %v7856_v2  ;;  %398 = vst.msk [vmem:[#allocation2 + $0xf8] sm:$0xff] %vm365_vm0, %v7856_v2  ;;  %v342_v15 = vld [vmem:[%s8142_s16 + $0x48] sm:$0xff]  ;;  %v345_v16 = vld [vmem:[%s8142_s16 + $0x60] sm:$0xff] }
  0x1b   : > { %400 = vst.msk [vmem:[#allocation2 + $0x108] sm:$0xff] %vm365_vm0, %v7856_v2  ;;  %401 = vst.msk [vmem:[#allocation2 + $0x110] sm:$0xff] %vm365_vm0, %v7856_v2  ;;  %v344_v17 = vld [vmem:[%s8142_s16 + $0x58] sm:$0xff]  ;;  %v347_v18 = vld [vmem:[%s8142_s16 + $0x70] sm:$0xff] }
  0x1c   : > { %403 = vst.msk [vmem:[#allocation2 + $0x120] sm:$0xff] %vm365_vm0, %v7856_v2  ;;  %404 = vst.msk [vmem:[#allocation2 + $0x128] sm:$0xff] %vm365_vm0, %v7856_v2  ;;  %v346_v19 = vld [vmem:[%s8142_s16 + $0x68] sm:$0xff]  ;;  %v349_v20 = vld [vmem:[%s8142_s16 + $0x80] sm:$0xff]  ;;  %503 = vperm.xlu0 %7793, %v465_v10  }
  0x1d   : > { %406 = vst.msk [vmem:[#allocation2 + $0x138] sm:$0xff] %vm365_vm0, %v7856_v2  ;;  %407 = vst.msk [vmem:[#allocation2 + $0x140] sm:$0xff] %vm365_vm0, %v7856_v2  ;;  %v348_v21 = vld [vmem:[%s8142_s16 + $0x78] sm:$0xff]  ;;  %v724_v40 = vld [vmem:[#allocation2 + $0x1] sm:$0xff] }
  0x1e   : > { %409 = vst.msk [vmem:[#allocation2 + $0x150] sm:$0xff] %vm365_vm0, %v7856_v2  ;;  %410 = vst.msk [vmem:[#allocation2 + $0x158] sm:$0xff] %vm365_vm0, %v7856_v2  ;;  %v984_v42 = vld [vmem:[#allocation2 + $0x2] sm:$0xff]  ;;  %v351_v51 = vld [vmem:[%s8142_s16 + $0x90] sm:$0xff] }
  0x1f   : > { %412 = vst.msk [vmem:[#allocation2 + $0x168] sm:$0xff] %vm365_vm0, %v7856_v2  ;;  %413 = vst.msk [vmem:[#allocation2 + $0x170] sm:$0xff] %vm365_vm0, %v7856_v2  ;;  %v350_v52 = vld [vmem:[%s8142_s16 + $0x88] sm:$0xff]  ;;  %v353_v54 = vld [vmem:[%s8142_s16 + $0xa0] sm:$0xff] }
  0x20   : > { %415 = vst.msk [vmem:[#allocation2 + $0x180] sm:$0xff] %vm365_vm0, %v7856_v2  ;;  %416 = vst.msk [vmem:[#allocation2 + $0x188] sm:$0xff] %vm365_vm0, %v7856_v2 }
  0x21   : > { %418 = vst.msk [vmem:[#allocation2 + $0x198] sm:$0xff] %vm365_vm0, %v7856_v2  ;;  %419 = vst.msk [vmem:[#allocation2 + $0x1a0] sm:$0xff] %vm365_vm0, %v7856_v2 }
  0x22   : > { %3883 = vst [vmem:[#allocation6] sm:$0xff] %v7856_v2  ;;  %3884 = vst [vmem:[#allocation6 + $0x8] sm:$0xff] %v7856_v2 }
  0x23   : > { %3885 = vst [vmem:[#allocation6 + $0x10] sm:$0xff] %v7856_v2  ;;  %3886 = vst [vmem:[#allocation6 + $0x18] sm:$0xff] %v7856_v2 }
  0x24   : > { %3887 = vst [vmem:[#allocation6 + $0x20] sm:$0xff] %v7856_v2  ;;  %3888 = vst [vmem:[#allocation6 + $0x28] sm:$0xff] %v7856_v2 }
  0x25   : > { %3889 = vst [vmem:[#allocation6 + $0x30] sm:$0xff] %v7856_v2  ;;  %3890 = vst [vmem:[#allocation6 + $0x38] sm:$0xff] %v7856_v2 }
  0x26   : > { %3891 = vst [vmem:[#allocation6 + $0x40] sm:$0xff] %v7856_v2  ;;  %3892 = vst [vmem:[#allocation6 + $0x48] sm:$0xff] %v7856_v2 }
  0x27   : > { %3893 = vst [vmem:[#allocation6 + $0x50] sm:$0xff] %v7856_v2  ;;  %3894 = vst [vmem:[#allocation6 + $0x58] sm:$0xff] %v7856_v2 }
  0x28   : > { %3895 = vst [vmem:[#allocation6 + $0x60] sm:$0xff] %v7856_v2  ;;  %3896 = vst [vmem:[#allocation6 + $0x68] sm:$0xff] %v7856_v2 }
  0x29   : > { %3897 = vst [vmem:[#allocation6 + $0x70] sm:$0xff] %v7856_v2  ;;  %3898 = vst [vmem:[#allocation6 + $0x78] sm:$0xff] %v7856_v2 }
  0x2a   : > { %3899 = vst [vmem:[#allocation6 + $0x80] sm:$0xff] %v7856_v2  ;;  %3900 = vst [vmem:[#allocation6 + $0x88] sm:$0xff] %v7856_v2 }
  0x2b   : > { %3901 = vst [vmem:[#allocation6 + $0x90] sm:$0xff] %v7856_v2  ;;  %3902 = vst [vmem:[#allocation6 + $0x98] sm:$0xff] %v7856_v2 }
  0x2c   : > { %3903 = vst [vmem:[#allocation6 + $0xa0] sm:$0xff] %v7856_v2  ;;  %3904 = vst [vmem:[#allocation6 + $0xa8] sm:$0xff] %v7856_v2 }
  0x2d   : > { %3905 = vst [vmem:[#allocation6 + $0xb0] sm:$0xff] %v7856_v2  ;;  %3906 = vst [vmem:[#allocation6 + $0xb8] sm:$0xff] %v7856_v2 }
  0x2e   : > { %3907 = vst [vmem:[#allocation6 + $0xc0] sm:$0xff] %v7856_v2  ;;  %3908 = vst [vmem:[#allocation6 + $0xc8] sm:$0xff] %v7856_v2 }
  0x2f   : > { %3909 = vst [vmem:[#allocation6 + $0xd0] sm:$0xff] %v7856_v2  ;;  %3910 = vst [vmem:[#allocation6 + $0xd8] sm:$0xff] %v7856_v2 }
  0x30   : > { %3911 = vst [vmem:[#allocation6 + $0xe0] sm:$0xff] %v7856_v2  ;;  %3912 = vst [vmem:[#allocation6 + $0xe8] sm:$0xff] %v7856_v2 }
  0x31   : > { %3913 = vst [vmem:[#allocation6 + $0xf0] sm:$0xff] %v7856_v2  ;;  %3914 = vst [vmem:[#allocation6 + $0xf8] sm:$0xff] %v7856_v2 }
  0x32   : > { %3915 = vst [vmem:[#allocation6 + $0x100] sm:$0xff] %v7856_v2  ;;  %3916 = vst [vmem:[#allocation6 + $0x108] sm:$0xff] %v7856_v2 }
  0x33   : > { %3917 = vst [vmem:[#allocation6 + $0x110] sm:$0xff] %v7856_v2  ;;  %3918 = vst [vmem:[#allocation6 + $0x118] sm:$0xff] %v7856_v2 }
  0x34   : > { %3919 = vst [vmem:[#allocation6 + $0x120] sm:$0xff] %v7856_v2  ;;  %3920 = vst [vmem:[#allocation6 + $0x128] sm:$0xff] %v7856_v2 }
  0x35   : > { %3921 = vst [vmem:[#allocation6 + $0x130] sm:$0xff] %v7856_v2  ;;  %3922 = vst [vmem:[#allocation6 + $0x138] sm:$0xff] %v7856_v2 }
  0x36   : > { %3923 = vst [vmem:[#allocation6 + $0x140] sm:$0xff] %v7856_v2  ;;  %3924 = vst [vmem:[#allocation6 + $0x148] sm:$0xff] %v7856_v2 }
  0x37   : > { %3925 = vst [vmem:[#allocation6 + $0x150] sm:$0xff] %v7856_v2  ;;  %3926 = vst [vmem:[#allocation6 + $0x158] sm:$0xff] %v7856_v2 }
  0x38   : > { %3927 = vst [vmem:[#allocation6 + $0x160] sm:$0xff] %v7856_v2  ;;  %3928 = vst [vmem:[#allocation6 + $0x168] sm:$0xff] %v7856_v2 }
  0x39   : > { %3929 = vst [vmem:[#allocation6 + $0x170] sm:$0xff] %v7856_v2  ;;  %3930 = vst [vmem:[#allocation6 + $0x178] sm:$0xff] %v7856_v2 }
  0x3a   : > { %3931 = vst [vmem:[#allocation6 + $0x180] sm:$0xff] %v7856_v2  ;;  %3932 = vst [vmem:[#allocation6 + $0x188] sm:$0xff] %v7856_v2 }
  0x3b   : > { %3933 = vst [vmem:[#allocation6 + $0x190] sm:$0xff] %v7856_v2  ;;  %3934 = vst [vmem:[#allocation6 + $0x198] sm:$0xff] %v7856_v2 }
  0x3c   : > { %3935 = vst [vmem:[#allocation6 + $0x1a0] sm:$0xff] %v7856_v2  ;;  %3936 = vst [vmem:[#allocation6 + $0x1a8] sm:$0xff] %v7856_v2 }
  0x3d   : > { %3937 = vst [vmem:[#allocation6 + $0x1b0] sm:$0xff] %v7856_v2  ;;  %3938 = vst [vmem:[#allocation6 + $0x1b8] sm:$0xff] %v7856_v2 }
  0x3e   : > { %3939 = vst [vmem:[#allocation6 + $0x1c0] sm:$0xff] %v7856_v2  ;;  %3940 = vst [vmem:[#allocation6 + $0x1c8] sm:$0xff] %v7856_v2 }
  0x3f   : > { %3941 = vst [vmem:[#allocation6 + $0x1d0] sm:$0xff] %v7856_v2  ;;  %3942 = vst [vmem:[#allocation6 + $0x1d8] sm:$0xff] %v7856_v2 }
  0x40   : > { %3943 = vst [vmem:[#allocation6 + $0x1e0] sm:$0xff] %v7856_v2  ;;  %3944 = vst [vmem:[#allocation6 + $0x1e8] sm:$0xff] %v7856_v2 }
  0x41   : > { %3945 = vst [vmem:[#allocation6 + $0x1f0] sm:$0xff] %v7856_v2  ;;  %3946 = vst [vmem:[#allocation6 + $0x1f8] sm:$0xff] %v7856_v2 }
  0x42   : > { %3947 = vst [vmem:[#allocation6 + $0x200] sm:$0xff] %v7856_v2  ;;  %3948 = vst [vmem:[#allocation6 + $0x208] sm:$0xff] %v7856_v2 }
  0x43   : > { %3949 = vst [vmem:[#allocation6 + $0x210] sm:$0xff] %v7856_v2  ;;  %3950 = vst [vmem:[#allocation6 + $0x218] sm:$0xff] %v7856_v2 }
  0x44   : > { %3951 = vst [vmem:[#allocation6 + $0x220] sm:$0xff] %v7856_v2  ;;  %3952 = vst [vmem:[#allocation6 + $0x228] sm:$0xff] %v7856_v2 }
  0x45   : > { %3953 = vst [vmem:[#allocation6 + $0x230] sm:$0xff] %v7856_v2  ;;  %3954 = vst [vmem:[#allocation6 + $0x238] sm:$0xff] %v7856_v2 }
  0x46   : > { %5121 = vst [vmem:[#allocation7] sm:$0xff] %v7856_v2  ;;  %5122 = vst [vmem:[#allocation7 + $0x8] sm:$0xff] %v7856_v2 }
  0x47   : > { %5123 = vst [vmem:[#allocation7 + $0x10] sm:$0xff] %v7856_v2  ;;  %5124 = vst [vmem:[#allocation7 + $0x18] sm:$0xff] %v7856_v2 }
  0x48   : > { %5125 = vst [vmem:[#allocation7 + $0x20] sm:$0xff] %v7856_v2  ;;  %5126 = vst [vmem:[#allocation7 + $0x28] sm:$0xff] %v7856_v2 }
  0x49   : > { %5127 = vst [vmem:[#allocation7 + $0x30] sm:$0xff] %v7856_v2  ;;  %5128 = vst [vmem:[#allocation7 + $0x38] sm:$0xff] %v7856_v2 }
  0x4a   : > { %5129 = vst [vmem:[#allocation7 + $0x40] sm:$0xff] %v7856_v2  ;;  %5130 = vst [vmem:[#allocation7 + $0x48] sm:$0xff] %v7856_v2 }
  0x4b   : > { %5131 = vst [vmem:[#allocation7 + $0x50] sm:$0xff] %v7856_v2  ;;  %5132 = vst [vmem:[#allocation7 + $0x58] sm:$0xff] %v7856_v2 }
  0x4c   : > { %5133 = vst [vmem:[#allocation7 + $0x60] sm:$0xff] %v7856_v2  ;;  %5134 = vst [vmem:[#allocation7 + $0x68] sm:$0xff] %v7856_v2 }
  0x4d   : > { %5135 = vst [vmem:[#allocation7 + $0x70] sm:$0xff] %v7856_v2  ;;  %5136 = vst [vmem:[#allocation7 + $0x78] sm:$0xff] %v7856_v2 }
  0x4e   : > { %5137 = vst [vmem:[#allocation7 + $0x80] sm:$0xff] %v7856_v2  ;;  %5138 = vst [vmem:[#allocation7 + $0x88] sm:$0xff] %v7856_v2 }
  0x4f   : > { %5891 = vst [vmem:[#allocation8] sm:$0xff] %v7856_v2  ;;  %5892 = vst [vmem:[#allocation8 + $0x8] sm:$0xff] %v7856_v2 }
  0x50   : > { %5893 = vst [vmem:[#allocation8 + $0x10] sm:$0xff] %v7856_v2  ;;  %5894 = vst [vmem:[#allocation8 + $0x18] sm:$0xff] %v7856_v2 }
  0x51   : > { %5895 = vst [vmem:[#allocation8 + $0x20] sm:$0xf] %v7856_v2  ;;  %372 = vst.msk [vmem:[#allocation2 + $0x28] sm:$0x3] %vm368_vm1, %v7856_v2 }
  0x52   : > { %369 = vst.msk [vmem:[#allocation2 + $0x10] sm:$0x3] %vm368_vm1, %v7856_v2  ;;  %375 = vst.msk [vmem:[#allocation2 + $0x40] sm:$0x3] %vm368_vm1, %v7856_v2 }
  0x53   : > { %378 = vst.msk [vmem:[#allocation2 + $0x58] sm:$0x3] %vm368_vm1, %v7856_v2  ;;  %381 = vst.msk [vmem:[#allocation2 + $0x70] sm:$0x3] %vm368_vm1, %v7856_v2 }
  0x54   : > { %384 = vst.msk [vmem:[#allocation2 + $0x88] sm:$0x3] %vm368_vm1, %v7856_v2  ;;  %387 = vst.msk [vmem:[#allocation2 + $0xa0] sm:$0x3] %vm368_vm1, %v7856_v2 }
  0x55   : > { %390 = vst.msk [vmem:[#allocation2 + $0xb8] sm:$0x3] %vm368_vm1, %v7856_v2  ;;  %393 = vst.msk [vmem:[#allocation2 + $0xd0] sm:$0x3] %vm368_vm1, %v7856_v2 }
  0x56   : > { %396 = vst.msk [vmem:[#allocation2 + $0xe8] sm:$0x3] %vm368_vm1, %v7856_v2  ;;  %399 = vst.msk [vmem:[#allocation2 + $0x100] sm:$0x3] %vm368_vm1, %v7856_v2 }
  0x57   : > { %402 = vst.msk [vmem:[#allocation2 + $0x118] sm:$0x3] %vm368_vm1, %v7856_v2  ;;  %405 = vst.msk [vmem:[#allocation2 + $0x130] sm:$0x3] %vm368_vm1, %v7856_v2 }
  0x58   : > { %408 = vst.msk [vmem:[#allocation2 + $0x148] sm:$0x3] %vm368_vm1, %v7856_v2  ;;  %411 = vst.msk [vmem:[#allocation2 + $0x160] sm:$0x3] %vm368_vm1, %v7856_v2 }
  0x59   : > { %414 = vst.msk [vmem:[#allocation2 + $0x178] sm:$0x3] %vm368_vm1, %v7856_v2  ;;  %417 = vst.msk [vmem:[#allocation2 + $0x190] sm:$0x3] %vm368_vm1, %v7856_v2  ;;  %v725_v44 = vld [vmem:[#allocation2 + $0x9] sm:$0xff] }
  0x5a   : > { %420 = vst.msk [vmem:[#allocation2 + $0x1a8] sm:$0x3] %vm368_vm1, %v7856_v2  ;;  %v985_v48 = vld [vmem:[#allocation2 + $0xa] sm:$0xff] }
  0x5b   : > { %422 = vst.msk [vmem:[#allocation2 + $0x19] sm:$0xff] %vm365_vm0, %v333_v3  ;;  %424 = vst.msk [vmem:[#allocation2 + $0x31] sm:$0xff] %vm365_vm0, %v335_v4 }
  0x5c   : > { %423 = vst.msk [vmem:[#allocation2 + $0x21] sm:$0xff] %vm365_vm0, %v334_v5  ;;  %426 = vst.msk [vmem:[#allocation2 + $0x49] sm:$0xff] %vm365_vm0, %v337_v6  ;;  %v352_v5 = vld [vmem:[%s8142_s16 + $0x98] sm:$0xff] }
  0x5d   : > { %425 = vst.msk [vmem:[#allocation2 + $0x39] sm:$0xff] %vm365_vm0, %v336_v7  ;;  %428 = vst.msk [vmem:[#allocation2 + $0x61] sm:$0xff] %vm365_vm0, %v339_v8  ;;  %v355_v8 = vld [vmem:[%s8142_s16 + $0xb0] sm:$0xff] }
  0x5e   : > { %427 = vst.msk [vmem:[#allocation2 + $0x51] sm:$0xff] %vm365_vm0, %v338_v11  ;;  %430 = vst.msk [vmem:[#allocation2 + $0x79] sm:$0xff] %vm365_vm0, %v341_v12  ;;  %v354_v11 = vld [vmem:[%s8142_s16 + $0xa8] sm:$0xff] }
  0x5f   : > { %429 = vst.msk [vmem:[#allocation2 + $0x69] sm:$0xff] %vm365_vm0, %v340_v13  ;;  %432 = vst.msk [vmem:[#allocation2 + $0x91] sm:$0xff] %vm365_vm0, %v343_v14 }
  0x60   : > { %431 = vst.msk [vmem:[#allocation2 + $0x81] sm:$0xff] %vm365_vm0, %v342_v15  ;;  %434 = vst.msk [vmem:[#allocation2 + $0xa9] sm:$0xff] %vm365_vm0, %v345_v16  ;;  %v357_v16 = vld [vmem:[%s8142_s16 + $0xc0] sm:$0xff] }
  0x61   : > { %433 = vst.msk [vmem:[#allocation2 + $0x99] sm:$0xff] %vm365_vm0, %v344_v17  ;;  %436 = vst.msk [vmem:[#allocation2 + $0xc1] sm:$0xff] %vm365_vm0, %v347_v18 }
  0x62   : > { %435 = vst.msk [vmem:[#allocation2 + $0xb1] sm:$0xff] %vm365_vm0, %v346_v19  ;;  %438 = vst.msk [vmem:[#allocation2 + $0xd9] sm:$0xff] %vm365_vm0, %v349_v20  ;;  %v466_v22 = vld [vmem:[#allocation2 + $0x18] sm:$0xff]  ;;  %v8178_v23 = vld [vmem:[#allocation2 + $0x30] sm:$0xff] }
  0x63   : > { %437 = vst.msk [vmem:[#allocation2 + $0xc9] sm:$0xff] %vm365_vm0, %v348_v21  ;;  %508 = vperm.xlu1 %7794, %v466_v22   ;;  %v8180_v24 = vld [vmem:[#allocation2 + $0x20] sm:$0xff]  ;;  %518 = vperm.xlu0 %7793, %v8178_v23   ;;  %v8183_v25 = vld [vmem:[#allocation2 + $0x48] sm:$0xff]  ;;  %v8228_v46 = vld [vmem:[#allocation2 + $0x31] sm:$0xff] }
  0x64   : > { %v8186_v26 = vld [vmem:[#allocation2 + $0x38] sm:$0xff]  ;;  %v8189_v27 = vld [vmem:[#allocation2 + $0x60] sm:$0xff]  ;;  %v8226_v45 = vld [vmem:[#allocation2 + $0x49] sm:$0xff]  ;;  %440 = vst.msk [vmem:[#allocation2 + $0xf1] sm:$0xff] %vm365_vm0, %v351_v51 }
  0x65   : > { %v8192_v28 = vld [vmem:[#allocation2 + $0x50] sm:$0xff]  ;;  %v8195_v29 = vld [vmem:[#allocation2 + $0x78] sm:$0xff]  ;;  %v727_v43 = vld [vmem:[#allocation2 + $0x21] sm:$0xff]  ;;  %439 = vst.msk [vmem:[#allocation2 + $0xe1] sm:$0xff] %vm365_vm0, %v350_v52 }
  0x66   : > { %v8198_v30 = vld [vmem:[#allocation2 + $0x68] sm:$0xff]  ;;  %v8201_v31 = vld [vmem:[#allocation2 + $0x90] sm:$0xff]  ;;  %v726_v39 = vld [vmem:[#allocation2 + $0x19] sm:$0xff]  ;;  %442 = vst.msk [vmem:[#allocation2 + $0x109] sm:$0xff] %vm365_vm0, %v353_v54 }
  0x67   : > { %513 = vperm.xlu1 %7794, %v8180_v24   ;;  %528 = vperm.xlu0 %7793, %v8183_v25   ;;  %v8204_v32 = vld [vmem:[#allocation2 + $0x80] sm:$0xff]  ;;  %v8207_v33 = vld [vmem:[#allocation2 + $0xa8] sm:$0xff]  ;;  %v8235_v50 = vld [vmem:[#allocation2 + $0x32] sm:$0xff]  ;;  %441 = vst.msk [vmem:[#allocation2 + $0xf9] sm:$0xff] %vm365_vm0, %v352_v5 }
  0x68   : > { %v8210_v34 = vld [vmem:[#allocation2 + $0x98] sm:$0xff]  ;;  %v8213_v35 = vld [vmem:[#allocation2 + $0xc0] sm:$0xff]  ;;  %v8233_v49 = vld [vmem:[#allocation2 + $0x4a] sm:$0xff]  ;;  %444 = vst.msk [vmem:[#allocation2 + $0x121] sm:$0xff] %vm365_vm0, %v355_v8 }
  0x69   : > { %v8216_v36 = vld [vmem:[#allocation2 + $0xb0] sm:$0xff]  ;;  %v8219_v37 = vld [vmem:[#allocation2 + $0xd8] sm:$0xff]  ;;  %v987_v47 = vld [vmem:[#allocation2 + $0x22] sm:$0xff]  ;;  %443 = vst.msk [vmem:[#allocation2 + $0x111] sm:$0xff] %vm365_vm0, %v354_v11 }
  0x6a   : > { %v8222_v38 = vld [vmem:[#allocation2 + $0xc8] sm:$0xff]  ;;  %v986_v41 = vld [vmem:[#allocation2 + $0x1a] sm:$0xff]  ;;  %v8244_v53 = vld [vmem:[#allocation2 + $0x51] sm:$0xff]  ;;  %446 = vst.msk [vmem:[#allocation2 + $0x139] sm:$0xff] %vm365_vm0, %v357_v16 }
  0x6b   : > { %523 = vperm.xlu1 %7794, %v8186_v26   ;;  %538 = vperm.xlu0 %7793, %v8189_v27   ;;  %v8248_v55 = vld [vmem:[#allocation2 + $0x39] sm:$0xff]  ;;  %v8254_v57 = vld [vmem:[#allocation2 + $0x61] sm:$0xff]  ;;  %v8282_v63 = vld [vmem:[#allocation2 + $0x69] sm:$0xff]  ;;  %3719 = vst.msk [vmem:[#allocation3] sm:$0xff] %vm2805_vm2, %v7856_v2 }
  0x6c   : > { %v8251_v56 = vld [vmem:[#allocation2 + $0x79] sm:$0xff]  ;;  %v8271_v61 = vld [vmem:[#allocation2 + $0x62] sm:$0xff]  ;;  %v8288_v1 = vld [vmem:[#allocation2 + $0x91] sm:$0xff]  ;;  %3721 = vst.msk [vmem:[#allocation3 + $0x10] sm:$0xff] %vm2805_vm2, %v7856_v2 }
  0x6d   : > { %v8263_v58 = vld [vmem:[#allocation2 + $0x52] sm:$0xff]  ;;  %v8265_v59 = vld [vmem:[#allocation2 + $0x3a] sm:$0xff]  ;;  %v8285_v0 = vld [vmem:[#allocation2 + $0xa9] sm:$0xff]  ;;  %3723 = vst.msk [vmem:[#allocation3 + $0x20] sm:$0xff] %vm2805_vm2, %v7856_v2 }
  0x6e   : > { %v8268_v60 = vld [vmem:[#allocation2 + $0x7a] sm:$0xff]  ;;  %v8314_v10 = vld [vmem:[#allocation2 + $0x82] sm:$0xff]  ;;  %v8321_v13 = vld [vmem:[#allocation2 + $0x6a] sm:$0xff]  ;;  %3725 = vst.msk [vmem:[#allocation3 + $0x30] sm:$0xff] %vm2805_vm2, %v7856_v2 }
  0x6f   : > { %533 = vperm.xlu1 %7794, %v8192_v28   ;;  %548 = vperm.xlu0 %7793, %v8195_v29   ;;  %v8279_v62 = vld [vmem:[#allocation2 + $0x81] sm:$0xff]  ;;  %v8326_v15 = vld [vmem:[#allocation2 + $0xaa] sm:$0xff]  ;;  %v8333_v18 = vld [vmem:[#allocation2 + $0x92] sm:$0xff]  ;;  %3727 = vst.msk [vmem:[#allocation3 + $0x40] sm:$0xff] %vm2805_vm2, %v7856_v2 }
  0x70   : > { %3729 = vst.msk [vmem:[#allocation3 + $0x50] sm:$0xff] %vm2805_vm2, %v7856_v2  ;;  %3731 = vst.msk [vmem:[#allocation3 + $0x60] sm:$0xff] %vm2805_vm2, %v7856_v2  ;;  %v8464_v11 = vld [vmem:[#allocation2 + $0xf0] sm:$0xff] }
  0x71   : > { %3733 = vst.msk [vmem:[#allocation3 + $0x70] sm:$0xff] %vm2805_vm2, %v7856_v2  ;;  %3735 = vst.msk [vmem:[#allocation3 + $0x80] sm:$0xff] %vm2805_vm2, %v7856_v2 }
  0x72   : > { %3737 = vst.msk [vmem:[#allocation3 + $0x90] sm:$0xff] %vm2805_vm2, %v7856_v2 }
  0x73   : > { %543 = vperm.xlu1 %7794, %v8198_v30   ;;  %558 = vperm.xlu0 %7793, %v8201_v31   ;;  %3720 = vst.msk [vmem:[#allocation3 + $0x8] sm:$0x3] %vm3206_vm3, %v7856_v2  ;;  %3722 = vst.msk [vmem:[#allocation3 + $0x18] sm:$0x3] %vm3206_vm3, %v7856_v2 }
  0x74   : > { %3724 = vst.msk [vmem:[#allocation3 + $0x28] sm:$0x3] %vm3206_vm3, %v7856_v2  ;;  %3726 = vst.msk [vmem:[#allocation3 + $0x38] sm:$0x3] %vm3206_vm3, %v7856_v2 }
  0x75   : > { %3728 = vst.msk [vmem:[#allocation3 + $0x48] sm:$0x3] %vm3206_vm3, %v7856_v2  ;;  %3730 = vst.msk [vmem:[#allocation3 + $0x58] sm:$0x3] %vm3206_vm3, %v7856_v2 }
  0x76   : > { %3732 = vst.msk [vmem:[#allocation3 + $0x68] sm:$0x3] %vm3206_vm3, %v7856_v2  ;;  %3734 = vst.msk [vmem:[#allocation3 + $0x78] sm:$0x3] %vm3206_vm3, %v7856_v2 }
  0x77   : > { %553 = vperm.xlu1 %7794, %v8204_v32   ;;  %568 = vperm.xlu0 %7793, %v8207_v33   ;;  %3736 = vst.msk [vmem:[#allocation3 + $0x88] sm:$0x3] %vm3206_vm3, %v7856_v2  ;;  %3738 = vst.msk [vmem:[#allocation3 + $0x98] sm:$0x3] %vm3206_vm3, %v7856_v2 }
  0x7b   : > { %563 = vperm.xlu1 %7794, %v8210_v34   ;;  %578 = vperm.xlu0 %7793, %v8213_v35  }
  0x7f   : > { %573 = vperm.xlu1 %7794, %v8216_v36   ;;  %588 = vperm.xlu0 %7793, %v8219_v37  }
  0x83   : > { %583 = vperm.xlu1 %7794, %v8222_v38   ;;  %768 = vperm.xlu0 %7793, %v726_v39  }
  0x87   : > { %758 = vperm.xlu1 %7794, %v724_v40   ;;  %1028 = vperm.xlu0 %7793, %v986_v41  }
  0x8b   : > { %1018 = vperm.xlu1 %7794, %v984_v42   ;;  %773 = vperm.xlu0 %7793, %v727_v43  }
  0x8f   : > { %763 = vperm.xlu1 %7794, %v725_v44   ;;  %788 = vperm.xlu0 %7793, %v8226_v45  }
  0x93   : > { %778 = vperm.xlu1 %7794, %v8228_v46   ;;  %1288 = vperm.xlu0 %7793, %v8178_v23  }
  0x97   : > { %1278 = vperm.xlu1 %7794, %v466_v22   ;;  %1033 = vperm.xlu0 %7793, %v987_v47   ;;  %v8296_v3 = vpop.permute.xlu0 %498 }
  0x9b   : > { %1023 = vperm.xlu1 %7794, %v985_v48   ;;  %1048 = vperm.xlu0 %7793, %v8233_v49   ;;  %v8299_v4 = vpop.permute.xlu0 %503 }
  0x9f   : > { %1038 = vperm.xlu1 %7794, %v8235_v50   ;;  %1548 = vperm.xlu0 %7793, %v8228_v46  }
  0xa3   : > { %1538 = vperm.xlu1 %7794, %v726_v39   ;;  %793 = vperm.xlu0 %7793, %v8244_v53  }
  0xa7   : > { %783 = vperm.xlu1 %7794, %v8248_v55   ;;  %808 = vperm.xlu0 %7793, %v8251_v56  }
  0xab   : > { %798 = vperm.xlu1 %7794, %v8254_v57   ;;  %1293 = vperm.xlu0 %7793, %v8186_v26  }
  0xaf   : > { %1283 = vperm.xlu1 %7794, %v8180_v24   ;;  %1308 = vperm.xlu0 %7793, %v8189_v27  }
  0xb3   : > { %1298 = vperm.xlu1 %7794, %v8183_v25   ;;  %1808 = vperm.xlu0 %7793, %v8235_v50  }
  0xb7   : > { %1798 = vperm.xlu1 %7794, %v986_v41   ;;  %1053 = vperm.xlu0 %7793, %v8263_v58  }
  0xbb   : > { %1043 = vperm.xlu1 %7794, %v8265_v59   ;;  %1068 = vperm.xlu0 %7793, %v8268_v60  }
  0xbf   : > { %1058 = vperm.xlu1 %7794, %v8271_v61   ;;  %1553 = vperm.xlu0 %7793, %v8248_v55  }
  0xc3   : > { %1543 = vperm.xlu1 %7794, %v727_v43   ;;  %1568 = vperm.xlu0 %7793, %v8254_v57   ;;  %v8398_v43 = vld [vmem:[#allocation2 + $0xd9] sm:$0xff] }
  0xc7   : > { %1558 = vperm.xlu1 %7794, %v8226_v45   ;;  %2069 = vperm.xlu0 %7793, %v8183_v25  }
  0xcb   : > { %2059 = vperm.xlu1 %7794, %v8178_v23   ;;  %813 = vperm.xlu0 %7793, %v8279_v62  }
  0xcf   : > { %803 = vperm.xlu1 %7794, %v8282_v63   ;;  %828 = vperm.xlu0 %7793, %v8285_v0  }
  0xd3   : > { %818 = vperm.xlu1 %7794, %v8288_v1   ;;  %1313 = vperm.xlu0 %7793, %v8198_v30  }
  0xd7   : > { %1303 = vperm.xlu1 %7794, %v8192_v28   ;;  %1328 = vperm.xlu0 %7793, %v8201_v31  }
  0xdb   : > { %1318 = vperm.xlu1 %7794, %v8195_v29   ;;  %1813 = vperm.xlu0 %7793, %v8265_v59  }
  0xdf   : > { %1803 = vperm.xlu1 %7794, %v987_v47   ;;  %1828 = vperm.xlu0 %7793, %v8271_v61  }
  0xe2   : > { %v8304_v6 = vpop.permute.xlu1 %508  ;;  %v8307_v7 = vpop.permute.xlu0 %518 }
  0xe3   : > { %1818 = vperm.xlu1 %7794, %v8233_v49   ;;  %11743 = vst [vmem:[#allocation10_spill] sm:$0xff] %v8307_v7  ;;  %2329 = vperm.xlu0 %7793, %v8226_v45   ;;  %v8423_v45 = vld [vmem:[#allocation2 + $0xc1] sm:$0xff] }
  0xe6   : > { %v8312_v9 = vpop.permute.xlu1 %513  ;;  %v8319_v12 = vpop.permute.xlu0 %528 }
  0xe7   : > { %2319 = vperm.xlu1 %7794, %v8228_v46   ;;  %11744 = vst [vmem:[#allocation11_spill] sm:$0xff] %v8319_v12  ;;  %1073 = vperm.xlu0 %7793, %v8314_v10  }
  0xea   : > { %v8324_v14 = vpop.permute.xlu1 %523  ;;  %v8331_v17 = vpop.permute.xlu0 %538 }
  0xeb   : > { %11745 = vst [vmem:[#allocation12_spill] sm:$0xff] %v8324_v14  ;;  %1063 = vperm.xlu1 %7794, %v8321_v13   ;;  %11746 = vst [vmem:[#allocation13_spill] sm:$0xff] %v8331_v17  ;;  %1088 = vperm.xlu0 %7793, %v8326_v15  }
  0xee   : > { %v8336_v19 = vpop.permute.xlu1 %533  ;;  %v8339_v20 = vpop.permute.xlu0 %548 }
  0xef   : > { %11747 = vst [vmem:[#allocation14_spill] sm:$0xff] %v8336_v19  ;;  %1078 = vperm.xlu1 %7794, %v8333_v18   ;;  %11748 = vst [vmem:[#allocation15_spill] sm:$0xff] %v8339_v20  ;;  %1573 = vperm.xlu0 %7793, %v8282_v63  }
  0xf2   : > { %v8342_v21 = vpop.permute.xlu1 %543  ;;  %v8345_v22 = vpop.permute.xlu0 %558 }
  0xf3   : > { %11749 = vst [vmem:[#allocation16_spill] sm:$0xff] %v8342_v21  ;;  %1563 = vperm.xlu1 %7794, %v8244_v53   ;;  %11750 = vst [vmem:[#allocation17_spill] sm:$0xff] %v8345_v22  ;;  %1588 = vperm.xlu0 %7793, %v8288_v1   ;;  %v358_v22 = vld [vmem:[%s8142_s16 + $0xc8] sm:$0xff] }
  0xf4   : > { %447 = vst.msk [vmem:[#allocation2 + $0x141] sm:$0xff] %vm365_vm0, %v358_v22 }
  0xf6   : > { %v8348_v23 = vpop.permute.xlu1 %553  ;;  %v8351_v24 = vpop.permute.xlu0 %568 }
  0xf7   : > { %11751 = vst [vmem:[#allocation18_spill] sm:$0xff] %v8348_v23  ;;  %1578 = vperm.xlu1 %7794, %v8251_v56   ;;  %11752 = vst [vmem:[#allocation19_spill] sm:$0xff] %v8351_v24  ;;  %2074 = vperm.xlu0 %7793, %v8192_v28   ;;  %v8368_v28 = vld [vmem:[#allocation2 + $0xb1] sm:$0xff] }
  0xf8   : > { %v8491_v24 = vld [vmem:[#allocation2 + $0xb2] sm:$0xff] }
  0xfa   : > { %v8354_v25 = vpop.permute.xlu1 %563  ;;  %v8357_v39 = vpop.permute.xlu0 %578 }
  0xfb   : > { %11753 = vst [vmem:[#allocation20_spill] sm:$0xff] %v8354_v25  ;;  %2064 = vperm.xlu1 %7794, %v8186_v26   ;;  %11754 = vst [vmem:[#allocation21_spill] sm:$0xff] %v8357_v39  ;;  %2089 = vperm.xlu0 %7793, %v8195_v29   ;;  %v8485_v39 = vld [vmem:[#allocation2 + $0xc2] sm:$0xff] }
  0xfe   : > { %v8360_v40 = vpop.permute.xlu1 %573  ;;  %v8363_v41 = vpop.permute.xlu0 %588 }
  0xff   : > { %11755 = vst [vmem:[#allocation22_spill] sm:$0xff] %v8360_v40  ;;  %2079 = vperm.xlu1 %7794, %v8189_v27   ;;  %11756 = vst [vmem:[#allocation23_spill] sm:$0xff] %v8363_v41  ;;  %2589 = vperm.xlu0 %7793, %v8233_v49   ;;  %v8393_v27 = vld [vmem:[#allocation2 + $0x99] sm:$0xff]  ;;  %v8479_v41 = vld [vmem:[#allocation2 + $0x108] sm:$0xff] }
 0x102   : > { %v8366_v42 = vpop.permute.xlu1 %583  ;;  %v8391_v26 = vpop.permute.xlu0 %768 }
 0x103   : > { %11757 = vst [vmem:[#allocation24_spill] sm:$0xff] %v8366_v42  ;;  %2579 = vperm.xlu1 %7794, %v8235_v50   ;;  %833 = vperm.xlu0 %7793, %v8368_v28   ;;  %v8469_v42 = vld [vmem:[#allocation2 + $0xe0] sm:$0xff] }
 0x106   : > { %v8396_v29 = vpop.permute.xlu1 %758  ;;  %v8421_v44 = vpop.permute.xlu0 %1028 }
 0x107   : > { %823 = vperm.xlu1 %7794, %v8393_v27   ;;  %848 = vperm.xlu0 %7793, %v8398_v43  }
 0x10a   : > { %v8426_v46 = vpop.permute.xlu1 %1018  ;;  %v8429_v47 = vpop.permute.xlu0 %773 }
 0x10b   : > { %838 = vperm.xlu1 %7794, %v8423_v45   ;;  %1333 = vperm.xlu0 %7793, %v8210_v34  }
 0x10e   : > { %v8432_v48 = vpop.permute.xlu1 %763  ;;  %v8435_v2 = vpop.permute.xlu0 %788 }
 0x10f   : > { %1323 = vperm.xlu1 %7794, %v8204_v32   ;;  %11758 = vst [vmem:[#allocation25_spill] sm:$0xff] %v8435_v2  ;;  %1348 = vperm.xlu0 %7793, %v8213_v35  }
 0x112   : > { %v8438_v49 = vpop.permute.xlu1 %778  ;;  %v8441_v50 = vpop.permute.xlu0 %1288 }
 0x113   : > { %11759 = vst [vmem:[#allocation26_spill] sm:$0xff] %v8438_v49  ;;  %1338 = vperm.xlu1 %7794, %v8207_v33   ;;  %1833 = vperm.xlu0 %7793, %v8321_v13   ;;  %v8724_v49 = vld [vmem:[#allocation2 + $0xe2] sm:$0xff] }
 0x114   : > { %11793 = vst [vmem:[#allocation60_spill] sm:$0xff] %v8724_v49 }
 0x116   : > { %v8444_v51 = vpop.permute.xlu1 %1278  ;;  %v8447_v34 = vpop.permute.xlu0 %1033 }
 0x117   : > { %1823 = vperm.xlu1 %7794, %v8263_v58   ;;  %1848 = vperm.xlu0 %7793, %v8333_v18  }
 0x11a   : > { %v8450_v52 = vpop.permute.xlu1 %1023  ;;  %v8453_v35 = vpop.permute.xlu0 %1048 }
 0x11b   : > { %1838 = vperm.xlu1 %7794, %v8268_v60   ;;  %11760 = vst [vmem:[#allocation27_spill] sm:$0xff] %v8453_v35  ;;  %2334 = vperm.xlu0 %7793, %v8244_v53   ;;  %v4187_v35 = vld [vmem:[%s11722_s3 + $0x78] sm:$0xff] }
 0x11e   : > { %v8456_v54 = vpop.permute.xlu1 %1038  ;;  %v8459_v5 = vpop.permute.xlu0 %1548 }
 0x11f   : > { %11761 = vst [vmem:[#allocation28_spill] sm:$0xff] %v8456_v54  ;;  %2324 = vperm.xlu1 %7794, %v8248_v55   ;;  %2349 = vperm.xlu0 %7793, %v8251_v56   ;;  %v8474_v55 = vld [vmem:[#allocation2 + $0x9a] sm:$0xff] }
 0x120   : > { %v8701_v54 = vld [vmem:[#allocation2 + $0x138] sm:$0xff] }
 0x121   : > { %11790 = vst [vmem:[#allocation57_spill] sm:$0xff] %v8701_v54 }
 0x122   : > { %v8462_v8 = vpop.permute.xlu1 %1538  ;;  %v8467_v16 = vpop.permute.xlu0 %793 }
 0x123   : > { %2339 = vperm.xlu1 %7794, %v8254_v57   ;;  %11762 = vst [vmem:[#allocation29_spill] sm:$0xff] %v8467_v16  ;;  %598 = vperm.xlu0 %7793, %v8464_v11   ;;  %v356_v57 = vld [vmem:[%s8142_s16 + $0xb8] sm:$0xff] }
 0x124   : > { %445 = vst.msk [vmem:[#allocation2 + $0x129] sm:$0xff] %vm365_vm0, %v356_v57 }
 0x126   : > { %v8472_v53 = vpop.permute.xlu1 %783  ;;  %v8477_v56 = vpop.permute.xlu0 %808 }
 0x127   : > { %11763 = vst [vmem:[#allocation30_spill] sm:$0xff] %v8472_v53  ;;  %593 = vperm.xlu1 %7794, %v8469_v42   ;;  %11764 = vst [vmem:[#allocation31_spill] sm:$0xff] %v8477_v56  ;;  %1083 = vperm.xlu0 %7793, %v8474_v55  }
 0x12a   : > { %v8483_v40 = vpop.permute.xlu1 %798  ;;  %v8489_v25 = vpop.permute.xlu0 %1293 }
 0x12b   : > { %11765 = vst [vmem:[#allocation32_spill] sm:$0xff] %v8483_v40  ;;  %608 = vperm.xlu1 %7794, %v8479_v41   ;;  %1098 = vperm.xlu0 %7793, %v8485_v39   ;;  %v8500_v40 = vld [vmem:[#allocation2 + $0xda] sm:$0xff] }
 0x12e   : > { %v8494_v23 = vpop.permute.xlu1 %1283  ;;  %v8498_v21 = vpop.permute.xlu0 %1308 }
 0x12f   : > { %1093 = vperm.xlu1 %7794, %v8491_v24   ;;  %11766 = vst [vmem:[#allocation33_spill] sm:$0xff] %v8498_v21  ;;  %1583 = vperm.xlu0 %7793, %v8279_v62  }
 0x132   : > { %v8504_v57 = vpop.permute.xlu1 %1298  ;;  %v8507_v56 = vpop.permute.xlu0 %1808 }
 0x133   : > { %11767 = vst [vmem:[#allocation34_spill] sm:$0xff] %v8504_v57  ;;  %1108 = vperm.xlu1 %7794, %v8500_v40   ;;  %1598 = vperm.xlu0 %7793, %v8285_v0  }
 0x136   : > { %v8510_v20 = vpop.permute.xlu1 %1798  ;;  %v8513_v17 = vpop.permute.xlu0 %1053 }
 0x137   : > { %1593 = vperm.xlu1 %7794, %v8393_v27   ;;  %11768 = vst [vmem:[#allocation35_spill] sm:$0xff] %v8513_v17  ;;  %2084 = vperm.xlu0 %7793, %v8198_v30  }
 0x13a   : > { %v8516_v16 = vpop.permute.xlu1 %1043  ;;  %v8519_v22 = vpop.permute.xlu0 %1068 }
 0x13b   : > { %11769 = vst [vmem:[#allocation36_spill] sm:$0xff] %v8516_v16  ;;  %1608 = vperm.xlu1 %7794, %v8423_v45   ;;  %11770 = vst [vmem:[#allocation37_spill] sm:$0xff] %v8519_v22  ;;  %2099 = vperm.xlu0 %7793, %v8201_v31   ;;  %v8536_v22 = vld [vmem:[#allocation2 + $0xc9] sm:$0xff] }
 0x13c   : > { %v8557_v16 = vld [vmem:[#allocation2 + $0x109] sm:$0xff] }
 0x13e   : > { %v8522_v53 = vpop.permute.xlu1 %1058  ;;  %v8525_v19 = vpop.permute.xlu0 %1553 }
 0x13f   : > { %11771 = vst [vmem:[#allocation38_spill] sm:$0xff] %v8522_v53  ;;  %2094 = vperm.xlu1 %7794, %v8204_v32   ;;  %2584 = vperm.xlu0 %7793, %v8265_v59   ;;  %v8544_v59 = vld [vmem:[#allocation2 + $0xf1] sm:$0xff]  ;;  %v8549_v53 = vld [vmem:[#allocation2 + $0xe1] sm:$0xff] }
 0x142   : > { %v8528_v14 = vpop.permute.xlu1 %1543  ;;  %v8531_v30 = vpop.permute.xlu0 %1568 }
 0x143   : > { %2109 = vperm.xlu1 %7794, %v8207_v33   ;;  %11772 = vst [vmem:[#allocation39_spill] sm:$0xff] %v8531_v30  ;;  %2599 = vperm.xlu0 %7793, %v8271_v61  }
 0x146   : > { %v8534_v17 = vpop.permute.xlu1 %1558  ;;  %v8539_v31 = vpop.permute.xlu0 %2069 }
 0x147   : > { %11773 = vst [vmem:[#allocation40_spill] sm:$0xff] %v8534_v17  ;;  %2594 = vperm.xlu1 %7794, %v8263_v58   ;;  %843 = vperm.xlu0 %7793, %v8536_v22  }
 0x14a   : > { %v8542_v32 = vpop.permute.xlu1 %2059  ;;  %v8547_v33 = vpop.permute.xlu0 %813 }
 0x14b   : > { %2609 = vperm.xlu1 %7794, %v8268_v60   ;;  %11774 = vst [vmem:[#allocation41_spill] sm:$0xff] %v8547_v33  ;;  %858 = vperm.xlu0 %7793, %v8544_v59   ;;  %v4188_v60 = vld [vmem:[%s11722_s3 + $0x80] sm:$0xff]  ;;  %v4189_v33 = vld [vmem:[%s11722_s3 + $0x88] sm:$0xff] }
 0x14c   : > { %v7308_v30 = vpack.c.bf16 %v4189_v33, %v4188_v60 }
 0x14e   : > { %v8552_v61 = vpop.permute.xlu1 %803  ;;  %v8555_v58 = vpop.permute.xlu0 %828  ;;  %7309 = vmatprep.subr.bf16.mxu0 %v7308_v30 }
 0x14f   : > { %11775 = vst [vmem:[#allocation42_spill] sm:$0xff] %v8552_v61  ;;  %853 = vperm.xlu1 %7794, %v8549_v53   ;;  %11776 = vst [vmem:[#allocation43_spill] sm:$0xff] %v8555_v58  ;;  %1343 = vperm.xlu0 %7793, %v8216_v36   ;;  %v4172_v61 = vld [vmem:[%s11722_s3] sm:$0xff]  ;;  %v4173_v58 = vld [vmem:[%s11722_s3 + $0x8] sm:$0xff] }
 0x150   : > { %v7310_v36 = vpack.c.bf16 %v4173_v58, %v4172_v61 }
 0x152   : > { %v8566_v17 = vpop.permute.xlu1 %818  ;;  %v8575_v57 = vpop.permute.xlu0 %1313  ;;  %7311 = vmatpush3.bf16.msra.mxu0 %v7310_v36 }
 0x153   : > { %11777 = vst [vmem:[#allocation44_spill] sm:$0xff] %v8566_v17  ;;  %868 = vperm.xlu1 %7794, %v8557_v16   ;;  %11778 = vst [vmem:[#allocation45_spill] sm:$0xff] %v8575_v57  ;;  %1358 = vperm.xlu0 %7793, %v8219_v37   ;;  %v4190_v37 = vld [vmem:[%s11722_s3 + $0x90] sm:$0xff] }
 0x156   : > { %v8578_v21 = vpop.permute.xlu1 %1303  ;;  %v8581_v33 = vpop.permute.xlu0 %1328 }
 0x157   : > { %11779 = vst [vmem:[#allocation46_spill] sm:$0xff] %v8578_v21  ;;  %1353 = vperm.xlu1 %7794, %v8222_v38   ;;  %11780 = vst [vmem:[#allocation47_spill] sm:$0xff] %v8581_v33  ;;  %1843 = vperm.xlu0 %7793, %v8314_v10   ;;  %v4191_v38 = vld [vmem:[%s11722_s3 + $0x98] sm:$0xff] }
 0x158   : > { %v7312_v10 = vpack.c.bf16 %v4191_v38, %v4190_v37  ;;  %v4193_v37 = vld [vmem:[%s11722_s3 + $0xa8] sm:$0xff] }
 0x15a   : > { %v8584_v60 = vpop.permute.xlu1 %1318  ;;  %v8587_v17 = vpop.permute.xlu0 %1813  ;;  %7313 = vmatprep.subr.bf16.mxu0 %v7312_v10  ;;  %v4177_v10 = vld [vmem:[%s11722_s3 + $0x28] sm:$0xff] }
 0x15b   : > { %11781 = vst [vmem:[#allocation48_spill] sm:$0xff] %v8584_v60  ;;  %1368 = vperm.xlu1 %7794, %v8464_v11   ;;  %1858 = vperm.xlu0 %7793, %v8326_v15   ;;  %v4174_v11 = vld [vmem:[%s11722_s3 + $0x10] sm:$0xff]  ;;  %v4175_v15 = vld [vmem:[%s11722_s3 + $0x18] sm:$0xff] }
 0x15c   : > { %v7314_v58 = vpack.c.bf16 %v4175_v15, %v4174_v11  ;;  %v8628_v60 = vld [vmem:[#allocation2 + $0xf8] sm:$0xff] }
 0x15e   : > { %v8590_v30 = vpop.permute.xlu1 %1803  ;;  %v8605_v61 = vpop.permute.xlu0 %1828  ;;  %7315 = vmatpush3.bf16.msra.mxu0 %v7314_v58 }
 0x15f   : > { %1853 = vperm.xlu1 %7794, %v8474_v55   ;;  %11782 = vst [vmem:[#allocation49_spill] sm:$0xff] %v8605_v61  ;;  %2344 = vperm.xlu0 %7793, %v8282_v63   ;;  %v4192_v55 = vld [vmem:[%s11722_s3 + $0xa0] sm:$0xff] }
 0x160   : > { %v7316_v38 = vpack.c.bf16 %v4193_v37, %v4192_v55  ;;  %v4176_v63 = vld [vmem:[%s11722_s3 + $0x20] sm:$0xff]  ;;  %v4195_v55 = vld [vmem:[%s11722_s3 + $0xb8] sm:$0xff] }
 0x161   : > { %v7318_v15 = vpack.c.bf16 %v4177_v10, %v4176_v63  ;;  %v359_v63 = vld [vmem:[%s8142_s16 + $0xd0] sm:$0xff] }
 0x162   : > { %v8608_v36 = vpop.permute.xlu1 %1818  ;;  %v8623_v11 = vpop.permute.xlu0 %2329  ;;  %7317 = vmatprep.subr.bf16.mxu0 %v7316_v38  ;;  %v4179_v38 = vld [vmem:[%s11722_s3 + $0x38] sm:$0xff]  ;;  %448 = vst.msk [vmem:[#allocation2 + $0x151] sm:$0xff] %vm365_vm0, %v359_v63 }
 0x163   : > { %11783 = vst [vmem:[#allocation50_spill] sm:$0xff] %v8608_v36  ;;  %1868 = vperm.xlu1 %7794, %v8485_v39   ;;  %2359 = vperm.xlu0 %7793, %v8288_v1   ;;  %v4194_v39 = vld [vmem:[%s11722_s3 + $0xb0] sm:$0xff]  ;;  %v4199_v63 = vld [vmem:[%s11722_s3 + $0xd8] sm:$0xff]  ;;  %v4200_v36 = vld [vmem:[%s11722_s3 + $0xe0] sm:$0xff] }
 0x164   : > { %7319 = vmatpush3.bf16.msra.mxu0 %v7318_v15  ;;  %v7320_v37 = vpack.c.bf16 %v4195_v55, %v4194_v39  ;;  %v4178_v1 = vld [vmem:[%s11722_s3 + $0x30] sm:$0xff]  ;;  %v8646_v15 = vld [vmem:[#allocation2 + $0x120] sm:$0xff]  ;;  %v4197_v39 = vld [vmem:[%s11722_s3 + $0xc8] sm:$0xff] }
 0x165   : > { %v7322_v33 = vpack.c.bf16 %v4179_v38, %v4178_v1  ;;  %v4180_v55 = vld [vmem:[%s11722_s3 + $0x40] sm:$0xff]  ;;  %v4198_v38 = vld [vmem:[%s11722_s3 + $0xd0] sm:$0xff] }
 0x166   : > { %v8626_v58 = vpop.permute.xlu1 %2319  ;;  %v8644_v10 = vpop.permute.xlu0 %1073  ;;  %7321 = vmatprep.subr.bf16.mxu0 %v7320_v37  ;;  %v4181_v37 = vld [vmem:[%s11722_s3 + $0x48] sm:$0xff]  ;;  %v7328_v21 = vpack.c.bf16 %v4199_v63, %v4198_v38  ;;  %v4184_v63 = vld [vmem:[%s11722_s3 + $0x60] sm:$0xff] }
 0x167   : > { %2354 = vperm.xlu1 %7794, %v8279_v62   ;;  %11784 = vst [vmem:[#allocation51_spill] sm:$0xff] %v8644_v10  ;;  %603 = vperm.xlu0 %7793, %v8628_v60   ;;  %v4196_v62 = vld [vmem:[%s11722_s3 + $0xc0] sm:$0xff]  ;;  %v7326_v57 = vpack.c.bf16 %v4181_v37, %v4180_v55  ;;  %v8690_v37 = vld [vmem:[#allocation2 + $0xca] sm:$0xff] }
 0x168   : > { %7323 = vmatpush3.bf16.msra.mxu0 %v7322_v33  ;;  %v7324_v1 = vpack.c.bf16 %v4197_v39, %v4196_v62  ;;  %v4182_v33 = vld [vmem:[%s11722_s3 + $0x50] sm:$0xff]  ;;  %v4183_v62 = vld [vmem:[%s11722_s3 + $0x58] sm:$0xff] }
 0x169   : > { %v7330_v38 = vpack.c.bf16 %v4183_v62, %v4182_v33  ;;  %v8712_v62 = vld [vmem:[#allocation2 + $0xf2] sm:$0xff] }
 0x16a   : > { %v8659_v10 = vpop.permute.xlu1 %1063  ;;  %v8677_v39 = vpop.permute.xlu0 %1088  ;;  %7325 = vmatprep.subr.bf16.mxu0 %v7324_v1 }
 0x16b   : > { %11785 = vst [vmem:[#allocation52_spill] sm:$0xff] %v8659_v10  ;;  %2369 = vperm.xlu1 %7794, %v8285_v0   ;;  %11786 = vst [vmem:[#allocation53_spill] sm:$0xff] %v8677_v39  ;;  %v8679_v10 = vld [vmem:[#allocation2 + $0x110] sm:$0xff]  ;;  %v4201_v0 = vld [vmem:[%s11722_s3 + $0xe8] sm:$0xff]  ;;  %618 = vperm.xlu0 %7793, %v8646_v15  }
 0x16c   : > { %11787 = vst [vmem:[#allocation54_spill] sm:$0xff] %v8679_v10  ;;  %7327 = vmatpush3.bf16.msra.mxu0 %v7326_v57  ;;  %v7332_v1 = vpack.c.bf16 %v4201_v0, %v4200_v36  ;;  %v4185_v39 = vld [vmem:[%s11722_s3 + $0x68] sm:$0xff]  ;;  %v4202_v57 = vld [vmem:[%s11722_s3 + $0xf0] sm:$0xff] }
 0x16d   : > { %7329 = vmatprep.subr.bf16.mxu0 %v7328_v21  ;;  %v4203_v21 = vld [vmem:[%s11722_s3 + $0xf8] sm:$0xff]  ;;  %v7334_v0 = vpack.c.bf16 %v4185_v39, %v4184_v63  ;;  %v8733_v63 = vld [vmem:[#allocation2 + $0x10a] sm:$0xff] }
 0x16e   : > { %v8688_v55 = vpop.permute.xlu1 %1078  ;;  %v8699_v61 = vpop.permute.xlu0 %1573  ;;  %v3971_v36 = vld [vmem:[#allocation3 + $0x1] sm:$0xff]  ;;  %11795 = vst [vmem:[#allocation62_spill] sm:$0xff] %v8733_v63 }
 0x16f   : > { %11788 = vst [vmem:[#allocation55_spill] sm:$0xff] %v8688_v55  ;;  %613 = vperm.xlu1 %7794, %v8679_v10   ;;  %11789 = vst [vmem:[#allocation56_spill] sm:$0xff] %v8699_v61  ;;  %1103 = vperm.xlu0 %7793, %v8690_v37   ;;  %v7336_v55 = vpack.c.bf16 %v4203_v21, %v4202_v57  ;;  %v4186_v61 = vld [vmem:[%s11722_s3 + $0x70] sm:$0xff] }
 0x170   : > { %7331 = vmatpush3.bf16.msra.mxu0 %v7330_v38  ;;  %3979 = vst.msk [vmem:[#allocation6 + $0x8] sm:$0xff] %vm2805_vm2, %v3971_v36  ;;  %v3955_v10 = vld [vmem:[#allocation3] sm:$0xff]  ;;  %v7338_v38 = vpack.c.bf16 %v4187_v35, %v4186_v61  ;;  %v2034_v61 = vld [vmem:[#allocation2 + $0x98] sm:$0xff] }
 0x171   : > { %7333 = vmatprep.subr.bf16.mxu0 %v7332_v1  ;;  %3963 = vst.msk [vmem:[#allocation6] sm:$0xff] %vm2805_vm2, %v3955_v10 }
 0x172   : > { %v8710_v33 = vpop.permute.xlu1 %1563 }
 0x173   : > { %11791 = vst [vmem:[#allocation58_spill] sm:$0xff] %v8710_v33  ;;  %628 = vperm.xlu1 %7794, %v8701_v54   ;;  %v8722_v33 = vpop.permute.xlu0 %1588  ;;  %1118 = vperm.xlu0 %7793, %v8712_v62  }
 0x174   : > { %11792 = vst [vmem:[#allocation59_spill] sm:$0xff] %v8722_v33  ;;  %7335 = vmatpush3.bf16.msra.mxu0 %v7334_v0 }
 0x175   : > { %7337 = vmatprep.subr.bf16.mxu0 %v7336_v55  ;;  %v656_v55 = vlaneseq }
 0x176   : > { %v8728_v39 = vpop.permute.xlu1 %1578 }
 0x177   : > { %11794 = vst [vmem:[#allocation61_spill] sm:$0xff] %v8728_v39  ;;  %1113 = vperm.xlu1 %7794, %v8724_v49   ;;  %v8731_v1 = vpop.permute.xlu0 %2074  ;;  %1603 = vperm.xlu0 %7793, %v8368_v28   ;;  %v4101_v57 = vld [vmem:[#allocation6 + $0x8] sm:$0xff] }
 0x178   : > { %7339 = vmatpush3.bf16.msra.mxu0 %v7338_v38  ;;  %4387 = vmatprep.mubr.f32.mxu0 %v4101_v57  ;;  %v4100_v10 = vld [vmem:[#allocation6] sm:$0xff]  ;;  %v2037_v38 = vld [vmem:[#allocation2 + $0xc0] sm:$0xff]  ;;  %v8750_v57 = vshrl.u32 %v656_v55, 7 }
 0x17a   : > { %v8736_v21 = vpop.permute.xlu1 %2064  ;;  %v1958_v49 = vsub.s32 5, %v8750_v57  ;;  %v2219_v7 = vsub.s32 6, %v8750_v57 }
 0x17b   : > { %1128 = vperm.xlu1 %7794, %v8733_v63   ;;  %v8739_v36 = vpop.permute.xlu0 %2089  ;;  %1618 = vperm.xlu0 %7793, %v8398_v43   ;;  %v2036_v43 = vld [vmem:[#allocation2 + $0xb0] sm:$0xff]  ;;  %v8774_v63 = vld [vmem:[#allocation2 + $0xf9] sm:$0xff] }
 0x17c   : > { %11796 = vst [vmem:[#allocation63_spill] sm:$0xff] %v8739_v36  ;;  %4388 = vmatmul.mubr.f32.vlgmr.msra.gmra.mrb[0].mxu0 %v4100_v10  ;;  %11805 = vst [vmem:[#allocation72_spill] sm:$0xff] %v8774_v63 }
 0x17e   : > { %v8742_v35 = vpop.permute.xlu1 %2079 }
 0x17f   : > { %11797 = vst [vmem:[#allocation64_spill] sm:$0xff] %v8742_v35  ;;  %1613 = vperm.xlu1 %7794, %v8536_v22   ;;  %v8745_v28 = vpop.permute.xlu0 %2589  ;;  %2104 = vperm.xlu0 %7793, %v2034_v61   ;;  %v658_v22 = vsub.s32 0, %v8750_v57  ;;  %v2039_v35 = vld [vmem:[#allocation2 + $0xd8] sm:$0xff]  ;;  %v454_v61 = vld [vmem:[%s11720_s1] sm:$0xff] }
 0x181   : > { %v8765_v55 = vrot.slane %v454_v61, %v658_v22  ;;  %v1438_v22 = vsub.s32 3, %v8750_v57 }
 0x182   : > { %v8747_v0 = vpop.permute.xlu1 %2579 }
 0x183   : > { %1628 = vperm.xlu1 %7794, %v8544_v59   ;;  %v8752_v39 = vpop.permute.xlu0 %833  ;;  %2119 = vperm.xlu0 %7793, %v2037_v38   ;;  %11802 = vst [vmem:[#allocation69_spill] sm:$0xff] %v8765_v55  ;;  %v918_v38 = vsub.s32 1, %v8750_v57  ;;  %v8806_v12 = vrot.slane %v454_v61, %v1438_v22 }
 0x184   : > { %11798 = vst [vmem:[#allocation65_spill] sm:$0xff] %v8752_v39 }
 0x186   : > { %v8754_v10 = vpop.permute.xlu1 %823 }
 0x187   : > { %11799 = vst [vmem:[#allocation66_spill] sm:$0xff] %v8754_v10  ;;  %2114 = vperm.xlu1 %7794, %v2036_v43   ;;  %v8757_v33 = vpop.permute.xlu0 %848  ;;  %2604 = vperm.xlu0 %7793, %v8321_v13   ;;  %v2552_v43 = vld [vmem:[#allocation2 + $0x82] sm:$0xff]  ;;  %v660_v13 = vmul.f32 %v8765_v55, %v8296_v3 }
 0x188   : > { %11800 = vst [vmem:[#allocation67_spill] sm:$0xff] %v8757_v33  ;;  %v1178_v33 = vsub.s32 2, %v8750_v57 }
 0x18a   : > { %v8763_v59 = vpop.permute.xlu1 %838 }
 0x18b   : > { %11801 = vst [vmem:[#allocation68_spill] sm:$0xff] %v8763_v59  ;;  %2129 = vperm.xlu1 %7794, %v2039_v35   ;;  %v8768_v10 = vpop.permute.xlu0 %1333  ;;  %2619 = vperm.xlu0 %7793, %v8333_v18   ;;  %v8778_v35 = vrot.slane %v454_v61, %v918_v38  ;;  %v8786_v18 = vld [vmem:[%s11721_s2] ss:$0 sm:$0xff]  ;;  %v8794_v38 = vrot.slane %v454_v61, %v1178_v33  ;;  %v8810_v33 = vld [vmem:[#allocation2 + $0x111] sm:$0xff] }
 0x18c   : > { %11803 = vst [vmem:[#allocation70_spill] sm:$0xff] %v8768_v10  ;;  %v2555_v10 = vld [vmem:[#allocation2 + $0xaa] sm:$0xff]  ;;  %v692_v54 = vadd.f32 %v8786_v18, %v660_v13  ;;  %11810 = vst [vmem:[#allocation77_spill] sm:$0xff] %v8810_v33 }
 0x18d   : > { %v920_v3 = vmul.f32 %v8778_v35, %v8396_v29  ;;  %v922_v2 = vmul.f32 %v8778_v35, %v8391_v26  ;;  %v1182_v26 = vmul.f32 %v8794_v38, %v8421_v44 }
 0x18e   : > { %v8772_v39 = vpop.permute.xlu1 %1323 }
 0x18f   : > { %11804 = vst [vmem:[#allocation71_spill] sm:$0xff] %v8772_v39  ;;  %2614 = vperm.xlu1 %7794, %v2552_v43   ;;  %v8781_v59 = vpop.permute.xlu0 %1348  ;;  %v1698_v39 = vsub.s32 4, %v8750_v57  ;;  %863 = vperm.xlu0 %7793, %v8774_v63   ;;  %v662_v43 = vmul.f32 %v8765_v55, %v8304_v6  ;;  %v1180_v6 = vmul.f32 %v8794_v38, %v8426_v46 }
 0x190   : > { %11806 = vst [vmem:[#allocation73_spill] sm:$0xff] %v8781_v59  ;;  %v8798_v59 = vld [vmem:[#allocation2 + $0x121] sm:$0xff]  ;;  %v952_v13 = vadd.f32 %v920_v3, %v692_v54  ;;  %v1440_v46 = vmul.f32 %v8806_v12, %v8444_v51  ;;  %v8824_v63 = vrot.slane %v454_v61, %v1958_v49  ;;  %v1442_v54 = vmul.f32 %v8806_v12, %v8441_v50  ;;  %v8835_v3 = vld [vmem:[#allocation2 + $0x139] sm:$0xff] }
 0x191   : > { %11808 = vst [vmem:[#allocation75_spill] sm:$0xff] %v8798_v59  ;;  %v8837_v49 = vrot.slane %v454_v61, %v2219_v7 }
 0x192   : > { %v8796_v36 = vpop.permute.xlu1 %1338  ;;  %11812 = vst [vmem:[#allocation79_spill] sm:$0xff] %v8824_v63  ;;  %v1962_v7 = vmul.f32 %v8824_v63, %v8507_v56  ;;  %v8865_v56 = vld [vmem:[%s11720_s1 + $0x8] ss:$0 sm:$0xff] }
 0x193   : > { %11807 = vst [vmem:[#allocation74_spill] sm:$0xff] %v8796_v36  ;;  %2629 = vperm.xlu1 %7794, %v2555_v10   ;;  %v8808_v29 = vpop.permute.xlu0 %1833  ;;  %v8812_v36 = vrot.slane %v454_v61, %v1698_v39  ;;  %878 = vperm.xlu0 %7793, %v8798_v59   ;;  %v694_v10 = vadd.f32 %v8786_v18, %v662_v43  ;;  %v2479_v39 = vsub.s32 7, %v8750_v57 }
 0x194   : > { %11809 = vst [vmem:[#allocation76_spill] sm:$0xff] %v8808_v29  ;;  %v360_v29 = vld [vmem:[%s8142_s16 + $0xd8] sm:$0xff]  ;;  %v1212_v43 = vadd.f32 %v1180_v6, %v952_v13  ;;  %v1960_v6 = vmul.f32 %v8824_v63, %v8510_v20 }
 0x195   : > { %449 = vst.msk [vmem:[#allocation2 + $0x159] sm:$0xff] %vm365_vm0, %v360_v29  ;;  %v954_v59 = vadd.f32 %v922_v2, %v694_v10  ;;  %v1700_v44 = vmul.f32 %v8812_v36, %v8462_v8  ;;  %v1702_v2 = vmul.f32 %v8812_v36, %v8459_v5  ;;  %v8846_v29 = vrot.slane %v454_v61, %v2479_v39 }
 0x196   : > { %v8821_v22 = vpop.permute.xlu1 %1823  ;;  %v2223_v61 = vmul.f32 %v8837_v49, %v8539_v31  ;;  %v2741_v31 = vmul.f32 %v8865_v56, %v8747_v0  ;;  %v2743_v39 = vmul.f32 %v8865_v56, %v8745_v28  ;;  %v7857_v0 = vmov 1983009808   ;;  %v4205_v28 = vld [vmem:[%s11722_s3 + $0x108] sm:$0xff] }
 0x197   : > { %11811 = vst [vmem:[#allocation78_spill] sm:$0xff] %v8821_v22  ;;  %873 = vperm.xlu1 %7794, %v8810_v33   ;;  %v8833_v51 = vpop.permute.xlu0 %1848  ;;  %1363 = vperm.xlu0 %7793, %v8469_v42   ;;  %v1214_v22 = vadd.f32 %v1182_v26, %v954_v59  ;;  %v1472_v33 = vadd.f32 %v1440_v46, %v1212_v43 }
 0x198   : > { %v2221_v42 = vmul.f32 %v8837_v49, %v8542_v32  ;;  %v2481_v13 = vmul.f32 %v8846_v29, %v8626_v58 }
 0x199   : > { %v1474_v8 = vadd.f32 %v1442_v54, %v1214_v22  ;;  %v1732_v10 = vadd.f32 %v1700_v44, %v1472_v33  ;;  %v2872_v54 = vunpack.c.l.s4 %v7857_v0  ;;  %v4204_v44 = vld [vmem:[%s11722_s3 + $0x100] sm:$0xff]  ;;  %v4209_v0 = vld [vmem:[%s11722_s3 + $0x128] sm:$0xff] }
 0x19a   : > { %v8844_v50 = vpop.permute.xlu1 %1838 }
 0x19b   : > { %888 = vperm.xlu1 %7794, %v8835_v3   ;;  %v8853_v59 = vpop.permute.xlu0 %2334  ;;  %1378 = vperm.xlu0 %7793, %v8479_v41   ;;  %v1734_v5 = vadd.f32 %v1702_v2, %v1474_v8  ;;  %v1992_v20 = vadd.f32 %v1960_v6, %v1732_v10  ;;  %v2483_v41 = vmul.f32 %v8846_v29, %v8623_v11  ;;  %v4221_v11 = vld [vmem:[%s11722_s3 + $0x188] sm:$0xff] }
 0x19c   : > { %v7342_v10 = vpack.c.bf16 %v4205_v28, %v4204_v44  ;;  %v8938_v28 = vld [vmem:[#allocation2 + $0x128] sm:$0xff] }
 0x19d   : > { %v1994_v32 = vadd.f32 %v1962_v7, %v1734_v5  ;;  %v2253_v33 = vadd.f32 %v2221_v42, %v1992_v20  ;;  %v4223_v5 = vld [vmem:[%s11722_s3 + $0x198] sm:$0xff]  ;;  %v2873_v20 = vunpack.c.0.s8 %v2872_v54 }
 0x19e   : > { %v8860_v26 = vpop.permute.xlu1 %2324 }
 0x19f   : > { %1373 = vperm.xlu1 %7794, %v8628_v60   ;;  %v8872_v46 = vpop.permute.xlu0 %2349  ;;  %1863 = vperm.xlu0 %7793, %v8491_v24   ;;  %v2255_v58 = vadd.f32 %v2223_v61, %v1994_v32  ;;  %v2513_v22 = vadd.f32 %v2481_v13, %v2253_v33  ;;  %v4220_v60 = vld [vmem:[%s11722_s3 + $0x180] sm:$0xff]  ;;  %v4207_v13 = vld [vmem:[%s11722_s3 + $0x118] sm:$0xff] }
 0x1a0   : > { %v7340_v24 = vpack.c.bf16 %v4221_v11, %v4220_v60  ;;  %v4208_v11 = vld [vmem:[%s11722_s3 + $0x120] sm:$0xff] }
 0x1a1   : > { %v2515_v2 = vadd.f32 %v2483_v41, %v2255_v58  ;;  %v2773_v6 = vadd.f32 %v2741_v31, %v2513_v22  ;;  %v4224_v58 = vld [vmem:[%s11722_s3 + $0x1a0] sm:$0xff]  ;;  %v4225_v22 = vld [vmem:[%s11722_s3 + $0x1a8] sm:$0xff]  ;;  %v7350_v44 = vpack.c.bf16 %v4209_v0, %v4208_v11  ;;  %v921_v11 = vmul.f32 %v8778_v35, %v8432_v48 }
 0x1a2   : > { %v8877_v43 = vpop.permute.xlu1 %2339  ;;  %7341 = vmatprep.subr.bf16.mxu1 %v7340_v24  ;;  %v2296_v24 = vld [vmem:[#allocation2 + $0xb1] sm:$0xff] }
 0x1a3   : > { %1388 = vperm.xlu1 %7794, %v8646_v15   ;;  %v8892_v8 = vpop.permute.xlu0 %598  ;;  %1878 = vperm.xlu0 %7793, %v8500_v40   ;;  %v2775_v7 = vadd.f32 %v2743_v39, %v2515_v2  ;;  %v4222_v15 = vld [vmem:[%s11722_s3 + $0x190] sm:$0xff]  ;;  %v2806_v32 = vsel %vm2805_vm2, %v2773_v6, -inf  ;;  %v8924_v39 = vsub.s32 %v2873_v20, %v8750_v57  ;;  %v4227_v2 = vld [vmem:[%s11722_s3 + $0x1b8] sm:$0xff] }
 0x1a4   : > { %7343 = vmatpush3.bf16.msra.mxu1 %v7342_v10  ;;  %v7344_v61 = vpack.c.bf16 %v4223_v5, %v4222_v15  ;;  %v4206_v40 = vld [vmem:[%s11722_s3 + $0x110] sm:$0xff]  ;;  %v2299_v5 = vld [vmem:[#allocation2 + $0xd9] sm:$0xff] }
 0x1a5   : > { %v7346_v41 = vpack.c.bf16 %v4207_v13, %v4206_v40  ;;  %v2807_v31 = vsel %vm2805_vm2, %v2775_v7, -inf  ;;  %v4211_v7 = vld [vmem:[%s11722_s3 + $0x138] sm:$0xff]  ;;  %v4228_v40 = vld [vmem:[%s11722_s3 + $0x1c0] sm:$0xff]  ;;  %v4229_v13 = vld [vmem:[%s11722_s3 + $0x1c8] sm:$0xff] }
 0x1a6   : > { %v8895_v42 = vpop.permute.xlu1 %593  ;;  %7345 = vmatprep.subr.bf16.mxu1 %v7344_v61  ;;  %v2808_v60 = vmax.f32 %v2806_v32, %v2807_v31  ;;  %v661_v61 = vmul.f32 %v8765_v55, %v8299_v4  ;;  %v663_v32 = vmul.f32 %v8765_v55, %v8312_v9  ;;  %v7356_v4 = vpack.c.bf16 %v4229_v13, %v4228_v40  ;;  %v4233_v40 = vld [vmem:[%s11722_s3 + $0x1e8] sm:$0xff] }
 0x1a7   : > { %1873 = vperm.xlu1 %7794, %v8690_v37   ;;  %v8911_v33 = vpop.permute.xlu0 %1083  ;;  %2364 = vperm.xlu0 %7793, %v8393_v27   ;;  %v7348_v27 = vpack.c.bf16 %v4225_v22, %v4224_v58  ;;  %v8970_v58 = vld [vmem:[#allocation2 + $0xfa] sm:$0xff] }
 0x1a8   : > { %7347 = vmatpush3.bf16.msra.mxu1 %v7346_v41  ;;  %v8947_v6 = vrot.slane %v2808_v60, %v8924_v39  ;;  %v2870_v41 = vcombine.high %v2808_v60, %v2808_v60  ;;  %v4212_v22 = vld [vmem:[%s11722_s3 + $0x140] sm:$0xff]  ;;  %v695_v13 = vadd.f32 %v8786_v18, %v663_v32 }
 0x1a9   : > { %7349 = vmatprep.subr.bf16.mxu1 %v7348_v27  ;;  %v4213_v27 = vld [vmem:[%s11722_s3 + $0x148] sm:$0xff]  ;;  %v8982_v60 = vld [vmem:[#allocation2 + $0x140] sm:$0xff] }
 0x1aa   : > { %v8915_v37 = vpop.permute.xlu1 %608  ;;  %v2885_v9 = vcombine.high %v8947_v6, %v8947_v6  ;;  %v7358_v0 = vpack.c.bf16 %v4213_v27, %v4212_v22  ;;  %v9016_v22 = vld [vmem:[#allocation2 + $0x122] sm:$0xff] }
 0x1ab   : > { %1888 = vperm.xlu1 %7794, %v8712_v62   ;;  %v8933_v54 = vpop.permute.xlu0 %1098  ;;  %2379 = vperm.xlu0 %7793, %v8423_v45   ;;  %v4226_v62 = vld [vmem:[%s11722_s3 + $0x1b0] sm:$0xff]  ;;  %v4216_v32 = vld [vmem:[%s11722_s3 + $0x160] sm:$0xff] }
 0x1ac   : > { %7351 = vmatpush3.bf16.msra.mxu1 %v7350_v44  ;;  %v7352_v10 = vpack.c.bf16 %v4227_v2, %v4226_v62  ;;  %v4210_v45 = vld [vmem:[%s11722_s3 + $0x130] sm:$0xff]  ;;  %v4231_v44 = vld [vmem:[%s11722_s3 + $0x1d8] sm:$0xff]  ;;  %v923_v62 = vmul.f32 %v8778_v35, %v8429_v47  ;;  %v4232_v47 = vld [vmem:[%s11722_s3 + $0x1e0] sm:$0xff] }
 0x1ad   : > { %v7354_v20 = vpack.c.bf16 %v4211_v7, %v4210_v45  ;;  %v4215_v45 = vld [vmem:[%s11722_s3 + $0x158] sm:$0xff]  ;;  %v361_v7 = vld [vmem:[%s8142_s16 + $0xe0] sm:$0xff] }
 0x1ae   : > { %v8936_v57 = vpop.permute.xlu1 %1093  ;;  %7353 = vmatprep.subr.bf16.mxu1 %v7352_v10  ;;  %v4214_v10 = vld [vmem:[%s11722_s3 + $0x150] sm:$0xff]  ;;  %450 = vst.msk [vmem:[#allocation2 + $0x169] sm:$0xff] %vm365_vm0, %v361_v7  ;;  %v7364_v7 = vpack.c.bf16 %v4233_v40, %v4232_v47 }
 0x1af   : > { %2374 = vperm.xlu1 %7794, %v2296_v24   ;;  %v8955_v15 = vpop.permute.xlu0 %1583  ;;  %623 = vperm.xlu0 %7793, %v8938_v28   ;;  %v4230_v24 = vld [vmem:[%s11722_s3 + $0x1d0] sm:$0xff] }
 0x1b0   : > { %11813 = vst [vmem:[#allocation80_spill] sm:$0xff] %v8955_v15  ;;  %7355 = vmatpush3.bf16.msra.mxu1 %v7354_v20  ;;  %v7360_v48 = vpack.c.bf16 %v4231_v44, %v4230_v24  ;;  %v1181_v20 = vmul.f32 %v8794_v38, %v8450_v52  ;;  %v7362_v52 = vpack.c.bf16 %v4215_v45, %v4214_v10  ;;  %v3214_v44 = vsel %vm3206_vm3, %v2885_v9, -inf  ;;  %v4234_v9 = vld [vmem:[%s11722_s3 + $0x1f0] sm:$0xff] }
 0x1b1   : > { %7357 = vmatprep.subr.bf16.mxu1 %v7356_v4  ;;  %v2884_v4 = vrot.slane %v2870_v41, %v8924_v39  ;;  %v1183_v24 = vmul.f32 %v8794_v38, %v8447_v34  ;;  %v4217_v41 = vld [vmem:[%s11722_s3 + $0x168] sm:$0xff]  ;;  %v9032_v34 = vld [vmem:[#allocation2 + $0x112] sm:$0xff]  ;;  %v3215_v40 = vrot.slane %v3214_v44, 4 }
 0x1b2   : > { %v8968_v31 = vpop.permute.xlu1 %1108 }
 0x1b3   : > { %11814 = vst [vmem:[#allocation81_spill] sm:$0xff] %v8968_v31  ;;  %2389 = vperm.xlu1 %7794, %v2299_v5   ;;  %v8992_v2 = vpop.permute.xlu0 %1598  ;;  %v693_v5 = vadd.f32 %v8786_v18, %v661_v61  ;;  %1123 = vperm.xlu0 %7793, %v8970_v58   ;;  %v2886_v47 = vcombine.high %v2884_v4, %v2884_v4 }
 0x1b4   : > { %11815 = vst [vmem:[#allocation82_spill] sm:$0xff] %v8992_v2  ;;  %7359 = vmatpush3.bf16.msra.mxu1 %v7358_v0  ;;  %v955_v0 = vadd.f32 %v923_v62, %v695_v13  ;;  %v1701_v62 = vmul.f32 %v8812_v36, %v8528_v14  ;;  %v3221_v13 = vsel %vm3206_vm3, %v2884_v4, -inf  ;;  %v7366_v2 = vpack.c.bf16 %v4217_v41, %v4216_v32  ;;  %v4218_v14 = vld [vmem:[%s11722_s3 + $0x170] sm:$0xff] }
 0x1b5   : > { %v953_v27 = vadd.f32 %v921_v11, %v693_v5  ;;  %7361 = vmatprep.subr.bf16.mxu1 %v7360_v48  ;;  %v1441_v11 = vmul.f32 %v8806_v12, %v8494_v23  ;;  %v4235_v48 = vld [vmem:[%s11722_s3 + $0x1f8] sm:$0xff]  ;;  %v1443_v5 = vmul.f32 %v8806_v12, %v8489_v25  ;;  %v3207_v23 = vsel %vm3206_vm3, %v8947_v6, -inf }
 0x1b6   : > { %v9014_v61 = vpop.permute.xlu1 %1593  ;;  %v7368_v25 = vpack.c.bf16 %v4235_v48, %v4234_v9  ;;  %v4219_v6 = vld [vmem:[%s11722_s3 + $0x178] sm:$0xff]  ;;  %v1703_v4 = vmul.f32 %v8812_v36, %v8525_v19  ;;  %v3216_v48 = vmax.f32 %v3214_v44, %v3215_v40  ;;  %v2224_v44 = vmul.f32 %v8837_v49, %v8731_v1 }
 0x1b7   : > { %11816 = vst [vmem:[#allocation83_spill] sm:$0xff] %v9014_v61  ;;  %633 = vperm.xlu1 %7794, %v8982_v60   ;;  %v9030_v10 = vpop.permute.xlu0 %2084  ;;  %v1213_v45 = vadd.f32 %v1181_v20, %v953_v27  ;;  %1138 = vperm.xlu0 %7793, %v9016_v22   ;;  %v1215_v20 = vadd.f32 %v1183_v24, %v955_v0  ;;  %v3987_v27 = vld [vmem:[#allocation3 + $0x2] sm:$0xff]  ;;  %v3208_v24 = vrot.slane %v3207_v23, 4  ;;  %v3222_v0 = vrot.slane %v3221_v13, 4 }
 0x1b8   : > { %7363 = vmatpush3.bf16.msra.mxu1 %v7362_v52  ;;  %v1961_v52 = vmul.f32 %v8824_v63, %v8590_v30  ;;  %3995 = vst.msk [vmem:[#allocation6 + $0x10] sm:$0xff] %vm2805_vm2, %v3987_v27  ;;  %v7370_v19 = vpack.c.bf16 %v4219_v6, %v4218_v14  ;;  %v1963_v30 = vmul.f32 %v8824_v63, %v8587_v17  ;;  %v3217_v17 = vrot.slane %v3216_v48, 2  ;;  %v11818_v1 = vld [vmem:[#allocation72_spill] sm:$0xff] }
 0x1b9   : > { %7365 = vmatprep.subr.bf16.mxu1 %v7364_v7  ;;  %v1473_v31 = vadd.f32 %v1441_v11, %v1213_v45  ;;  %v9063_v7 = vld [vmem:[#allocation2 + $0x13a] sm:$0xff]  ;;  %v1475_v41 = vadd.f32 %v1443_v5, %v1215_v20  ;;  %v3228_v11 = vsel %vm3206_vm3, %v2886_v47, -inf }
 0x1ba   : > { %v9048_v61 = vpop.permute.xlu1 %1608  ;;  %v3229_v47 = vrot.slane %v3228_v11, 4 }
 0x1bb   : > { %11817 = vst [vmem:[#allocation84_spill] sm:$0xff] %v9048_v61  ;;  %1133 = vperm.xlu1 %7794, %v9032_v34   ;;  %v9061_v32 = vpop.permute.xlu0 %2099  ;;  %1623 = vperm.xlu0 %7793, %v8549_v53   ;;  %v1733_v9 = vadd.f32 %v1701_v62, %v1473_v31  ;;  %v2222_v61 = vmul.f32 %v8837_v49, %v8736_v21  ;;  %v2038_v21 = vld [vmem:[#allocation2 + $0xc8] sm:$0xff] }
 0x1bc   : > { %7367 = vmatpush3.bf16.msra.mxu1 %v7366_v2  ;;  %v1735_v5 = vadd.f32 %v1703_v4, %v1475_v41  ;;  %v3209_v53 = vmax.f32 %v3207_v23, %v3208_v24  ;;  %v3223_v62 = vmax.f32 %v3221_v13, %v3222_v0  ;;  %v2482_v2 = vmul.f32 %v8846_v29, %v8860_v26  ;;  %v2041_v0 = vld [vmem:[#allocation2 + $0xf0] sm:$0xff] }
 0x1bd   : > { %7369 = vmatprep.subr.bf16.mxu1 %v7368_v25  ;;  %v1993_v20 = vadd.f32 %v1961_v52, %v1733_v9  ;;  %v2484_v23 = vmul.f32 %v8846_v29, %v8853_v59  ;;  %v3218_v24 = vmax.f32 %v3216_v48, %v3217_v17  ;;  %v2554_v48 = vld [vmem:[#allocation2 + $0x9a] sm:$0xff] }
 0x1be   : > { %v9068_v45 = vpop.permute.xlu1 %2094  ;;  %v1995_v25 = vadd.f32 %v1963_v30, %v1735_v5  ;;  %v3210_v13 = vrot.slane %v3209_v53, 2  ;;  %v3224_v4 = vrot.slane %v3223_v62, 2 }
 0x1bf   : > { %1148 = vperm.xlu1 %7794, %v9063_v7   ;;  %v2585_v31 = vpop.permute.xlu0 %2584  ;;  %1638 = vperm.xlu0 %7793, %v8557_v16   ;;  %v2254_v14 = vadd.f32 %v2222_v61, %v1993_v20  ;;  %v3230_v16 = vmax.f32 %v3228_v11, %v3229_v47  ;;  %v2040_v20 = vld [vmem:[#allocation2 + $0xe0] sm:$0xff]  ;;  %v362_v11 = vld [vmem:[%s8142_s16 + $0xe8] sm:$0xff]  ;;  %v3219_v47 = vrot.slane %v3218_v24, 1 }
 0x1c0   : > { %7371 = vmatpush3.bf16.msra.mxu1 %v7370_v19  ;;  %v2742_v6 = vmul.f32 %v8865_v56, %v2585_v31  ;;  %v2256_v26 = vadd.f32 %v2224_v44, %v1995_v25  ;;  %v11819_v19 = vld [vmem:[#allocation75_spill] sm:$0xff]  ;;  %v3211_v30 = vmax.f32 %v3209_v53, %v3210_v13  ;;  %v3225_v31 = vmax.f32 %v3223_v62, %v3224_v4 }
 0x1c1   : > { %v2514_v52 = vadd.f32 %v2482_v2, %v2254_v14  ;;  %v3231_v44 = vrot.slane %v3230_v16, 2  ;;  %451 = vst.msk [vmem:[#allocation2 + $0x171] sm:$0xff] %vm365_vm0, %v362_v11  ;;  %v2043_v62 = vld [vmem:[#allocation2 + $0x108] sm:$0xff]  ;;  %v3220_v13 = vmax.f32 %v3218_v24, %v3219_v47 }
 0x1c2   : > { %v9080_v40 = vpop.permute.xlu1 %2109  ;;  %v2516_v61 = vadd.f32 %v2484_v23, %v2256_v26  ;;  %v3212_v53 = vrot.slane %v3211_v30, 1 }
 0x1c3   : > { %1633 = vperm.xlu1 %7794, %v11818_v1   ;;  %v9086_v27 = vpop.permute.xlu0 %2599  ;;  %2124 = vperm.xlu0 %7793, %v2038_v21   ;;  %v2774_v9 = vadd.f32 %v2742_v6, %v2514_v52  ;;  %v3226_v6 = vrot.slane %v3225_v31, 1  ;;  %v3232_v1 = vmax.f32 %v3230_v16, %v3231_v44  ;;  %v3656_v47 = vmax.f32 %v3220_v13, 0.0 }
 0x1c5   : > { %v2809_v17 = vsel %vm2805_vm2, %v2774_v9, -inf  ;;  %v3227_v24 = vmax.f32 %v3225_v31, %v3226_v6  ;;  %v3233_v44 = vrot.slane %v3232_v1, 1 }
 0x1c6   : > { %v2595_v41 = vpop.permute.xlu1 %2594 }
 0x1c7   : > { %v2744_v59 = vmul.f32 %v8865_v56, %v2595_v41  ;;  %1648 = vperm.xlu1 %7794, %v11819_v19   ;;  %v9090_v5 = vpop.permute.xlu0 %843  ;;  %2139 = vperm.xlu0 %7793, %v2041_v0   ;;  %v2557_v41 = vld [vmem:[#allocation2 + $0xc2] sm:$0xff]  ;;  %v3213_v0 = vmax.f32 %v3211_v30, %v3212_v53 }
 0x1c8   : > { %11820 = vst [vmem:[#allocation72_spill] sm:$0xff] %v9090_v5  ;;  %v9113_v53 = vld [vmem:[#allocation2 + $0x129] sm:$0xff] }
 0x1c9   : > { %v2776_v25 = vadd.f32 %v2744_v59, %v2516_v61  ;;  %v3655_v6 = vmax.f32 %v3213_v0, 0.0 }
 0x1ca   : > { %v9093_v2 = vpop.permute.xlu1 %2609 }
 0x1cb   : > { %v2810_v21 = vsel %vm2805_vm2, %v2776_v25, -inf  ;;  %2134 = vperm.xlu1 %7794, %v2040_v20   ;;  %v9098_v23 = vpop.permute.xlu0 %858  ;;  %2624 = vperm.xlu0 %7793, %v2554_v48   ;;  %v2556_v20 = vld [vmem:[#allocation2 + $0xb2] sm:$0xff]  ;;  %v11824_v25 = vld [vmem:[#allocation10_spill] sm:$0xff] }
 0x1cc   : > { %v2811_v14 = vmax.f32 %v2809_v17, %v2810_v21  ;;  %11821 = vst [vmem:[#allocation75_spill] sm:$0xff] %v9098_v23  ;;  %v664_v16 = vmul.f32 %v8765_v55, %v11824_v25 }
 0x1ce   : > { %v2887_v26 = vcombine.high %v2811_v14, %v2811_v14  ;;  %v2894_v4 = vrot.slane %v2811_v14, %v8924_v39  ;;  %v9101_v52 = vpop.permute.xlu1 %853 }
 0x1cf   : > { %11822 = vst [vmem:[#allocation85_spill] sm:$0xff] %v9101_v52  ;;  %2149 = vperm.xlu1 %7794, %v2043_v62   ;;  %v9105_v19 = vpop.permute.xlu0 %1343  ;;  %2639 = vperm.xlu0 %7793, %v2557_v41  }
 0x1d0   : > { %v2901_v61 = vrot.slane %v2887_v26, %v8924_v39  ;;  %v2902_v9 = vcombine.high %v2894_v4, %v2894_v4  ;;  %v3235_v59 = vsel %vm3206_vm3, %v2894_v4, -inf  ;;  %11823 = vst [vmem:[#allocation86_spill] sm:$0xff] %v9105_v19  ;;  %v11826_v4 = vld [vmem:[#allocation11_spill] sm:$0xff] }
 0x1d1   : > { %v3236_v11 = vrot.slane %v3235_v59, 4  ;;  %v666_v31 = vmul.f32 %v8765_v55, %v11826_v4  ;;  %v3804_v4 = vsel %vm3803_vm4, %v3656_v47, %v3655_v6 }
 0x1d2   : > { %v2903_v48 = vcombine.high %v2901_v61, %v2901_v61  ;;  %v3242_v17 = vsel %vm3206_vm3, %v2902_v9, -inf  ;;  %v3249_v30 = vsel %vm3206_vm3, %v2901_v61, -inf  ;;  %v9111_v21 = vpop.permute.xlu1 %868  ;;  %v2559_v9 = vld [vmem:[#allocation2 + $0xda] sm:$0xff] }
 0x1d3   : > { %11825 = vst [vmem:[#allocation10_spill] sm:$0xff] %v9111_v21  ;;  %v3237_v14 = vmax.f32 %v3235_v59, %v3236_v11  ;;  %v3243_v62 = vrot.slane %v3242_v17, 4  ;;  %v3250_v26 = vrot.slane %v3249_v30, 4  ;;  %2634 = vperm.xlu1 %7794, %v2556_v20   ;;  %v9118_v41 = vpop.permute.xlu0 %1358  ;;  %883 = vperm.xlu0 %7793, %v9113_v53   ;;  %v11828_v59 = vld [vmem:[#allocation25_spill] sm:$0xff]  ;;  %v3234_v20 = vmax.f32 %v3232_v1, %v3233_v44 }
 0x1d4   : > { %v3256_v13 = vsel %vm3206_vm3, %v2903_v48, -inf  ;;  %11827 = vst [vmem:[#allocation11_spill] sm:$0xff] %v9118_v41  ;;  %v926_v11 = vmul.f32 %v8778_v35, %v11828_v59  ;;  %v3657_v21 = vmax.f32 %v3227_v24, 0.0  ;;  %v9132_v1 = vld [vmem:[#allocation2 + $0x141] sm:$0xff] }
 0x1d5   : > { %v3238_v61 = vrot.slane %v3237_v14, 2  ;;  %v3244_v25 = vmax.f32 %v3242_v17, %v3243_v62  ;;  %v3251_v52 = vmax.f32 %v3249_v30, %v3250_v26  ;;  %v3257_v5 = vrot.slane %v3256_v13, 4  ;;  %v11830_v62 = vld [vmem:[#allocation26_spill] sm:$0xff] }
 0x1d6   : > { %v9124_v19 = vpop.permute.xlu1 %1353  ;;  %v696_v17 = vadd.f32 %v8786_v18, %v664_v16  ;;  %v698_v30 = vadd.f32 %v8786_v18, %v666_v31  ;;  %v924_v26 = vmul.f32 %v8778_v35, %v11830_v62 }
 0x1d7   : > { %11829 = vst [vmem:[#allocation25_spill] sm:$0xff] %v9124_v19  ;;  %v3239_v0 = vmax.f32 %v3237_v14, %v3238_v61  ;;  %v3245_v48 = vrot.slane %v3244_v25, 2  ;;  %v3252_v23 = vrot.slane %v3251_v52, 2  ;;  %v3258_v41 = vmax.f32 %v3256_v13, %v3257_v5  ;;  %2649 = vperm.xlu1 %7794, %v2559_v9   ;;  %v9130_v15 = vpop.permute.xlu0 %1843  ;;  %v11832_v14 = vld [vmem:[#allocation54_spill] sm:$0xff] }
 0x1d8   : > { %11831 = vst [vmem:[#allocation26_spill] sm:$0xff] %v9130_v15  ;;  %1383 = vperm.xlu0 %7793, %v11832_v14   ;;  %v958_v61 = vadd.f32 %v926_v11, %v698_v30  ;;  %v3658_v5 = vmax.f32 %v3234_v20, 0.0  ;;  %v3806_v13 = vsel %vm3805_vm5, %v3657_v21, %v3804_v4  ;;  %v956_v19 = vadd.f32 %v924_v26, %v696_v17  ;;  %v11834_v15 = vld [vmem:[#allocation27_spill] sm:$0xff]  ;;  %v11838_v30 = vld [vmem:[#allocation33_spill] sm:$0xff] }
 0x1d9   : > { %v3240_v24 = vrot.slane %v3239_v0, 1  ;;  %v3246_v44 = vmax.f32 %v3244_v25, %v3245_v48  ;;  %v3253_v47 = vmax.f32 %v3251_v52, %v3252_v23  ;;  %v3259_v6 = vrot.slane %v3258_v41, 2  ;;  %v11835_v52 = vld [vmem:[#allocation28_spill] sm:$0xff] }
 0x1da   : > { %v9136_v16 = vpop.permute.xlu1 %1368  ;;  %v1186_v23 = vmul.f32 %v8794_v38, %v11834_v15  ;;  %v1184_v25 = vmul.f32 %v8794_v38, %v11835_v52  ;;  %v3808_v17 = vsel %vm3807_vm6, %v3658_v5, %v3806_v13  ;;  %v9159_v13 = vld [vmem:[#allocation2 + $0x150] sm:$0xff] }
 0x1db   : > { %11833 = vst [vmem:[#allocation54_spill] sm:$0xff] %v9136_v16  ;;  %v3241_v31 = vmax.f32 %v3239_v0, %v3240_v24  ;;  %v3247_v9 = vrot.slane %v3246_v44, 1  ;;  %v3254_v59 = vrot.slane %v3253_v47, 1  ;;  %v3260_v62 = vmax.f32 %v3258_v41, %v3259_v6  ;;  %893 = vperm.xlu1 %7794, %v9132_v1   ;;  %v9143_v11 = vpop.permute.xlu0 %1858  ;;  %v11837_v0 = vld [vmem:[#allocation57_spill] sm:$0xff] }
 0x1dc   : > { %11836 = vst [vmem:[#allocation27_spill] sm:$0xff] %v9143_v11  ;;  %1398 = vperm.xlu0 %7793, %v11837_v0   ;;  %v1446_v41 = vmul.f32 %v8806_v12, %v11838_v30  ;;  %v1216_v52 = vadd.f32 %v1184_v25, %v956_v19 }
 0x1dd   : > { %v3248_v21 = vmax.f32 %v3246_v44, %v3247_v9  ;;  %v3255_v20 = vmax.f32 %v3253_v47, %v3254_v59  ;;  %v3261_v4 = vrot.slane %v3260_v62, 1  ;;  %v3659_v48 = vmax.f32 %v3241_v31, 0.0  ;;  %v11840_v47 = vld [vmem:[#allocation34_spill] sm:$0xff]  ;;  %v11841_v9 = vld [vmem:[#allocation39_spill] sm:$0xff] }
 0x1de   : > { %v9149_v15 = vpop.permute.xlu1 %1853  ;;  %v1218_v44 = vadd.f32 %v1186_v23, %v958_v61  ;;  %v1444_v31 = vmul.f32 %v8806_v12, %v11840_v47  ;;  %v1706_v59 = vmul.f32 %v8812_v36, %v11841_v9  ;;  %v11844_v23 = vld [vmem:[#allocation49_spill] sm:$0xff]  ;;  %v11848_v47 = vld [vmem:[#allocation62_spill] sm:$0xff] }
 0x1df   : > { %11839 = vst [vmem:[#allocation28_spill] sm:$0xff] %v9149_v15  ;;  %v3262_v26 = vmax.f32 %v3260_v62, %v3261_v4  ;;  %v3660_v24 = vmax.f32 %v3248_v21, 0.0  ;;  %v3661_v6 = vmax.f32 %v3255_v20, 0.0  ;;  %v3810_v14 = vsel %vm3809_vm7, %v3659_v48, %v3808_v17  ;;  %1393 = vperm.xlu1 %7794, %v8938_v28   ;;  %v9157_v5 = vpop.permute.xlu0 %2344  ;;  %v11842_v20 = vld [vmem:[#allocation60_spill] sm:$0xff] }
 0x1e0   : > { %1883 = vperm.xlu0 %7793, %v11842_v20   ;;  %v1478_v4 = vadd.f32 %v1446_v41, %v1218_v44  ;;  %v11843_v28 = vld [vmem:[#allocation40_spill] sm:$0xff]  ;;  %v1966_v48 = vmul.f32 %v8824_v63, %v11844_v23  ;;  %v1476_v19 = vadd.f32 %v1444_v31, %v1216_v52  ;;  %v11847_v41 = vld [vmem:[#allocation63_spill] sm:$0xff]  ;;  %v2487_v31 = vmul.f32 %v8846_v29, %v8872_v46 }
 0x1e1   : > { %v3662_v62 = vmax.f32 %v3262_v26, 0.0  ;;  %v3812_v21 = vsel %vm3811_vm8, %v3660_v24, %v3810_v14  ;;  %v1704_v61 = vmul.f32 %v8812_v36, %v11843_v28  ;;  %v11846_v26 = vld [vmem:[#allocation50_spill] sm:$0xff]  ;;  %v2227_v14 = vmul.f32 %v8837_v49, %v11847_v41 }
 0x1e2   : > { %v3814_v0 = vsel %vm3813_vm9, %v3661_v6, %v3812_v21  ;;  %v9168_v30 = vpop.permute.xlu1 %1868  ;;  %v1738_v25 = vadd.f32 %v1706_v59, %v1478_v4  ;;  %v1964_v24 = vmul.f32 %v8824_v63, %v11846_v26  ;;  %v11849_v21 = vld [vmem:[#allocation64_spill] sm:$0xff]  ;;  %v2298_v52 = vld [vmem:[#allocation2 + $0xc9] sm:$0xff]  ;;  %v2485_v28 = vmul.f32 %v8846_v29, %v8877_v43 }
 0x1e3   : > { %11845 = vst [vmem:[#allocation57_spill] sm:$0xff] %v9168_v30  ;;  %v3816_v17 = vsel %vm3815_vm10, %v3662_v62, %v3814_v0  ;;  %1408 = vperm.xlu1 %7794, %v9159_v13   ;;  %v9177_v44 = vpop.permute.xlu0 %2359  ;;  %v1736_v6 = vadd.f32 %v1704_v61, %v1476_v19  ;;  %v2225_v62 = vmul.f32 %v8837_v49, %v11849_v21  ;;  %v2301_v19 = vld [vmem:[#allocation2 + $0xf1] sm:$0xff] }
 0x1e4   : > { %3875 = vst.msk [vmem:[#allocation3 + $0x11] sm:$0xff] %vm2805_vm2, %v3816_v17  ;;  %1898 = vperm.xlu0 %7793, %v11848_v47   ;;  %v1998_v9 = vadd.f32 %v1966_v48, %v1738_v25  ;;  %v2747_v61 = vmul.f32 %v8865_v56, %v9093_v2  ;;  %v2745_v46 = vmul.f32 %v8865_v56, %v9086_v27  ;;  %v2300_v2 = vld [vmem:[#allocation2 + $0xe1] sm:$0xff] }
 0x1e5   : > { %v1996_v20 = vadd.f32 %v1964_v24, %v1736_v6  ;;  %v9208_v6 = vld [vmem:[#allocation2 + $0x12a] sm:$0xff] }
 0x1e6   : > { %v9184_v59 = vpop.permute.xlu1 %2354  ;;  %v2259_v4 = vadd.f32 %v2227_v14, %v1998_v9 }
 0x1e7   : > { %1893 = vperm.xlu1 %7794, %v8970_v58   ;;  %v9191_v23 = vpop.permute.xlu0 %603  ;;  %v2257_v48 = vadd.f32 %v2225_v62, %v1996_v20  ;;  %v2303_v62 = vld [vmem:[#allocation2 + $0x109] sm:$0xff]  ;;  %v4102_v20 = vld [vmem:[#allocation6 + $0x10] sm:$0xff] }
 0x1e8   : > { %11850 = vst [vmem:[#allocation33_spill] sm:$0xff] %v9191_v23  ;;  %2384 = vperm.xlu0 %7793, %v2298_v52   ;;  %v2519_v0 = vadd.f32 %v2487_v31, %v2259_v4  ;;  %v363_v4 = vld [vmem:[%s8142_s16 + $0xf0] sm:$0xff] }
 0x1e9   : > { %v2517_v43 = vadd.f32 %v2485_v28, %v2257_v48  ;;  %452 = vst.msk [vmem:[#allocation2 + $0x181] sm:$0xff] %vm365_vm0, %v363_v4 }
 0x1ea   : > { %v9195_v17 = vpop.permute.xlu1 %2369  ;;  %v2779_v24 = vadd.f32 %v2747_v61, %v2519_v0 }
 0x1eb   : > { %1908 = vperm.xlu1 %7794, %v9016_v22   ;;  %v3972_v58 = vld [vmem:[#allocation3 + $0x11] sm:$0xff]  ;;  %v9198_v41 = vpop.permute.xlu0 %618  ;;  %v2777_v22 = vadd.f32 %v2745_v46, %v2517_v43 }
 0x1ec   : > { %v4003_v25 = vld [vmem:[#allocation3 + $0x10] sm:$0xff]  ;;  %11851 = vst [vmem:[#allocation34_spill] sm:$0xff] %v9198_v41  ;;  %3980 = vst.msk [vmem:[#allocation6 + $0x50] sm:$0xff] %vm2805_vm2, %v3972_v58  ;;  %2399 = vperm.xlu0 %7793, %v2301_v19   ;;  %v2813_v9 = vsel %vm2805_vm2, %v2779_v24, -inf  ;;  %v11859_v24 = vld [vmem:[#allocation12_spill] sm:$0xff] }
 0x1ed   : > { %v3988_v26 = vld [vmem:[#allocation3 + $0x12] sm:$0xff]  ;;  %4011 = vst.msk [vmem:[#allocation6 + $0x18] sm:$0xff] %vm2805_vm2, %v4003_v25  ;;  %3964 = vst.msk [vmem:[#allocation6 + $0x48] sm:$0xff] %vm2805_vm2, %v4003_v25  ;;  %v2812_v31 = vsel %vm2805_vm2, %v2777_v22, -inf  ;;  %v2042_v22 = vld [vmem:[#allocation2 + $0xf8] sm:$0xff] }
 0x1ee   : > { %3996 = vst.msk [vmem:[#allocation6 + $0x58] sm:$0xff] %vm2805_vm2, %v3988_v26  ;;  %v4035_v27 = vld [vmem:[#allocation3 + $0x12] sm:$0xff]  ;;  %v9206_v47 = vpop.permute.xlu1 %613  ;;  %v2814_v28 = vmax.f32 %v2812_v31, %v2813_v9 }
 0x1ef   : > { %v4019_v14 = vld [vmem:[#allocation3 + $0x11] sm:$0xff]  ;;  %4043 = vst.msk [vmem:[#allocation6 + $0x28] sm:$0xff] %vm2805_vm2, %v4035_v27  ;;  %11852 = vst [vmem:[#allocation39_spill] sm:$0xff] %v9206_v47  ;;  %2394 = vperm.xlu1 %7794, %v2300_v2   ;;  %v9211_v21 = vpop.permute.xlu0 %1103  ;;  %v665_v2 = vmul.f32 %v8765_v55, %v11859_v24 }
 0x1f0   : > { %4027 = vst.msk [vmem:[#allocation6 + $0x20] sm:$0xff] %vm2805_vm2, %v4019_v14  ;;  %11853 = vst [vmem:[#allocation60_spill] sm:$0xff] %v9211_v21  ;;  %1143 = vperm.xlu0 %7793, %v9208_v6   ;;  %v9221_v19 = vld [vmem:[#allocation2 + $0x142] sm:$0xff]  ;;  %v2911_v26 = vrot.slane %v2814_v28, %v8924_v39  ;;  %v2904_v27 = vcombine.high %v2814_v28, %v2814_v28 }
 0x1f1   : > { %v11856_v58 = vld [vmem:[#allocation77_spill] sm:$0xff]  ;;  %v11861_v9 = vld [vmem:[#allocation14_spill] sm:$0xff] }
 0x1f2   : > { %v9215_v52 = vpop.permute.xlu1 %628  ;;  %v11862_v31 = vld [vmem:[#allocation30_spill] sm:$0xff]  ;;  %v2919_v4 = vcombine.high %v2911_v26, %v2911_v26  ;;  %v11870_v47 = vld [vmem:[#allocation45_spill] sm:$0xff] }
 0x1f3   : > { %11854 = vst [vmem:[#allocation40_spill] sm:$0xff] %v9215_v52  ;;  %2409 = vperm.xlu1 %7794, %v2303_v62   ;;  %v4110_v61 = vld [vmem:[#allocation6 + $0x50] sm:$0xff]  ;;  %v9219_v46 = vpop.permute.xlu0 %1118  ;;  %v667_v62 = vmul.f32 %v8765_v55, %v11861_v9  ;;  %v364_v9 = vld [vmem:[%s8142_s16 + $0xf8] sm:$0xff] }
 0x1f4   : > { %v4103_v48 = vld [vmem:[#allocation6 + $0x18] sm:$0xff]  ;;  %v4109_v0 = vld [vmem:[#allocation6 + $0x48] sm:$0xff]  ;;  %11855 = vst [vmem:[#allocation49_spill] sm:$0xff] %v9219_v46  ;;  %4392 = vmatprep.mubr.f32.mxu0 %v4110_v61  ;;  %1643 = vperm.xlu0 %7793, %v11856_v58   ;;  %v2045_v21 = vld [vmem:[#allocation2 + $0x120] sm:$0xff] }
 0x1f5   : > { %4492 = vmatprep.mubr.f32.mxu1 %v4103_v48  ;;  %4393 = vmatmul.mubr.f32.gmra.mrb[2].mxu0 %v4109_v0  ;;  %v9242_v48 = vld [vmem:[#allocation2 + $0x151] sm:$0xff]  ;;  %v697_v0 = vadd.f32 %v8786_v18, %v665_v2  ;;  %453 = vst.msk [vmem:[#allocation2 + $0x189] sm:$0xff] %vm365_vm0, %v364_v9  ;;  %v1447_v9 = vmul.f32 %v8806_v12, %v11870_v47  ;;  %v11874_v47 = vld [vmem:[#allocation78_spill] sm:$0xff] }
 0x1f6   : > { %v9224_v25 = vpop.permute.xlu1 %1113  ;;  %4493 = vmatmul.mubr.f32.vlgmr.msra.gmra.mrb[0].mxu1 %v4102_v20  ;;  %v925_v20 = vmul.f32 %v8778_v35, %v11862_v31  ;;  %v11865_v58 = vld [vmem:[#allocation36_spill] sm:$0xff] }
 0x1f7   : > { %11857 = vst [vmem:[#allocation50_spill] sm:$0xff] %v9224_v25  ;;  %1153 = vperm.xlu1 %7794, %v9221_v19   ;;  %v9228_v43 = vpop.permute.xlu0 %1603  ;;  %v1185_v24 = vmul.f32 %v8794_v38, %v11865_v58  ;;  %v2918_v25 = vrot.slane %v2904_v27, %v8924_v39  ;;  %v11868_v58 = vld [vmem:[#allocation46_spill] sm:$0xff]  ;;  %v2044_v27 = vld [vmem:[#allocation2 + $0x110] sm:$0xff] }
 0x1f8   : > { %11858 = vst [vmem:[#allocation63_spill] sm:$0xff] %v9228_v43  ;;  %1658 = vperm.xlu0 %7793, %v8835_v3   ;;  %v11864_v3 = vld [vmem:[#allocation29_spill] sm:$0xff]  ;;  %v11867_v43 = vld [vmem:[#allocation35_spill] sm:$0xff] }
 0x1f9   : > { %v927_v28 = vmul.f32 %v8778_v35, %v11864_v3  ;;  %v1187_v2 = vmul.f32 %v8794_v38, %v11867_v43  ;;  %v3270_v3 = vsel %vm3206_vm3, %v2919_v4, -inf }
 0x1fa   : > { %v9233_v14 = vpop.permute.xlu1 %1128  ;;  %v3271_v4 = vrot.slane %v3270_v3, 4 }
 0x1fb   : > { %11860 = vst [vmem:[#allocation62_spill] sm:$0xff] %v9233_v14  ;;  %1653 = vperm.xlu1 %7794, %v9113_v53   ;;  %v9240_v61 = vpop.permute.xlu0 %1618  ;;  %v957_v14 = vadd.f32 %v925_v20, %v697_v0  ;;  %v2920_v20 = vcombine.high %v2918_v25, %v2918_v25  ;;  %v3277_v0 = vsel %vm3206_vm3, %v2918_v25, -inf }
 0x1fc   : > { %11863 = vst [vmem:[#allocation64_spill] sm:$0xff] %v9240_v61  ;;  %2144 = vperm.xlu0 %7793, %v2042_v22   ;;  %v699_v61 = vadd.f32 %v8786_v18, %v667_v62  ;;  %v1445_v22 = vmul.f32 %v8806_v12, %v11868_v58  ;;  %v3263_v18 = vsel %vm3206_vm3, %v2911_v26, -inf  ;;  %v11871_v62 = vld [vmem:[#allocation58_spill] sm:$0xff]  ;;  %v1965_v26 = vmul.f32 %v8824_v63, %v11874_v47 }
 0x1fd   : > { %v1217_v52 = vadd.f32 %v1185_v24, %v957_v14  ;;  %v1705_v43 = vmul.f32 %v8812_v36, %v11871_v62  ;;  %v2558_v58 = vld [vmem:[#allocation2 + $0xca] sm:$0xff]  ;;  %v11873_v14 = vld [vmem:[#allocation56_spill] sm:$0xff]  ;;  %v3278_v30 = vrot.slane %v3277_v0, 4  ;;  %v3272_v16 = vmax.f32 %v3270_v3, %v3271_v4 }
 0x1fe   : > { %v9251_v31 = vpop.permute.xlu1 %1613  ;;  %v2047_v62 = vld [vmem:[#allocation2 + $0x138] sm:$0xff] }
 0x1ff   : > { %11866 = vst [vmem:[#allocation77_spill] sm:$0xff] %v9251_v31  ;;  %1668 = vperm.xlu1 %7794, %v9242_v48   ;;  %v9261_v46 = vpop.permute.xlu0 %2104  ;;  %v959_v31 = vadd.f32 %v927_v28, %v699_v61  ;;  %v1477_v61 = vadd.f32 %v1445_v22, %v1217_v52  ;;  %v1707_v28 = vmul.f32 %v8812_v36, %v11873_v14  ;;  %v2561_v52 = vld [vmem:[#allocation2 + $0xf2] sm:$0xff] }
 0x200   : > { %11869 = vst [vmem:[#allocation12_spill] sm:$0xff] %v9261_v46  ;;  %2159 = vperm.xlu0 %7793, %v2045_v21   ;;  %v3264_v21 = vrot.slane %v3263_v18, 4  ;;  %v3279_v3 = vmax.f32 %v3277_v0, %v3278_v30 }
 0x201   : > { %v1219_v23 = vadd.f32 %v1187_v2, %v959_v31  ;;  %v1737_v25 = vadd.f32 %v1705_v43, %v1477_v61  ;;  %v11877_v2 = vld [vmem:[#allocation76_spill] sm:$0xff]  ;;  %v2486_v43 = vmul.f32 %v8846_v29, %v9157_v5 }
 0x202   : > { %v9269_v41 = vpop.permute.xlu1 %1628  ;;  %v1967_v22 = vmul.f32 %v8824_v63, %v11877_v2  ;;  %v3280_v0 = vrot.slane %v3279_v3, 2 }
 0x203   : > { %11872 = vst [vmem:[#allocation14_spill] sm:$0xff] %v9269_v41  ;;  %2154 = vperm.xlu1 %7794, %v2044_v27   ;;  %v9275_v24 = vpop.permute.xlu0 %2119  ;;  %v1479_v11 = vadd.f32 %v1447_v9, %v1219_v23  ;;  %v3284_v41 = vsel %vm3206_vm3, %v2920_v20, -inf  ;;  %v2226_v27 = vmul.f32 %v8837_v49, %v9030_v10  ;;  %v1997_v47 = vadd.f32 %v1965_v26, %v1737_v25 }
 0x204   : > { %11875 = vst [vmem:[#allocation30_spill] sm:$0xff] %v9275_v24  ;;  %2644 = vperm.xlu0 %7793, %v2558_v58   ;;  %v3265_v24 = vmax.f32 %v3263_v18, %v3264_v21  ;;  %v2560_v58 = vld [vmem:[#allocation2 + $0xe2] sm:$0xff]  ;;  %v2228_v23 = vmul.f32 %v8837_v49, %v9068_v45  ;;  %v3285_v9 = vrot.slane %v3284_v41, 4  ;;  %v3273_v20 = vrot.slane %v3272_v16, 2  ;;  %v2563_v45 = vld [vmem:[#allocation2 + $0x10a] sm:$0xff] }
 0x205   : > { %v1739_v14 = vadd.f32 %v1707_v28, %v1479_v11  ;;  %v2258_v10 = vadd.f32 %v2226_v27, %v1997_v47  ;;  %v2488_v11 = vmul.f32 %v8846_v29, %v9184_v59  ;;  %v9299_v27 = vld [vmem:[#allocation2 + $0x158] sm:$0xff] }
 0x206   : > { %v9278_v31 = vpop.permute.xlu1 %2114  ;;  %v3266_v28 = vrot.slane %v3265_v24, 2  ;;  %v3286_v21 = vmax.f32 %v3284_v41, %v3285_v9 }
 0x207   : > { %11876 = vst [vmem:[#allocation29_spill] sm:$0xff] %v9278_v31  ;;  %2169 = vperm.xlu1 %7794, %v2047_v62   ;;  %v2605_v46 = vpop.permute.xlu0 %2604  ;;  %v1999_v61 = vadd.f32 %v1967_v22, %v1739_v14  ;;  %v2518_v5 = vadd.f32 %v2486_v43, %v2258_v10  ;;  %v3274_v62 = vmax.f32 %v3272_v16, %v3273_v20 }
 0x208   : > { %2659 = vperm.xlu0 %7793, %v2561_v52   ;;  %v2746_v18 = vmul.f32 %v8865_v56, %v2605_v46  ;;  %v3267_v59 = vmax.f32 %v3265_v24, %v3266_v28  ;;  %v3281_v14 = vmax.f32 %v3279_v3, %v3280_v0  ;;  %v3287_v47 = vrot.slane %v3286_v21, 2  ;;  %v11882_v3 = vld [vmem:[#allocation15_spill] sm:$0xff]  ;;  %v9320_v0 = vld [vmem:[%s11721_s2] ss:$0 sm:$0xff] }
 0x209   : > { %v2260_v30 = vadd.f32 %v2228_v23, %v1999_v61  ;;  %v3275_v41 = vrot.slane %v3274_v62, 1  ;;  %v670_v61 = vmul.f32 %v8765_v55, %v11882_v3  ;;  %v2305_v3 = vld [vmem:[#allocation2 + $0x121] sm:$0xff] }
 0x20a   : > { %v9288_v4 = vpop.permute.xlu1 %2129  ;;  %v2778_v2 = vadd.f32 %v2746_v18, %v2518_v5  ;;  %v3268_v24 = vrot.slane %v3267_v59, 1  ;;  %v3288_v10 = vmax.f32 %v3286_v21, %v3287_v47  ;;  %v9330_v47 = vld [vmem:[#allocation2 + $0x152] sm:$0xff] }
 0x20b   : > { %11878 = vst [vmem:[#allocation36_spill] sm:$0xff] %v9288_v4  ;;  %2654 = vperm.xlu1 %7794, %v2560_v58   ;;  %v9293_v26 = vpop.permute.xlu0 %2619  ;;  %v2520_v52 = vadd.f32 %v2488_v11, %v2260_v30  ;;  %v3276_v11 = vmax.f32 %v3274_v62, %v3275_v41  ;;  %v2302_v30 = vld [vmem:[#allocation2 + $0xf9] sm:$0xff]  ;;  %11886 = vst [vmem:[#allocation56_spill] sm:$0xff] %v9330_v47 }
 0x20c   : > { %1403 = vperm.xlu0 %7793, %v8982_v60   ;;  %v11880_v60 = vld [vmem:[#allocation13_spill] sm:$0xff]  ;;  %v2815_v9 = vsel %vm2805_vm2, %v2778_v2, -inf }
 0x20d   : > { %v668_v16 = vmul.f32 %v8765_v55, %v11880_v60  ;;  %v3289_v60 = vrot.slane %v3288_v10, 1 }
 0x20e   : > { %v2615_v25 = vpop.permute.xlu1 %2614 }
 0x20f   : > { %v2748_v22 = vmul.f32 %v8865_v56, %v2615_v25  ;;  %2669 = vperm.xlu1 %7794, %v2563_v45   ;;  %v9297_v46 = vpop.permute.xlu0 %863  ;;  %v700_v5 = vadd.f32 %v9320_v0, %v668_v16  ;;  %v11884_v25 = vld [vmem:[#allocation31_spill] sm:$0xff] }
 0x210   : > { %11879 = vst [vmem:[#allocation35_spill] sm:$0xff] %v9297_v46  ;;  %1903 = vperm.xlu0 %7793, %v9032_v34   ;;  %v3282_v34 = vrot.slane %v3281_v14, 1  ;;  %v3290_v46 = vmax.f32 %v3288_v10, %v3289_v60  ;;  %v2307_v10 = vld [vmem:[#allocation2 + $0x139] sm:$0xff] }
 0x211   : > { %v2780_v58 = vadd.f32 %v2748_v22, %v2520_v52  ;;  %v930_v52 = vmul.f32 %v8778_v35, %v11884_v25 }
 0x212   : > { %v9302_v23 = vpop.permute.xlu1 %2629  ;;  %v3283_v41 = vmax.f32 %v3281_v14, %v3282_v34  ;;  %v11889_v34 = vld [vmem:[#allocation37_spill] sm:$0xff] }
 0x213   : > { %v2816_v56 = vsel %vm2805_vm2, %v2780_v58, -inf  ;;  %1413 = vperm.xlu1 %7794, %v9299_v27   ;;  %v9309_v20 = vpop.permute.xlu0 %878  ;;  %v702_v58 = vadd.f32 %v9320_v0, %v670_v61  ;;  %v11888_v61 = vld [vmem:[#allocation32_spill] sm:$0xff] }
 0x214   : > { %v2817_v43 = vmax.f32 %v2815_v9, %v2816_v56  ;;  %11881 = vst [vmem:[#allocation46_spill] sm:$0xff] %v9309_v20  ;;  %1918 = vperm.xlu0 %7793, %v9063_v7   ;;  %v3269_v7 = vmax.f32 %v3267_v59, %v3268_v24  ;;  %v3664_v9 = vmax.f32 %v3276_v11, 0.0  ;;  %v928_v14 = vmul.f32 %v8778_v35, %v11888_v61 }
 0x215   : > { %v1190_v11 = vmul.f32 %v8794_v38, %v11889_v34  ;;  %v3665_v4 = vmax.f32 %v3283_v41, 0.0 }
 0x216   : > { %v2921_v18 = vcombine.high %v2817_v43, %v2817_v43  ;;  %v2928_v28 = vrot.slane %v2817_v43, %v8924_v39  ;;  %v9315_v45 = vpop.permute.xlu1 %873 }
 0x217   : > { %11883 = vst [vmem:[#allocation45_spill] sm:$0xff] %v9315_v45  ;;  %1913 = vperm.xlu1 %7794, %v9208_v6   ;;  %v9328_v22 = vpop.permute.xlu0 %1363 }
 0x218   : > { %v2935_v21 = vrot.slane %v2921_v18, %v8924_v39  ;;  %v2936_v62 = vcombine.high %v2928_v28, %v2928_v28  ;;  %v3291_v2 = vsel %vm3206_vm3, %v2928_v28, -inf  ;;  %11885 = vst [vmem:[#allocation58_spill] sm:$0xff] %v9328_v22  ;;  %2404 = vperm.xlu0 %7793, %v2302_v30   ;;  %v962_v18 = vadd.f32 %v930_v52, %v702_v58  ;;  %v11891_v58 = vld [vmem:[#allocation38_spill] sm:$0xff] }
 0x219   : > { %v3292_v16 = vrot.slane %v3291_v2, 4  ;;  %v3663_v30 = vmax.f32 %v3269_v7, 0.0 }
 0x21a   : > { %v2937_v56 = vcombine.high %v2935_v21, %v2935_v21  ;;  %v3298_v43 = vsel %vm3206_vm3, %v2936_v62, -inf  ;;  %v3305_v59 = vsel %vm3206_vm3, %v2935_v21, -inf  ;;  %v9335_v24 = vpop.permute.xlu1 %888  ;;  %v2304_v21 = vld [vmem:[#allocation2 + $0x111] sm:$0xff] }
 0x21b   : > { %11887 = vst [vmem:[#allocation78_spill] sm:$0xff] %v9335_v24  ;;  %v3293_v28 = vmax.f32 %v3291_v2, %v3292_v16  ;;  %v3299_v25 = vrot.slane %v3298_v43, 4  ;;  %v3306_v22 = vrot.slane %v3305_v59, 4  ;;  %1928 = vperm.xlu1 %7794, %v9330_v47   ;;  %v9343_v45 = vpop.permute.xlu0 %1378  ;;  %v1188_v16 = vmul.f32 %v8794_v38, %v11891_v58 }
 0x21c   : > { %v3312_v62 = vsel %vm3206_vm3, %v2937_v56, -inf  ;;  %11890 = vst [vmem:[#allocation76_spill] sm:$0xff] %v9343_v45  ;;  %2419 = vperm.xlu0 %7793, %v2305_v3   ;;  %v3817_v61 = vsel %vm3803_vm4, %v3664_v9, %v3663_v30  ;;  %v960_v45 = vadd.f32 %v928_v14, %v700_v5  ;;  %v1222_v47 = vadd.f32 %v1190_v11, %v962_v18 }
 0x21d   : > { %v3294_v24 = vrot.slane %v3293_v28, 2  ;;  %v3300_v20 = vmax.f32 %v3298_v43, %v3299_v25  ;;  %v3307_v52 = vmax.f32 %v3305_v59, %v3306_v22  ;;  %v3313_v2 = vrot.slane %v3312_v62, 4  ;;  %v11893_v43 = vld [vmem:[#allocation47_spill] sm:$0xff]  ;;  %v11894_v59 = vld [vmem:[#allocation48_spill] sm:$0xff] }
 0x21e   : > { %v9348_v31 = vpop.permute.xlu1 %1373  ;;  %v1450_v22 = vmul.f32 %v8806_v12, %v11893_v43  ;;  %v1448_v3 = vmul.f32 %v8806_v12, %v11894_v59  ;;  %v3666_v18 = vmax.f32 %v3290_v46, 0.0  ;;  %v3818_v14 = vsel %vm3805_vm5, %v3665_v4, %v3817_v61  ;;  %v9368_v46 = vld [vmem:[#allocation2 + $0x159] sm:$0xff] }
 0x21f   : > { %11892 = vst [vmem:[#allocation13_spill] sm:$0xff] %v9348_v31  ;;  %v3295_v7 = vmax.f32 %v3293_v28, %v3294_v24  ;;  %v3301_v34 = vrot.slane %v3300_v20, 2  ;;  %v3308_v56 = vrot.slane %v3307_v52, 2  ;;  %v3314_v15 = vmax.f32 %v3312_v62, %v3313_v2  ;;  %2414 = vperm.xlu1 %7794, %v2304_v21   ;;  %v9354_v25 = vpop.permute.xlu0 %1863  ;;  %v11895_v28 = vld [vmem:[#allocation59_spill] sm:$0xff]  ;;  %v11921_v31 = vld [vmem:[#allocation52_spill] sm:$0xff] }
 0x220   : > { %1663 = vperm.xlu0 %7793, %v9132_v1   ;;  %v1220_v24 = vadd.f32 %v1188_v16, %v960_v45  ;;  %v1710_v5 = vmul.f32 %v8812_v36, %v11895_v28  ;;  %v2046_v62 = vld [vmem:[#allocation2 + $0x128] sm:$0xff]  ;;  %v1970_v45 = vmul.f32 %v8824_v63, %v8833_v51 }
 0x221   : > { %v3296_v41 = vrot.slane %v3295_v7, 1  ;;  %v3302_v60 = vmax.f32 %v3300_v20, %v3301_v34  ;;  %v3309_v9 = vmax.f32 %v3307_v52, %v3308_v56  ;;  %v3315_v30 = vrot.slane %v3314_v15, 2  ;;  %v11897_v34 = vld [vmem:[#allocation61_spill] sm:$0xff] }
 0x222   : > { %v9360_v11 = vpop.permute.xlu1 %1388  ;;  %v1482_v20 = vadd.f32 %v1450_v22, %v1222_v47  ;;  %v1480_v52 = vadd.f32 %v1448_v3, %v1220_v24  ;;  %v1708_v56 = vmul.f32 %v8812_v36, %v11897_v34  ;;  %v2231_v47 = vmul.f32 %v8837_v49, %v9080_v40  ;;  %v9403_v34 = vld [vmem:[#allocation2 + $0x168] sm:$0xff] }
 0x223   : > { %11896 = vst [vmem:[#allocation15_spill] sm:$0xff] %v9360_v11  ;;  %v3297_v21 = vmax.f32 %v3295_v7, %v3296_v41  ;;  %v3303_v2 = vrot.slane %v3302_v60, 1  ;;  %v3310_v58 = vrot.slane %v3309_v9, 1  ;;  %v3316_v43 = vmax.f32 %v3314_v15, %v3315_v30  ;;  %2429 = vperm.xlu1 %7794, %v2307_v10   ;;  %v9366_v16 = vpop.permute.xlu0 %1878 }
 0x224   : > { %11898 = vst [vmem:[#allocation31_spill] sm:$0xff] %v9366_v16  ;;  %2164 = vperm.xlu0 %7793, %v2046_v62   ;;  %v1742_v41 = vadd.f32 %v1710_v5, %v1482_v20  ;;  %v1968_v15 = vmul.f32 %v8824_v63, %v8844_v50  ;;  %v3819_v22 = vsel %vm3807_vm6, %v3666_v18, %v3818_v14  ;;  %v2048_v5 = vld [vmem:[#allocation2 + $0x140] sm:$0xff] }
 0x225   : > { %v3304_v4 = vmax.f32 %v3302_v60, %v3303_v2  ;;  %v3311_v61 = vmax.f32 %v3309_v9, %v3310_v58  ;;  %v3317_v59 = vrot.slane %v3316_v43, 1  ;;  %v3667_v7 = vmax.f32 %v3297_v21, 0.0  ;;  %v2562_v58 = vld [vmem:[#allocation2 + $0xfa] sm:$0xff] }
 0x226   : > { %v9375_v3 = vpop.permute.xlu1 %1873  ;;  %v1740_v9 = vadd.f32 %v1708_v56, %v1480_v52  ;;  %v2002_v24 = vadd.f32 %v1970_v45, %v1742_v41  ;;  %v2229_v50 = vmul.f32 %v8837_v49, %v9061_v32  ;;  %v2491_v40 = vmul.f32 %v8846_v29, %v9195_v17  ;;  %v9396_v17 = vld [vmem:[%s11720_s1 + $0x8] ss:$0 sm:$0xff]  ;;  %v2564_v41 = vld [vmem:[#allocation2 + $0x112] sm:$0xff] }
 0x227   : > { %11899 = vst [vmem:[#allocation32_spill] sm:$0xff] %v9375_v3  ;;  %v3318_v51 = vmax.f32 %v3316_v43, %v3317_v59  ;;  %v3668_v10 = vmax.f32 %v3304_v4, 0.0  ;;  %v3669_v30 = vmax.f32 %v3311_v61, 0.0  ;;  %v3820_v60 = vsel %vm3809_vm7, %v3667_v7, %v3819_v22  ;;  %1673 = vperm.xlu1 %7794, %v9368_v46   ;;  %v9379_v28 = vpop.permute.xlu0 %2364  ;;  %v2565_v61 = vld [vmem:[#allocation2 + $0x122] sm:$0xff] }
 0x228   : > { %2179 = vperm.xlu0 %7793, %v9159_v13   ;;  %v2000_v62 = vadd.f32 %v1968_v15, %v1740_v9  ;;  %v2263_v43 = vadd.f32 %v2231_v47, %v2002_v24  ;;  %v2489_v20 = vmul.f32 %v8846_v29, %v9177_v44  ;;  %v2751_v13 = vmul.f32 %v9396_v17, %v9302_v23  ;;  %v11902_v47 = vld [vmem:[#allocation16_spill] sm:$0xff]  ;;  %v11905_v24 = vld [vmem:[#allocation19_spill] sm:$0xff]  ;;  %v11931_v3 = vld [vmem:[#allocation73_spill] sm:$0xff] }
 0x229   : > { %v3670_v18 = vmax.f32 %v3318_v51, 0.0  ;;  %v3821_v14 = vsel %vm3811_vm8, %v3668_v10, %v3820_v60  ;;  %v2749_v44 = vmul.f32 %v9396_v17, %v9293_v26  ;;  %v669_v22 = vmul.f32 %v8765_v55, %v11902_v47  ;;  %v2567_v10 = vld [vmem:[#allocation2 + $0x13a] sm:$0xff]  ;;  %v11904_v60 = vld [vmem:[#allocation18_spill] sm:$0xff] }
 0x22a   : > { %v3822_v21 = vsel %vm3813_vm9, %v3669_v30, %v3821_v14  ;;  %v9388_v2 = vpop.permute.xlu1 %1888  ;;  %v2261_v56 = vadd.f32 %v2229_v50, %v2000_v62  ;;  %v2523_v45 = vadd.f32 %v2491_v40, %v2263_v43  ;;  %v11903_v26 = vld [vmem:[#allocation17_spill] sm:$0xff]  ;;  %v671_v9 = vmul.f32 %v8765_v55, %v11904_v60  ;;  %v11906_v62 = vld [vmem:[#allocation20_spill] sm:$0xff]  ;;  %v11913_v60 = vld [vmem:[#allocation42_spill] sm:$0xff] }
 0x22b   : > { %11900 = vst [vmem:[#allocation37_spill] sm:$0xff] %v9388_v2  ;;  %v3823_v32 = vsel %vm3815_vm10, %v3670_v18, %v3822_v21  ;;  %2174 = vperm.xlu1 %7794, %v2048_v5   ;;  %v9401_v52 = vpop.permute.xlu0 %2379  ;;  %v672_v30 = vmul.f32 %v8765_v55, %v11903_v26  ;;  %v674_v5 = vmul.f32 %v8765_v55, %v11905_v24  ;;  %v11912_v47 = vld [vmem:[#allocation41_spill] sm:$0xff] }
 0x22c   : > { %3876 = vst.msk [vmem:[#allocation3 + $0x21] sm:$0xff] %vm2805_vm2, %v3823_v32  ;;  %2664 = vperm.xlu0 %7793, %v2562_v58   ;;  %v2521_v59 = vadd.f32 %v2489_v20, %v2261_v56  ;;  %v2783_v7 = vadd.f32 %v2751_v13, %v2523_v45  ;;  %v673_v21 = vmul.f32 %v8765_v55, %v11906_v62  ;;  %v11907_v58 = vld [vmem:[#allocation21_spill] sm:$0xff]  ;;  %v11908_v20 = vld [vmem:[#allocation22_spill] sm:$0xff]  ;;  %v11909_v13 = vld [vmem:[#allocation23_spill] sm:$0xff] }
 0x22d   : > { %v676_v43 = vmul.f32 %v8765_v55, %v11907_v58  ;;  %v675_v32 = vmul.f32 %v8765_v55, %v11908_v20  ;;  %v678_v56 = vmul.f32 %v8765_v55, %v11909_v13  ;;  %v931_v26 = vmul.f32 %v8778_v35, %v11912_v47  ;;  %v11915_v62 = vld [vmem:[#allocation44_spill] sm:$0xff] }
 0x22e   : > { %v9407_v4 = vpop.permute.xlu1 %2374  ;;  %v2781_v15 = vadd.f32 %v2749_v44, %v2521_v59  ;;  %v2819_v50 = vsel %vm2805_vm2, %v2783_v7, -inf  ;;  %v11911_v7 = vld [vmem:[#allocation24_spill] sm:$0xff]  ;;  %v929_v24 = vmul.f32 %v8778_v35, %v11913_v60  ;;  %v932_v58 = vmul.f32 %v8778_v35, %v11915_v62 }
 0x22f   : > { %2189 = vperm.xlu1 %7794, %v9403_v34   ;;  %v9410_v23 = vpop.permute.xlu0 %623  ;;  %v701_v13 = vadd.f32 %v9320_v0, %v669_v22  ;;  %v708_v47 = vadd.f32 %v9320_v0, %v676_v43  ;;  %v707_v60 = vadd.f32 %v9320_v0, %v675_v32 }
 0x230   : > { %11901 = vst [vmem:[#allocation38_spill] sm:$0xff] %v9410_v23  ;;  %2679 = vperm.xlu0 %7793, %v2565_v61   ;;  %v11930_v23 = vld [vmem:[#allocation71_spill] sm:$0xff] }
 0x232   : > { %v9414_v51 = vpop.permute.xlu1 %2389 }
 0x233   : > { %2674 = vperm.xlu1 %7794, %v2564_v41   ;;  %v3973_v40 = vld [vmem:[#allocation3 + $0x21] sm:$0xff]  ;;  %v9431_v45 = vpop.permute.xlu0 %1123  ;;  %v677_v41 = vmul.f32 %v8765_v55, %v11911_v7  ;;  %v704_v7 = vadd.f32 %v9320_v0, %v672_v30 }
 0x234   : > { %v4004_v18 = vld [vmem:[#allocation3 + $0x20] sm:$0xff]  ;;  %11910 = vst [vmem:[#allocation47_spill] sm:$0xff] %v9431_v45  ;;  %3981 = vst.msk [vmem:[#allocation6 + $0x98] sm:$0xff] %vm2805_vm2, %v3973_v40  ;;  %v2818_v40 = vsel %vm2805_vm2, %v2781_v15, -inf  ;;  %1923 = vperm.xlu0 %7793, %v9221_v19  }
 0x235   : > { %v3989_v14 = vld [vmem:[#allocation3 + $0x22] sm:$0xff]  ;;  %4012 = vst.msk [vmem:[#allocation6 + $0x60] sm:$0xff] %vm2805_vm2, %v4004_v18  ;;  %3965 = vst.msk [vmem:[#allocation6 + $0x90] sm:$0xff] %vm2805_vm2, %v4004_v18  ;;  %v9454_v20 = vmax.f32 %v2818_v40, %v2819_v50  ;;  %v9467_v50 = vld [vmem:[#allocation2 + $0x15a] sm:$0xff]  ;;  %v710_v40 = vadd.f32 %v9320_v0, %v678_v56  ;;  %v9471_v22 = vadd.f32 %v9320_v0, %v677_v41 }
 0x236   : > { %3997 = vst.msk [vmem:[#allocation6 + $0xa0] sm:$0xff] %vm2805_vm2, %v3989_v14  ;;  %v4036_v44 = vld [vmem:[#allocation3 + $0x22] sm:$0xff]  ;;  %v9456_v15 = vpop.permute.xlu1 %633  ;;  %v1189_v56 = vmul.f32 %v8794_v38, %v11921_v31 }
 0x237   : > { %v4020_v61 = vld [vmem:[#allocation3 + $0x21] sm:$0xff]  ;;  %4044 = vst.msk [vmem:[#allocation6 + $0x70] sm:$0xff] %vm2805_vm2, %v4036_v44  ;;  %4092 = vst.msk [vmem:[#allocation6 + $0x40] sm:$0xff] %vm2805_vm2, %v4036_v44  ;;  %2689 = vperm.xlu1 %7794, %v2567_v10   ;;  %v706_v44 = vadd.f32 %v9320_v0, %v674_v5  ;;  %v964_v5 = vadd.f32 %v932_v58, %v704_v7  ;;  %v2945_v32 = vrot.slane %v9454_v20, %v8924_v39 }
 0x238   : > { %v4052_v59 = vld [vmem:[#allocation3 + $0x20] sm:$0xff]  ;;  %4028 = vst.msk [vmem:[#allocation6 + $0x68] sm:$0xff] %vm2805_vm2, %v4020_v61  ;;  %4076 = vst.msk [vmem:[#allocation6 + $0x38] sm:$0xff] %vm2805_vm2, %v4020_v61  ;;  %v703_v61 = vadd.f32 %v9320_v0, %v671_v9  ;;  %v961_v9 = vadd.f32 %v929_v24, %v701_v13  ;;  %2424 = vperm.xlu0 %7793, %v9113_v53   ;;  %v11924_v53 = vld [vmem:[#allocation65_spill] sm:$0xff]  ;;  %v2938_v2 = vcombine.high %v9454_v20, %v9454_v20 }
 0x239   : > { %4060 = vst.msk [vmem:[#allocation6 + $0x30] sm:$0xff] %vm2805_vm2, %v4052_v59  ;;  %v11914_v18 = vld [vmem:[#allocation43_spill] sm:$0xff]  ;;  %11916 = vst [vmem:[#allocation48_spill] sm:$0xff] %v9456_v15  ;;  %v705_v59 = vadd.f32 %v9320_v0, %v673_v21  ;;  %v11922_v15 = vld [vmem:[#allocation53_spill] sm:$0xff]  ;;  %v680_v20 = vmul.f32 %v8765_v55, %v8892_v8 }
 0x23a   : > { %v934_v14 = vmul.f32 %v8778_v35, %v11914_v18  ;;  %v9465_v18 = vpop.permute.xlu0 %1138  ;;  %11918 = vst [vmem:[#allocation61_spill] sm:$0xff] %v9471_v22  ;;  %v963_v30 = vadd.f32 %v931_v26, %v703_v61  ;;  %v11919_v21 = vld [vmem:[#allocation51_spill] sm:$0xff]  ;;  %v9478_v62 = vpop.permute.xlu1 %1133  ;;  %v1194_v41 = vmul.f32 %v8794_v38, %v11922_v15  ;;  %v11925_v61 = vld [vmem:[#allocation66_spill] sm:$0xff]  ;;  %v11927_v22 = vld [vmem:[#allocation68_spill] sm:$0xff]  ;;  %v1221_v45 = vadd.f32 %v1189_v56, %v961_v9 }
 0x23b   : > { %11917 = vst [vmem:[#allocation59_spill] sm:$0xff] %v9465_v18  ;;  %v1191_v43 = vmul.f32 %v8794_v38, %v11919_v21  ;;  %11920 = vst [vmem:[#allocation16_spill] sm:$0xff] %v9478_v62  ;;  %v11923_v26 = vld [vmem:[#allocation55_spill] sm:$0xff]  ;;  %1933 = vperm.xlu1 %7794, %v9467_v50   ;;  %v936_v15 = vmul.f32 %v8778_v35, %v11927_v22  ;;  %v1449_v18 = vmul.f32 %v8806_v12, %v11930_v23 }
 0x23c   : > { %v966_v10 = vadd.f32 %v934_v14, %v706_v44  ;;  %v1192_v24 = vmul.f32 %v8794_v38, %v11923_v26  ;;  %v935_v14 = vmul.f32 %v8778_v35, %v11924_v53  ;;  %v4119_v58 = vld [vmem:[#allocation6 + $0x98] sm:$0xff]  ;;  %v4112_v13 = vld [vmem:[#allocation6 + $0x60] sm:$0xff]  ;;  %v4118_v7 = vld [vmem:[#allocation6 + $0x90] sm:$0xff]  ;;  %v933_v44 = vmul.f32 %v8778_v35, %v11925_v61  ;;  %2439 = vperm.xlu0 %7793, %v9242_v48  }
 0x23d   : > { %v11926_v21 = vld [vmem:[#allocation67_spill] sm:$0xff]  ;;  %4397 = vmatprep.mubr.f32.mxu0 %v4119_v58  ;;  %4497 = vmatprep.mubr.f32.mxu1 %v4112_v13  ;;  %v11929_v26 = vld [vmem:[#allocation70_spill] sm:$0xff]  ;;  %v1454_v22 = vmul.f32 %v8806_v12, %v11931_v3  ;;  %v2953_v13 = vcombine.high %v2945_v32, %v2945_v32  ;;  %v1481_v9 = vadd.f32 %v1449_v18, %v1221_v45 }
 0x23e   : > { %v938_v31 = vmul.f32 %v8778_v35, %v11926_v21  ;;  %v9495_v62 = vpop.permute.xlu0 %1623  ;;  %v1451_v53 = vmul.f32 %v8806_v12, %v11929_v26  ;;  %4398 = vmatmul.mubr.f32.gmra.mrb[4].mxu0 %v4118_v7  ;;  %v4111_v61 = vld [vmem:[#allocation6 + $0x58] sm:$0xff]  ;;  %v1223_v21 = vadd.f32 %v1191_v43, %v963_v30  ;;  %v9508_v26 = vpop.permute.xlu1 %1148  ;;  %v1226_v23 = vadd.f32 %v1194_v41, %v966_v10 }
 0x23f   : > { %11928 = vst [vmem:[#allocation17_spill] sm:$0xff] %v9495_v62  ;;  %v11932_v62 = vld [vmem:[#allocation74_spill] sm:$0xff]  ;;  %4498 = vmatmul.mubr.f32.gmra.mrb[2].mxu1 %v4111_v61  ;;  %11933 = vst [vmem:[#allocation18_spill] sm:$0xff] %v9508_v26  ;;  %v679_v7 = vmul.f32 %v8765_v55, %v8895_v42  ;;  %2434 = vperm.xlu1 %7794, %v9132_v1   ;;  %v1224_v30 = vadd.f32 %v1192_v24, %v964_v5  ;;  %v3326_v1 = vsel %vm3206_vm3, %v2953_v13, -inf  ;;  %v11938_v5 = vld [vmem:[#allocation81_spill] sm:$0xff] }
 0x240   : > { %v1452_v58 = vmul.f32 %v8806_v12, %v11932_v62  ;;  %v967_v43 = vadd.f32 %v935_v14, %v707_v60  ;;  %v965_v3 = vadd.f32 %v933_v44, %v705_v59  ;;  %v970_v16 = vadd.f32 %v938_v31, %v710_v40  ;;  %v9517_v62 = vld [vmem:[#allocation2 + $0x169] sm:$0xff]  ;;  %2184 = vperm.xlu0 %7793, %v9299_v27  }
 0x241   : > { %v968_v61 = vadd.f32 %v936_v15, %v708_v47  ;;  %v1483_v26 = vadd.f32 %v1451_v53, %v1223_v21  ;;  %v2952_v10 = vrot.slane %v2938_v2, %v8924_v39  ;;  %v1486_v8 = vadd.f32 %v1454_v22, %v1226_v23  ;;  %v11937_v47 = vld [vmem:[#allocation80_spill] sm:$0xff]  ;;  %v11941_v31 = vld [vmem:[#allocation83_spill] sm:$0xff] }
 0x242   : > { %v9515_v11 = vpop.permute.xlu0 %1638  ;;  %v1484_v56 = vadd.f32 %v1452_v58, %v1224_v30  ;;  %v1193_v42 = vmul.f32 %v8794_v38, %v8911_v33  ;;  %v9524_v59 = vpop.permute.xlu1 %1633  ;;  %v712_v60 = vadd.f32 %v9320_v0, %v680_v20  ;;  %v9528_v40 = vadd.f32 %v9320_v0, %v679_v7  ;;  %v9544_v44 = vld [vmem:[#allocation2 + $0x170] sm:$0xff] }
 0x243   : > { %11934 = vst [vmem:[#allocation19_spill] sm:$0xff] %v9515_v11  ;;  %11935 = vst [vmem:[#allocation20_spill] sm:$0xff] %v9524_v59  ;;  %v682_v45 = vmul.f32 %v8765_v55, %v8915_v37  ;;  %v1196_v2 = vmul.f32 %v8794_v38, %v8933_v54  ;;  %2449 = vperm.xlu1 %7794, %v9517_v62   ;;  %v1195_v33 = vmul.f32 %v8794_v38, %v8936_v57  ;;  %v11940_v37 = vld [vmem:[#allocation82_spill] sm:$0xff]  ;;  %v11942_v22 = vld [vmem:[#allocation84_spill] sm:$0xff] }
 0x244   : > { %11936 = vst [vmem:[#allocation21_spill] sm:$0xff] %v9528_v40  ;;  %v1709_v18 = vmul.f32 %v8812_v36, %v11937_v47  ;;  %v1198_v41 = vmul.f32 %v8794_v38, %v11938_v5  ;;  %v3319_v24 = vsel %vm3206_vm3, %v2945_v32, -inf  ;;  %v1712_v54 = vmul.f32 %v8812_v36, %v11940_v37  ;;  %2684 = vperm.xlu0 %7793, %v9208_v6   ;;  %v11943_v32 = vld [vmem:[#allocation75_spill] sm:$0xff]  ;;  %v11945_v47 = vld [vmem:[#allocation86_spill] sm:$0xff] }
 0x245   : > { %v1711_v15 = vmul.f32 %v8812_v36, %v11941_v31  ;;  %v3327_v53 = vrot.slane %v3326_v1, 4  ;;  %v3333_v57 = vsel %vm3206_vm3, %v2952_v10, -inf  ;;  %v1225_v21 = vadd.f32 %v1193_v42, %v965_v3  ;;  %v11946_v42 = vld [vmem:[#allocation26_spill] sm:$0xff] }
 0x246   : > { %v9542_v14 = vpop.permute.xlu0 %2124  ;;  %v1714_v58 = vmul.f32 %v8812_v36, %v11942_v22  ;;  %v940_v13 = vmul.f32 %v8778_v35, %v11943_v32  ;;  %v2954_v23 = vcombine.high %v2952_v10, %v2952_v10  ;;  %v9556_v20 = vpop.permute.xlu1 %1648  ;;  %v714_v7 = vadd.f32 %v9320_v0, %v682_v45  ;;  %v11948_v45 = vld [vmem:[#allocation56_spill] sm:$0xff] }
 0x247   : > { %11939 = vst [vmem:[#allocation22_spill] sm:$0xff] %v9542_v14  ;;  %11944 = vst [vmem:[#allocation23_spill] sm:$0xff] %v9556_v20  ;;  %v1228_v30 = vadd.f32 %v1196_v2, %v968_v61  ;;  %v1453_v5 = vmul.f32 %v8806_v12, %v11945_v47  ;;  %v3320_v37 = vrot.slane %v3319_v24, 4  ;;  %2194 = vperm.xlu1 %7794, %v9544_v44   ;;  %v3334_v22 = vrot.slane %v3333_v57, 4  ;;  %v11949_v47 = vld [vmem:[#allocation28_spill] sm:$0xff] }
 0x248   : > { %v1227_v6 = vadd.f32 %v1195_v33, %v967_v43  ;;  %v1741_v3 = vadd.f32 %v1709_v18, %v1481_v9  ;;  %v1969_v31 = vmul.f32 %v8824_v63, %v11946_v42  ;;  %v1230_v10 = vadd.f32 %v1198_v41, %v970_v16  ;;  %2699 = vperm.xlu0 %7793, %v11948_v45   ;;  %v11951_v18 = vld [vmem:[#allocation10_spill] sm:$0xff]  ;;  %v11954_v41 = vld [vmem:[#allocation25_spill] sm:$0xff] }
 0x249   : > { %v1744_v32 = vadd.f32 %v1712_v54, %v1484_v56  ;;  %v1743_v40 = vadd.f32 %v1711_v15, %v1483_v26  ;;  %v3328_v20 = vmax.f32 %v3326_v1, %v3327_v53  ;;  %v1746_v61 = vadd.f32 %v1714_v58, %v1486_v8  ;;  %v11952_v56 = vld [vmem:[#allocation12_spill] sm:$0xff]  ;;  %v11953_v8 = vld [vmem:[#allocation11_spill] sm:$0xff] }
 0x24a   : > { %v9564_v59 = vpop.permute.xlu0 %2139  ;;  %v9567_v2 = vadd.f32 %v940_v13, %v712_v60  ;;  %v1971_v14 = vmul.f32 %v8824_v63, %v11949_v47  ;;  %v3340_v43 = vsel %vm3206_vm3, %v2954_v23, -inf  ;;  %v9572_v9 = vpop.permute.xlu1 %2134  ;;  %v9574_v33 = vadd.f32 %v1453_v5, %v1225_v21  ;;  %v9585_v21 = vld [vmem:[#allocation2 + $0x16a] sm:$0xff]  ;;  %v11955_v13 = vld [vmem:[#allocation29_spill] sm:$0xff] }
 0x24b   : > { %11947 = vst [vmem:[#allocation24_spill] sm:$0xff] %v9564_v59  ;;  %11950 = vst [vmem:[#allocation41_spill] sm:$0xff] %v9572_v9  ;;  %v942_v16 = vmul.f32 %v8778_v35, %v11951_v18  ;;  %v2230_v26 = vmul.f32 %v8837_v49, %v11952_v56  ;;  %v3321_v1 = vmax.f32 %v3319_v24, %v3320_v37  ;;  %2694 = vperm.xlu1 %7794, %v9221_v19   ;;  %v11956_v19 = vld [vmem:[#allocation54_spill] sm:$0xff]  ;;  %v11957_v47 = vld [vmem:[#allocation27_spill] sm:$0xff] }
 0x24c   : > { %v1456_v60 = vmul.f32 %v8806_v12, %v11953_v8  ;;  %v1455_v54 = vmul.f32 %v8806_v12, %v11954_v41  ;;  %v2001_v15 = vadd.f32 %v1969_v31, %v1741_v3  ;;  %v3335_v53 = vmax.f32 %v3333_v57, %v3334_v22  ;;  %2444 = vperm.xlu0 %7793, %v9368_v46   ;;  %v11958_v31 = vld [vmem:[#allocation57_spill] sm:$0xff] }
 0x24d   : > { %v2232_v23 = vmul.f32 %v8837_v49, %v11955_v13  ;;  %v3329_v5 = vrot.slane %v3328_v20, 2  ;;  %v3341_v42 = vrot.slane %v3340_v43, 4  ;;  %v2490_v24 = vmul.f32 %v8846_v29, %v9379_v28 }
 0x24e   : > { %v2625_v58 = vpop.permute.xlu0 %2624  ;;  %v1458_v37 = vmul.f32 %v8806_v12, %v11956_v19  ;;  %v1972_v3 = vmul.f32 %v8824_v63, %v11957_v47  ;;  %v2003_v57 = vadd.f32 %v1971_v14, %v1743_v40  ;;  %v1974_v22 = vmul.f32 %v8824_v63, %v11958_v31  ;;  %v9598_v18 = vpop.permute.xlu1 %2149  ;;  %v9610_v31 = vld [vmem:[#allocation2 + $0x171] sm:$0xff] }
 0x24f   : > { %11959 = vst [vmem:[#allocation42_spill] sm:$0xff] %v9598_v18  ;;  %v2262_v56 = vadd.f32 %v2230_v26, %v2001_v15  ;;  %v3322_v8 = vrot.slane %v3321_v1, 2  ;;  %v2492_v41 = vmul.f32 %v8846_v29, %v9407_v4  ;;  %v2750_v28 = vmul.f32 %v9396_v17, %v2625_v58  ;;  %2709 = vperm.xlu1 %7794, %v9585_v21  }
 0x250   : > { %v9604_v13 = vadd.f32 %v942_v16, %v714_v7  ;;  %v9606_v19 = vadd.f32 %v1456_v60, %v1228_v30  ;;  %v9608_v47 = vadd.f32 %v1455_v54, %v1227_v6  ;;  %v3336_v40 = vrot.slane %v3335_v53, 2  ;;  %2704 = vperm.xlu0 %7793, %v9467_v50   ;;  %v11960_v7 = vld [vmem:[#allocation33_spill] sm:$0xff]  ;;  %v492_v6 = vld [vmem:[#allocation2 + $0x150] sm:$0xff]  ;;  %v6651_v60 = vpop.f32.mrb[0].mxu0 }
 0x251   : > { %v2264_v18 = vadd.f32 %v2232_v23, %v2003_v57  ;;  %v3330_v26 = vmax.f32 %v3328_v20, %v3329_v5  ;;  %v3342_v15 = vmax.f32 %v3340_v43, %v3341_v42  ;;  %v2522_v9 = vadd.f32 %v2490_v24, %v2262_v56  ;;  %v6652_v20 = vpop.f32.mrb[1].mxu0  ;;  %v11961_v43 = vld [vmem:[#allocation34_spill] sm:$0xff]  ;;  %v11965_v56 = vld [vmem:[#allocation39_spill] sm:$0xff] }
 0x252   : > { %v2640_v14 = vpop.permute.xlu0 %2639  ;;  %v9613_v4 = vadd.f32 %v1458_v37, %v1230_v10  ;;  %v2004_v58 = vadd.f32 %v1972_v3, %v1744_v32  ;;  %v2006_v59 = vadd.f32 %v1974_v22, %v1746_v61  ;;  %v681_v30 = vmul.f32 %v8765_v55, %v11960_v7  ;;  %v2635_v16 = vpop.permute.xlu1 %2634  ;;  %v11962_v5 = vld [vmem:[#allocation30_spill] sm:$0xff]  ;;  %v11963_v61 = vld [vmem:[#allocation36_spill] sm:$0xff] }
 0x253   : > { %v3323_v54 = vmax.f32 %v3321_v1, %v3322_v8  ;;  %v2524_v11 = vadd.f32 %v2492_v41, %v2264_v18  ;;  %v2782_v63 = vadd.f32 %v2750_v28, %v2522_v9  ;;  %v2752_v23 = vmul.f32 %v9396_v17, %v2635_v16  ;;  %2454 = vperm.xlu1 %7794, %v9610_v31   ;;  %v9627_v1 = vld [vmem:[#allocation2 + $0x172] sm:$0xff] }
 0x254   : > { %v684_v10 = vmul.f32 %v8765_v55, %v11961_v43  ;;  %v2233_v32 = vmul.f32 %v8837_v49, %v11962_v5  ;;  %v2235_v42 = vmul.f32 %v8837_v49, %v11963_v61  ;;  %v3337_v24 = vmax.f32 %v3335_v53, %v3336_v40  ;;  %638 = vperm.xlu0 %7793, %v492_v6   ;;  %v11966_v41 = vld [vmem:[#allocation40_spill] sm:$0xff] }
 0x255   : > { %v3331_v9 = vrot.slane %v3330_v26, 1  ;;  %v3343_v3 = vrot.slane %v3342_v15, 2  ;;  %v2784_v57 = vadd.f32 %v2752_v23, %v2524_v11  ;;  %v9629_v22 = vadd.f32 %v6652_v20, %v6651_v60 }
 0x256   : > { %v9625_v37 = vpop.permute.xlu0 %883  ;;  %v9632_v18 = vadd.f32 %v9320_v0, %v681_v30  ;;  %v683_v8 = vmul.f32 %v8765_v55, %v11965_v56  ;;  %v686_v28 = vmul.f32 %v8765_v55, %v11966_v41  ;;  %v2495_v53 = vmul.f32 %v8846_v29, %v9414_v51  ;;  %v2650_v40 = vpop.permute.xlu1 %2649 }
 0x257   : > { %11964 = vst [vmem:[#allocation43_spill] sm:$0xff] %v9629_v22  ;;  %v3324_v7 = vrot.slane %v3323_v54, 1  ;;  %v2493_v11 = vmul.f32 %v8846_v29, %v9401_v52  ;;  %v2821_v16 = vsel %vm2805_vm2, %v2782_v63, -inf  ;;  %v2822_v6 = vsel %vm2805_vm2, %v2784_v57, -inf  ;;  %2714 = vperm.xlu1 %7794, %v9627_v1  }
 0x258   : > { %v9646_v30 = vadd.f32 %v9320_v0, %v684_v10  ;;  %v2267_v60 = vadd.f32 %v2235_v42, %v2006_v59  ;;  %v2823_v23 = vmax.f32 %v2821_v16, %v2822_v6  ;;  %v2755_v20 = vmul.f32 %v9396_v17, %v2650_v40  ;;  %898 = vperm.xlu0 %7793, %v9242_v48   ;;  %v11967_v16 = vld [vmem:[#allocation49_spill] sm:$0xff] }
 0x259   : > { %v2265_v51 = vadd.f32 %v2233_v32, %v2004_v58  ;;  %v3332_v5 = vmax.f32 %v3330_v26, %v3331_v9  ;;  %v3338_v61 = vrot.slane %v3337_v24, 1  ;;  %v3344_v56 = vmax.f32 %v3342_v15, %v3343_v3 }
 0x25a   : > { %v9649_v43 = vpop.permute.xlu0 %1383  ;;  %v2527_v63 = vadd.f32 %v2495_v53, %v2267_v60  ;;  %v2753_v52 = vmul.f32 %v9396_v17, %v2640_v14  ;;  %v2955_v57 = vcombine.high %v2823_v23, %v2823_v23  ;;  %v2962_v41 = vrot.slane %v2823_v23, %v8924_v39  ;;  %v9654_v10 = vpop.permute.xlu1 %893 }
 0x25b   : > { %v9657_v59 = vadd.f32 %v9320_v0, %v683_v8  ;;  %v9660_v42 = vadd.f32 %v9320_v0, %v686_v28  ;;  %v3325_v58 = vmax.f32 %v3323_v54, %v3324_v7  ;;  %v2525_v26 = vadd.f32 %v2493_v11, %v2265_v51  ;;  %648 = vperm.xlu1 %7794, %v9403_v34  }
 0x25c   : > { %v2969_v48 = vrot.slane %v2955_v57, %v8924_v39  ;;  %v2970_v15 = vcombine.high %v2962_v41, %v2962_v41  ;;  %v3347_v14 = vsel %vm3206_vm3, %v2962_v41, -inf  ;;  %v2787_v32 = vadd.f32 %v2755_v20, %v2527_v63  ;;  %643 = vperm.xlu0 %7793, %v9299_v27  }
 0x25d   : > { %v3339_v3 = vmax.f32 %v3337_v24, %v3338_v61  ;;  %v3345_v53 = vrot.slane %v3344_v56, 1  ;;  %v3672_v40 = vmax.f32 %v3332_v5, 0.0  ;;  %v3348_v8 = vrot.slane %v3347_v14, 4  ;;  %v11968_v24 = vld [vmem:[#allocation63_spill] sm:$0xff] }
 0x25e   : > { %v9665_v9 = vpop.permute.xlu0 %1398  ;;  %v2785_v0 = vadd.f32 %v2753_v52, %v2525_v26  ;;  %v2971_v28 = vcombine.high %v2969_v48, %v2969_v48  ;;  %v3354_v54 = vsel %vm3206_vm3, %v2970_v15, -inf  ;;  %v3361_v7 = vsel %vm3206_vm3, %v2969_v48, -inf  ;;  %v9670_v11 = vpop.permute.xlu1 %1393 }
 0x25f   : > { %v1200_v6 = vmul.f32 %v8794_v38, %v11967_v16  ;;  %v3349_v60 = vmax.f32 %v3347_v14, %v3348_v8  ;;  %v3355_v23 = vrot.slane %v3354_v54, 4  ;;  %v3362_v20 = vrot.slane %v3361_v7, 4  ;;  %908 = vperm.xlu1 %7794, %v9517_v62  }
 0x260   : > { %v1713_v51 = vmul.f32 %v8812_v36, %v11968_v24  ;;  %v3671_v27 = vmax.f32 %v3325_v58, 0.0  ;;  %v3368_v5 = vsel %vm3206_vm3, %v2971_v28, -inf  ;;  %v2825_v61 = vsel %vm2805_vm2, %v2787_v32, -inf  ;;  %1158 = vperm.xlu0 %7793, %v11948_v45  }
 0x261   : > { %v3350_v52 = vrot.slane %v3349_v60, 2  ;;  %v3356_v57 = vmax.f32 %v3354_v54, %v3355_v23  ;;  %v3363_v41 = vmax.f32 %v3361_v7, %v3362_v20  ;;  %v3369_v26 = vrot.slane %v3368_v5, 4  ;;  %v11969_v7 = vld [vmem:[#allocation62_spill] sm:$0xff] }
 0x262   : > { %v9679_v63 = vpop.permute.xlu0 %1883  ;;  %v3346_v48 = vmax.f32 %v3344_v56, %v3345_v53  ;;  %v3673_v15 = vmax.f32 %v3339_v3, 0.0  ;;  %v3824_v14 = vsel %vm3803_vm4, %v3672_v40, %v3671_v27  ;;  %v2824_v8 = vsel %vm2805_vm2, %v2785_v0, -inf  ;;  %v9684_v16 = vpop.permute.xlu1 %1408  ;;  %v11970_v56 = vld [vmem:[#allocation64_spill] sm:$0xff] }
 0x263   : > { %v3351_v58 = vmax.f32 %v3349_v60, %v3350_v52  ;;  %v3357_v28 = vrot.slane %v3356_v57, 2  ;;  %v3364_v24 = vrot.slane %v3363_v41, 2  ;;  %v3370_v32 = vmax.f32 %v3368_v5, %v3369_v26  ;;  %653 = vperm.xlu1 %7794, %v9544_v44   ;;  %v11971_v5 = vld [vmem:[#allocation77_spill] sm:$0xff] }
 0x264   : > { %v9688_v54 = vadd.f32 %v1200_v6, %v9567_v2  ;;  %v1202_v45 = vmul.f32 %v8794_v38, %v11969_v7  ;;  %v1716_v3 = vmul.f32 %v8812_v36, %v11970_v56  ;;  %v2826_v53 = vmax.f32 %v2824_v8, %v2825_v61  ;;  %903 = vperm.xlu0 %7793, %v9368_v46  }
 0x265   : > { %v3352_v0 = vrot.slane %v3351_v58, 1  ;;  %v3358_v23 = vmax.f32 %v3356_v57, %v3357_v28  ;;  %v3365_v60 = vmax.f32 %v3363_v41, %v3364_v24  ;;  %v3371_v20 = vrot.slane %v3370_v32, 2  ;;  %v11973_v41 = vld [vmem:[#allocation14_spill] sm:$0xff] }
 0x266   : > { %v9694_v40 = vpop.permute.xlu0 %1898  ;;  %v1745_v27 = vadd.f32 %v1713_v51, %v9574_v33  ;;  %v1715_v2 = vmul.f32 %v8812_v36, %v11971_v5  ;;  %v3674_v6 = vmax.f32 %v3346_v48, 0.0  ;;  %v3825_v52 = vsel %vm3805_vm5, %v3673_v15, %v3824_v14  ;;  %v9701_v26 = vpop.permute.xlu1 %1893 }
 0x267   : > { %11972 = vst [vmem:[#allocation44_spill] sm:$0xff] %v9701_v26  ;;  %v3353_v7 = vmax.f32 %v3351_v58, %v3352_v0  ;;  %v3359_v61 = vrot.slane %v3358_v23, 1  ;;  %v3366_v8 = vrot.slane %v3365_v60, 1  ;;  %v3372_v56 = vmax.f32 %v3370_v32, %v3371_v20  ;;  %1168 = vperm.xlu1 %7794, %v9585_v21   ;;  %v11974_v32 = vld [vmem:[#allocation35_spill] sm:$0xff] }
 0x268   : > { %v1234_v57 = vadd.f32 %v1202_v45, %v9604_v13  ;;  %v1748_v46 = vadd.f32 %v1716_v3, %v9606_v19  ;;  %v1718_v33 = vmul.f32 %v8812_v36, %v11973_v41  ;;  %v2979_v51 = vrot.slane %v2826_v53, %v8924_v39  ;;  %1418 = vperm.xlu0 %7793, %v9403_v34   ;;  %v11975_v34 = vld [vmem:[#allocation46_spill] sm:$0xff] }
 0x269   : > { %v3360_v15 = vmax.f32 %v3358_v23, %v3359_v61  ;;  %v3367_v14 = vmax.f32 %v3365_v60, %v3366_v8  ;;  %v3373_v28 = vrot.slane %v3372_v56, 1  ;;  %v3675_v58 = vmax.f32 %v3353_v7, 0.0  ;;  %v11977_v61 = vld [vmem:[#allocation78_spill] sm:$0xff]  ;;  %v11978_v8 = vld [vmem:[#allocation76_spill] sm:$0xff] }
 0x26a   : > { %v9709_v48 = vpop.permute.xlu0 %2384  ;;  %v1747_v24 = vadd.f32 %v1715_v2, %v9608_v47  ;;  %v941_v13 = vmul.f32 %v8778_v35, %v11974_v32  ;;  %v3826_v19 = vsel %vm3807_vm6, %v3674_v6, %v3825_v52  ;;  %v2972_v45 = vcombine.high %v2826_v53, %v2826_v53  ;;  %v9716_v3 = vpop.permute.xlu1 %1908  ;;  %v11976_v2 = vld [vmem:[#allocation45_spill] sm:$0xff]  ;;  %v11981_v32 = vld [vmem:[#allocation31_spill] sm:$0xff] }
 0x26b   : > { %v3374_v0 = vmax.f32 %v3372_v56, %v3373_v28  ;;  %v3676_v20 = vmax.f32 %v3360_v15, 0.0  ;;  %v3677_v5 = vmax.f32 %v3367_v14, 0.0  ;;  %v3827_v23 = vsel %vm3809_vm7, %v3675_v58, %v3826_v19  ;;  %913 = vperm.xlu1 %7794, %v9610_v31   ;;  %v9729_v52 = vld [vmem:[#allocation2 + $0x180] sm:$0xff]  ;;  %v11980_v28 = vld [vmem:[#allocation15_spill] sm:$0xff] }
 0x26c   : > { %v1750_v60 = vadd.f32 %v1718_v33, %v9613_v4  ;;  %v944_v47 = vmul.f32 %v8778_v35, %v11975_v34  ;;  %v943_v7 = vmul.f32 %v8778_v35, %v11976_v2  ;;  %v946_v53 = vmul.f32 %v8778_v35, %v11977_v61  ;;  %1163 = vperm.xlu0 %7793, %v9467_v50   ;;  %v11979_v33 = vld [vmem:[#allocation79_spill] sm:$0xff] }
 0x26d   : > { %v1460_v56 = vmul.f32 %v8806_v12, %v11978_v8  ;;  %v3678_v41 = vmax.f32 %v3374_v0, 0.0  ;;  %v3828_v15 = vsel %vm3811_vm8, %v3676_v20, %v3827_v23  ;;  %v2987_v4 = vcombine.high %v2979_v51, %v2979_v51  ;;  %v11982_v61 = vld [vmem:[#allocation47_spill] sm:$0xff] }
 0x26e   : > { %v9727_v6 = vpop.permute.xlu0 %2399  ;;  %v1973_v14 = vmul.f32 %v11979_v33, %v9354_v25  ;;  %v1462_v58 = vmul.f32 %v8806_v12, %v11980_v28  ;;  %v1976_v19 = vmul.f32 %v11979_v33, %v11981_v32  ;;  %v3829_v34 = vsel %vm3813_vm9, %v3677_v5, %v3828_v15  ;;  %v9742_v2 = vpop.permute.xlu1 %2394  ;;  %v11983_v5 = vld [vmem:[#allocation32_spill] sm:$0xff] }
 0x26f   : > { %v973_v0 = vadd.f32 %v941_v13, %v9632_v18  ;;  %v1201_v20 = vmul.f32 %v8794_v38, %v11982_v61  ;;  %v3830_v50 = vsel %vm3815_vm10, %v3678_v41, %v3829_v34  ;;  %v2986_v23 = vrot.slane %v2972_v45, %v8924_v39  ;;  %1428 = vperm.xlu1 %7794, %v9729_v52   ;;  %v11987_v34 = vld [vmem:[#allocation16_spill] sm:$0xff] }
 0x270   : > { %v976_v25 = vadd.f32 %v944_v47, %v9646_v30  ;;  %v975_v8 = vadd.f32 %v943_v7, %v9657_v59  ;;  %v9753_v28 = vadd.f32 %v946_v53, %v9660_v42  ;;  %v1975_v15 = vmul.f32 %v11979_v33, %v11983_v5  ;;  %3877 = vst.msk [vmem:[#allocation3 + $0x31] sm:$0xff] %vm2805_vm2, %v3830_v50  ;;  %v11984_v7 = vld [vmem:[#allocation37_spill] sm:$0xff] }
 0x271   : > { %v9761_v13 = vadd.f32 %v1460_v56, %v9688_v54  ;;  %v3375_v45 = vsel %vm3206_vm3, %v2979_v51, -inf  ;;  %v3382_v41 = vsel %vm3206_vm3, %v2987_v4, -inf  ;;  %v1461_v30 = vmul.f32 %v8806_v12, %v9649_v43  ;;  %1678 = vperm.xlu0 %7793, %v9517_v62   ;;  %v11985_v51 = vld [vmem:[#allocation59_spill] sm:$0xff] }
 0x272   : > { %v9758_v18 = vpop.permute.xlu0 %1143  ;;  %v9768_v59 = vadd.f32 %v1973_v14, %v1745_v27  ;;  %v9770_v42 = vadd.f32 %v1462_v58, %v1234_v57  ;;  %v9772_v47 = vadd.f32 %v1976_v19, %v1748_v46  ;;  %v1978_v53 = vmul.f32 %v11979_v33, %v11984_v7  ;;  %v9776_v54 = vpop.permute.xlu1 %2409  ;;  %v11986_v27 = vld [vmem:[#allocation38_spill] sm:$0xff] }
 0x273   : > { %v1233_v56 = vadd.f32 %v1201_v20, %v973_v0  ;;  %v1204_v4 = vmul.f32 %v8794_v38, %v11985_v51  ;;  %v2988_v32 = vcombine.high %v2986_v23, %v2986_v23  ;;  %v3389_v43 = vsel %vm3206_vm3, %v2986_v23, -inf  ;;  %1173 = vperm.xlu1 %7794, %v9627_v1   ;;  %v9786_v19 = vld [vmem:[#allocation2 + $0x181] sm:$0xff]  ;;  %v11988_v23 = vld [vmem:[#allocation48_spill] sm:$0xff] }
 0x274   : > { %v9782_v62 = vadd.f32 %v1975_v15, %v1747_v24  ;;  %v685_v57 = vmul.f32 %v8765_v55, %v11986_v27  ;;  %v3376_v46 = vrot.slane %v3375_v45, 4  ;;  %v3383_v14 = vrot.slane %v3382_v41, 4  ;;  %v11989_v15 = vld [vmem:[#allocation18_spill] sm:$0xff] }
 0x275   : > { %v1203_v0 = vmul.f32 %v8794_v38, %v11987_v34  ;;  %v1493_v61 = vadd.f32 %v1461_v30, %v1233_v56  ;;  %v1464_v20 = vmul.f32 %v8806_v12, %v9665_v9  ;;  %1423 = vperm.xlu0 %7793, %v9544_v44   ;;  %v9794_v24 = vadd.f32 %v1978_v53, %v1750_v60  ;;  %v9802_v34 = vld [vmem:[#allocation2 + $0x188] sm:$0xff] }
 0x276   : > { %v1644_v58 = vpop.permute.xlu0 %1643  ;;  %v687_v5 = vmul.f32 %v8765_v55, %v11988_v23  ;;  %v1206_v7 = vmul.f32 %v8794_v38, %v11989_v15  ;;  %v3390_v51 = vrot.slane %v3389_v43, 4  ;;  %v9800_v27 = vpop.permute.xlu1 %1153  ;;  %v1236_v30 = vadd.f32 %v1204_v4, %v976_v25  ;;  %v11991_v23 = vld [vmem:[#allocation19_spill] sm:$0xff]  ;;  %v11992_v55 = vld [vmem:[#allocation22_spill] sm:$0xff] }
 0x277   : > { %v1721_v50 = vmul.f32 %v8812_v36, %v1644_v58  ;;  %v3396_v9 = vsel %vm3206_vm3, %v2988_v32, -inf  ;;  %v1463_v56 = vmul.f32 %v8806_v12, %v9670_v11  ;;  %1688 = vperm.xlu1 %7794, %v9786_v19   ;;  %v3974_v60 = vld [vmem:[#allocation3 + $0x31] sm:$0xff]  ;;  %v1720_v15 = vmul.f32 %v8812_v36, %v11991_v23 }
 0x278   : > { %v4005_v53 = vld [vmem:[#allocation3 + $0x30] sm:$0xff]  ;;  %v2234_v22 = vmul.f32 %v8837_v49, %v11992_v55  ;;  %v3377_v26 = vmax.f32 %v3375_v45, %v3376_v46  ;;  %v3384_v25 = vmax.f32 %v3382_v41, %v3383_v14  ;;  %3982 = vst.msk [vmem:[#allocation6 + $0xe0] sm:$0xff] %vm2805_vm2, %v3974_v60  ;;  %v1235_v41 = vadd.f32 %v1203_v0, %v975_v8 }
 0x279   : > { %v9807_v44 = vadd.f32 %v1721_v50, %v1493_v61  ;;  %v3990_v58 = vld [vmem:[#allocation3 + $0x32] sm:$0xff]  ;;  %4013 = vst.msk [vmem:[#allocation6 + $0xa8] sm:$0xff] %vm2805_vm2, %v4005_v53  ;;  %3966 = vst.msk [vmem:[#allocation6 + $0xd8] sm:$0xff] %vm2805_vm2, %v4005_v53  ;;  %v7832_v55 = vld [vmem:[%s11721_s2] ss:$0 sm:$0xff]  ;;  %v1496_v46 = vadd.f32 %v1464_v20, %v1236_v30  ;;  %1938 = vperm.xlu0 %7793, %v9585_v21   ;;  %v1238_v60 = vadd.f32 %v1206_v7, %v9753_v28 }
 0x27a   : > { %v1659_v4 = vpop.permute.xlu0 %1658  ;;  %3998 = vst.msk [vmem:[#allocation6 + $0xe8] sm:$0xff] %vm2805_vm2, %v3990_v58  ;;  %4045 = vst.msk [vmem:[#allocation6 + $0xb8] sm:$0xff] %vm2805_vm2, %v3990_v58  ;;  %v4021_v11 = vld [vmem:[#allocation3 + $0x31] sm:$0xff]  ;;  %v9822_v45 = vadd.f32 %v7832_v55, %v685_v57  ;;  %v9830_v50 = vadd.f32 %v7832_v55, %v687_v5  ;;  %v3391_v57 = vmax.f32 %v3389_v43, %v3390_v51  ;;  %v3397_v53 = vrot.slane %v3396_v9, 4  ;;  %v1654_v8 = vpop.permute.xlu1 %1653  ;;  %v11993_v51 = vld [vmem:[#allocation23_spill] sm:$0xff] }
 0x27b   : > { %11990 = vst [vmem:[#allocation51_spill] sm:$0xff] %v9807_v44  ;;  %v4085_v32 = vld [vmem:[#allocation3 + $0x32] sm:$0xff]  ;;  %v1724_v14 = vmul.f32 %v8812_v36, %v1659_v4  ;;  %4029 = vst.msk [vmem:[#allocation6 + $0xb0] sm:$0xff] %vm2805_vm2, %v4021_v11  ;;  %v1495_v0 = vadd.f32 %v1463_v56, %v1235_v41  ;;  %v1466_v20 = vmul.f32 %v8806_v12, %v9684_v16  ;;  %1433 = vperm.xlu1 %7794, %v9802_v34   ;;  %v11994_v56 = vld [vmem:[#allocation24_spill] sm:$0xff] }
 0x27c   : > { %v4053_v61 = vld [vmem:[#allocation3 + $0x30] sm:$0xff]  ;;  %4093 = vst.msk [vmem:[#allocation6 + $0x88] sm:$0xff] %vm2805_vm2, %v4085_v32  ;;  %4077 = vst.msk [vmem:[#allocation6 + $0x80] sm:$0xff] %vm2805_vm2, %v4021_v11  ;;  %v1723_v30 = vmul.f32 %v8812_v36, %v1654_v8  ;;  %v1752_v58 = vadd.f32 %v1720_v15, %v9761_v13  ;;  %v9841_v5 = vadd.f32 %v2234_v22, %v9768_v59  ;;  %v3378_v23 = vrot.slane %v3377_v26, 2  ;;  %v4253_v13 = vld [vmem:[%s11722_s3 + $0x288] sm:$0xff] }
 0x27d   : > { %4061 = vst.msk [vmem:[#allocation6 + $0x78] sm:$0xff] %vm2805_vm2, %v4053_v61  ;;  %v9835_v21 = vadd.f32 %v1724_v14, %v1496_v46  ;;  %v3385_v28 = vrot.slane %v3384_v25, 2  ;;  %v9845_v7 = vld [vmem:[#allocation2 + $0x182] sm:$0xff]  ;;  %v1722_v16 = vmul.f32 %v8812_v36, %v11993_v51  ;;  %v2237_v4 = vmul.f32 %v8837_v49, %v11994_v56  ;;  %1683 = vperm.xlu0 %7793, %v9610_v31  }
 0x27e   : > { %v9843_v43 = vpop.permute.xlu0 %2144  ;;  %v1980_v11 = vmul.f32 %v11979_v33, %v9694_v40  ;;  %v9853_v32 = vadd.f32 %v1723_v30, %v1495_v0  ;;  %v4252_v22 = vld [vmem:[%s11722_s3 + $0x280] sm:$0xff]  ;;  %v3392_v61 = vrot.slane %v3391_v57, 2  ;;  %v3398_v55 = vmax.f32 %v3396_v9, %v3397_v53  ;;  %v1669_v41 = vpop.permute.xlu1 %1668  ;;  %v4237_v31 = vld [vmem:[%s11722_s3 + $0x208] sm:$0xff] }
 0x27f   : > { %v11996_v59 = vld [vmem:[#allocation41_spill] sm:$0xff]  ;;  %v7372_v46 = vpack.c.bf16 %v4253_v13, %v4252_v22  ;;  %v11997_v14 = vld [vmem:[#allocation42_spill] sm:$0xff]  ;;  %v1498_v0 = vadd.f32 %v1466_v20, %v1238_v60  ;;  %v1726_v30 = vmul.f32 %v8812_v36, %v1669_v41  ;;  %1948 = vperm.xlu1 %7794, %v9845_v7   ;;  %v4128_v51 = vld [vmem:[#allocation6 + $0xe0] sm:$0xff]  ;;  %v945_v22 = vmul.f32 %v8778_v35, %v9625_v37 }
 0x280   : > { %11995 = vst [vmem:[#allocation52_spill] sm:$0xff] %v9853_v32  ;;  %v2236_v15 = vmul.f32 %v8837_v49, %v11996_v59  ;;  %v4236_v40 = vld [vmem:[%s11722_s3 + $0x200] sm:$0xff]  ;;  %v2239_v8 = vmul.f32 %v8837_v49, %v11997_v14  ;;  %v4121_v9 = vld [vmem:[#allocation6 + $0xa8] sm:$0xff]  ;;  %v4127_v53 = vld [vmem:[#allocation6 + $0xd8] sm:$0xff]  ;;  %v3379_v13 = vmax.f32 %v3377_v26, %v3378_v23  ;;  %v3386_v59 = vmax.f32 %v3384_v25, %v3385_v28 }
 0x281   : > { %v7374_v56 = vpack.c.bf16 %v4237_v31, %v4236_v40  ;;  %4402 = vmatprep.mubr.f32.mxu0 %v4128_v51  ;;  %4502 = vmatprep.mubr.f32.mxu1 %v4121_v9  ;;  %v9876_v44 = vld [vmem:[#allocation2 + $0x189] sm:$0xff]  ;;  %v2012_v14 = vadd.f32 %v1980_v11, %v1752_v58  ;;  %v9878_v60 = vadd.f32 %v1726_v30, %v1498_v0  ;;  %v4255_v26 = vld [vmem:[%s11722_s3 + $0x298] sm:$0xff]  ;;  %v3399_v58 = vrot.slane %v3398_v55, 2  ;;  %v4256_v40 = vld [vmem:[%s11722_s3 + $0x2a0] sm:$0xff] }
 0x282   : > { %v2160_v32 = vpop.permute.xlu0 %2159  ;;  %2199 = vperm.xlu0 %7793, %v9729_v52   ;;  %4403 = vmatmul.mubr.f32.gmra.mrb[6].mxu0 %v4127_v53  ;;  %v4120_v41 = vld [vmem:[#allocation6 + $0xa0] sm:$0xff]  ;;  %v1754_v25 = vadd.f32 %v1722_v16, %v9770_v42  ;;  %v3393_v23 = vmax.f32 %v3391_v57, %v3392_v61  ;;  %v9889_v28 = vpop.permute.xlu1 %2154  ;;  %v1982_v42 = vmul.f32 %v11979_v33, %v9716_v3  ;;  %v4257_v61 = vld [vmem:[%s11722_s3 + $0x2a8] sm:$0xff]  ;;  %v3387_v31 = vrot.slane %v3386_v59, 1  ;;  %v2055_v51 = vld [vmem:[#allocation2 + $0x198] sm:$0xff] }
 0x283   : > { %v2241_v20 = vmul.f32 %v8837_v49, %v2160_v32  ;;  %v4254_v37 = vld [vmem:[%s11722_s3 + $0x290] sm:$0xff]  ;;  %4503 = vmatmul.mubr.f32.gmra.mrb[4].mxu1 %v4120_v41  ;;  %7373 = vmatprep.subr.bf16.mxu0 %v7372_v46  ;;  %v4239_v32 = vld [vmem:[%s11722_s3 + $0x218] sm:$0xff]  ;;  %v3380_v46 = vrot.slane %v3379_v13, 1  ;;  %v2494_v0 = vmul.f32 %v8846_v29, %v9709_v48  ;;  %v7380_v9 = vpack.c.bf16 %v4257_v61, %v4256_v40  ;;  %v4240_v3 = vld [vmem:[%s11722_s3 + $0x220] sm:$0xff] }
 0x284   : > { %v7376_v11 = vpack.c.bf16 %v4255_v26, %v4254_v37  ;;  %v4238_v52 = vld [vmem:[%s11722_s3 + $0x210] sm:$0xff]  ;;  %1693 = vperm.xlu1 %7794, %v9876_v44   ;;  %7375 = vmatpush3.bf16.msra.mxu0 %v7374_v56  ;;  %v4241_v53 = vld [vmem:[%s11722_s3 + $0x228] sm:$0xff]  ;;  %v2269_v56 = vadd.f32 %v2237_v4, %v9772_v47  ;;  %v977_v48 = vadd.f32 %v945_v22, %v9822_v45  ;;  %v4259_v37 = vld [vmem:[%s11722_s3 + $0x2b8] sm:$0xff]  ;;  %v3394_v26 = vrot.slane %v3393_v23, 1 }
 0x285   : > { %v9902_v57 = vadd.f32 %v2241_v20, %v2012_v14  ;;  %v7378_v16 = vpack.c.bf16 %v4239_v32, %v4238_v52  ;;  %v2268_v14 = vadd.f32 %v2236_v15, %v9782_v62  ;;  %v2271_v20 = vadd.f32 %v2239_v8, %v9794_v24  ;;  %v4258_v41 = vld [vmem:[%s11722_s3 + $0x2b0] sm:$0xff]  ;;  %v4260_v32 = vld [vmem:[%s11722_s3 + $0x2c0] sm:$0xff]  ;;  %v4261_v40 = vld [vmem:[%s11722_s3 + $0x2c8] sm:$0xff] }
 0x286   : > { %v2645_v30 = vpop.permute.xlu0 %2644  ;;  %7377 = vmatprep.subr.bf16.mxu0 %v7376_v11  ;;  %1943 = vperm.xlu0 %7793, %v9627_v1   ;;  %v9927_v11 = vmax.f32 %v3398_v55, %v3399_v58  ;;  %v2496_v47 = vmul.f32 %v8846_v29, %v9742_v2  ;;  %v2170_v24 = vpop.permute.xlu1 %2169  ;;  %v2014_v45 = vadd.f32 %v1982_v42, %v1754_v25  ;;  %v9938_v58 = vld [vmem:[#allocation2 + $0x18a] sm:$0xff]  ;;  %v4243_v25 = vld [vmem:[%s11722_s3 + $0x238] sm:$0xff] }
 0x287   : > { %v2754_v62 = vmul.f32 %v9396_v17, %v2645_v30  ;;  %v2243_v1 = vmul.f32 %v8837_v49, %v2170_v24  ;;  %v7382_v4 = vpack.c.bf16 %v4241_v53, %v4240_v3  ;;  %v9933_v15 = vmax.f32 %v3379_v13, %v3380_v46  ;;  %v4242_v17 = vld [vmem:[%s11722_s3 + $0x230] sm:$0xff]  ;;  %v2315_v3 = vld [vmem:[#allocation2 + $0x199] sm:$0xff] }
 0x288   : > { %2209 = vperm.xlu1 %7794, %v2055_v51   ;;  %7379 = vmatpush3.bf16.msra.mxu0 %v7378_v16  ;;  %v9935_v8 = vmax.f32 %v3386_v59, %v3387_v31  ;;  %v2526_v22 = vadd.f32 %v2494_v0, %v9841_v5  ;;  %v7384_v2 = vpack.c.bf16 %v4259_v37, %v4258_v41  ;;  %v4244_v31 = vld [vmem:[%s11722_s3 + $0x240] sm:$0xff]  ;;  %v3401_v0 = vrot.slane %v9927_v11, 1 }
 0x289   : > { %7381 = vmatprep.subr.bf16.mxu0 %v7380_v9  ;;  %v947_v13 = vmul.f32 %v8778_v35, %v9654_v10  ;;  %v2497_v59 = vmul.f32 %v8846_v29, %v9727_v6  ;;  %v1205_v5 = vmul.f32 %v8794_v38, %v9758_v18  ;;  %v9952_v52 = vadd.f32 %v2243_v1, %v2014_v45 }
 0x28a   : > { %v2660_v55 = vpop.permute.xlu0 %2659  ;;  %2459 = vperm.xlu0 %7793, %v9786_v19   ;;  %v9961_v42 = vmax.f32 %v3393_v23, %v3394_v26  ;;  %v2528_v10 = vadd.f32 %v2496_v47, %v2268_v14  ;;  %v2499_v6 = vmul.f32 %v8846_v29, %v9776_v54  ;;  %v2786_v16 = vadd.f32 %v2754_v62, %v2526_v22  ;;  %v2655_v18 = vpop.permute.xlu1 %2654  ;;  %v9968_v19 = vld [vmem:[%s11720_s1 + $0x8] ss:$0 sm:$0xff]  ;;  %v4262_v47 = vld [vmem:[%s11722_s3 + $0x2d0] sm:$0xff]  ;;  %v4263_v62 = vld [vmem:[%s11722_s3 + $0x2d8] sm:$0xff] }
 0x28b   : > { %v2757_v61 = vmul.f32 %v9968_v19, %v2660_v55  ;;  %v2756_v46 = vmul.f32 %v9968_v19, %v2655_v18  ;;  %v7386_v23 = vpack.c.bf16 %v4243_v25, %v4242_v17  ;;  %v4245_v54 = vld [vmem:[%s11722_s3 + $0x248] sm:$0xff]  ;;  %v3679_v30 = vmax.f32 %v9933_v15, 0.0  ;;  %v11998_v22 = vld [vmem:[#allocation72_spill] sm:$0xff] }
 0x28c   : > { %1953 = vperm.xlu1 %7794, %v9938_v58   ;;  %7383 = vmatpush3.bf16.msra.mxu0 %v7382_v4  ;;  %v3680_v51 = vmax.f32 %v9935_v8, 0.0  ;;  %v7388_v53 = vpack.c.bf16 %v4261_v40, %v4260_v32  ;;  %v2529_v14 = vadd.f32 %v2497_v59, %v2269_v56  ;;  %v1237_v41 = vadd.f32 %v1205_v5, %v977_v48  ;;  %v2056_v59 = vld [vmem:[#allocation2 + $0x1a0] sm:$0xff]  ;;  %v4265_v40 = vld [vmem:[%s11722_s3 + $0x2e8] sm:$0xff] }
 0x28d   : > { %7385 = vmatprep.subr.bf16.mxu0 %v7384_v2  ;;  %v2788_v37 = vadd.f32 %v2756_v46, %v2528_v10  ;;  %v2531_v24 = vadd.f32 %v2499_v6, %v2271_v20  ;;  %v1207_v45 = vmul.f32 %v8794_v38, %v9800_v27  ;;  %v2827_v56 = vsel %vm2805_vm2, %v2786_v16, -inf  ;;  %v4246_v20 = vld [vmem:[%s11722_s3 + $0x250] sm:$0xff]  ;;  %v4247_v27 = vld [vmem:[%s11722_s3 + $0x258] sm:$0xff]  ;;  %v4264_v32 = vld [vmem:[%s11722_s3 + $0x2e0] sm:$0xff] }
 0x28e   : > { %v1404_v9 = vpop.permute.xlu0 %1403  ;;  %2204 = vperm.xlu0 %7793, %v9802_v34   ;;  %v2670_v48 = vpop.permute.xlu1 %2669  ;;  %v7390_v1 = vpack.c.bf16 %v4245_v54, %v4244_v31  ;;  %v2789_v4 = vadd.f32 %v2757_v61, %v2529_v14  ;;  %v10005_v55 = vmul.f32 %v8778_v35, %v11998_v22  ;;  %v979_v2 = vadd.f32 %v947_v13, %v9830_v50  ;;  %v4248_v31 = vld [vmem:[%s11722_s3 + $0x260] sm:$0xff] }
 0x28f   : > { %v1465_v26 = vmul.f32 %v8806_v12, %v1404_v9  ;;  %v2828_v15 = vsel %vm2805_vm2, %v2788_v37, -inf  ;;  %v2759_v8 = vmul.f32 %v9968_v19, %v2670_v48  ;;  %v7392_v5 = vpack.c.bf16 %v4263_v62, %v4262_v47 }
 0x290   : > { %2469 = vperm.xlu1 %7794, %v2315_v3   ;;  %7387 = vmatpush3.bf16.msra.mxu0 %v7386_v23  ;;  %v2829_v17 = vmax.f32 %v2827_v56, %v2828_v15  ;;  %v10017_v10 = vmax.f32 %v9927_v11, %v3401_v0  ;;  %v3681_v6 = vmax.f32 %v9961_v42, 0.0  ;;  %v10021_v50 = vsel %vm3803_vm4, %v3680_v51, %v3679_v30  ;;  %v4249_v11 = vld [vmem:[%s11722_s3 + $0x268] sm:$0xff] }
 0x291   : > { %v9994_v34 = vadd.f32 %v1465_v26, %v1237_v41  ;;  %7389 = vmatprep.subr.bf16.mxu0 %v7388_v53  ;;  %v2791_v13 = vadd.f32 %v2759_v8, %v2531_v24  ;;  %v1239_v16 = vadd.f32 %v1207_v45, %v979_v2  ;;  %v7394_v23 = vpack.c.bf16 %v4247_v27, %v4246_v20  ;;  %v2575_v41 = vld [vmem:[#allocation2 + $0x19a] sm:$0xff]  ;;  %v4266_v24 = vld [vmem:[%s11722_s3 + $0x2f0] sm:$0xff] }
 0x292   : > { %v10008_v25 = vpop.permute.xlu0 %1903  ;;  %2719 = vperm.xlu0 %7793, %v9845_v7   ;;  %v2989_v18 = vcombine.high %v2829_v17, %v2829_v17  ;;  %v2996_v61 = vrot.slane %v2829_v17, %v8924_v39  ;;  %v1414_v46 = vpop.permute.xlu1 %1413  ;;  %v2830_v54 = vsel %vm2805_vm2, %v2789_v4, -inf  ;;  %v7396_v30 = vpack.c.bf16 %v4265_v40, %v4264_v32  ;;  %v4267_v45 = vld [vmem:[%s11722_s3 + $0x2f8] sm:$0xff] }
 0x293   : > { %v2831_v0 = vsel %vm2805_vm2, %v2791_v13, -inf  ;;  %v1467_v7 = vmul.f32 %v8806_v12, %v1414_v46  ;;  %v7398_v62 = vpack.c.bf16 %v4249_v11, %v4248_v31  ;;  %v7400_v32 = vpack.c.bf16 %v4267_v45, %v4266_v24  ;;  %v11999_v24 = vld [vmem:[#allocation85_spill] sm:$0xff] }
 0x294   : > { %2214 = vperm.xlu1 %7794, %v2056_v59   ;;  %7391 = vmatpush3.bf16.msra.mxu0 %v7390_v1  ;;  %v3003_v51 = vrot.slane %v2989_v18, %v8924_v39  ;;  %v3004_v9 = vcombine.high %v2996_v61, %v2996_v61  ;;  %v3403_v3 = vsel %vm3206_vm3, %v2996_v61, -inf  ;;  %v2832_v53 = vmax.f32 %v2830_v54, %v2831_v0 }
 0x295   : > { %7393 = vmatprep.subr.bf16.mxu0 %v7392_v5  ;;  %v3404_v37 = vrot.slane %v3403_v3, 4  ;;  %v10036_v26 = vadd.f32 %v1467_v7, %v1239_v16  ;;  %v2316_v5 = vld [vmem:[#allocation2 + $0x1a1] sm:$0xff]  ;;  %v939_v45 = vmul.f32 %v8778_v35, %v11999_v24 }
 0x296   : > { %v1919_v14 = vpop.permute.xlu0 %1918  ;;  %2464 = vperm.xlu0 %7793, %v9876_v44   ;;  %v3005_v56 = vcombine.high %v3003_v51, %v3003_v51  ;;  %v3410_v48 = vsel %vm3206_vm3, %v3004_v9, -inf  ;;  %v3417_v1 = vsel %vm3206_vm3, %v3003_v51, -inf  ;;  %v3006_v4 = vcombine.high %v2832_v53, %v2832_v53  ;;  %v10048_v15 = vpop.permute.xlu1 %1913 }
 0x297   : > { %v1984_v47 = vmul.f32 %v11979_v33, %v1919_v14  ;;  %v3405_v8 = vmax.f32 %v3403_v3, %v3404_v37  ;;  %v3411_v20 = vrot.slane %v3410_v48, 4  ;;  %v3418_v44 = vrot.slane %v3417_v1, 4 }
 0x298   : > { %v3013_v27 = vrot.slane %v2832_v53, %v8924_v39  ;;  %2729 = vperm.xlu1 %7794, %v2575_v41   ;;  %7395 = vmatpush3.bf16.msra.mxu0 %v7394_v23  ;;  %v3424_v22 = vsel %vm3206_vm3, %v3005_v56, -inf  ;;  %v3020_v2 = vrot.slane %v3006_v4, %v8924_v39  ;;  %v2576_v53 = vld [vmem:[#allocation2 + $0x1a2] sm:$0xff]  ;;  %v3682_v56 = vmax.f32 %v10017_v10, 0.0 }
 0x299   : > { %v10054_v17 = vadd.f32 %v1984_v47, %v9835_v21  ;;  %7397 = vmatprep.subr.bf16.mxu0 %v7396_v30  ;;  %v3406_v40 = vrot.slane %v3405_v8, 2  ;;  %v3412_v13 = vmax.f32 %v3410_v48, %v3411_v20  ;;  %v3419_v16 = vmax.f32 %v3417_v1, %v3418_v44 }
 0x29a   : > { %v10056_v59 = vpop.permute.xlu0 %2404  ;;  %v3425_v18 = vrot.slane %v3424_v22, 4  ;;  %2724 = vperm.xlu0 %7793, %v9938_v58   ;;  %v3021_v61 = vcombine.high %v3013_v27, %v3013_v27  ;;  %v3022_v46 = vcombine.high %v3020_v2, %v3020_v2  ;;  %v3431_v23 = vsel %vm3206_vm3, %v3013_v27, -inf  ;;  %v10061_v11 = vpop.permute.xlu1 %1928 }
 0x29b   : > { %v3445_v31 = vsel %vm3206_vm3, %v3020_v2, -inf  ;;  %v3407_v21 = vmax.f32 %v3405_v8, %v3406_v40  ;;  %v3413_v54 = vrot.slane %v3412_v13, 2  ;;  %v3420_v0 = vrot.slane %v3419_v16, 2 }
 0x29c   : > { %v3426_v7 = vmax.f32 %v3424_v22, %v3425_v18  ;;  %2474 = vperm.xlu1 %7794, %v2316_v5   ;;  %7399 = vmatpush3.bf16.msra.mxu0 %v7398_v62  ;;  %v3432_v30 = vrot.slane %v3431_v23, 4  ;;  %v3438_v51 = vsel %vm3206_vm3, %v3021_v61, -inf  ;;  %v3446_v9 = vrot.slane %v3445_v31, 4 }
 0x29d   : > { %v3452_v58 = vsel %vm3206_vm3, %v3022_v46, -inf  ;;  %7401 = vmatprep.subr.bf16.mxu0 %v7400_v32  ;;  %v3408_v14 = vrot.slane %v3407_v21, 1  ;;  %v3414_v41 = vmax.f32 %v3412_v13, %v3413_v54  ;;  %v3421_v37 = vmax.f32 %v3419_v16, %v3420_v0  ;;  %v12000_v16 = vld [vmem:[#allocation61_spill] sm:$0xff] }
 0x29e   : > { %v10065_v3 = vpop.permute.xlu0 %2419  ;;  %v3427_v47 = vrot.slane %v3426_v7, 2  ;;  %v3832_v62 = vsel %vm3805_vm5, %v3681_v6, %v10021_v50  ;;  %v3439_v48 = vrot.slane %v3438_v51, 4  ;;  %v10074_v1 = vpop.permute.xlu1 %2414  ;;  %v3433_v27 = vmax.f32 %v3431_v23, %v3432_v30  ;;  %v12001_v50 = vld [vmem:[#allocation60_spill] sm:$0xff] }
 0x29f   : > { %v3409_v4 = vmax.f32 %v3407_v21, %v3408_v14  ;;  %v3415_v8 = vrot.slane %v3414_v41, 1  ;;  %v3422_v20 = vrot.slane %v3421_v37, 1  ;;  %v3447_v2 = vmax.f32 %v3445_v31, %v3446_v9 }
 0x2a0   : > { %v3428_v44 = vmax.f32 %v3426_v7, %v3427_v47  ;;  %2734 = vperm.xlu1 %7794, %v2576_v53   ;;  %v3440_v22 = vmax.f32 %v3438_v51, %v3439_v48  ;;  %v3453_v5 = vrot.slane %v3452_v58, 4  ;;  %v969_v6 = vadd.f32 %v10005_v55, %v12000_v16  ;;  %v12002_v7 = vld [vmem:[#allocation21_spill] sm:$0xff]  ;;  %v12003_v51 = vld [vmem:[#allocation50_spill] sm:$0xff] }
 0x2a1   : > { %v3416_v10 = vmax.f32 %v3414_v41, %v3415_v8  ;;  %v3423_v40 = vmax.f32 %v3421_v37, %v3422_v20  ;;  %v3683_v42 = vmax.f32 %v3409_v4, 0.0  ;;  %v1197_v18 = vmul.f32 %v8794_v38, %v12001_v50  ;;  %v12004_v53 = vld [vmem:[#allocation58_spill] sm:$0xff]  ;;  %v12005_v48 = vld [vmem:[#allocation13_spill] sm:$0xff] }
 0x2a2   : > { %v10076_v32 = vpop.permute.xlu0 %1663  ;;  %v3429_v13 = vrot.slane %v3428_v44, 1  ;;  %v3833_v61 = vsel %vm3807_vm6, %v3682_v56, %v3832_v62  ;;  %v3441_v46 = vrot.slane %v3440_v22, 2  ;;  %v10083_v21 = vpop.permute.xlu1 %2429  ;;  %v971_v30 = vadd.f32 %v939_v45, %v12002_v7 }
 0x2a3   : > { %v3684_v31 = vmax.f32 %v3416_v10, 0.0  ;;  %v3685_v54 = vmax.f32 %v3423_v40, 0.0  ;;  %v3834_v0 = vsel %vm3809_vm7, %v3683_v42, %v3833_v61  ;;  %v1199_v9 = vmul.f32 %v8794_v38, %v12003_v51 }
 0x2a4   : > { %v3430_v23 = vmax.f32 %v3428_v44, %v3429_v13  ;;  %v1457_v55 = vmul.f32 %v8806_v12, %v12004_v53  ;;  %v3434_v14 = vrot.slane %v3433_v27, 2  ;;  %v3448_v24 = vrot.slane %v3447_v2, 2  ;;  %v12006_v44 = vld [vmem:[#allocation17_spill] sm:$0xff] }
 0x2a5   : > { %v3835_v47 = vsel %vm3811_vm8, %v3684_v31, %v3834_v0  ;;  %v3454_v56 = vmax.f32 %v3452_v58, %v3453_v5  ;;  %v1229_v62 = vadd.f32 %v1197_v18, %v969_v6  ;;  %v1459_v4 = vmul.f32 %v8806_v12, %v12005_v48  ;;  %v12007_v58 = vld [vmem:[#allocation20_spill] sm:$0xff] }
 0x2a6   : > { %v10091_v41 = vpop.permute.xlu0 %2164  ;;  %v3686_v37 = vmax.f32 %v3430_v23, 0.0  ;;  %v3836_v45 = vsel %vm3813_vm9, %v3685_v54, %v3835_v47  ;;  %v3442_v8 = vmax.f32 %v3440_v22, %v3441_v46  ;;  %v10097_v20 = vpop.permute.xlu1 %1673  ;;  %v1717_v10 = vmul.f32 %v8812_v36, %v12006_v44 }
 0x2a7   : > { %v1986_v13 = vmul.f32 %v11979_v33, %v10061_v11  ;;  %v1231_v42 = vadd.f32 %v1199_v9, %v971_v30  ;;  %v1489_v16 = vadd.f32 %v1457_v55, %v1229_v62  ;;  %v1719_v5 = vmul.f32 %v8812_v36, %v12007_v58  ;;  %v12008_v11 = vld [vmem:[#allocation44_spill] sm:$0xff] }
 0x2a8   : > { %v3837_v40 = vsel %vm3815_vm10, %v3686_v37, %v3836_v45  ;;  %v3435_v6 = vmax.f32 %v3433_v27, %v3434_v14  ;;  %v1977_v22 = vmul.f32 %v11979_v33, %v9679_v63  ;;  %v3449_v18 = vmax.f32 %v3447_v2, %v3448_v24  ;;  %v4250_v63 = vld [vmem:[%s11722_s3 + $0x270] sm:$0xff] }
 0x2a9   : > { %3878 = vst.msk [vmem:[#allocation3 + $0x41] sm:$0xff] %vm2805_vm2, %v3837_v40  ;;  %v3455_v61 = vrot.slane %v3454_v56, 2  ;;  %v10112_v46 = vadd.f32 %v1986_v13, %v9878_v60  ;;  %v1491_v23 = vadd.f32 %v1459_v4, %v1231_v42  ;;  %v1979_v31 = vmul.f32 %v11979_v33, %v12008_v11  ;;  %v4251_v60 = vld [vmem:[%s11722_s3 + $0x278] sm:$0xff] }
 0x2aa   : > { %v10107_v50 = vpop.permute.xlu0 %2179  ;;  %v3443_v54 = vrot.slane %v3442_v8, 1  ;;  %v10116_v0 = vpop.permute.xlu1 %2174  ;;  %v1749_v7 = vadd.f32 %v1717_v10, %v1489_v16  ;;  %v2238_v27 = vmul.f32 %v8837_v49, %v9843_v43  ;;  %v2240_v30 = vmul.f32 %v8837_v49, %v9889_v28 }
 0x2ab   : > { %v1751_v2 = vadd.f32 %v1719_v5, %v1491_v23  ;;  %v3436_v51 = vrot.slane %v3435_v6, 1  ;;  %v3450_v55 = vrot.slane %v3449_v18, 1  ;;  %v3456_v14 = vmax.f32 %v3454_v56, %v3455_v61 }
 0x2ac   : > { %v2009_v53 = vadd.f32 %v1977_v22, %v1749_v7  ;;  %v2498_v43 = vmul.f32 %v8846_v29, %v10056_v59  ;;  %v3444_v47 = vmax.f32 %v3442_v8, %v3443_v54  ;;  %v1981_v24 = vmul.f32 %v11979_v33, %v10008_v25 }
 0x2ad   : > { %v2011_v37 = vadd.f32 %v1979_v31, %v1751_v2  ;;  %v7402_v48 = vpack.c.bf16 %v4251_v60, %v4250_v63  ;;  %v2500_v28 = vmul.f32 %v8846_v29, %v10074_v1  ;;  %v3437_v13 = vmax.f32 %v3435_v6, %v3436_v51  ;;  %v12009_v6 = vld [vmem:[#allocation51_spill] sm:$0xff] }
 0x2ae   : > { %v2665_v9 = vpop.permute.xlu0 %2664  ;;  %v10132_v62 = vpop.permute.xlu1 %2189  ;;  %v2270_v4 = vadd.f32 %v2238_v27, %v2009_v53  ;;  %v1983_v59 = vmul.f32 %v11979_v33, %v10048_v15  ;;  %v3451_v42 = vmax.f32 %v3449_v18, %v3450_v55  ;;  %v3457_v15 = vrot.slane %v3456_v14, 1  ;;  %v12010_v27 = vld [vmem:[#allocation52_spill] sm:$0xff] }
 0x2af   : > { %v2758_v45 = vmul.f32 %v9968_v19, %v2665_v9  ;;  %v2272_v40 = vadd.f32 %v2240_v30, %v2011_v37  ;;  %7403 = vmatpush3.bf16.msra.mxu0 %v7402_v48  ;;  %v2501_v58 = vmul.f32 %v8846_v29, %v10065_v3  ;;  %v3688_v5 = vmax.f32 %v3444_v47, 0.0 }
 0x2b0   : > { %v3975_v44 = vld [vmem:[#allocation3 + $0x41] sm:$0xff]  ;;  %v2530_v16 = vadd.f32 %v2498_v43, %v2270_v4  ;;  %v2013_v22 = vadd.f32 %v1981_v24, %v12009_v6  ;;  %v2503_v61 = vmul.f32 %v8846_v29, %v10083_v21  ;;  %v3687_v7 = vmax.f32 %v3437_v13, 0.0 }
 0x2b1   : > { %v4006_v10 = vld [vmem:[#allocation3 + $0x40] sm:$0xff]  ;;  %3983 = vst.msk [vmem:[#allocation6 + $0x128] sm:$0xff] %vm2805_vm2, %v3975_v44  ;;  %4030 = vst.msk [vmem:[#allocation6 + $0xf8] sm:$0xff] %vm2805_vm2, %v3975_v44  ;;  %v2532_v11 = vadd.f32 %v2500_v28, %v2272_v40  ;;  %v2015_v3 = vadd.f32 %v1983_v59, %v12010_v27  ;;  %v1725_v63 = vmul.f32 %v8812_v36, %v10076_v32  ;;  %v3689_v51 = vmax.f32 %v3451_v42, 0.0 }
 0x2b2   : > { %v3991_v56 = vld [vmem:[#allocation3 + $0x42] sm:$0xff]  ;;  %v2680_v8 = vpop.permute.xlu0 %2679  ;;  %4014 = vst.msk [vmem:[#allocation6 + $0xf0] sm:$0xff] %vm2805_vm2, %v4006_v10  ;;  %3967 = vst.msk [vmem:[#allocation6 + $0x120] sm:$0xff] %vm2805_vm2, %v4006_v10  ;;  %v2675_v23 = vpop.permute.xlu1 %2674  ;;  %v2790_v31 = vadd.f32 %v2758_v45, %v2530_v16  ;;  %v2242_v60 = vmul.f32 %v8837_v49, %v10091_v41  ;;  %v3458_v30 = vmax.f32 %v3456_v14, %v3457_v15 }
 0x2b3   : > { %3999 = vst.msk [vmem:[#allocation6 + $0x130] sm:$0xff] %vm2805_vm2, %v3991_v56  ;;  %4046 = vst.msk [vmem:[#allocation6 + $0x100] sm:$0xff] %vm2805_vm2, %v3991_v56  ;;  %v4070_v25 = vld [vmem:[#allocation3 + $0x41] sm:$0xff]  ;;  %v2761_v18 = vmul.f32 %v9968_v19, %v2680_v8  ;;  %v2760_v54 = vmul.f32 %v9968_v19, %v2675_v23  ;;  %v2533_v21 = vadd.f32 %v2501_v58, %v9902_v57 }
 0x2b4   : > { %4094 = vst.msk [vmem:[#allocation6 + $0xd0] sm:$0xff] %vm2805_vm2, %v3991_v56  ;;  %v4054_v1 = vld [vmem:[#allocation3 + $0x40] sm:$0xff]  ;;  %4078 = vst.msk [vmem:[#allocation6 + $0xc8] sm:$0xff] %vm2805_vm2, %v4070_v25  ;;  %v3838_v53 = vsel %vm3803_vm4, %v3688_v5, %v3687_v7  ;;  %v2535_v55 = vadd.f32 %v2503_v61, %v9952_v52  ;;  %v1727_v43 = vmul.f32 %v8812_v36, %v10097_v20  ;;  %v2833_v47 = vsel %vm2805_vm2, %v2790_v31, -inf }
 0x2b5   : > { %4062 = vst.msk [vmem:[#allocation6 + $0xc0] sm:$0xff] %vm2805_vm2, %v4054_v1  ;;  %v2792_v9 = vadd.f32 %v2760_v54, %v2532_v11  ;;  %v2245_v37 = vmul.f32 %v8837_v49, %v10107_v50  ;;  %v2793_v41 = vadd.f32 %v2761_v18, %v2533_v21  ;;  %v1757_v28 = vadd.f32 %v1725_v63, %v9994_v34  ;;  %v4129_v50 = vld [vmem:[#allocation6 + $0xe8] sm:$0xff] }
 0x2b6   : > { %v1924_v2 = vpop.permute.xlu0 %1923  ;;  %v2690_v32 = vpop.permute.xlu1 %2689  ;;  %v10171_v52 = vadd.f32 %v2242_v60, %v2013_v22  ;;  %v3690_v44 = vmax.f32 %v3458_v30, 0.0  ;;  %v2244_v10 = vmul.f32 %v8837_v49, %v10116_v0  ;;  %v2247_v56 = vmul.f32 %v8837_v49, %v10132_v62 }
 0x2b7   : > { %v2834_v14 = vsel %vm2805_vm2, %v2792_v9, -inf  ;;  %v2763_v24 = vmul.f32 %v9968_v19, %v2690_v32  ;;  %v3839_v13 = vsel %vm3805_vm5, %v3689_v51, %v3838_v53  ;;  %v10179_v34 = vadd.f32 %v1727_v43, %v10036_v26 }
 0x2b8   : > { %v4137_v57 = vld [vmem:[#allocation6 + $0x128] sm:$0xff]  ;;  %v2835_v45 = vmax.f32 %v2833_v47, %v2834_v14  ;;  %v10185_v1 = vadd.f32 %v2245_v37, %v10054_v17  ;;  %v2836_v0 = vsel %vm2805_vm2, %v2793_v41, -inf  ;;  %v1985_v62 = vmul.f32 %v11979_v33, %v1924_v2 }
 0x2b9   : > { %v4130_v48 = vld [vmem:[#allocation6 + $0xf0] sm:$0xff]  ;;  %v4136_v4 = vld [vmem:[#allocation6 + $0x120] sm:$0xff]  ;;  %4407 = vmatprep.mubr.f32.mxu0 %v4137_v57  ;;  %v2795_v40 = vadd.f32 %v2763_v24, %v2535_v55  ;;  %v10194_v6 = vadd.f32 %v2244_v10, %v2015_v3  ;;  %v10197_v22 = vadd.f32 %v2247_v56, %v10112_v46  ;;  %v10200_v17 = vsel %vm3807_vm6, %v3690_v44, %v3839_v13 }
 0x2ba   : > { %v2425_v20 = vpop.permute.xlu0 %2424  ;;  %4507 = vmatprep.mubr.f32.mxu1 %v4130_v48  ;;  %4408 = vmatmul.mubr.f32.gmra.mrb[8].mxu0 %v4136_v4  ;;  %v3023_v59 = vcombine.high %v2835_v45, %v2835_v45  ;;  %v3030_v8 = vrot.slane %v2835_v45, %v8924_v39  ;;  %v10182_v25 = vpop.permute.xlu1 %1933  ;;  %v10208_v60 = vadd.f32 %v1985_v62, %v1757_v28 }
 0x2bb   : > { %4508 = vmatmul.mubr.f32.gmra.mrb[6].mxu1 %v4129_v50  ;;  %v2837_v42 = vsel %vm2805_vm2, %v2795_v40, -inf  ;;  %v10212_v30 = vmul.f32 %v8846_v29, %v2425_v20 }
 0x2bc   : > { %v3037_v15 = vrot.slane %v3023_v59, %v8924_v39  ;;  %v3038_v16 = vcombine.high %v3030_v8, %v3030_v8  ;;  %v3459_v26 = vsel %vm3206_vm3, %v3030_v8, -inf  ;;  %v2838_v58 = vmax.f32 %v2836_v0, %v2837_v42 }
 0x2bd   : > { %v3460_v61 = vrot.slane %v3459_v26, 4 }
 0x2be   : > { %v10192_v5 = vpop.permute.xlu0 %2439  ;;  %v3039_v23 = vcombine.high %v3037_v15, %v3037_v15  ;;  %v3466_v11 = vsel %vm3206_vm3, %v3038_v16, -inf  ;;  %v3473_v31 = vsel %vm3206_vm3, %v3037_v15, -inf  ;;  %v3040_v18 = vcombine.high %v2838_v58, %v2838_v58  ;;  %v10204_v54 = vpop.permute.xlu1 %2434 }
 0x2bf   : > { %v3461_v7 = vmax.f32 %v3459_v26, %v3460_v61  ;;  %v3467_v27 = vrot.slane %v3466_v11, 4  ;;  %v3474_v63 = vrot.slane %v3473_v31, 4  ;;  %v3047_v3 = vrot.slane %v2838_v58, %v8924_v39 }
 0x2c0   : > { %v3480_v46 = vsel %vm3206_vm3, %v3039_v23, -inf  ;;  %v3054_v2 = vrot.slane %v3040_v18, %v8924_v39 }
 0x2c1   : > { %v3462_v21 = vrot.slane %v3461_v7, 2  ;;  %v3468_v9 = vmax.f32 %v3466_v11, %v3467_v27  ;;  %v3475_v53 = vmax.f32 %v3473_v31, %v3474_v63  ;;  %v3481_v55 = vrot.slane %v3480_v46, 4 }
 0x2c2   : > { %v10214_v51 = vpop.permute.xlu0 %2184  ;;  %v3055_v43 = vcombine.high %v3047_v3, %v3047_v3  ;;  %v3056_v37 = vcombine.high %v3054_v2, %v3054_v2  ;;  %v3487_v32 = vsel %vm3206_vm3, %v3047_v3, -inf  ;;  %v3501_v47 = vsel %vm3206_vm3, %v3054_v2, -inf  ;;  %v10218_v41 = vpop.permute.xlu1 %2449 }
 0x2c3   : > { %v3463_v14 = vmax.f32 %v3461_v7, %v3462_v21  ;;  %v3469_v24 = vrot.slane %v3468_v9, 2  ;;  %v3476_v57 = vrot.slane %v3475_v53, 2  ;;  %v3482_v48 = vmax.f32 %v3480_v46, %v3481_v55 }
 0x2c4   : > { %v3488_v4 = vrot.slane %v3487_v32, 4  ;;  %v3494_v28 = vsel %vm3206_vm3, %v3055_v43, -inf  ;;  %v3502_v45 = vrot.slane %v3501_v47, 4  ;;  %v3508_v20 = vsel %vm3206_vm3, %v3056_v37, -inf }
 0x2c5   : > { %v3464_v44 = vrot.slane %v3463_v14, 1  ;;  %v3470_v10 = vmax.f32 %v3468_v9, %v3469_v24  ;;  %v3477_v56 = vmax.f32 %v3475_v53, %v3476_v57  ;;  %v3483_v40 = vrot.slane %v3482_v48, 2 }
 0x2c6   : > { %v2685_v50 = vpop.permute.xlu0 %2684  ;;  %v3489_v13 = vmax.f32 %v3487_v32, %v3488_v4  ;;  %v3495_v59 = vrot.slane %v3494_v28, 4  ;;  %v3503_v8 = vmax.f32 %v3501_v47, %v3502_v45  ;;  %v3509_v0 = vrot.slane %v3508_v20, 4  ;;  %v2195_v62 = vpop.permute.xlu1 %2194 }
 0x2c7   : > { %v3465_v42 = vmax.f32 %v3463_v14, %v3464_v44  ;;  %v3471_v15 = vrot.slane %v3470_v10, 1  ;;  %v3478_v16 = vrot.slane %v3477_v56, 1  ;;  %v3484_v26 = vmax.f32 %v3482_v48, %v3483_v40 }
 0x2c8   : > { %v3490_v58 = vrot.slane %v3489_v13, 2  ;;  %v3496_v61 = vmax.f32 %v3494_v28, %v3495_v59  ;;  %v3504_v23 = vrot.slane %v3503_v8, 2  ;;  %v3510_v11 = vmax.f32 %v3508_v20, %v3509_v0  ;;  %v6654_v18 = vpop.f32.mrb[2].mxu0 }
 0x2c9   : > { %v3472_v7 = vmax.f32 %v3470_v10, %v3471_v15  ;;  %v3479_v27 = vmax.f32 %v3477_v56, %v3478_v16  ;;  %v3485_v63 = vrot.slane %v3484_v26, 1  ;;  %v3691_v3 = vmax.f32 %v3465_v42, 0.0  ;;  %v6655_v46 = vpop.f32.mrb[3].mxu0  ;;  %v10222_v2 = vpop.f32.mrb[0].mxu1 }
 0x2ca   : > { %v2700_v31 = vpop.permute.xlu0 %2699  ;;  %v3491_v21 = vmax.f32 %v3489_v13, %v3490_v58  ;;  %v3497_v9 = vrot.slane %v3496_v61, 2  ;;  %v3505_v53 = vmax.f32 %v3503_v8, %v3504_v23  ;;  %v3511_v55 = vrot.slane %v3510_v11, 2  ;;  %v2695_v43 = vpop.permute.xlu1 %2694 }
 0x2cb   : > { %v10224_v37 = vpop.f32.mrb[1].mxu1  ;;  %v3486_v32 = vmax.f32 %v3484_v26, %v3485_v63  ;;  %v3692_v47 = vmax.f32 %v3472_v7, 0.0  ;;  %v3693_v14 = vmax.f32 %v3479_v27, 0.0  ;;  %v3841_v24 = vsel %vm3809_vm7, %v3691_v3, %v10200_v17 }
 0x2cc   : > { %v3492_v57 = vrot.slane %v3491_v21, 1  ;;  %v3498_v48 = vmax.f32 %v3496_v61, %v3497_v9  ;;  %v3506_v4 = vrot.slane %v3505_v53, 1  ;;  %v3512_v28 = vmax.f32 %v3510_v11, %v3511_v55  ;;  %v4285_v55 = vld [vmem:[%s11722_s3 + $0x388] sm:$0xff] }
 0x2cd   : > { %v3694_v20 = vmax.f32 %v3486_v32, 0.0  ;;  %v3842_v44 = vsel %vm3811_vm8, %v3692_v47, %v3841_v24  ;;  %v1987_v10 = vmul.f32 %v11979_v33, %v10182_v25  ;;  %v2505_v56 = vmul.f32 %v8846_v29, %v10192_v5 }
 0x2ce   : > { %v2445_v45 = vpop.permute.xlu0 %2444  ;;  %v3843_v40 = vsel %vm3813_vm9, %v3693_v14, %v3842_v44  ;;  %v3499_v13 = vrot.slane %v3498_v48, 1  ;;  %v2534_v17 = vadd.f32 %v10212_v30, %v10171_v52  ;;  %v2504_v59 = vmul.f32 %v8846_v29, %v10204_v54  ;;  %v2710_v8 = vpop.permute.xlu1 %2709 }
 0x2cf   : > { %v3844_v0 = vsel %vm3815_vm10, %v3694_v20, %v3843_v40  ;;  %v3493_v42 = vmax.f32 %v3491_v21, %v3492_v57  ;;  %v10239_v15 = vmax.f32 %v3505_v53, %v3506_v4  ;;  %v2246_v25 = vmul.f32 %v8837_v49, %v10214_v51 }
 0x2d0   : > { %3879 = vst.msk [vmem:[#allocation3 + $0x51] sm:$0xff] %vm2805_vm2, %v3844_v0  ;;  %v3500_v5 = vmax.f32 %v3498_v48, %v3499_v13  ;;  %v3513_v16 = vrot.slane %v3512_v28, 1  ;;  %v2507_v26 = vmul.f32 %v8846_v29, %v10218_v41  ;;  %v2762_v52 = vmul.f32 %v9968_v19, %v2685_v50 }
 0x2d1   : > { %v2019_v54 = vadd.f32 %v1987_v10, %v10179_v34  ;;  %v2537_v58 = vadd.f32 %v2505_v56, %v10185_v1  ;;  %v2248_v61 = vmul.f32 %v8837_v49, %v2195_v62  ;;  %v2765_v23 = vmul.f32 %v9968_v19, %v2700_v31 }
 0x2d2   : > { %v2705_v30 = vpop.permute.xlu0 %2704  ;;  %v2536_v51 = vadd.f32 %v2504_v59, %v10194_v6  ;;  %v2794_v11 = vadd.f32 %v2762_v52, %v2534_v17  ;;  %v10252_v7 = vadd.f32 %v6655_v46, %v6654_v18  ;;  %v2764_v27 = vmul.f32 %v9968_v19, %v2695_v43  ;;  %v2455_v63 = vpop.permute.xlu1 %2454 }
 0x2d3   : > { %v3695_v41 = vmax.f32 %v3493_v42, 0.0  ;;  %v3696_v3 = vmax.f32 %v3500_v5, 0.0  ;;  %v2278_v50 = vadd.f32 %v2246_v25, %v10208_v60  ;;  %v2506_v34 = vmul.f32 %v8846_v29, %v2445_v45  ;;  %v4284_v60 = vld [vmem:[%s11722_s3 + $0x380] sm:$0xff] }
 0x2d4   : > { %v10257_v21 = vmax.f32 %v3512_v28, %v3513_v16  ;;  %v3697_v1 = vmax.f32 %v10239_v15, 0.0  ;;  %v2539_v62 = vadd.f32 %v2507_v26, %v10197_v22  ;;  %v2796_v31 = vadd.f32 %v2764_v27, %v2536_v51 }
 0x2d5   : > { %v2839_v18 = vsel %vm2805_vm2, %v2794_v11, -inf  ;;  %v2280_v46 = vadd.f32 %v2248_v61, %v2019_v54  ;;  %v2797_v9 = vadd.f32 %v2765_v23, %v2537_v58  ;;  %v2767_v53 = vmul.f32 %v9968_v19, %v2710_v8 }
 0x2d6   : > { %v10261_v6 = vpop.permute.xlu0 %638  ;;  %v2840_v43 = vsel %vm2805_vm2, %v2796_v31, -inf  ;;  %v2538_v22 = vadd.f32 %v2506_v34, %v2278_v50  ;;  %v2766_v32 = vmul.f32 %v9968_v19, %v2705_v30  ;;  %v2508_v47 = vmul.f32 %v8846_v29, %v2455_v63  ;;  %v2715_v14 = vpop.permute.xlu1 %2714 }
 0x2d7   : > { %v3845_v24 = vsel %vm3803_vm4, %v3696_v3, %v3695_v41  ;;  %v2841_v57 = vmax.f32 %v2839_v18, %v2840_v43  ;;  %v2799_v48 = vadd.f32 %v2767_v53, %v2539_v62  ;;  %v2768_v4 = vmul.f32 %v9968_v19, %v2715_v14  ;;  %v3976_v28 = vld [vmem:[#allocation3 + $0x51] sm:$0xff] }
 0x2d8   : > { %v4007_v45 = vld [vmem:[#allocation3 + $0x50] sm:$0xff]  ;;  %v2798_v44 = vadd.f32 %v2766_v32, %v2538_v22  ;;  %v2540_v10 = vadd.f32 %v2508_v47, %v2280_v46  ;;  %3984 = vst.msk [vmem:[#allocation6 + $0x170] sm:$0xff] %vm2805_vm2, %v3976_v28  ;;  %v10284_v40 = vadd.f32 %v10224_v37, %v10222_v2  ;;  %4031 = vst.msk [vmem:[#allocation6 + $0x140] sm:$0xff] %vm2805_vm2, %v3976_v28  ;;  %v2842_v59 = vsel %vm2805_vm2, %v2797_v9, -inf }
 0x2d9   : > { %v3992_v20 = vld [vmem:[#allocation3 + $0x52] sm:$0xff]  ;;  %4015 = vst.msk [vmem:[#allocation6 + $0x138] sm:$0xff] %vm2805_vm2, %v4007_v45  ;;  %3968 = vst.msk [vmem:[#allocation6 + $0x168] sm:$0xff] %vm2805_vm2, %v4007_v45  ;;  %v7404_v19 = vpack.c.bf16 %v4285_v55, %v4284_v60  ;;  %v3057_v8 = vcombine.high %v2841_v57, %v2841_v57  ;;  %v3064_v0 = vrot.slane %v2841_v57, %v8924_v39  ;;  %v2843_v42 = vsel %vm2805_vm2, %v2799_v48, -inf }
 0x2da   : > { %v10276_v56 = vpop.permute.xlu0 %898  ;;  %4000 = vst.msk [vmem:[#allocation6 + $0x178] sm:$0xff] %vm2805_vm2, %v3992_v20  ;;  %4047 = vst.msk [vmem:[#allocation6 + $0x148] sm:$0xff] %vm2805_vm2, %v3992_v20  ;;  %v4071_v13 = vld [vmem:[#allocation3 + $0x51] sm:$0xff]  ;;  %v3698_v2 = vmax.f32 %v10257_v21, 0.0  ;;  %v3846_v37 = vsel %vm3805_vm5, %v3697_v1, %v3845_v24  ;;  %v2844_v15 = vmax.f32 %v2842_v59, %v2843_v42  ;;  %v2800_v25 = vadd.f32 %v2768_v4, %v2540_v10  ;;  %v10296_v5 = vpop.permute.xlu1 %648 }
 0x2db   : > { %4095 = vst.msk [vmem:[#allocation6 + $0x118] sm:$0xff] %vm2805_vm2, %v3992_v20  ;;  %v4055_v17 = vld [vmem:[#allocation3 + $0x50] sm:$0xff]  ;;  %4079 = vst.msk [vmem:[#allocation6 + $0x110] sm:$0xff] %vm2805_vm2, %v4071_v13  ;;  %7405 = vmatprep.subr.bf16.mxu1 %v7404_v19  ;;  %v3071_v16 = vrot.slane %v3057_v8, %v8924_v39  ;;  %v3072_v26 = vcombine.high %v3064_v0, %v3064_v0  ;;  %v3515_v52 = vsel %vm3206_vm3, %v3064_v0, -inf  ;;  %v2845_v30 = vsel %vm2805_vm2, %v2798_v44, -inf }
 0x2dc   : > { %4063 = vst.msk [vmem:[#allocation6 + $0x108] sm:$0xff] %vm2805_vm2, %v4055_v17  ;;  %v3516_v54 = vrot.slane %v3515_v52, 4  ;;  %v3074_v58 = vcombine.high %v2844_v15, %v2844_v15  ;;  %v3081_v61 = vrot.slane %v2844_v15, %v8924_v39  ;;  %v2846_v23 = vsel %vm2805_vm2, %v2800_v25, -inf  ;;  %v4138_v14 = vld [vmem:[#allocation6 + $0x130] sm:$0xff] }
 0x2dd   : > { %v3073_v11 = vcombine.high %v3071_v16, %v3071_v16  ;;  %v3522_v27 = vsel %vm3206_vm3, %v3072_v26, -inf  ;;  %v3529_v63 = vsel %vm3206_vm3, %v3071_v16, -inf  ;;  %v10307_v41 = vmax.f32 %v2845_v30, %v2846_v23 }
 0x2de   : > { %v10303_v51 = vpop.permute.xlu0 %643  ;;  %v3517_v3 = vmax.f32 %v3515_v52, %v3516_v54  ;;  %v3523_v50 = vrot.slane %v3522_v27, 4  ;;  %v3530_v34 = vrot.slane %v3529_v63, 4  ;;  %v3088_v21 = vrot.slane %v3074_v58, %v8924_v39  ;;  %v10310_v1 = vpop.permute.xlu1 %908 }
 0x2df   : > { %v3847_v62 = vsel %vm3807_vm6, %v3698_v2, %v3846_v37  ;;  %v3536_v31 = vsel %vm3206_vm3, %v3073_v11, -inf  ;;  %v3089_v18 = vcombine.high %v3081_v61, %v3081_v61  ;;  %v3543_v46 = vsel %vm3206_vm3, %v3081_v61, -inf  ;;  %v4146_v9 = vld [vmem:[#allocation6 + $0x170] sm:$0xff] }
 0x2e0   : > { %v4139_v53 = vld [vmem:[#allocation6 + $0x138] sm:$0xff]  ;;  %v4145_v60 = vld [vmem:[#allocation6 + $0x168] sm:$0xff]  ;;  %v3518_v55 = vrot.slane %v3517_v3, 2  ;;  %v3524_v43 = vmax.f32 %v3522_v27, %v3523_v50  ;;  %v3531_v22 = vmax.f32 %v3529_v63, %v3530_v34  ;;  %v3537_v32 = vrot.slane %v3536_v31, 4  ;;  %4412 = vmatprep.mubr.f32.mxu0 %v4146_v9 }
 0x2e1   : > { %4512 = vmatprep.mubr.f32.mxu1 %v4139_v53  ;;  %v3090_v24 = vcombine.high %v3088_v21, %v3088_v21  ;;  %v3544_v57 = vrot.slane %v3543_v46, 4  ;;  %v3550_v48 = vsel %vm3206_vm3, %v3089_v18, -inf  ;;  %v3557_v4 = vsel %vm3206_vm3, %v3088_v21, -inf  ;;  %4413 = vmatmul.mubr.f32.gmra.mrb[10].mxu0 %v4145_v60 }
 0x2e2   : > { %v10315_v47 = vpop.permute.xlu0 %1158  ;;  %4513 = vmatmul.mubr.f32.gmra.mrb[8].mxu1 %v4138_v14  ;;  %v3519_v28 = vmax.f32 %v3517_v3, %v3518_v55  ;;  %v3525_v45 = vrot.slane %v3524_v43, 2  ;;  %v3532_v20 = vrot.slane %v3531_v22, 2  ;;  %v3538_v44 = vmax.f32 %v3536_v31, %v3537_v32  ;;  %v10319_v10 = vpop.permute.xlu1 %653 }
 0x2e3   : > { %v3545_v19 = vmax.f32 %v3543_v46, %v3544_v57  ;;  %v3551_v13 = vrot.slane %v3550_v48, 4  ;;  %v3558_v17 = vrot.slane %v3557_v4, 4  ;;  %v3564_v59 = vsel %vm3206_vm3, %v3090_v24, -inf  ;;  %v4075_v24 = vld [vmem:[#allocation3 + $0x91] sm:$0xff] }
 0x2e4   : > { %v3520_v8 = vrot.slane %v3519_v28, 1  ;;  %v3526_v0 = vmax.f32 %v3524_v43, %v3525_v45  ;;  %v3533_v42 = vmax.f32 %v3531_v22, %v3532_v20  ;;  %v3539_v2 = vrot.slane %v3538_v44, 2  ;;  %4083 = vst.msk [vmem:[#allocation6 + $0x230] sm:$0xff] %vm2805_vm2, %v4075_v24  ;;  %v4059_v20 = vld [vmem:[#allocation3 + $0x90] sm:$0xff] }
 0x2e5   : > { %v3546_v15 = vrot.slane %v3545_v19, 2  ;;  %v3552_v25 = vmax.f32 %v3550_v48, %v3551_v13  ;;  %v3559_v16 = vmax.f32 %v3557_v4, %v3558_v17  ;;  %v3565_v26 = vrot.slane %v3564_v59, 4  ;;  %4067 = vst.msk [vmem:[#allocation6 + $0x228] sm:$0xff] %vm2805_vm2, %v4059_v20 }
 0x2e6   : > { %v10322_v37 = vpop.permute.xlu0 %903  ;;  %v3521_v52 = vmax.f32 %v3519_v28, %v3520_v8  ;;  %v3527_v30 = vrot.slane %v3526_v0, 1  ;;  %v3534_v54 = vrot.slane %v3533_v42, 1  ;;  %v3540_v58 = vmax.f32 %v3538_v44, %v3539_v2  ;;  %v10324_v61 = vpop.permute.xlu1 %1168  ;;  %v4091_v2 = vld [vmem:[#allocation3 + $0x92] sm:$0xff] }
 0x2e7   : > { %v3553_v23 = vrot.slane %v3552_v25, 2  ;;  %v3560_v11 = vrot.slane %v3559_v16, 2  ;;  %v3566_v27 = vmax.f32 %v3564_v59, %v3565_v26  ;;  %v3091_v63 = vcombine.high %v10307_v41, %v10307_v41  ;;  %4099 = vst.msk [vmem:[#allocation6 + $0x238] sm:$0xff] %vm2805_vm2, %v4091_v2 }
 0x2e8   : > { %v3528_v3 = vmax.f32 %v3526_v0, %v3527_v30  ;;  %v3535_v50 = vmax.f32 %v3533_v42, %v3534_v54  ;;  %v3541_v34 = vrot.slane %v3540_v58, 1  ;;  %v3699_v21 = vmax.f32 %v3521_v52, 0.0 }
 0x2e9   : > { %v3547_v18 = vmax.f32 %v3545_v19, %v3546_v15  ;;  %v3554_v46 = vmax.f32 %v3552_v25, %v3553_v23  ;;  %v3561_v9 = vmax.f32 %v3559_v16, %v3560_v11  ;;  %v3567_v53 = vrot.slane %v3566_v27, 2 }
 0x2ea   : > { %v10328_v31 = vpop.permute.xlu0 %1418  ;;  %v3542_v60 = vmax.f32 %v3540_v58, %v3541_v34  ;;  %v3700_v55 = vmax.f32 %v3528_v3, 0.0  ;;  %v3701_v43 = vmax.f32 %v3535_v50, 0.0  ;;  %v3848_v22 = vsel %vm3809_vm7, %v3699_v21, %v3847_v62  ;;  %v10331_v32 = vpop.permute.xlu1 %913 }
 0x2eb   : > { %v3555_v14 = vrot.slane %v3554_v46, 1  ;;  %v3098_v4 = vrot.slane %v10307_v41, %v8924_v39  ;;  %v3105_v28 = vrot.slane %v3091_v63, %v8924_v39  ;;  %v3548_v62 = vrot.slane %v3547_v18, 1 }
 0x2ec   : > { %v3702_v57 = vmax.f32 %v3542_v60, 0.0  ;;  %v3849_v48 = vsel %vm3811_vm8, %v3700_v55, %v3848_v22  ;;  %v3568_v19 = vmax.f32 %v3566_v27, %v3567_v53  ;;  %v3562_v17 = vrot.slane %v3561_v9, 1 }
 0x2ed   : > { %v3850_v44 = vsel %vm3813_vm9, %v3701_v43, %v3849_v48  ;;  %v3106_v59 = vcombine.high %v3098_v4, %v3098_v4  ;;  %v3107_v8 = vcombine.high %v3105_v28, %v3105_v28  ;;  %v3556_v41 = vmax.f32 %v3554_v46, %v3555_v14 }
 0x2ee   : > { %v10337_v45 = vpop.permute.xlu0 %1163  ;;  %v3851_v13 = vsel %vm3815_vm10, %v3702_v57, %v3850_v44  ;;  %v10343_v0 = vpop.permute.xlu1 %1428  ;;  %v3571_v42 = vsel %vm3206_vm3, %v3098_v4, -inf  ;;  %v3585_v16 = vsel %vm3206_vm3, %v3105_v28, -inf  ;;  %v3549_v30 = vmax.f32 %v3547_v18, %v3548_v62 }
 0x2ef   : > { %3880 = vst.msk [vmem:[#allocation3 + $0x61] sm:$0xff] %vm2805_vm2, %v3851_v13  ;;  %v3572_v15 = vrot.slane %v3571_v42, 4  ;;  %v3578_v25 = vsel %vm3206_vm3, %v3106_v59, -inf  ;;  %v3592_v26 = vsel %vm3206_vm3, %v3107_v8, -inf  ;;  %v3569_v54 = vrot.slane %v3568_v19, 1 }
 0x2f0   : > { %v3579_v58 = vrot.slane %v3578_v25, 4  ;;  %v3586_v23 = vrot.slane %v3585_v16, 4  ;;  %v3563_v11 = vmax.f32 %v3561_v9, %v3562_v17  ;;  %v3593_v63 = vrot.slane %v3592_v26, 4 }
 0x2f1   : > { %v3573_v27 = vmax.f32 %v3571_v42, %v3572_v15  ;;  %v3704_v50 = vmax.f32 %v3556_v41, 0.0  ;;  %v3570_v55 = vmax.f32 %v3568_v19, %v3569_v54  ;;  %v3703_v43 = vmax.f32 %v3549_v30, 0.0 }
 0x2f2   : > { %v10350_v52 = vpop.permute.xlu0 %1678  ;;  %v10353_v3 = vpop.permute.xlu1 %1173  ;;  %v3580_v34 = vmax.f32 %v3578_v25, %v3579_v58  ;;  %v3587_v21 = vmax.f32 %v3585_v16, %v3586_v23  ;;  %v3594_v53 = vmax.f32 %v3592_v26, %v3593_v63  ;;  %v3705_v18 = vmax.f32 %v3563_v11, 0.0  ;;  %v10379_v23 = vld [vmem:[%s11723_s4] ss:$0 sm:$0xff] }
 0x2f3   : > { %v3574_v46 = vrot.slane %v3573_v27, 2  ;;  %v3852_v20 = vsel %vm3803_vm4, %v3704_v50, %v3703_v43  ;;  %v3706_v59 = vmax.f32 %v3570_v55, 0.0  ;;  %v12011_v43 = vld [vmem:[#allocation43_spill] sm:$0xff] }
 0x2f4   : > { %v3581_v22 = vrot.slane %v3580_v34, 2  ;;  %v3588_v14 = vrot.slane %v3587_v21, 2  ;;  %v3595_v57 = vrot.slane %v3594_v53, 2  ;;  %v3853_v42 = vsel %vm3805_vm5, %v3705_v18, %v3852_v20 }
 0x2f5   : > { %v3575_v24 = vmax.f32 %v3573_v27, %v3574_v46  ;;  %v3854_v11 = vsel %vm3807_vm6, %v3706_v59, %v3853_v42  ;;  %v4287_v59 = vld [vmem:[%s11722_s3 + $0x398] sm:$0xff] }
 0x2f6   : > { %v10355_v60 = vpop.permute.xlu0 %1423  ;;  %v10357_v48 = vpop.permute.xlu1 %1688  ;;  %v3977_v9 = vld [vmem:[#allocation3 + $0x61] sm:$0xff]  ;;  %v3582_v44 = vmax.f32 %v3580_v34, %v3581_v22  ;;  %v3589_v62 = vmax.f32 %v3587_v21, %v3588_v14  ;;  %v3596_v13 = vmax.f32 %v3594_v53, %v3595_v57  ;;  %v4390_v22 = vadd.f32 %v12011_v43, %v10379_v23 }
 0x2f7   : > { %v4008_v4 = vld [vmem:[#allocation3 + $0x60] sm:$0xff]  ;;  %3985 = vst.msk [vmem:[#allocation6 + $0x1b8] sm:$0xff] %vm2805_vm2, %v3977_v9  ;;  %4032 = vst.msk [vmem:[#allocation6 + $0x188] sm:$0xff] %vm2805_vm2, %v3977_v9  ;;  %v3576_v19 = vrot.slane %v3575_v24, 1  ;;  %v949_v43 = vmul.f32 %v8778_v35, %v10322_v37 }
 0x2f8   : > { %v3993_v28 = vld [vmem:[#allocation3 + $0x62] sm:$0xff]  ;;  %4016 = vst.msk [vmem:[#allocation6 + $0x180] sm:$0xff] %vm2805_vm2, %v4008_v4  ;;  %3969 = vst.msk [vmem:[#allocation6 + $0x1b0] sm:$0xff] %vm2805_vm2, %v4008_v4  ;;  %v3583_v8 = vrot.slane %v3582_v44, 1  ;;  %v3590_v41 = vrot.slane %v3589_v62, 1  ;;  %v3597_v15 = vrot.slane %v3596_v13, 1  ;;  %v10420_v42 = vadd.f32 %v10284_v40, %v4390_v22 }
 0x2f9   : > { %4001 = vst.msk [vmem:[#allocation6 + $0x1c0] sm:$0xff] %vm2805_vm2, %v3993_v28  ;;  %4048 = vst.msk [vmem:[#allocation6 + $0x190] sm:$0xff] %vm2805_vm2, %v3993_v28  ;;  %v3577_v2 = vmax.f32 %v3575_v24, %v3576_v19  ;;  %v4147_v24 = vld [vmem:[#allocation6 + $0x178] sm:$0xff]  ;;  %v4288_v40 = vld [vmem:[%s11722_s3 + $0x3a0] sm:$0xff] }
 0x2fa   : > { %4096 = vst.msk [vmem:[#allocation6 + $0x160] sm:$0xff] %vm2805_vm2, %v3993_v28  ;;  %4080 = vst.msk [vmem:[#allocation6 + $0x158] sm:$0xff] %vm2805_vm2, %v3977_v9  ;;  %v10369_v17 = vpop.permute.xlu0 %1938  ;;  %v10372_v25 = vpop.permute.xlu1 %1433  ;;  %v3584_v16 = vmax.f32 %v3582_v44, %v3583_v8  ;;  %v3591_v26 = vmax.f32 %v3589_v62, %v3590_v41  ;;  %v3598_v30 = vmax.f32 %v3596_v13, %v3597_v15  ;;  %v4268_v9 = vld [vmem:[%s11722_s3 + $0x300] sm:$0xff]  ;;  %v4269_v44 = vld [vmem:[%s11722_s3 + $0x308] sm:$0xff] }
 0x2fb   : > { %4064 = vst.msk [vmem:[#allocation6 + $0x150] sm:$0xff] %vm2805_vm2, %v4008_v4  ;;  %v3707_v54 = vmax.f32 %v3577_v2, 0.0  ;;  %v12012_v4 = vld [vmem:[#allocation69_spill] sm:$0xff]  ;;  %v4301_v19 = vld [vmem:[%s11722_s3 + $0x408] sm:$0xff]  ;;  %v948_v8 = vmul.f32 %v8778_v35, %v10276_v56  ;;  %v4270_v2 = vld [vmem:[%s11722_s3 + $0x310] sm:$0xff]  ;;  %v7406_v56 = vpack.c.bf16 %v4269_v44, %v4268_v9 }
 0x2fc   : > { %v3708_v27 = vmax.f32 %v3584_v16, 0.0  ;;  %v3709_v63 = vmax.f32 %v3591_v26, 0.0  ;;  %v3710_v50 = vmax.f32 %v3598_v30, 0.0  ;;  %v688_v28 = vmul.f32 %v12012_v4, %v10261_v6  ;;  %v4300_v62 = vld [vmem:[%s11722_s3 + $0x400] sm:$0xff]  ;;  %v4286_v6 = vld [vmem:[%s11722_s3 + $0x390] sm:$0xff]  ;;  %v4271_v15 = vld [vmem:[%s11722_s3 + $0x318] sm:$0xff] }
 0x2fd   : > { %v3855_v34 = vsel %vm3809_vm7, %v3707_v54, %v3854_v11  ;;  %v690_v41 = vmul.f32 %v12012_v4, %v10296_v5  ;;  %v689_v16 = vmul.f32 %v12012_v4, %v10303_v51  ;;  %v10432_v30 = vpack.c.bf16 %v4301_v19, %v4300_v62  ;;  %v4289_v5 = vld [vmem:[%s11722_s3 + $0x3a8] sm:$0xff]  ;;  %v7834_v54 = vld [vmem:[%s11721_s2] ss:$0 sm:$0xff]  ;;  %7407 = vmatpush3.bf16.msra.mxu1 %v7406_v56  ;;  %v4290_v37 = vld [vmem:[%s11722_s3 + $0x3b0] sm:$0xff] }
 0x2fe   : > { %v10374_v58 = vpop.permute.xlu0 %1683  ;;  %v4155_v21 = vld [vmem:[#allocation6 + $0x1b8] sm:$0xff]  ;;  %v10383_v55 = vpop.permute.xlu1 %1948  ;;  %v3856_v14 = vsel %vm3811_vm8, %v3708_v27, %v3855_v34  ;;  %v720_v11 = vadd.f32 %v7834_v54, %v688_v28  ;;  %v950_v51 = vmul.f32 %v8778_v35, %v10310_v1  ;;  %v1208_v27 = vmul.f32 %v8794_v38, %v10315_v47  ;;  %v4272_v47 = vld [vmem:[%s11722_s3 + $0x320] sm:$0xff]  ;;  %v4291_v9 = vld [vmem:[%s11722_s3 + $0x3b8] sm:$0xff] }
 0x2ff   : > { %v4148_v46 = vld [vmem:[#allocation6 + $0x180] sm:$0xff]  ;;  %v4154_v53 = vld [vmem:[#allocation6 + $0x1b0] sm:$0xff]  ;;  %4417 = vmatprep.mubr.f32.mxu0 %v4155_v21  ;;  %v3857_v18 = vsel %vm3813_vm9, %v3709_v63, %v3856_v14  ;;  %v7408_v63 = vpack.c.bf16 %v4287_v59, %v4286_v6  ;;  %7437 = vmatprep.subr.bf16.mxu0 %v10432_v30  ;;  %v7410_v21 = vpack.c.bf16 %v4271_v15, %v4270_v2 }
 0x300   : > { %4517 = vmatprep.mubr.f32.mxu1 %v4148_v46  ;;  %4418 = vmatmul.mubr.f32.gmra.mrb[12].mxu0 %v4154_v53  ;;  %v3858_v20 = vsel %vm3815_vm10, %v3710_v50, %v3857_v18  ;;  %v691_v50 = vmul.f32 %v12012_v4, %v10319_v10  ;;  %v980_v46 = vadd.f32 %v948_v8, %v720_v11  ;;  %v4273_v10 = vld [vmem:[%s11722_s3 + $0x328] sm:$0xff] }
 0x301   : > { %4518 = vmatmul.mubr.f32.gmra.mrb[10].mxu1 %v4147_v24  ;;  %3881 = vst.msk [vmem:[#allocation3 + $0x71] sm:$0xff] %vm2805_vm2, %v3858_v20  ;;  %v722_v53 = vadd.f32 %v7834_v54, %v690_v41  ;;  %7409 = vmatprep.subr.bf16.mxu1 %v7408_v63  ;;  %v7412_v1 = vpack.c.bf16 %v4289_v5, %v4288_v40 }
 0x302   : > { %v10389_v57 = vpop.permute.xlu0 %2199  ;;  %v721_v22 = vadd.f32 %v7834_v54, %v689_v16  ;;  %v1210_v14 = vmul.f32 %v8794_v38, %v10324_v61  ;;  %v1468_v18 = vmul.f32 %v8806_v12, %v10328_v31  ;;  %v1240_v28 = vadd.f32 %v1208_v27, %v980_v46  ;;  %7411 = vmatpush3.bf16.msra.mxu1 %v7410_v21  ;;  %v4293_v27 = vld [vmem:[%s11722_s3 + $0x3c8] sm:$0xff] }
 0x303   : > { %v10407_v13 = vpop.permute.xlu1 %1693  ;;  %v982_v4 = vadd.f32 %v950_v51, %v722_v53  ;;  %v951_v20 = vmul.f32 %v8778_v35, %v10331_v32  ;;  %v1209_v61 = vmul.f32 %v8794_v38, %v10337_v45  ;;  %v723_v19 = vadd.f32 %v7834_v54, %v691_v50  ;;  %7413 = vmatprep.subr.bf16.mxu1 %v7412_v1  ;;  %v4292_v51 = vld [vmem:[%s11722_s3 + $0x3c0] sm:$0xff] }
 0x304   : > { %v1470_v6 = vmul.f32 %v8806_v12, %v10343_v0  ;;  %v1728_v59 = vmul.f32 %v8812_v36, %v10350_v52  ;;  %v7414_v32 = vpack.c.bf16 %v4273_v10, %v4272_v47  ;;  %v981_v45 = vadd.f32 %v949_v43, %v721_v22  ;;  %v4302_v47 = vld [vmem:[%s11722_s3 + $0x410] sm:$0xff] }
 0x305   : > { %v1211_v0 = vmul.f32 %v8794_v38, %v10353_v3  ;;  %v1469_v52 = vmul.f32 %v8806_v12, %v10355_v60  ;;  %v7416_v8 = vpack.c.bf16 %v4291_v9, %v4290_v37  ;;  %v1242_v41 = vadd.f32 %v1210_v14, %v982_v4  ;;  %v4274_v38 = vld [vmem:[%s11722_s3 + $0x330] sm:$0xff]  ;;  %v4275_v3 = vld [vmem:[%s11722_s3 + $0x338] sm:$0xff] }
 0x306   : > { %v10430_v26 = vpop.permute.xlu0 %1943  ;;  %v1500_v2 = vadd.f32 %v1468_v18, %v1240_v28  ;;  %v1730_v15 = vmul.f32 %v8812_v36, %v10357_v48  ;;  %v1988_v16 = vmul.f32 %v11979_v33, %v10369_v17  ;;  %v983_v40 = vadd.f32 %v951_v20, %v723_v19  ;;  %7415 = vmatpush3.bf16.msra.mxu1 %v7414_v32  ;;  %v10547_v19 = vld [vmem:[%s11720_s1 + $0x8] ss:$0 sm:$0xff]  ;;  %v4294_v32 = vld [vmem:[%s11722_s3 + $0x3d0] sm:$0xff] }
 0x307   : > { %v10449_v34 = vpop.permute.xlu1 %2209  ;;  %v1241_v5 = vadd.f32 %v1209_v61, %v981_v45  ;;  %v1502_v60 = vadd.f32 %v1470_v6, %v1242_v41  ;;  %v1990_v48 = vmul.f32 %v11979_v33, %v10383_v55  ;;  %v2249_v17 = vmul.f32 %v8837_v49, %v10389_v57  ;;  %7417 = vmatprep.subr.bf16.mxu1 %v7416_v8  ;;  %v4156_v61 = vld [vmem:[#allocation6 + $0x1c0] sm:$0xff]  ;;  %v4295_v45 = vld [vmem:[%s11722_s3 + $0x3d8] sm:$0xff] }
 0x308   : > { %v3978_v44 = vld [vmem:[#allocation3 + $0x71] sm:$0xff]  ;;  %v1760_v54 = vadd.f32 %v1728_v59, %v1500_v2  ;;  %v4395_v63 = vadd.f32 %v10252_v7, %v10379_v23  ;;  %v1243_v50 = vadd.f32 %v1211_v0, %v983_v40  ;;  %v1471_v55 = vmul.f32 %v8806_v12, %v10372_v25  ;;  %v4303_v7 = vld [vmem:[%s11722_s3 + $0x418] sm:$0xff] }
 0x309   : > { %v4009_v31 = vld [vmem:[#allocation3 + $0x70] sm:$0xff]  ;;  %3986 = vst.msk [vmem:[#allocation6 + $0x200] sm:$0xff] %vm2805_vm2, %v3978_v44  ;;  %4033 = vst.msk [vmem:[#allocation6 + $0x1d0] sm:$0xff] %vm2805_vm2, %v3978_v44  ;;  %v1501_v21 = vadd.f32 %v1469_v52, %v1241_v5  ;;  %v1762_v57 = vadd.f32 %v1730_v15, %v1502_v60  ;;  %v1729_v53 = vmul.f32 %v8812_v36, %v10374_v58  ;;  %v4305_v5 = vld [vmem:[%s11722_s3 + $0x428] sm:$0xff] }
 0x30a   : > { %v10464_v24 = vpop.permute.xlu0 %2459  ;;  %v4041_v62 = vld [vmem:[#allocation3 + $0x72] sm:$0xff]  ;;  %4017 = vst.msk [vmem:[#allocation6 + $0x1c8] sm:$0xff] %vm2805_vm2, %v4009_v31  ;;  %3970 = vst.msk [vmem:[#allocation6 + $0x1f8] sm:$0xff] %vm2805_vm2, %v4009_v31  ;;  %v2020_v46 = vadd.f32 %v1988_v16, %v1760_v54  ;;  %v7418_v10 = vpack.c.bf16 %v4275_v3, %v4274_v38  ;;  %v1731_v12 = vmul.f32 %v8812_v36, %v10407_v13  ;;  %v4104_v60 = vld [vmem:[#allocation6 + $0x20] sm:$0xff] }
 0x30b   : > { %v10483_v35 = vpop.permute.xlu1 %1953  ;;  %4049 = vst.msk [vmem:[#allocation6 + $0x1d8] sm:$0xff] %vm2805_vm2, %v4041_v62  ;;  %4002 = vst.msk [vmem:[#allocation6 + $0x208] sm:$0xff] %vm2805_vm2, %v4041_v62  ;;  %v2251_v58 = vmul.f32 %v8837_v49, %v10449_v34  ;;  %v2509_v18 = vmul.f32 %v8846_v29, %v10464_v24  ;;  %v7420_v4 = vpack.c.bf16 %v4293_v27, %v4292_v51  ;;  %v4277_v34 = vld [vmem:[%s11722_s3 + $0x348] sm:$0xff]  ;;  %v4105_v24 = vld [vmem:[#allocation6 + $0x28] sm:$0xff] }
 0x30c   : > { %4097 = vst.msk [vmem:[#allocation6 + $0x1a8] sm:$0xff] %vm2805_vm2, %v4041_v62  ;;  %4081 = vst.msk [vmem:[#allocation6 + $0x1a0] sm:$0xff] %vm2805_vm2, %v3978_v44  ;;  %v2022_v28 = vadd.f32 %v1990_v48, %v1762_v57  ;;  %v2281_v20 = vadd.f32 %v2249_v17, %v2020_v46  ;;  %v1503_v0 = vadd.f32 %v1471_v55, %v1243_v50  ;;  %7419 = vmatpush3.bf16.msra.mxu1 %v7418_v10  ;;  %v4304_v40 = vld [vmem:[%s11722_s3 + $0x420] sm:$0xff]  ;;  %v4279_v51 = vld [vmem:[%s11722_s3 + $0x358] sm:$0xff] }
 0x30d   : > { %4065 = vst.msk [vmem:[#allocation6 + $0x198] sm:$0xff] %vm2805_vm2, %v4009_v31  ;;  %v4276_v31 = vld [vmem:[%s11722_s3 + $0x340] sm:$0xff]  ;;  %v1989_v52 = vmul.f32 %v11979_v33, %v10430_v26  ;;  %v7440_v41 = vpack.c.bf16 %v4303_v7, %v4302_v47  ;;  %7421 = vmatprep.subr.bf16.mxu1 %v7420_v4  ;;  %v1761_v3 = vadd.f32 %v1729_v53, %v1501_v21  ;;  %v4297_v57 = vld [vmem:[%s11722_s3 + $0x3e8] sm:$0xff]  ;;  %v4306_v7 = vld [vmem:[%s11722_s3 + $0x430] sm:$0xff] }
 0x30e   : > { %v10499_v56 = vpop.permute.xlu0 %2204  ;;  %v2283_v2 = vadd.f32 %v2251_v58, %v2022_v28  ;;  %v2541_v15 = vadd.f32 %v2509_v18, %v2281_v20  ;;  %v7422_v38 = vpack.c.bf16 %v4277_v34, %v4276_v31  ;;  %v1763_v26 = vadd.f32 %v1731_v12, %v1503_v0  ;;  %v4114_v27 = vld [vmem:[#allocation6 + $0x70] sm:$0xff]  ;;  %v4281_v58 = vld [vmem:[%s11722_s3 + $0x368] sm:$0xff]  ;;  %v4298_v20 = vld [vmem:[%s11722_s3 + $0x3f0] sm:$0xff] }
 0x30f   : > { %v2470_v11 = vpop.permute.xlu1 %2469  ;;  %v2250_v54 = vmul.f32 %v8837_v49, %v10499_v56  ;;  %v7424_v17 = vpack.c.bf16 %v4295_v45, %v4294_v32  ;;  %v4296_v56 = vld [vmem:[%s11722_s3 + $0x3e0] sm:$0xff]  ;;  %v2021_v46 = vadd.f32 %v1989_v52, %v1761_v3  ;;  %v4309_v0 = vld [vmem:[%s11722_s3 + $0x448] sm:$0xff] }
 0x310   : > { %v4164_v25 = vld [vmem:[#allocation6 + $0x200] sm:$0xff]  ;;  %v2511_v62 = vmul.f32 %v8846_v29, %v2470_v11  ;;  %7423 = vmatpush3.bf16.msra.mxu1 %v7422_v38  ;;  %v4122_v31 = vld [vmem:[#allocation6 + $0xb0] sm:$0xff] }
 0x311   : > { %v6657_v1 = vpop.f32.mrb[4].mxu0  ;;  %v4157_v22 = vld [vmem:[#allocation6 + $0x1c8] sm:$0xff]  ;;  %v4163_v14 = vld [vmem:[#allocation6 + $0x1f8] sm:$0xff]  ;;  %4422 = vmatprep.mubr.f32.mxu0 %v4164_v25  ;;  %v4278_v11 = vld [vmem:[%s11722_s3 + $0x350] sm:$0xff]  ;;  %v2282_v12 = vadd.f32 %v2250_v54, %v2021_v46  ;;  %7425 = vmatprep.subr.bf16.mxu1 %v7424_v17 }
 0x312   : > { %v2720_v43 = vpop.permute.xlu0 %2719  ;;  %v6710_v37 = vpop.f32.mrb[2].mxu1  ;;  %4522 = vmatprep.mubr.f32.mxu1 %v4157_v22  ;;  %4423 = vmatmul.mubr.f32.gmra.mrb[14].mxu0 %v4163_v14  ;;  %v2543_v50 = vadd.f32 %v2511_v62, %v2283_v2  ;;  %v7426_v10 = vpack.c.bf16 %v4279_v51, %v4278_v11  ;;  %v7428_v14 = vpack.c.bf16 %v4297_v57, %v4296_v56  ;;  %v4132_v2 = vld [vmem:[#allocation6 + $0x100] sm:$0xff]  ;;  %v4311_v17 = vld [vmem:[%s11722_s3 + $0x458] sm:$0xff]  ;;  %v4131_v11 = vld [vmem:[#allocation6 + $0xf8] sm:$0xff] }
 0x313   : > { %v6658_v9 = vpop.f32.mrb[5].mxu0  ;;  %v6711_v36 = vpop.f32.mrb[3].mxu1  ;;  %4523 = vmatmul.mubr.f32.gmra.mrb[12].mxu1 %v4156_v61  ;;  %v2769_v6 = vmul.f32 %v10547_v19, %v2720_v43  ;;  %4597 = vmatprep.mubr.f32.mxu0 %v4105_v24  ;;  %v4299_v61 = vld [vmem:[%s11722_s3 + $0x3f8] sm:$0xff] }
 0x314   : > { %v10535_v44 = vadd.f32 %v6658_v9, %v6657_v1  ;;  %v2215_v13 = vpop.permute.xlu1 %2214  ;;  %v6712_v59 = vadd.f32 %v6711_v36, %v6710_v37  ;;  %v4123_v37 = vld [vmem:[#allocation6 + $0xb8] sm:$0xff]  ;;  %7427 = vmatpush3.bf16.msra.mxu1 %v7426_v10  ;;  %v7432_v52 = vpack.c.bf16 %v4299_v61, %v4298_v20  ;;  %v4312_v10 = vld [vmem:[%s11722_s3 + $0x460] sm:$0xff] }
 0x315   : > { %v2801_v21 = vadd.f32 %v2769_v6, %v2541_v15  ;;  %v2252_v1 = vmul.f32 %v8837_v49, %v2215_v13  ;;  %v4280_v49 = vld [vmem:[%s11722_s3 + $0x360] sm:$0xff]  ;;  %7429 = vmatprep.subr.bf16.mxu1 %v7428_v14 }
 0x316   : > { %v2465_v8 = vpop.permute.xlu0 %2464  ;;  %v10558_v16 = vadd.f32 %v6712_v59, %v4395_v63  ;;  %4598 = vmatmul.mubr.f32.vlgmr.msra.gmra.mrb[16].mxu0 %v4104_v60  ;;  %v1991_v63 = vmul.f32 %v11979_v33, %v10483_v35  ;;  %v7444_v33 = vpack.c.bf16 %v4305_v5, %v4304_v40  ;;  %v4113_v35 = vld [vmem:[#allocation6 + $0x68] sm:$0xff]  ;;  %v7430_v62 = vpack.c.bf16 %v4281_v58, %v4280_v49 }
 0x317   : > { %4602 = vmatprep.mubr.f32.mxu0 %v4114_v27  ;;  %v2510_v53 = vmul.f32 %v8846_v29, %v2465_v8  ;;  %7439 = vmatpush3.bf16.msra.mxu0 %v10432_v30  ;;  %v4307_v30 = vld [vmem:[%s11722_s3 + $0x438] sm:$0xff]  ;;  %v2848_v9 = vsel %vm2805_vm2, %v2801_v21, -inf  ;;  %v4282_v8 = vld [vmem:[%s11722_s3 + $0x370] sm:$0xff] }
 0x318   : > { %v2730_v48 = vpop.permute.xlu1 %2729  ;;  %7441 = vmatprep.subr.bf16.mxu0 %v7440_v41  ;;  %v2023_v18 = vadd.f32 %v1991_v63, %v1763_v26  ;;  %v7448_v24 = vpack.c.bf16 %v4307_v30, %v4306_v7  ;;  %7431 = vmatpush3.bf16.msra.mxu1 %v7430_v62  ;;  %v4141_v21 = vld [vmem:[#allocation6 + $0x148] sm:$0xff] }
 0x319   : > { %v2771_v55 = vmul.f32 %v10547_v19, %v2730_v48  ;;  %v2542_v36 = vadd.f32 %v2510_v53, %v2282_v12  ;;  %v4310_v48 = vld [vmem:[%s11722_s3 + $0x450] sm:$0xff]  ;;  %7433 = vmatprep.subr.bf16.mxu1 %v7432_v52  ;;  %v4313_v12 = vld [vmem:[%s11722_s3 + $0x468] sm:$0xff] }
 0x31a   : > { %v2725_v43 = vpop.permute.xlu0 %2724  ;;  %4603 = vmatmul.mubr.f32.gmra.mrb[18].mxu0 %v4113_v35  ;;  %v2284_v34 = vadd.f32 %v2252_v1, %v2023_v18  ;;  %v7460_v20 = vpack.c.bf16 %v4313_v12, %v4312_v10 }
 0x31b   : > { %v2803_v47 = vadd.f32 %v2771_v55, %v2543_v50  ;;  %v2770_v25 = vmul.f32 %v10547_v19, %v2725_v43  ;;  %4607 = vmatprep.mubr.f32.mxu0 %v4123_v37  ;;  %7443 = vmatpush3.bf16.msra.mxu0 %v7440_v41  ;;  %v4283_v41 = vld [vmem:[%s11722_s3 + $0x378] sm:$0xff]  ;;  %v4150_v37 = vld [vmem:[#allocation6 + $0x190] sm:$0xff] }
 0x31c   : > { %v2475_v22 = vpop.permute.xlu1 %2474  ;;  %7445 = vmatprep.subr.bf16.mxu0 %v7444_v33 }
 0x31d   : > { %v2849_v4 = vsel %vm2805_vm2, %v2803_v47, -inf  ;;  %v2512_v28 = vmul.f32 %v8846_v29, %v2475_v22  ;;  %v4308_v29 = vld [vmem:[%s11722_s3 + $0x440] sm:$0xff]  ;;  %v2802_v32 = vadd.f32 %v2770_v25, %v2542_v36  ;;  %v4140_v25 = vld [vmem:[#allocation6 + $0x140] sm:$0xff] }
 0x31e   : > { %v2850_v13 = vmax.f32 %v2848_v9, %v2849_v4  ;;  %4608 = vmatmul.mubr.f32.gmra.mrb[20].mxu0 %v4122_v31  ;;  %v7452_v54 = vpack.c.bf16 %v4309_v0, %v4308_v29 }
 0x31f   : > { %v2544_v15 = vadd.f32 %v2512_v28, %v2284_v34  ;;  %4612 = vmatprep.mubr.f32.mxu0 %v4132_v2  ;;  %7447 = vmatpush3.bf16.msra.mxu0 %v7444_v33  ;;  %v2851_v50 = vsel %vm2805_vm2, %v2802_v32, -inf  ;;  %v7456_v33 = vpack.c.bf16 %v4311_v17, %v4310_v48  ;;  %v4149_v34 = vld [vmem:[#allocation6 + $0x188] sm:$0xff] }
 0x320   : > { %v3108_v6 = vcombine.high %v2850_v13, %v2850_v13  ;;  %v3115_v59 = vrot.slane %v2850_v13, %v8924_v39  ;;  %v2735_v45 = vpop.permute.xlu1 %2734  ;;  %7449 = vmatprep.subr.bf16.mxu0 %v7448_v24  ;;  %v4315_v32 = vld [vmem:[%s11722_s3 + $0x478] sm:$0xff] }
 0x321   : > { %v2772_v40 = vmul.f32 %v10547_v19, %v2735_v45  ;;  %v7434_v19 = vpack.c.bf16 %v4283_v41, %v4282_v8  ;;  %v4159_v41 = vld [vmem:[#allocation6 + $0x1d8] sm:$0xff] }
 0x322   : > { %v3122_v5 = vrot.slane %v3108_v6, %v8924_v39  ;;  %v3123_v38 = vcombine.high %v3115_v59, %v3115_v59  ;;  %v3599_v3 = vsel %vm3206_vm3, %v3115_v59, -inf  ;;  %4613 = vmatmul.mubr.f32.gmra.mrb[22].mxu0 %v4131_v11  ;;  %v4314_v59 = vld [vmem:[%s11722_s3 + $0x470] sm:$0xff]  ;;  %v4158_v11 = vld [vmem:[#allocation6 + $0x1d0] sm:$0xff] }
 0x323   : > { %v3600_v26 = vrot.slane %v3599_v3, 4  ;;  %v2804_v60 = vadd.f32 %v2772_v40, %v2544_v15  ;;  %4617 = vmatprep.mubr.f32.mxu0 %v4141_v21  ;;  %7451 = vmatpush3.bf16.msra.mxu0 %v7448_v24 }
 0x324   : > { %v3124_v51 = vcombine.high %v3122_v5, %v3122_v5  ;;  %v3606_v27 = vsel %vm3206_vm3, %v3123_v38, -inf  ;;  %v3613_v63 = vsel %vm3206_vm3, %v3122_v5, -inf  ;;  %7453 = vmatprep.subr.bf16.mxu0 %v7452_v54  ;;  %7435 = vmatpush3.bf16.msra.mxu1 %v7434_v19 }
 0x325   : > { %v3601_v55 = vmax.f32 %v3599_v3, %v3600_v26  ;;  %v3607_v56 = vrot.slane %v3606_v27, 4  ;;  %v3614_v57 = vrot.slane %v3613_v63, 4  ;;  %v2852_v46 = vsel %vm2805_vm2, %v2804_v60, -inf }
 0x326   : > { %v3620_v53 = vsel %vm3206_vm3, %v3124_v51, -inf  ;;  %v2853_v43 = vmax.f32 %v2851_v50, %v2852_v46  ;;  %4618 = vmatmul.mubr.f32.gmra.mrb[24].mxu0 %v4140_v25  ;;  %v7464_v60 = vpack.c.bf16 %v4315_v32, %v4314_v59  ;;  %v4107_v59 = vld [vmem:[#allocation6 + $0x38] sm:$0xff]  ;;  %v4108_v32 = vld [vmem:[#allocation6 + $0x40] sm:$0xff] }
 0x327   : > { %v3602_v35 = vrot.slane %v3601_v55, 2  ;;  %v3608_v1 = vmax.f32 %v3606_v27, %v3607_v56  ;;  %v3615_v47 = vmax.f32 %v3613_v63, %v3614_v57  ;;  %v3621_v7 = vrot.slane %v3620_v53, 4  ;;  %4622 = vmatprep.mubr.f32.mxu0 %v4150_v37  ;;  %7455 = vmatpush3.bf16.msra.mxu0 %v7452_v54 }
 0x328   : > { %v3125_v22 = vcombine.high %v2853_v43, %v2853_v43  ;;  %v3132_v30 = vrot.slane %v2853_v43, %v8924_v39  ;;  %7457 = vmatprep.subr.bf16.mxu0 %v7456_v33 }
 0x329   : > { %v3603_v14 = vmax.f32 %v3601_v55, %v3602_v35  ;;  %v3609_v49 = vrot.slane %v3608_v1, 2  ;;  %v3616_v58 = vrot.slane %v3615_v47, 2  ;;  %v3622_v18 = vmax.f32 %v3620_v53, %v3621_v7 }
 0x32a   : > { %v3139_v9 = vrot.slane %v3125_v22, %v8924_v39  ;;  %v3140_v4 = vcombine.high %v3132_v30, %v3132_v30  ;;  %v3627_v28 = vsel %vm3206_vm3, %v3132_v30, -inf  ;;  %4623 = vmatmul.mubr.f32.gmra.mrb[26].mxu0 %v4149_v34 }
 0x32b   : > { %v3604_v61 = vrot.slane %v3603_v14, 1  ;;  %v3610_v36 = vmax.f32 %v3608_v1, %v3609_v49  ;;  %v3617_v13 = vmax.f32 %v3615_v47, %v3616_v58  ;;  %v3623_v31 = vrot.slane %v3622_v18, 2  ;;  %4627 = vmatprep.mubr.f32.mxu0 %v4159_v41  ;;  %7459 = vmatpush3.bf16.msra.mxu0 %v7456_v33 }
 0x32c   : > { %v3141_v24 = vcombine.high %v3139_v9, %v3139_v9  ;;  %v3628_v29 = vrot.slane %v3627_v28, 4  ;;  %v3634_v62 = vsel %vm3206_vm3, %v3140_v4, -inf  ;;  %v3641_v6 = vsel %vm3206_vm3, %v3139_v9, -inf  ;;  %7461 = vmatprep.subr.bf16.mxu0 %v7460_v20 }
 0x32d   : > { %v3605_v45 = vmax.f32 %v3603_v14, %v3604_v61  ;;  %v3611_v0 = vrot.slane %v3610_v36, 1  ;;  %v3618_v52 = vrot.slane %v3617_v13, 1  ;;  %v3624_v8 = vmax.f32 %v3622_v18, %v3623_v31 }
 0x32e   : > { %v3629_v2 = vmax.f32 %v3627_v28, %v3628_v29  ;;  %v3635_v15 = vrot.slane %v3634_v62, 4  ;;  %v3642_v40 = vrot.slane %v3641_v6, 4  ;;  %v3648_v5 = vsel %vm3206_vm3, %v3141_v24, -inf  ;;  %4628 = vmatmul.mubr.f32.gmra.mrb[28].mxu0 %v4158_v11  ;;  %v4153_v11 = vld [vmem:[#allocation6 + $0x1a8] sm:$0xff] }
 0x32f   : > { %v3612_v38 = vmax.f32 %v3610_v36, %v3611_v0  ;;  %v3619_v3 = vmax.f32 %v3617_v13, %v3618_v52  ;;  %v3625_v26 = vrot.slane %v3624_v8, 1  ;;  %v3649_v19 = vrot.slane %v3648_v5, 4  ;;  %7463 = vmatpush3.bf16.msra.mxu0 %v7460_v20  ;;  %v4117_v0 = vld [vmem:[#allocation6 + $0x88] sm:$0xff]  ;;  %v4116_v52 = vld [vmem:[#allocation6 + $0x80] sm:$0xff] }
 0x330   : > { %v3630_v54 = vrot.slane %v3629_v2, 2  ;;  %v3636_v48 = vmax.f32 %v3634_v62, %v3635_v15  ;;  %v3643_v17 = vmax.f32 %v3641_v6, %v3642_v40  ;;  %v3711_v27 = vmax.f32 %v3605_v45, 0.0  ;;  %7465 = vmatprep.subr.bf16.mxu0 %v7464_v60  ;;  %v4165_v6 = vld [vmem:[#allocation6 + $0x208] sm:$0xff]  ;;  %v4106_v45 = vld [vmem:[#allocation6 + $0x30] sm:$0xff] }
 0x331   : > { %v3626_v51 = vmax.f32 %v3624_v8, %v3625_v26  ;;  %v3712_v63 = vmax.f32 %v3612_v38, 0.0  ;;  %v3713_v50 = vmax.f32 %v3619_v3, 0.0  ;;  %v3650_v57 = vmax.f32 %v3648_v5, %v3649_v19  ;;  %v4126_v8 = vld [vmem:[#allocation6 + $0xd0] sm:$0xff]  ;;  %v4115_v38 = vld [vmem:[#allocation6 + $0x78] sm:$0xff]  ;;  %v4124_v19 = vld [vmem:[#allocation6 + $0xc0] sm:$0xff] }
 0x332   : > { %v3631_v21 = vmax.f32 %v3629_v2, %v3630_v54  ;;  %v3637_v55 = vrot.slane %v3636_v48, 2  ;;  %v3644_v56 = vrot.slane %v3643_v17, 2  ;;  %v4135_v3 = vld [vmem:[#allocation6 + $0x118] sm:$0xff]  ;;  %v4400_v26 = vadd.f32 %v10535_v44, %v10379_v23  ;;  %v4125_v54 = vld [vmem:[#allocation6 + $0xc8] sm:$0xff] }
 0x333   : > { %v3859_v46 = vsel %vm3803_vm4, %v3712_v63, %v3711_v27  ;;  %v3714_v35 = vmax.f32 %v3626_v51, 0.0  ;;  %v3651_v1 = vrot.slane %v3650_v57, 2  ;;  %7467 = vmatpush3.bf16.msra.mxu0 %v7464_v60  ;;  %v4134_v51 = vld [vmem:[#allocation6 + $0x110] sm:$0xff]  ;;  %v4171_v63 = vld [vmem:[#allocation6 + $0x238] sm:$0xff] }
 0x334   : > { %v3632_v53 = vrot.slane %v3631_v21, 1  ;;  %v3638_v43 = vmax.f32 %v3636_v48, %v3637_v55  ;;  %v3645_v33 = vmax.f32 %v3643_v17, %v3644_v56  ;;  %v3860_v47 = vsel %vm3805_vm5, %v3713_v50, %v3859_v46  ;;  %v4144_v48 = vld [vmem:[#allocation6 + $0x160] sm:$0xff]  ;;  %v4133_v50 = vld [vmem:[#allocation6 + $0x108] sm:$0xff]  ;;  %v4143_v44 = vld [vmem:[#allocation6 + $0x158] sm:$0xff] }
 0x335   : > { %v3652_v25 = vmax.f32 %v3650_v57, %v3651_v1  ;;  %v3861_v49 = vsel %vm3807_vm6, %v3714_v35, %v3860_v47  ;;  %v4152_v55 = vld [vmem:[#allocation6 + $0x1a0] sm:$0xff]  ;;  %v4151_v56 = vld [vmem:[#allocation6 + $0x198] sm:$0xff]  ;;  %v4170_v46 = vld [vmem:[#allocation6 + $0x230] sm:$0xff] }
 0x336   : > { %v3633_v7 = vmax.f32 %v3631_v21, %v3632_v53  ;;  %v3639_v10 = vrot.slane %v3638_v43, 1  ;;  %v3646_v12 = vrot.slane %v3645_v33, 1  ;;  %v4142_v21 = vld [vmem:[#allocation6 + $0x150] sm:$0xff] }
 0x337   : > { %v3653_v58 = vrot.slane %v3652_v25, 1 }
 0x338   : > { %v3640_v22 = vmax.f32 %v3638_v43, %v3639_v10  ;;  %v3647_v30 = vmax.f32 %v3645_v33, %v3646_v12  ;;  %v3715_v14 = vmax.f32 %v3633_v7, 0.0  ;;  %v4169_v43 = vld [vmem:[#allocation6 + $0x228] sm:$0xff] }
 0x339   : > { %v3654_v4 = vmax.f32 %v3652_v25, %v3653_v58 }
 0x33a   : > { %v3716_v18 = vmax.f32 %v3640_v22, 0.0  ;;  %v3717_v37 = vmax.f32 %v3647_v30, 0.0  ;;  %v3862_v9 = vsel %vm3809_vm7, %v3715_v14, %v3861_v49 }
 0x33b   : > { %v3718_v20 = vmax.f32 %v3654_v4, 0.0  ;;  %v10677_v4 = vld [vmem:[#allocation7] sm:$0xff] }
 0x33c   : > { %v3863_v28 = vsel %vm3811_vm8, %v3716_v18, %v3862_v9  ;;  %5077 = vst.msk [vmem:[#allocation4] sm:$0x3f] %vm5076_vm11, %v10677_v4  ;;  %5078 = vst.msk [vmem:[#allocation4 + $0x8] sm:$0x3f] %vm5076_vm11, %v10677_v4 }
 0x33d   : > { %v3864_v61 = vsel %vm3813_vm9, %v3717_v37, %v3863_v28  ;;  %5082 = vst.msk [vmem:[#allocation4 + $0x28] sm:$0x3f] %vm5076_vm11, %v10677_v4  ;;  %5079 = vst.msk [vmem:[#allocation4 + $0x10] sm:$0x3f] %vm5076_vm11, %v10677_v4  ;;  %v5300_v28 = vld [vmem:[%s11724_s5 + $0x80] sm:$0xff] }
 0x33e   : > { %v3865_v36 = vsel %vm3815_vm10, %v3718_v20, %v3864_v61  ;;  %5080 = vst.msk [vmem:[#allocation4 + $0x18] sm:$0x3f] %vm5076_vm11, %v10677_v4  ;;  %5081 = vst.msk [vmem:[#allocation4 + $0x20] sm:$0x3f] %vm5076_vm11, %v10677_v4  ;;  %v5301_v20 = vld [vmem:[%s11724_s5 + $0x88] sm:$0xff] }
 0x33f   : > { %3882 = vst.msk [vmem:[#allocation3 + $0x81] sm:$0xff] %vm2805_vm2, %v3865_v36  ;;  %v7468_v61 = vpack.c.bf16 %v5301_v20, %v5300_v28  ;;  %v5284_v36 = vld [vmem:[%s11724_s5] sm:$0xff]  ;;  %v5311_v28 = vld [vmem:[%s11724_s5 + $0xd8] sm:$0xff]  ;;  %v5338_v20 = vld [vmem:[%s11724_s5 + $0x1b0] sm:$0xff] }
 0x340   : > { %5876 = vst.msk [vmem:[#allocation5] sm:$0xf] %vm5116_vm12, %v10677_v4  ;;  %5877 = vst.msk [vmem:[#allocation5 + $0x4] sm:$0xf] %vm5116_vm12, %v10677_v4 }
 0x341   : > { %5878 = vst.msk [vmem:[#allocation5 + $0x8] sm:$0xf] %vm5116_vm12, %v10677_v4  ;;  %5879 = vst.msk [vmem:[#allocation5 + $0xc] sm:$0xf] %vm5116_vm12, %v10677_v4  ;;  %7469 = vmatprep.subr.bf16.mxu1 %v7468_v61 }
 0x346   : > { %v4010_v13 = vld [vmem:[#allocation3 + $0x80] sm:$0xff] }
 0x347   : > { %v4042_v31 = vld [vmem:[#allocation3 + $0x82] sm:$0xff]  ;;  %4018 = vst.msk [vmem:[#allocation6 + $0x210] sm:$0xff] %vm2805_vm2, %v4010_v13  ;;  %4066 = vst.msk [vmem:[#allocation6 + $0x1e0] sm:$0xff] %vm2805_vm2, %v4010_v13  ;;  %v5285_v13 = vld [vmem:[%s11724_s5 + $0x8] sm:$0xff] }
 0x348   : > { %v4026_v34 = vld [vmem:[#allocation3 + $0x81] sm:$0xff]  ;;  %4050 = vst.msk [vmem:[#allocation6 + $0x220] sm:$0xff] %vm2805_vm2, %v4042_v31  ;;  %4098 = vst.msk [vmem:[#allocation6 + $0x1f0] sm:$0xff] %vm2805_vm2, %v4042_v31  ;;  %v7470_v31 = vpack.c.bf16 %v5285_v13, %v5284_v36 }
 0x349   : > { %4034 = vst.msk [vmem:[#allocation6 + $0x218] sm:$0xff] %vm2805_vm2, %v4026_v34  ;;  %4082 = vst.msk [vmem:[#allocation6 + $0x1e8] sm:$0xff] %vm2805_vm2, %v4026_v34  ;;  %v5302_v34 = vld [vmem:[%s11724_s5 + $0x90] sm:$0xff]  ;;  %v5339_v36 = vld [vmem:[%s11724_s5 + $0x1b8] sm:$0xff] }
 0x34a   : > { %v5294_v13 = vld [vmem:[%s11724_s5 + $0x50] sm:$0xff] }
 0x34e   : > { %v4166_v24 = vld [vmem:[#allocation6 + $0x210] sm:$0xff]  ;;  %v4160_v53 = vld [vmem:[#allocation6 + $0x1e0] sm:$0xff] }
 0x34f   : > { %v4168_v29 = vld [vmem:[#allocation6 + $0x220] sm:$0xff]  ;;  %4527 = vmatprep.mubr.f32.mxu1 %v4166_v24  ;;  %v4162_v27 = vld [vmem:[#allocation6 + $0x1f0] sm:$0xff]  ;;  %v5303_v24 = vld [vmem:[%s11724_s5 + $0x98] sm:$0xff] }
 0x350   : > { %v4167_v62 = vld [vmem:[#allocation6 + $0x218] sm:$0xff]  ;;  %4632 = vmatprep.mubr.f32.mxu0 %v4168_v29  ;;  %4528 = vmatmul.mubr.f32.gmra.mrb[14].mxu1 %v4165_v6  ;;  %v4161_v57 = vld [vmem:[#allocation6 + $0x1e8] sm:$0xff]  ;;  %v5286_v6 = vld [vmem:[%s11724_s5 + $0x10] sm:$0xff] }
 0x351   : > { %4633 = vmatmul.mubr.f32.gmra.mrb[30].mxu0 %v4167_v62  ;;  %4702 = vmatprep.mubr.f32.mxu1 %v4107_v59  ;;  %v7472_v62 = vpack.c.bf16 %v5303_v24, %v5302_v34  ;;  %v5287_v59 = vld [vmem:[%s11724_s5 + $0x18] sm:$0xff]  ;;  %v7512_v34 = vpack.c.bf16 %v5339_v36, %v5338_v20  ;;  %v5346_v36 = vld [vmem:[%s11724_s5 + $0x1f0] sm:$0xff] }
 0x352   : > { %7226 = vmatprep.mubr.f32.mxu0 %v4108_v32 }
 0x354   : > { %4703 = vmatmul.mubr.f32.vlgmr.msra.gmra.mrb[16].mxu1 %v4106_v45 }
 0x355   : > { %7227 = vmatmul.mubr.f32.vlgmr.msra.gmra.mrb[32].mxu0 %v4117_v0  ;;  %4707 = vmatprep.mubr.f32.mxu1 %v4116_v52  ;;  %v6660_v41 = vpop.f32.mrb[6].mxu0  ;;  %v7474_v0 = vpack.c.bf16 %v5287_v59, %v5286_v6 }
 0x356   : > { %7229 = vmatprep.mubr.f32.mxu0 %v4126_v8  ;;  %v6713_v2 = vpop.f32.mrb[4].mxu1  ;;  %v6661_v15 = vpop.f32.mrb[7].mxu0  ;;  %7471 = vmatpush3.bf16.msra.mxu1 %v7470_v31  ;;  %v5295_v31 = vld [vmem:[%s11724_s5 + $0x58] sm:$0xff] }
 0x357   : > { %v6662_v40 = vadd.f32 %v6661_v15, %v6660_v41  ;;  %v6714_v5 = vpop.f32.mrb[5].mxu1  ;;  %7473 = vmatprep.subr.bf16.mxu1 %v7472_v62  ;;  %v5304_v15 = vld [vmem:[%s11724_s5 + $0xa0] sm:$0xff]  ;;  %v7490_v24 = vpack.c.bf16 %v5295_v31, %v5294_v13  ;;  %v5323_v62 = vld [vmem:[%s11724_s5 + $0x138] sm:$0xff] }
 0x358   : > { %v6715_v60 = vadd.f32 %v6714_v5, %v6713_v2  ;;  %4708 = vmatmul.mubr.f32.gmra.mrb[18].mxu1 %v4115_v38  ;;  %v5332_v5 = vld [vmem:[%s11724_s5 + $0x180] sm:$0xff]  ;;  %v5347_v13 = vld [vmem:[%s11724_s5 + $0x1f8] sm:$0xff] }
 0x359   : > { %7230 = vmatmul.mubr.f32.gmra.mrb[34].mxu0 %v4135_v3  ;;  %4712 = vmatprep.mubr.f32.mxu1 %v4125_v54  ;;  %v4405_v7 = vadd.f32 %v6662_v40, %v10379_v23  ;;  %v5305_v40 = vld [vmem:[%s11724_s5 + $0xa8] sm:$0xff] }
 0x35a   : > { %7232 = vmatprep.mubr.f32.mxu0 %v4144_v48  ;;  %v10669_v17 = vadd.f32 %v6715_v60, %v4400_v26  ;;  %7475 = vmatpush3.bf16.msra.mxu1 %v7474_v0  ;;  %v7476_v38 = vpack.c.bf16 %v5305_v40, %v5304_v15  ;;  %v5333_v3 = vld [vmem:[%s11724_s5 + $0x188] sm:$0xff] }
 0x35b   : > { %v5289_v26 = vld [vmem:[%s11724_s5 + $0x28] sm:$0xff]  ;;  %v7500_v54 = vpack.c.bf16 %v5333_v3, %v5332_v5  ;;  %v5296_v3 = vld [vmem:[%s11724_s5 + $0x60] sm:$0xff] }
 0x35c   : > { %4713 = vmatmul.mubr.f32.gmra.mrb[20].mxu1 %v4124_v19  ;;  %v5316_v19 = vld [vmem:[%s11724_s5 + $0x100] sm:$0xff]  ;;  %7477 = vmatprep.subr.bf16.mxu1 %v7476_v38  ;;  %v5313_v0 = vld [vmem:[%s11724_s5 + $0xe8] sm:$0xff] }
 0x35d   : > { %7233 = vmatmul.mubr.f32.gmra.mrb[36].mxu0 %v4153_v11  ;;  %4717 = vmatprep.mubr.f32.mxu1 %v4134_v51  ;;  %v5317_v11 = vld [vmem:[%s11724_s5 + $0x108] sm:$0xff] }
 0x35e   : > { %7235 = vmatprep.mubr.f32.mxu0 %v4162_v27  ;;  %v7502_v51 = vpack.c.bf16 %v5317_v11, %v5316_v19  ;;  %7501 = vmatprep.subr.bf16.mxu0 %v7500_v54  ;;  %v5306_v27 = vld [vmem:[%s11724_s5 + $0xb0] sm:$0xff]  ;;  %v5341_v38 = vld [vmem:[%s11724_s5 + $0x1c8] sm:$0xff]  ;;  %v5324_v19 = vld [vmem:[%s11724_s5 + $0x140] sm:$0xff] }
 0x35f   : > { %v5325_v11 = vld [vmem:[%s11724_s5 + $0x148] sm:$0xff] }
 0x360   : > { %4718 = vmatmul.mubr.f32.gmra.mrb[22].mxu1 %v4133_v50  ;;  %v5334_v50 = vld [vmem:[%s11724_s5 + $0x190] sm:$0xff]  ;;  %7503 = vmatpush3.bf16.msra.mxu0 %v7502_v51  ;;  %v7518_v51 = vpack.c.bf16 %v5325_v11, %v5324_v19 }
 0x361   : > { %7236 = vmatmul.mubr.f32.gmra.mrb[38].mxu0 %v4171_v63  ;;  %4722 = vmatprep.mubr.f32.mxu1 %v4143_v44  ;;  %v5307_v63 = vld [vmem:[%s11724_s5 + $0xb8] sm:$0xff] }
 0x362   : > { %v7480_v44 = vpack.c.bf16 %v5307_v63, %v5306_v27 }
 0x364   : > { %4723 = vmatmul.mubr.f32.gmra.mrb[24].mxu1 %v4142_v21  ;;  %v5335_v21 = vld [vmem:[%s11724_s5 + $0x198] sm:$0xff] }
 0x365   : > { %4727 = vmatprep.mubr.f32.mxu1 %v4152_v55  ;;  %v5290_v55 = vld [vmem:[%s11724_s5 + $0x30] sm:$0xff] }
 0x368   : > { %4728 = vmatmul.mubr.f32.gmra.mrb[26].mxu1 %v4151_v56  ;;  %v5291_v56 = vld [vmem:[%s11724_s5 + $0x38] sm:$0xff] }
 0x369   : > { %4732 = vmatprep.mubr.f32.mxu1 %v4161_v57  ;;  %v7504_v57 = vpack.c.bf16 %v5335_v21, %v5334_v50  ;;  %v5314_v50 = vld [vmem:[%s11724_s5 + $0xf0] sm:$0xff] }
 0x36a   : > { %v5342_v21 = vld [vmem:[%s11724_s5 + $0x1d0] sm:$0xff] }
 0x36b   : > { %7505 = vmatprep.subr.bf16.mxu0 %v7504_v57  ;;  %v5343_v57 = vld [vmem:[%s11724_s5 + $0x1d8] sm:$0xff] }
 0x36c   : > { %4733 = vmatmul.mubr.f32.gmra.mrb[28].mxu1 %v4160_v53  ;;  %v5318_v53 = vld [vmem:[%s11724_s5 + $0x110] sm:$0xff] }
 0x36d   : > { %4737 = vmatprep.mubr.f32.mxu1 %v4170_v46  ;;  %v7482_v46 = vpack.c.bf16 %v5291_v56, %v5290_v55 }
 0x370   : > { %4738 = vmatmul.mubr.f32.gmra.mrb[30].mxu1 %v4169_v43  ;;  %v5319_v43 = vld [vmem:[%s11724_s5 + $0x118] sm:$0xff] }
 0x38d   : > { %v6663_v33 = vpop.f32.mrb[8].mxu0 }
 0x38e   : > { %v6716_v35 = vpop.f32.mrb[6].mxu1  ;;  %v6664_v1 = vpop.f32.mrb[9].mxu0 }
 0x38f   : > { %v6717_v47 = vpop.f32.mrb[7].mxu1  ;;  %v6665_v10 = vadd.f32 %v6664_v1, %v6663_v33  ;;  %v7506_v33 = vpack.c.bf16 %v5319_v43, %v5318_v53  ;;  %v5309_v1 = vld [vmem:[%s11724_s5 + $0xc8] sm:$0xff]  ;;  %v5299_v53 = vld [vmem:[%s11724_s5 + $0x78] sm:$0xff] }
 0x390   : > { %v6718_v12 = vadd.f32 %v6717_v47, %v6716_v35  ;;  %v5308_v35 = vld [vmem:[%s11724_s5 + $0xc0] sm:$0xff] }
 0x391   : > { %v4410_v58 = vadd.f32 %v6665_v10, %v10379_v23  ;;  %v5336_v47 = vld [vmem:[%s11724_s5 + $0x1a0] sm:$0xff]  ;;  %7507 = vmatpush3.bf16.msra.mxu0 %v7506_v33  ;;  %v5337_v10 = vld [vmem:[%s11724_s5 + $0x1a8] sm:$0xff]  ;;  %v7520_v33 = vpack.c.bf16 %v5343_v57, %v5342_v21 }
 0x392   : > { %v10672_v25 = vadd.f32 %v6718_v12, %v4405_v7  ;;  %v7484_v7 = vpack.c.bf16 %v5309_v1, %v5308_v35  ;;  %v5292_v12 = vld [vmem:[%s11724_s5 + $0x40] sm:$0xff]  ;;  %v5326_v1 = vld [vmem:[%s11724_s5 + $0x150] sm:$0xff] }
 0x3b4   : > { %v6666_v22 = vpop.f32.mrb[10].mxu0 }
 0x3b5   : > { %v6719_v30 = vpop.f32.mrb[8].mxu1  ;;  %v6667_v14 = vpop.f32.mrb[11].mxu0 }
 0x3b6   : > { %v6720_v49 = vpop.f32.mrb[9].mxu1  ;;  %v6668_v18 = vadd.f32 %v6667_v14, %v6666_v22  ;;  %v5293_v22 = vld [vmem:[%s11724_s5 + $0x48] sm:$0xff] }
 0x3b7   : > { %v6721_v37 = vadd.f32 %v6720_v49, %v6719_v30  ;;  %v7508_v30 = vpack.c.bf16 %v5337_v10, %v5336_v47  ;;  %v7486_v14 = vpack.c.bf16 %v5293_v22, %v5292_v12  ;;  %v5320_v49 = vld [vmem:[%s11724_s5 + $0x120] sm:$0xff]  ;;  %v5327_v47 = vld [vmem:[%s11724_s5 + $0x158] sm:$0xff] }
 0x3b8   : > { %v4415_v41 = vadd.f32 %v6668_v18, %v10379_v23  ;;  %v5288_v23 = vld [vmem:[%s11724_s5 + $0x20] sm:$0xff] }
 0x3b9   : > { %v10675_v9 = vadd.f32 %v6721_v37, %v4410_v58  ;;  %v7478_v48 = vpack.c.bf16 %v5289_v26, %v5288_v23  ;;  %v5321_v58 = vld [vmem:[%s11724_s5 + $0x128] sm:$0xff]  ;;  %7509 = vmatprep.subr.bf16.mxu0 %v7508_v30  ;;  %v5310_v37 = vld [vmem:[%s11724_s5 + $0xd0] sm:$0xff]  ;;  %v5344_v22 = vld [vmem:[%s11724_s5 + $0x1e0] sm:$0xff] }
 0x3ba   : > { %v7510_v18 = vpack.c.bf16 %v5321_v58, %v5320_v49  ;;  %v7488_v61 = vpack.c.bf16 %v5311_v28, %v5310_v37  ;;  %v5297_v23 = vld [vmem:[%s11724_s5 + $0x68] sm:$0xff] }
 0x3bb   : > { %7479 = vmatpush3.bf16.msra.mxu1 %v7478_v48  ;;  %v7494_v48 = vpack.c.bf16 %v5297_v23, %v5296_v3  ;;  %v5345_v30 = vld [vmem:[%s11724_s5 + $0x1e8] sm:$0xff] }
 0x3bc   : > { %7481 = vmatprep.subr.bf16.mxu1 %v7480_v44  ;;  %7511 = vmatpush3.bf16.msra.mxu0 %v7510_v18  ;;  %v5315_v44 = vld [vmem:[%s11724_s5 + $0xf8] sm:$0xff]  ;;  %v7524_v58 = vpack.c.bf16 %v5345_v30, %v5344_v22  ;;  %v5328_v18 = vld [vmem:[%s11724_s5 + $0x160] sm:$0xff]  ;;  %v5329_v37 = vld [vmem:[%s11724_s5 + $0x168] sm:$0xff] }
 0x3bd   : > { %7513 = vmatprep.subr.bf16.mxu0 %v7512_v34  ;;  %v7496_v56 = vpack.c.bf16 %v5315_v44, %v5314_v50 }
 0x3bf   : > { %7483 = vmatpush3.bf16.msra.mxu1 %v7482_v46  ;;  %v5298_v46 = vld [vmem:[%s11724_s5 + $0x70] sm:$0xff] }
 0x3c0   : > { %7485 = vmatprep.subr.bf16.mxu1 %v7484_v7  ;;  %v7498_v35 = vpack.c.bf16 %v5299_v53, %v5298_v46  ;;  %v7522_v7 = vpack.c.bf16 %v5327_v47, %v5326_v1 }
 0x3c3   : > { %7487 = vmatpush3.bf16.msra.mxu1 %v7486_v14  ;;  %v5364_v14 = vld [vmem:[%s11724_s5 + $0x280] sm:$0xff] }
 0x3c4   : > { %7489 = vmatprep.subr.bf16.mxu1 %v7488_v61  ;;  %v7526_v61 = vpack.c.bf16 %v5329_v37, %v5328_v18 }
 0x3c7   : > { %7491 = vmatpush3.bf16.msra.mxu1 %v7490_v24  ;;  %v7528_v24 = vpack.c.bf16 %v5347_v13, %v5346_v36 }
 0x3d3   : > { %v6669_v29 = vpop.f32.mrb[12].mxu0 }
 0x3d4   : > { %v6722_v32 = vpop.f32.mrb[10].mxu1  ;;  %v6670_v45 = vpop.f32.mrb[13].mxu0 }
 0x3d5   : > { %v10717_v52 = vadd.f32 %v6670_v45, %v6669_v29  ;;  %v6723_v8 = vpop.f32.mrb[11].mxu1  ;;  %v5322_v29 = vld [vmem:[%s11724_s5 + $0x130] sm:$0xff]  ;;  %v5312_v45 = vld [vmem:[%s11724_s5 + $0xe0] sm:$0xff] }
 0x3d6   : > { %v6724_v2 = vadd.f32 %v6723_v8, %v6722_v32  ;;  %v7514_v6 = vpack.c.bf16 %v5323_v62, %v5322_v29  ;;  %v5340_v8 = vld [vmem:[%s11724_s5 + $0x1c0] sm:$0xff]  ;;  %v7492_v5 = vpack.c.bf16 %v5313_v0, %v5312_v45  ;;  %v5330_v29 = vld [vmem:[%s11724_s5 + $0x170] sm:$0xff]  ;;  %v5331_v62 = vld [vmem:[%s11724_s5 + $0x178] sm:$0xff] }
 0x3d7   : > { %v5397_v45 = vld [vmem:[%s11724_s5 + $0x388] sm:$0xff] }
 0x3d8   : > { %v10738_v60 = vadd.f32 %v6724_v2, %v4415_v41  ;;  %v10830_v41 = vld [vmem:[%s11723_s4] ss:$0 sm:$0xff]  ;;  %7515 = vmatpush3.bf16.msra.mxu0 %v7514_v6  ;;  %7493 = vmatprep.subr.bf16.mxu1 %v7492_v5 }
 0x3d9   : > { %v4420_v2 = vadd.f32 %v10830_v41, %v10717_v52  ;;  %v7516_v52 = vpack.c.bf16 %v5341_v38, %v5340_v8  ;;  %7495 = vmatpush3.bf16.msra.mxu1 %v7494_v48 }
 0x3da   : > { %7497 = vmatprep.subr.bf16.mxu1 %v7496_v56 }
 0x3db   : > { %7517 = vmatprep.subr.bf16.mxu0 %v7516_v52 }
 0x3dc   : > { %7519 = vmatpush3.bf16.msra.mxu0 %v7518_v51 }
 0x3dd   : > { %7521 = vmatprep.subr.bf16.mxu0 %v7520_v33  ;;  %7499 = vmatpush3.bf16.msra.mxu1 %v7498_v35 }
 0x3e0   : > { %7523 = vmatpush3.bf16.msra.mxu0 %v7522_v7 }
 0x3e1   : > { %7525 = vmatprep.subr.bf16.mxu0 %v7524_v58 }
 0x3e4   : > { %7527 = vmatpush3.bf16.msra.mxu0 %v7526_v61 }
 0x3e5   : > { %v6672_v59 = vpop.f32.mrb[14].mxu0  ;;  %7529 = vmatprep.subr.bf16.mxu0 %v7528_v24 }
 0x3e6   : > { %v6725_v32 = vpop.f32.mrb[12].mxu1  ;;  %v6673_v15 = vpop.f32.mrb[15].mxu0 }
 0x3e7   : > { %v6726_v40 = vpop.f32.mrb[13].mxu1  ;;  %v10843_v26 = vadd.f32 %v6673_v15, %v6672_v59  ;;  %v7530_v59 = vpack.c.bf16 %v5331_v62, %v5330_v29 }
 0x3e8   : > { %v6727_v54 = vadd.f32 %v6726_v40, %v6725_v32 }
 0x3e9   : > { %v6763_v63 = vpop.f32.mrb[16].mxu0  ;;  %7531 = vmatpush3.bf16.msra.mxu0 %v7530_v59 }
 0x3ea   : > { %v10851_v27 = vadd.f32 %v6727_v54, %v4420_v2  ;;  %v6764_v55 = vpop.f32.mrb[17].mxu0 }
 0x3eb   : > { %v6765_v43 = vadd.f32 %v6764_v55, %v6763_v63 }
 0x3ed   : > { %v10878_v10 = vadd.f32 %v6765_v43, %v10420_v42  ;;  %v6766_v12 = vpop.f32.mrb[18].mxu0  ;;  %v5365_v42 = vld [vmem:[%s11724_s5 + $0x288] sm:$0xff] }
 0x3ee   : > { %v6767_v49 = vpop.f32.mrb[19].mxu0  ;;  %v7532_v20 = vpack.c.bf16 %v5365_v42, %v5364_v14 }
 0x3ef   : > { %v6768_v28 = vadd.f32 %v6767_v49, %v6766_v12 }
 0x3f0   : > { %7533 = vmatprep.subr.bf16.mxu1 %v7532_v20 }
 0x3f1   : > { %v4605_v31 = vadd.f32 %v6768_v28, %v10558_v16  ;;  %v6769_v34 = vpop.f32.mrb[20].mxu0  ;;  %v5396_v16 = vld [vmem:[%s11724_s5 + $0x380] sm:$0xff] }
 0x3f2   : > { %v6770_v6 = vpop.f32.mrb[21].mxu0  ;;  %v7564_v0 = vpack.c.bf16 %v5397_v45, %v5396_v16 }
 0x3f3   : > { %v6771_v32 = vadd.f32 %v6770_v6, %v6769_v34 }
 0x3f4   : > { %7565 = vmatprep.subr.bf16.mxu0 %v7564_v0 }
 0x3f5   : > { %v4610_v8 = vadd.f32 %v6771_v32, %v10669_v17  ;;  %v6772_v2 = vpop.f32.mrb[22].mxu0 }
 0x3f6   : > { %v6773_v15 = vpop.f32.mrb[23].mxu0 }
 0x3f7   : > { %v6774_v40 = vadd.f32 %v6773_v15, %v6772_v2 }
 0x3f9   : > { %v4615_v5 = vadd.f32 %v6774_v40, %v10672_v25  ;;  %v6775_v38 = vpop.f32.mrb[24].mxu0 }
 0x3fa   : > { %v6776_v3 = vpop.f32.mrb[25].mxu0 }
 0x3fb   : > { %v6777_v23 = vadd.f32 %v6776_v3, %v6775_v38 }
 0x3fd   : > { %v10920_v54 = vadd.f32 %v6777_v23, %v10675_v9  ;;  %v6778_v52 = vpop.f32.mrb[26].mxu0  ;;  %v4425_v9 = vadd.f32 %v10830_v41, %v10843_v26 }
 0x3fe   : > { %v6779_v48 = vpop.f32.mrb[27].mxu0 }
 0x3ff   : > { %v6780_v19 = vadd.f32 %v6779_v48, %v6778_v52 }
 0x401   : > { %v10923_v11 = vadd.f32 %v6780_v19, %v10738_v60  ;;  %v6781_v17 = vpop.f32.mrb[28].mxu0 }
 0x402   : > { %v6782_v51 = vpop.f32.mrb[29].mxu0 }
 0x403   : > { %v6783_v63 = vadd.f32 %v6782_v51, %v6781_v17 }
 0x405   : > { %v10926_v50 = vadd.f32 %v6783_v63, %v10851_v27 }
 0x423   : > { %v6728_v44 = vpop.f32.mrb[14].mxu1 }
 0x424   : > { %v6784_v25 = vpop.f32.mrb[30].mxu0  ;;  %v6729_v21 = vpop.f32.mrb[15].mxu1 }
 0x425   : > { %v6785_v55 = vpop.f32.mrb[31].mxu0  ;;  %v6730_v56 = vadd.f32 %v6729_v21, %v6728_v44 }
 0x426   : > { %v6786_v57 = vadd.f32 %v6785_v55, %v6784_v25 }
 0x427   : > { %v4530_v46 = vadd.f32 %v6730_v56, %v4425_v9  ;;  %v6819_v53 = vpop.f32.mrb[16].mxu1 }
 0x428   : > { %v7228_v43 = vpop.f32.mrb[32].mxu0  ;;  %v6820_v60 = vpop.f32.mrb[17].mxu1 }
 0x429   : > { %v4809_v33 = vpop.f32.mrb[33].mxu0  ;;  %v10930_v35 = vadd.f32 %v6786_v57, %v4530_v46  ;;  %v6821_v1 = vadd.f32 %v6820_v60, %v6819_v53 }
 0x42b   : > { %v4705_v27 = vadd.f32 %v6821_v1, %v10878_v10  ;;  %v6822_v47 = vpop.f32.mrb[18].mxu1 }
 0x42c   : > { %v7231_v7 = vpop.f32.mrb[34].mxu0  ;;  %v6823_v12 = vpop.f32.mrb[19].mxu1 }
 0x42d   : > { %v4819_v22 = vpop.f32.mrb[35].mxu0  ;;  %v4810_v30 = vadd.f32 %v4809_v33, %v4705_v27  ;;  %v6824_v14 = vadd.f32 %v6823_v12, %v6822_v47 }
 0x42f   : > { %v4710_v49 = vadd.f32 %v6824_v14, %v4605_v31  ;;  %v6825_v41 = vpop.f32.mrb[20].mxu1  ;;  %v4848_v28 = vsel %vm2805_vm2, %v4810_v30, -inf }
 0x430   : > { %v10933_v26 = vpop.f32.mrb[36].mxu0  ;;  %v6826_v58 = vpop.f32.mrb[21].mxu1 }
 0x431   : > { %v4829_v42 = vpop.f32.mrb[37].mxu0  ;;  %v4815_v18 = vadd.f32 %v7228_v43, %v4710_v49  ;;  %v6827_v37 = vadd.f32 %v6826_v58, %v6825_v41 }
 0x433   : > { %v4849_v20 = vsel %vm2805_vm2, %v4815_v18, -inf  ;;  %v4715_v61 = vadd.f32 %v6827_v37, %v4610_v8  ;;  %v6828_v10 = vpop.f32.mrb[22].mxu1 }
 0x434   : > { %v10937_v36 = vpop.f32.mrb[38].mxu0  ;;  %v4850_v13 = vmax.f32 %v4848_v28, %v4849_v20  ;;  %v6829_v34 = vpop.f32.mrb[23].mxu1 }
 0x435   : > { %v10939_v24 = vpop.f32.mrb[39].mxu0  ;;  %v4820_v31 = vadd.f32 %v4819_v22, %v4715_v61  ;;  %v6830_v29 = vadd.f32 %v6829_v34, %v6828_v10 }
 0x436   : > { %v4864_v62 = vcombine.high %v4850_v13, %v4850_v13  ;;  %v4871_v6 = vrot.slane %v4850_v13, %v8924_v39 }
 0x437   : > { %v4720_v59 = vadd.f32 %v6830_v29, %v4615_v5  ;;  %v6831_v32 = vpop.f32.mrb[24].mxu1  ;;  %v4851_v52 = vsel %vm2805_vm2, %v4820_v31, -inf }
 0x438   : > { %v4878_v16 = vrot.slane %v4864_v62, %v8924_v39  ;;  %v4879_v45 = vcombine.high %v4871_v6, %v4871_v6  ;;  %v4948_v0 = vsel %vm3206_vm3, %v4871_v6, -inf  ;;  %v6832_v8 = vpop.f32.mrb[25].mxu1 }
 0x439   : > { %v4949_v2 = vrot.slane %v4948_v0, 4  ;;  %v4825_v15 = vadd.f32 %v7231_v7, %v4720_v59  ;;  %v6833_v40 = vadd.f32 %v6832_v8, %v6831_v32 }
 0x43a   : > { %v4880_v38 = vcombine.high %v4878_v16, %v4878_v16  ;;  %v4955_v3 = vsel %vm3206_vm3, %v4879_v45, -inf  ;;  %v4962_v23 = vsel %vm3206_vm3, %v4878_v16, -inf }
 0x43b   : > { %v4950_v48 = vmax.f32 %v4948_v0, %v4949_v2  ;;  %v4956_v19 = vrot.slane %v4955_v3, 4  ;;  %v4963_v5 = vrot.slane %v4962_v23, 4  ;;  %v4852_v17 = vsel %vm2805_vm2, %v4825_v15, -inf  ;;  %v6834_v51 = vpop.f32.mrb[26].mxu1 }
 0x43c   : > { %v4969_v63 = vsel %vm3206_vm3, %v4880_v38, -inf  ;;  %v4853_v44 = vmax.f32 %v4851_v52, %v4852_v17  ;;  %v4725_v25 = vadd.f32 %v6833_v40, %v10920_v54  ;;  %v6835_v21 = vpop.f32.mrb[27].mxu1 }
 0x43d   : > { %v4951_v55 = vrot.slane %v4950_v48, 2  ;;  %v4957_v9 = vmax.f32 %v4955_v3, %v4956_v19  ;;  %v4964_v56 = vmax.f32 %v4962_v23, %v4963_v5  ;;  %v4970_v57 = vrot.slane %v4969_v63, 4 }
 0x43e   : > { %v4881_v46 = vcombine.high %v4853_v44, %v4853_v44  ;;  %v4888_v53 = vrot.slane %v4853_v44, %v8924_v39  ;;  %v4830_v43 = vadd.f32 %v4829_v42, %v4725_v25  ;;  %v6836_v60 = vadd.f32 %v6835_v21, %v6834_v51 }
 0x43f   : > { %v4952_v33 = vmax.f32 %v4950_v48, %v4951_v55  ;;  %v4958_v1 = vrot.slane %v4957_v9, 2  ;;  %v4965_v27 = vrot.slane %v4964_v56, 2  ;;  %v4971_v47 = vmax.f32 %v4969_v63, %v4970_v57  ;;  %v6837_v7 = vpop.f32.mrb[28].mxu1 }
 0x440   : > { %v4895_v12 = vrot.slane %v4881_v46, %v8924_v39  ;;  %v4896_v22 = vcombine.high %v4888_v53, %v4888_v53  ;;  %v4976_v54 = vsel %vm3206_vm3, %v4888_v53, -inf  ;;  %v4854_v30 = vsel %vm2805_vm2, %v4830_v43, -inf  ;;  %v6838_v14 = vpop.f32.mrb[29].mxu1 }
 0x441   : > { %v4953_v49 = vrot.slane %v4952_v33, 1  ;;  %v4959_v41 = vmax.f32 %v4957_v9, %v4958_v1  ;;  %v4966_v58 = vmax.f32 %v4964_v56, %v4965_v27  ;;  %v4972_v18 = vrot.slane %v4971_v47, 2 }
 0x442   : > { %v4897_v37 = vcombine.high %v4895_v12, %v4895_v12  ;;  %v4977_v42 = vrot.slane %v4976_v54, 4  ;;  %v4983_v28 = vsel %vm3206_vm3, %v4896_v22, -inf  ;;  %v4990_v20 = vsel %vm3206_vm3, %v4895_v12, -inf }
 0x443   : > { %v4954_v61 = vmax.f32 %v4952_v33, %v4953_v49  ;;  %v4960_v10 = vrot.slane %v4959_v41, 1  ;;  %v4967_v13 = vrot.slane %v4966_v58, 1  ;;  %v4973_v34 = vmax.f32 %v4971_v47, %v4972_v18  ;;  %v6840_v31 = vpop.f32.mrb[30].mxu1 }
 0x444   : > { %v4978_v29 = vmax.f32 %v4976_v54, %v4977_v42  ;;  %v4984_v62 = vrot.slane %v4983_v28, 4  ;;  %v4991_v6 = vrot.slane %v4990_v20, 4  ;;  %v4997_v59 = vsel %vm3206_vm3, %v4897_v37, -inf  ;;  %v6841_v32 = vpop.f32.mrb[31].mxu1 }
 0x445   : > { %v4961_v16 = vmax.f32 %v4959_v41, %v4960_v10  ;;  %v4968_v45 = vmax.f32 %v4966_v58, %v4967_v13  ;;  %v4974_v0 = vrot.slane %v4973_v34, 1  ;;  %v5060_v8 = vmax.f32 %v4954_v61, 0.0 }
 0x446   : > { %v4979_v2 = vrot.slane %v4978_v29, 2  ;;  %v4985_v15 = vmax.f32 %v4983_v28, %v4984_v62  ;;  %v4992_v40 = vmax.f32 %v4990_v20, %v4991_v6  ;;  %v4998_v38 = vrot.slane %v4997_v59, 4 }
 0x447   : > { %v4975_v3 = vmax.f32 %v4973_v34, %v4974_v0  ;;  %v5061_v23 = vmax.f32 %v4961_v16, 0.0  ;;  %v5062_v52 = vmax.f32 %v4968_v45, 0.0  ;;  %v4730_v48 = vadd.f32 %v6836_v60, %v10923_v11  ;;  %v10981_v45 = vld [vmem:[%s11724_s5 + $0x200] sm:$0xff] }
 0x448   : > { %v4980_v19 = vmax.f32 %v4978_v29, %v4979_v2  ;;  %v4986_v5 = vrot.slane %v4985_v15, 2  ;;  %v4993_v17 = vrot.slane %v4992_v40, 2  ;;  %v4999_v51 = vmax.f32 %v4997_v59, %v4998_v38  ;;  %v5349_v38 = vld [vmem:[%s11724_s5 + $0x208] sm:$0xff] }
 0x449   : > { %v5063_v63 = vmax.f32 %v4975_v3, 0.0  ;;  %v5099_v44 = vsel %vm3803_vm4, %v5061_v23, %v5060_v8  ;;  %v4835_v25 = vadd.f32 %v10933_v26, %v4730_v48  ;;  %v6839_v21 = vadd.f32 %v6838_v14, %v6837_v7 }
 0x44a   : > { %v5100_v55 = vsel %vm3805_vm5, %v5062_v52, %v5099_v44  ;;  %v4981_v9 = vrot.slane %v4980_v19, 1  ;;  %v4987_v56 = vmax.f32 %v4985_v15, %v4986_v5  ;;  %v4994_v57 = vmax.f32 %v4992_v40, %v4993_v17  ;;  %v5366_v52 = vld [vmem:[%s11724_s5 + $0x290] sm:$0xff] }
 0x44b   : > { %v5101_v46 = vsel %vm3807_vm6, %v5063_v63, %v5100_v55  ;;  %v5000_v53 = vrot.slane %v4999_v51, 2  ;;  %v4855_v11 = vsel %vm2805_vm2, %v4835_v25, -inf  ;;  %v6842_v43 = vadd.f32 %v6841_v32, %v6840_v31 }
 0x44c   : > { %5117 = vst.msk [vmem:[#allocation4 + $0x9] sm:$0xf] %vm5116_vm12, %v5101_v46  ;;  %v4982_v60 = vmax.f32 %v4980_v19, %v4981_v9  ;;  %v4988_v33 = vrot.slane %v4987_v56, 1  ;;  %v4995_v1 = vrot.slane %v4994_v57, 1  ;;  %v4856_v27 = vmax.f32 %v4854_v30, %v4855_v11 }
 0x44d   : > { %v5001_v47 = vmax.f32 %v4999_v51, %v5000_v53  ;;  %v4740_v26 = vadd.f32 %v6842_v43, %v10930_v35  ;;  %v4735_v7 = vadd.f32 %v6839_v21, %v10926_v50  ;;  %v5367_v51 = vld [vmem:[%s11724_s5 + $0x298] sm:$0xff]  ;;  %v7534_v21 = vpack.c.bf16 %v5349_v38, %v10981_v45 }
 0x44e   : > { %v4989_v12 = vmax.f32 %v4987_v56, %v4988_v33  ;;  %v4996_v22 = vmax.f32 %v4994_v57, %v4995_v1  ;;  %v4898_v54 = vcombine.high %v4856_v27, %v4856_v27  ;;  %v4905_v49 = vrot.slane %v4856_v27, %v8924_v39 }
 0x44f   : > { %v5002_v14 = vrot.slane %v5001_v47, 1  ;;  %v4845_v41 = vadd.f32 %v10937_v36, %v4740_v26  ;;  %v4840_v58 = vadd.f32 %v10939_v24, %v4735_v7  ;;  %v5064_v18 = vmax.f32 %v4982_v60, 0.0  ;;  %v5351_v26 = vld [vmem:[%s11724_s5 + $0x218] sm:$0xff] }
 0x450   : > { %v5065_v37 = vmax.f32 %v4989_v12, 0.0  ;;  %v5066_v42 = vmax.f32 %v4996_v22, 0.0  ;;  %v4912_v30 = vrot.slane %v4898_v54, %v8924_v39  ;;  %v4913_v20 = vcombine.high %v4905_v49, %v4905_v49 }
 0x451   : > { %v5003_v28 = vmax.f32 %v5001_v47, %v5002_v14  ;;  %v5004_v35 = vsel %vm3206_vm3, %v4905_v49, -inf  ;;  %v4857_v50 = vsel %vm2805_vm2, %v4840_v58, -inf  ;;  %v4858_v32 = vsel %vm2805_vm2, %v4845_v41, -inf  ;;  %v5350_v47 = vld [vmem:[%s11724_s5 + $0x210] sm:$0xff] }
 0x452   : > { %v5102_v61 = vsel %vm3803_vm4, %v5065_v37, %v5064_v18  ;;  %v4914_v10 = vcombine.high %v4912_v30, %v4912_v30  ;;  %v5005_v13 = vrot.slane %v5004_v35, 4  ;;  %v5018_v34 = vsel %vm3206_vm3, %v4912_v30, -inf  ;;  %v5368_v37 = vld [vmem:[%s11724_s5 + $0x2a0] sm:$0xff] }
 0x453   : > { %v5067_v36 = vmax.f32 %v5003_v28, 0.0  ;;  %v5103_v24 = vsel %vm3805_vm5, %v5066_v42, %v5102_v61  ;;  %v5011_v31 = vsel %vm3206_vm3, %v4913_v20, -inf  ;;  %v5019_v29 = vrot.slane %v5018_v34, 4  ;;  %v7795_v16 = vld [vmem:[#allocation4 + $0x1] ss:$8 sps:$4 sm:$0xff]   ;;  %v5369_v61 = vld [vmem:[%s11724_s5 + $0x2a8] sm:$0xff] }
 0x454   : > { %v5006_v62 = vmax.f32 %v5004_v35, %v5005_v13  ;;  %v5012_v6 = vrot.slane %v5011_v31, 4  ;;  %v5025_v59 = vsel %vm3206_vm3, %v4914_v10, -inf  ;;  %v4859_v15 = vmax.f32 %v4857_v50, %v4858_v32  ;;  %v7796_v40 = vld [vmem:[#allocation4] ss:$8 sps:$4 sm:$0xff]   ;;  %5165 = vst.msk [vmem:[#allocation7 + $0x8] sm:$0xff] %vm2805_vm2, %v7795_v16 }
 0x455   : > { %v5104_v0 = vsel %vm3807_vm6, %v5067_v36, %v5103_v24  ;;  %v5020_v8 = vmax.f32 %v5018_v34, %v5019_v29  ;;  %v5026_v2 = vrot.slane %v5025_v59, 4  ;;  %5151 = vst.msk [vmem:[#allocation7] sm:$0xff] %vm2805_vm2, %v7796_v40  ;;  %v7798_v63 = vld [vmem:[#allocation4 + $0x2] ss:$8 sps:$4 sm:$0xff]   ;;  %v7536_v43 = vpack.c.bf16 %v5367_v51, %v5366_v52  ;;  %v5352_v24 = vld [vmem:[%s11724_s5 + $0x220] sm:$0xff] }
 0x456   : > { %5118 = vst.msk [vmem:[#allocation4 + $0x11] sm:$0xf] %vm5116_vm12, %v5104_v0  ;;  %v5007_v3 = vrot.slane %v5006_v62, 2  ;;  %v5013_v23 = vmax.f32 %v5011_v31, %v5012_v6  ;;  %v4915_v5 = vcombine.high %v4859_v15, %v4859_v15  ;;  %v4922_v17 = vrot.slane %v4859_v15, %v8924_v39  ;;  %v5353_v31 = vld [vmem:[%s11724_s5 + $0x228] sm:$0xff]  ;;  %v5370_v32 = vld [vmem:[%s11724_s5 + $0x2b0] sm:$0xff] }
 0x457   : > { %v5021_v48 = vrot.slane %v5020_v8, 2  ;;  %v5027_v19 = vmax.f32 %v5025_v59, %v5026_v2  ;;  %5179 = vst.msk [vmem:[#allocation7 + $0x10] sm:$0xff] %vm2805_vm2, %v7798_v63  ;;  %v7538_v35 = vpack.c.bf16 %v5351_v26, %v5350_v47  ;;  %v5380_v2 = vld [vmem:[%s11724_s5 + $0x300] sm:$0xff] }
 0x458   : > { %v5008_v44 = vmax.f32 %v5006_v62, %v5007_v3  ;;  %v5014_v25 = vrot.slane %v5013_v23, 2  ;;  %v4929_v56 = vrot.slane %v4915_v5, %v8924_v39  ;;  %v4930_v57 = vcombine.high %v4922_v17, %v4922_v17  ;;  %v5381_v5 = vld [vmem:[%s11724_s5 + $0x308] sm:$0xff] }
 0x459   : > { %v5022_v55 = vmax.f32 %v5020_v8, %v5021_v48  ;;  %v5028_v9 = vrot.slane %v5027_v19, 2  ;;  %v5032_v11 = vsel %vm3206_vm3, %v4922_v17, -inf  ;;  %v7540_v8 = vpack.c.bf16 %v5369_v61, %v5368_v37 }
 0x45a   : > { %v5009_v46 = vrot.slane %v5008_v44, 1  ;;  %v5015_v53 = vmax.f32 %v5013_v23, %v5014_v25  ;;  %v4931_v1 = vcombine.high %v4929_v56, %v4929_v56  ;;  %v5033_v27 = vrot.slane %v5032_v11, 4  ;;  %v5371_v23 = vld [vmem:[%s11724_s5 + $0x2b8] sm:$0xff] }
 0x45b   : > { %v5023_v60 = vrot.slane %v5022_v55, 1  ;;  %v5029_v33 = vmax.f32 %v5027_v19, %v5028_v9  ;;  %v5039_v22 = vsel %vm3206_vm3, %v4930_v57, -inf  ;;  %v5046_v54 = vsel %vm3206_vm3, %v4929_v56, -inf  ;;  %v5267_v18 = vld [vmem:[#allocation7 + $0x8] sm:$0xff] }
 0x45c   : > { %v5010_v7 = vmax.f32 %v5008_v44, %v5009_v46  ;;  %v5016_v12 = vrot.slane %v5015_v53, 1  ;;  %v5034_v41 = vmax.f32 %v5032_v11, %v5033_v27  ;;  %v5040_v58 = vrot.slane %v5039_v22, 4  ;;  %5499 = vmatprep.mubr.f32.mxu1 %v5267_v18  ;;  %v5266_v20 = vld [vmem:[#allocation7] sm:$0xff]  ;;  %v5373_v27 = vld [vmem:[%s11724_s5 + $0x2c8] sm:$0xff]  ;;  %v5356_v18 = vld [vmem:[%s11724_s5 + $0x240] sm:$0xff] }
 0x45d   : > { %v5024_v14 = vmax.f32 %v5022_v55, %v5023_v60  ;;  %v5030_v49 = vrot.slane %v5029_v33, 1  ;;  %v5047_v30 = vrot.slane %v5046_v54, 4  ;;  %v5053_v28 = vsel %vm3206_vm3, %v4931_v1, -inf  ;;  %v7797_v50 = vld [vmem:[#allocation4 + $0x8] ss:$8 sps:$4 sm:$0xff]   ;;  %5500 = vmatmul.mubr.f32.vlgmr.msra.gmra.mrb[32].mxu1 %v5266_v20  ;;  %v5354_v46 = vld [vmem:[%s11724_s5 + $0x230] sm:$0xff] }
 0x45e   : > { %v5017_v42 = vmax.f32 %v5015_v53, %v5016_v12  ;;  %v5035_v34 = vrot.slane %v5034_v41, 2  ;;  %v5041_v36 = vmax.f32 %v5039_v22, %v5040_v58  ;;  %v5068_v29 = vmax.f32 %v5010_v7, 0.0  ;;  %7535 = vmatpush3.bf16.msra.mxu1 %v7534_v21  ;;  %5193 = vst.msk [vmem:[#allocation7 + $0x18] sm:$0xff] %vm2805_vm2, %v7797_v50  ;;  %v7801_v15 = vld [vmem:[#allocation4 + $0xa] ss:$8 sps:$4 sm:$0xff]   ;;  %v5398_v21 = vld [vmem:[%s11724_s5 + $0x390] sm:$0xff] }
 0x45f   : > { %v5031_v10 = vmax.f32 %v5029_v33, %v5030_v49  ;;  %v5070_v13 = vmax.f32 %v5024_v14, 0.0  ;;  %v5048_v6 = vmax.f32 %v5046_v54, %v5047_v30  ;;  %v5054_v59 = vrot.slane %v5053_v28, 4  ;;  %7537 = vmatprep.subr.bf16.mxu1 %v7536_v43  ;;  %5221 = vst.msk [vmem:[#allocation7 + $0x28] sm:$0xff] %vm2805_vm2, %v7801_v15  ;;  %v7805_v17 = vld [vmem:[#allocation4 + $0x9] ss:$8 sps:$4 sm:$0xff]   ;;  %v5382_v33 = vld [vmem:[%s11724_s5 + $0x310] sm:$0xff] }
 0x460   : > { %v5069_v62 = vmax.f32 %v5017_v42, 0.0  ;;  %v5036_v45 = vmax.f32 %v5034_v41, %v5035_v34  ;;  %v5042_v0 = vrot.slane %v5041_v36, 2  ;;  %v7542_v25 = vpack.c.bf16 %v5353_v31, %v5352_v24  ;;  %v5399_v55 = vld [vmem:[%s11724_s5 + $0x398] sm:$0xff]  ;;  %5207 = vst.msk [vmem:[#allocation7 + $0x20] sm:$0xff] %vm2805_vm2, %v7805_v17  ;;  %v5372_v1 = vld [vmem:[%s11724_s5 + $0x2c0] sm:$0xff]  ;;  %v5401_v58 = vld [vmem:[%s11724_s5 + $0x3a8] sm:$0xff] }
 0x461   : > { %v5071_v16 = vmax.f32 %v5031_v10, 0.0  ;;  %v5049_v38 = vrot.slane %v5048_v6, 2  ;;  %v5055_v3 = vmax.f32 %v5053_v28, %v5054_v59  ;;  %v7544_v57 = vpack.c.bf16 %v5371_v23, %v5370_v32  ;;  %v5355_v53 = vld [vmem:[%s11724_s5 + $0x238] sm:$0xff]  ;;  %v5400_v22 = vld [vmem:[%s11724_s5 + $0x3a0] sm:$0xff]  ;;  %v5357_v28 = vld [vmem:[%s11724_s5 + $0x248] sm:$0xff] }
 0x462   : > { %v5105_v40 = vsel %vm3803_vm4, %v5069_v62, %v5068_v29  ;;  %v5037_v48 = vrot.slane %v5036_v45, 1  ;;  %v5043_v19 = vmax.f32 %v5041_v36, %v5042_v0  ;;  %7539 = vmatpush3.bf16.msra.mxu1 %v7538_v35  ;;  %v7566_v60 = vpack.c.bf16 %v5381_v5, %v5380_v2  ;;  %v5383_v12 = vld [vmem:[%s11724_s5 + $0x318] sm:$0xff]  ;;  %v5268_v49 = vld [vmem:[#allocation7 + $0x10] sm:$0xff]  ;;  %v5385_v35 = vld [vmem:[%s11724_s5 + $0x328] sm:$0xff] }
 0x463   : > { %v5106_v52 = vsel %vm3805_vm5, %v5070_v13, %v5105_v40  ;;  %v5050_v63 = vmax.f32 %v5048_v6, %v5049_v38  ;;  %v5056_v44 = vrot.slane %v5055_v3, 2  ;;  %7541 = vmatprep.subr.bf16.mxu1 %v7540_v8  ;;  %v7568_v7 = vpack.c.bf16 %v5399_v55, %v5398_v21  ;;  %v5384_v20 = vld [vmem:[%s11724_s5 + $0x320] sm:$0xff]  ;;  %v5374_v13 = vld [vmem:[%s11724_s5 + $0x2d0] sm:$0xff]  ;;  %v5375_v34 = vld [vmem:[%s11724_s5 + $0x2d8] sm:$0xff] }
 0x464   : > { %v5107_v51 = vsel %vm3807_vm6, %v5071_v16, %v5106_v52  ;;  %v5038_v9 = vmax.f32 %v5036_v45, %v5037_v48  ;;  %v5044_v56 = vrot.slane %v5043_v19, 1  ;;  %v7546_v41 = vpack.c.bf16 %v5355_v53, %v5354_v46  ;;  %v5402_v36 = vld [vmem:[%s11724_s5 + $0x3b0] sm:$0xff]  ;;  %v5403_v29 = vld [vmem:[%s11724_s5 + $0x3b8] sm:$0xff]  ;;  %v5376_v0 = vld [vmem:[%s11724_s5 + $0x2e0] sm:$0xff] }
 0x465   : > { %5119 = vst.msk [vmem:[#allocation4 + $0x19] sm:$0xf] %vm5116_vm12, %v5107_v51  ;;  %v5051_v11 = vrot.slane %v5050_v63, 1  ;;  %v5057_v43 = vmax.f32 %v5055_v3, %v5056_v44  ;;  %v5269_v26 = vld [vmem:[#allocation7 + $0x18] sm:$0xff]  ;;  %v7548_v30 = vpack.c.bf16 %v5373_v27, %v5372_v1  ;;  %v7570_v10 = vpack.c.bf16 %v5383_v12, %v5382_v33  ;;  %v5358_v62 = vld [vmem:[%s11724_s5 + $0x250] sm:$0xff]  ;;  %v5359_v6 = vld [vmem:[%s11724_s5 + $0x258] sm:$0xff] }
 0x466   : > { %v5045_v47 = vmax.f32 %v5043_v19, %v5044_v56  ;;  %5574 = vmatprep.mubr.f32.mxu0 %v5269_v26  ;;  %7543 = vmatpush3.bf16.msra.mxu1 %v7542_v25  ;;  %v5072_v37 = vmax.f32 %v5038_v9, 0.0  ;;  %v7572_v31 = vpack.c.bf16 %v5401_v58, %v5400_v22  ;;  %v7550_v45 = vpack.c.bf16 %v5357_v28, %v5356_v18  ;;  %v5377_v8 = vld [vmem:[%s11724_s5 + $0x2e8] sm:$0xff]  ;;  %v5386_v40 = vld [vmem:[%s11724_s5 + $0x330] sm:$0xff]  ;;  %v5387_v38 = vld [vmem:[%s11724_s5 + $0x338] sm:$0xff] }
 0x467   : > { %v5052_v54 = vmax.f32 %v5050_v63, %v5051_v11  ;;  %v5058_v14 = vrot.slane %v5057_v43, 1  ;;  %5575 = vmatmul.mubr.f32.vlgmr.msra.gmra.mrb[40].mxu0 %v5268_v49  ;;  %7545 = vmatprep.subr.bf16.mxu1 %v7544_v57  ;;  %v7552_v15 = vpack.c.bf16 %v5375_v34, %v5374_v13  ;;  %v7574_v23 = vpack.c.bf16 %v5385_v35, %v5384_v20  ;;  %v5404_v52 = vld [vmem:[%s11724_s5 + $0x3c0] sm:$0xff]  ;;  %v5405_v48 = vld [vmem:[%s11724_s5 + $0x3c8] sm:$0xff]  ;;  %v5378_v56 = vld [vmem:[%s11724_s5 + $0x2f0] sm:$0xff] }
 0x468   : > { %v5073_v42 = vmax.f32 %v5045_v47, 0.0  ;;  %7567 = vmatpush3.bf16.msra.mxu0 %v7566_v60  ;;  %v7576_v5 = vpack.c.bf16 %v5403_v29, %v5402_v36  ;;  %v7554_v51 = vpack.c.bf16 %v5359_v6, %v5358_v62  ;;  %v7556_v44 = vpack.c.bf16 %v5377_v8, %v5376_v0  ;;  %v5360_v25 = vld [vmem:[%s11724_s5 + $0x260] sm:$0xff]  ;;  %v5361_v21 = vld [vmem:[%s11724_s5 + $0x268] sm:$0xff]  ;;  %v5379_v57 = vld [vmem:[%s11724_s5 + $0x2f8] sm:$0xff] }
 0x469   : > { %v5059_v50 = vmax.f32 %v5057_v43, %v5058_v14  ;;  %v5074_v61 = vmax.f32 %v5052_v54, 0.0  ;;  %7569 = vmatprep.subr.bf16.mxu0 %v7568_v7  ;;  %v7578_v9 = vpack.c.bf16 %v5387_v38, %v5386_v40  ;;  %v7580_v46 = vpack.c.bf16 %v5405_v48, %v5404_v52  ;;  %v5388_v53 = vld [vmem:[%s11724_s5 + $0x340] sm:$0xff]  ;;  %v5389_v11 = vld [vmem:[%s11724_s5 + $0x348] sm:$0xff]  ;;  %v5406_v43 = vld [vmem:[%s11724_s5 + $0x3d0] sm:$0xff] }
 0x46a   : > { %v5108_v24 = vsel %vm3803_vm4, %v5073_v42, %v5072_v37  ;;  %7547 = vmatpush3.bf16.msra.mxu1 %v7546_v41  ;;  %v7558_v60 = vpack.c.bf16 %v5361_v21, %v5360_v25  ;;  %v5407_v33 = vld [vmem:[%s11724_s5 + $0x3d8] sm:$0xff]  ;;  %v5362_v1 = vld [vmem:[%s11724_s5 + $0x270] sm:$0xff]  ;;  %v7560_v26 = vpack.c.bf16 %v5379_v57, %v5378_v56  ;;  %v5412_v22 = vld [vmem:[%s11724_s5 + $0x400] sm:$0xff]  ;;  %v7582_v41 = vpack.c.bf16 %v5389_v11, %v5388_v53 }
 0x46b   : > { %v5075_v59 = vmax.f32 %v5059_v50, 0.0  ;;  %v5109_v32 = vsel %vm3805_vm5, %v5074_v61, %v5108_v24  ;;  %7549 = vmatprep.subr.bf16.mxu1 %v7548_v30  ;;  %v5363_v27 = vld [vmem:[%s11724_s5 + $0x278] sm:$0xff]  ;;  %v5390_v7 = vld [vmem:[%s11724_s5 + $0x350] sm:$0xff]  ;;  %v5413_v54 = vld [vmem:[%s11724_s5 + $0x408] sm:$0xff]  ;;  %v7584_v37 = vpack.c.bf16 %v5407_v33, %v5406_v43 }
 0x46c   : > { %v7799_v16 = vld [vmem:[#allocation4 + $0x11] ss:$8 sps:$4 sm:$0xff]   ;;  %7571 = vmatpush3.bf16.msra.mxu0 %v7570_v10  ;;  %v5391_v12 = vld [vmem:[%s11724_s5 + $0x358] sm:$0xff]  ;;  %v7562_v30 = vpack.c.bf16 %v5363_v27, %v5362_v1  ;;  %v7596_v35 = vpack.c.bf16 %v5413_v54, %v5412_v22  ;;  %v5414_v62 = vld [vmem:[%s11724_s5 + $0x410] sm:$0xff] }
 0x46d   : > { %v7800_v2 = vld [vmem:[#allocation4 + $0x10] ss:$8 sps:$4 sm:$0xff]   ;;  %v5110_v3 = vsel %vm3807_vm6, %v5075_v59, %v5109_v32  ;;  %5166 = vst.msk [vmem:[#allocation7 + $0x50] sm:$0xff] %vm2805_vm2, %v7799_v16  ;;  %7573 = vmatprep.subr.bf16.mxu0 %v7572_v31  ;;  %v5271_v18 = vld [vmem:[#allocation7 + $0x28] sm:$0xff]  ;;  %v7586_v61 = vpack.c.bf16 %v5391_v12, %v5390_v7  ;;  %v5410_v31 = vld [vmem:[%s11724_s5 + $0x3f0] sm:$0xff] }
 0x46e   : > { %v7803_v19 = vld [vmem:[#allocation4 + $0x12] ss:$8 sps:$4 sm:$0xff]   ;;  %5120 = vst.msk [vmem:[#allocation4 + $0x21] sm:$0xf] %vm5116_vm12, %v5110_v3  ;;  %7551 = vmatpush3.bf16.msra.mxu1 %v7550_v45  ;;  %v5411_v29 = vld [vmem:[%s11724_s5 + $0x3f8] sm:$0xff]  ;;  %v5270_v59 = vld [vmem:[#allocation7 + $0x20] sm:$0xff] }
 0x46f   : > { %5152 = vst.msk [vmem:[#allocation7 + $0x48] sm:$0xff] %vm2805_vm2, %v7800_v2  ;;  %v7804_v17 = vld [vmem:[#allocation4 + $0x11] ss:$8 sps:$4 sm:$0xff]   ;;  %5180 = vst.msk [vmem:[#allocation7 + $0x58] sm:$0xff] %vm2805_vm2, %v7803_v19  ;;  %7553 = vmatprep.subr.bf16.mxu1 %v7552_v15  ;;  %v5415_v6 = vld [vmem:[%s11724_s5 + $0x418] sm:$0xff]  ;;  %v7592_v8 = vpack.c.bf16 %v5411_v29, %v5410_v31 }
 0x470   : > { %v7808_v63 = vld [vmem:[#allocation4 + $0x12] ss:$8 sps:$4 sm:$0xff]   ;;  %5250 = vst.msk [vmem:[#allocation7 + $0x38] sm:$0xff] %vm2805_vm2, %v7804_v17  ;;  %7575 = vmatpush3.bf16.msra.mxu0 %v7574_v23  ;;  %v5394_v16 = vld [vmem:[%s11724_s5 + $0x370] sm:$0xff]  ;;  %v5395_v45 = vld [vmem:[%s11724_s5 + $0x378] sm:$0xff]  ;;  %v7600_v3 = vpack.c.bf16 %v5415_v6, %v5414_v62 }
 0x471   : > { %v7809_v55 = vld [vmem:[#allocation4 + $0x10] ss:$8 sps:$4 sm:$0xff]   ;;  %5264 = vst.msk [vmem:[#allocation7 + $0x40] sm:$0xff] %vm2805_vm2, %v7808_v63  ;;  %7577 = vmatprep.subr.bf16.mxu0 %v7576_v5  ;;  %v7594_v48 = vpack.c.bf16 %v5395_v45, %v5394_v16  ;;  %v5418_v17 = vld [vmem:[%s11724_s5 + $0x430] sm:$0xff]  ;;  %v5423_v57 = vld [vmem:[%s11724_s5 + $0x458] sm:$0xff] }
 0x472   : > { %5236 = vst.msk [vmem:[#allocation7 + $0x30] sm:$0xff] %vm2805_vm2, %v7809_v55  ;;  %7555 = vmatpush3.bf16.msra.mxu1 %v7554_v51  ;;  %v5408_v58 = vld [vmem:[%s11724_s5 + $0x3e0] sm:$0xff]  ;;  %v5409_v28 = vld [vmem:[%s11724_s5 + $0x3e8] sm:$0xff]  ;;  %v5419_v51 = vld [vmem:[%s11724_s5 + $0x438] sm:$0xff] }
 0x473   : > { %7557 = vmatprep.subr.bf16.mxu1 %v7556_v44  ;;  %v5392_v10 = vld [vmem:[%s11724_s5 + $0x360] sm:$0xff]  ;;  %v7588_v34 = vpack.c.bf16 %v5409_v28, %v5408_v58  ;;  %v5393_v36 = vld [vmem:[%s11724_s5 + $0x368] sm:$0xff]  ;;  %v7608_v63 = vpack.c.bf16 %v5419_v51, %v5418_v17  ;;  %v5422_v56 = vld [vmem:[%s11724_s5 + $0x450] sm:$0xff] }
 0x474   : > { %v5276_v47 = vld [vmem:[#allocation7 + $0x50] sm:$0xff]  ;;  %7579 = vmatpush3.bf16.msra.mxu0 %v7578_v9  ;;  %v7590_v32 = vpack.c.bf16 %v5393_v36, %v5392_v10  ;;  %v5417_v15 = vld [vmem:[%s11724_s5 + $0x428] sm:$0xff]  ;;  %v7616_v53 = vpack.c.bf16 %v5423_v57, %v5422_v56  ;;  %v5426_v33 = vld [vmem:[%s11724_s5 + $0x470] sm:$0xff] }
 0x475   : > { %5504 = vmatprep.mubr.f32.mxu1 %v5276_v47  ;;  %v7802_v49 = vld [vmem:[#allocation4 + $0x18] ss:$8 sps:$4 sm:$0xff]   ;;  %7581 = vmatprep.subr.bf16.mxu0 %v7580_v46  ;;  %v5416_v2 = vld [vmem:[%s11724_s5 + $0x420] sm:$0xff]  ;;  %v5427_v1 = vld [vmem:[%s11724_s5 + $0x478] sm:$0xff] }
 0x476   : > { %v5275_v14 = vld [vmem:[#allocation7 + $0x48] sm:$0xff]  ;;  %v7806_v42 = vld [vmem:[#allocation4 + $0x1a] ss:$8 sps:$4 sm:$0xff]   ;;  %5194 = vst.msk [vmem:[#allocation7 + $0x60] sm:$0xff] %vm2805_vm2, %v7802_v49  ;;  %7559 = vmatpush3.bf16.msra.mxu1 %v7558_v60  ;;  %v7604_v19 = vpack.c.bf16 %v5417_v15, %v5416_v2  ;;  %v5420_v44 = vld [vmem:[%s11724_s5 + $0x440] sm:$0xff]  ;;  %v7624_v27 = vpack.c.bf16 %v5427_v1, %v5426_v33 }
 0x477   : > { %5505 = vmatmul.mubr.f32.gmra.mrb[34].mxu1 %v5275_v14  ;;  %v7807_v20 = vld [vmem:[#allocation4 + $0x19] ss:$8 sps:$4 sm:$0xff]   ;;  %7561 = vmatprep.subr.bf16.mxu1 %v7560_v26  ;;  %5222 = vst.msk [vmem:[#allocation7 + $0x70] sm:$0xff] %vm2805_vm2, %v7806_v42  ;;  %v5424_v11 = vld [vmem:[%s11724_s5 + $0x460] sm:$0xff]  ;;  %v6047_v28 = vld [vmem:[%s11726_s7 + $0x98] sm:$0xff] }
 0x478   : > { %5649 = vmatprep.mubr.f32.mxu1 %v5271_v18  ;;  %v7810_v50 = vld [vmem:[#allocation4 + $0x21] ss:$8 sps:$4 sm:$0xff]   ;;  %7583 = vmatpush3.bf16.msra.mxu0 %v7582_v41  ;;  %5208 = vst.msk [vmem:[#allocation7 + $0x68] sm:$0xff] %vm2805_vm2, %v7807_v20  ;;  %v5277_v40 = vld [vmem:[#allocation7 + $0x58] sm:$0xff]  ;;  %v6044_v26 = vld [vmem:[%s11726_s7 + $0x80] sm:$0xff] }
 0x479   : > { %v7811_v13 = vld [vmem:[#allocation4 + $0x20] ss:$8 sps:$4 sm:$0xff]   ;;  %7585 = vmatprep.subr.bf16.mxu0 %v7584_v37  ;;  %5251 = vst.msk [vmem:[#allocation7 + $0x80] sm:$0xff] %vm2805_vm2, %v7810_v50  ;;  %v5273_v23 = vld [vmem:[#allocation7 + $0x38] sm:$0xff]  ;;  %v5272_v21 = vld [vmem:[#allocation7 + $0x30] sm:$0xff] }
 0x47a   : > { %v7812_v24 = vld [vmem:[#allocation4 + $0x22] ss:$8 sps:$4 sm:$0xff]   ;;  %7563 = vmatpush3.bf16.msra.mxu1 %v7562_v30  ;;  %5237 = vst.msk [vmem:[#allocation7 + $0x78] sm:$0xff] %vm2805_vm2, %v7811_v13  ;;  %v5421_v25 = vld [vmem:[%s11724_s5 + $0x448] sm:$0xff]  ;;  %v6076_v12 = vld [vmem:[%s11726_s7 + $0x180] sm:$0xff] }
 0x47b   : > { %7597 = vmatprep.subr.bf16.mxu1 %v7596_v35  ;;  %5265 = vst.msk [vmem:[#allocation7 + $0x88] sm:$0xff] %vm2805_vm2, %v7812_v24  ;;  %v5274_v5 = vld [vmem:[#allocation7 + $0x40] sm:$0xff]  ;;  %v7612_v9 = vpack.c.bf16 %v5421_v25, %v5420_v44  ;;  %v5425_v43 = vld [vmem:[%s11724_s5 + $0x468] sm:$0xff]  ;;  %v6028_v14 = vld [vmem:[%s11726_s7] sm:$0xff] }
 0x47c   : > { %7587 = vmatpush3.bf16.msra.mxu0 %v7586_v61  ;;  %v7620_v60 = vpack.c.bf16 %v5425_v43, %v5424_v11  ;;  %v6045_v7 = vld [vmem:[%s11726_s7 + $0x88] sm:$0xff]  ;;  %v6060_v18 = vld [vmem:[%s11726_s7 + $0x100] sm:$0xff]  ;;  %v6046_v42 = vld [vmem:[%s11726_s7 + $0x90] sm:$0xff] }
 0x47d   : > { %v5278_v0 = vld [vmem:[#allocation7 + $0x60] sm:$0xff]  ;;  %5650 = vmatmul.mubr.f32.vlgmr.msra.gmra.mrb[36].mxu1 %v5270_v59  ;;  %7589 = vmatprep.subr.bf16.mxu0 %v7588_v34  ;;  %v7628_v22 = vpack.c.bf16 %v6045_v7, %v6044_v26  ;;  %v6077_v54 = vld [vmem:[%s11726_s7 + $0x188] sm:$0xff]  ;;  %v7632_v50 = vpack.c.bf16 %v6047_v28, %v6046_v42  ;;  %v6031_v13 = vld [vmem:[%s11726_s7 + $0x18] sm:$0xff] }
 0x47e   : > { %5579 = vmatprep.mubr.f32.mxu0 %v5278_v0  ;;  %v5280_v38 = vld [vmem:[#allocation7 + $0x70] sm:$0xff]  ;;  %7599 = vmatpush3.bf16.msra.mxu1 %v7596_v35  ;;  %v6029_v49 = vld [vmem:[%s11726_s7 + $0x8] sm:$0xff]  ;;  %v7660_v41 = vpack.c.bf16 %v6077_v54, %v6076_v12  ;;  %v6078_v20 = vld [vmem:[%s11726_s7 + $0x190] sm:$0xff] }
 0x47f   : > { %5580 = vmatmul.mubr.f32.gmra.mrb[42].mxu0 %v5277_v40  ;;  %5654 = vmatprep.mubr.f32.mxu1 %v5280_v38  ;;  %v5279_v52 = vld [vmem:[#allocation7 + $0x68] sm:$0xff]  ;;  %v7630_v58 = vpack.c.bf16 %v6029_v49, %v6028_v14  ;;  %v6061_v37 = vld [vmem:[%s11726_s7 + $0x108] sm:$0xff]  ;;  %v6030_v10 = vld [vmem:[%s11726_s7 + $0x10] sm:$0xff] }
 0x480   : > { %5724 = vmatprep.mubr.f32.mxu0 %v5273_v23  ;;  %7591 = vmatpush3.bf16.msra.mxu0 %v7590_v32  ;;  %v5282_v55 = vld [vmem:[#allocation7 + $0x80] sm:$0xff]  ;;  %v7662_v30 = vpack.c.bf16 %v6061_v37, %v6060_v18  ;;  %v6079_v35 = vld [vmem:[%s11726_s7 + $0x198] sm:$0xff]  ;;  %v7634_v36 = vpack.c.bf16 %v6031_v13, %v6030_v10  ;;  %v6048_v31 = vld [vmem:[%s11726_s7 + $0xa0] sm:$0xff] }
 0x481   : > { %5655 = vmatmul.mubr.f32.gmra.mrb[38].mxu1 %v5279_v52  ;;  %7593 = vmatprep.subr.bf16.mxu0 %v7592_v8  ;;  %v5281_v46 = vld [vmem:[#allocation7 + $0x78] sm:$0xff]  ;;  %v7664_v61 = vpack.c.bf16 %v6079_v35, %v6078_v20  ;;  %v6062_v34 = vld [vmem:[%s11726_s7 + $0x110] sm:$0xff]  ;;  %v6063_v24 = vld [vmem:[%s11726_s7 + $0x118] sm:$0xff] }
 0x482   : > { %7601 = vmatprep.subr.bf16.mxu1 %v7600_v3  ;;  %7270 = vmatprep.mubr.f32.mxu1 %v5274_v5  ;;  %v5283_v47 = vld [vmem:[#allocation7 + $0x88] sm:$0xff]  ;;  %v6049_v29 = vld [vmem:[%s11726_s7 + $0xa8] sm:$0xff]  ;;  %v7666_v62 = vpack.c.bf16 %v6063_v24, %v6062_v34  ;;  %v6080_v59 = vld [vmem:[%s11726_s7 + $0x1a0] sm:$0xff] }
 0x483   : > { %7603 = vmatpush3.bf16.msra.mxu1 %v7600_v3  ;;  %v7636_v6 = vpack.c.bf16 %v6049_v29, %v6048_v31  ;;  %v6081_v32 = vld [vmem:[%s11726_s7 + $0x1a8] sm:$0xff]  ;;  %v6032_v16 = vld [vmem:[%s11726_s7 + $0x20] sm:$0xff]  ;;  %v6050_v40 = vld [vmem:[%s11726_s7 + $0xb0] sm:$0xff] }
 0x484   : > { %7595 = vmatpush3.bf16.msra.mxu0 %v7594_v48  ;;  %7605 = vmatprep.subr.bf16.mxu1 %v7604_v19  ;;  %v7668_v45 = vpack.c.bf16 %v6081_v32, %v6080_v59  ;;  %v6033_v0 = vld [vmem:[%s11726_s7 + $0x28] sm:$0xff]  ;;  %v6064_v8 = vld [vmem:[%s11726_s7 + $0x120] sm:$0xff]  ;;  %v6051_v38 = vld [vmem:[%s11726_s7 + $0xb8] sm:$0xff] }
 0x485   : > { %7629 = vmatprep.subr.bf16.mxu0 %v7628_v22  ;;  %v6065_v2 = vld [vmem:[%s11726_s7 + $0x128] sm:$0xff]  ;;  %v7638_v15 = vpack.c.bf16 %v6033_v0, %v6032_v16  ;;  %v6082_v3 = vld [vmem:[%s11726_s7 + $0x1b0] sm:$0xff]  ;;  %v7640_v52 = vpack.c.bf16 %v6051_v38, %v6050_v40  ;;  %v6083_v48 = vld [vmem:[%s11726_s7 + $0x1b8] sm:$0xff] }
 0x486   : > { %v7670_v23 = vpack.c.bf16 %v6065_v2, %v6064_v8  ;;  %v6035_v5 = vld [vmem:[%s11726_s7 + $0x38] sm:$0xff]  ;;  %v7672_v17 = vpack.c.bf16 %v6083_v48, %v6082_v3  ;;  %v6066_v51 = vld [vmem:[%s11726_s7 + $0x130] sm:$0xff]  ;;  %v6052_v44 = vld [vmem:[%s11726_s7 + $0xc0] sm:$0xff] }
 0x487   : > { %5725 = vmatmul.mubr.f32.vlgmr.msra.gmra.mrb[44].mxu0 %v5272_v21  ;;  %7607 = vmatpush3.bf16.msra.mxu1 %v7604_v19  ;;  %v6034_v19 = vld [vmem:[%s11726_s7 + $0x30] sm:$0xff]  ;;  %v6053_v25 = vld [vmem:[%s11726_s7 + $0xc8] sm:$0xff]  ;;  %v6084_v21 = vld [vmem:[%s11726_s7 + $0x1c0] sm:$0xff] }
 0x488   : > { %5729 = vmatprep.mubr.f32.mxu0 %v5282_v55  ;;  %7609 = vmatprep.subr.bf16.mxu1 %v7608_v63  ;;  %v6085_v55 = vld [vmem:[%s11726_s7 + $0x1c8] sm:$0xff]  ;;  %v7644_v57 = vpack.c.bf16 %v6053_v25, %v6052_v44  ;;  %v6068_v11 = vld [vmem:[%s11726_s7 + $0x140] sm:$0xff]  ;;  %v6054_v33 = vld [vmem:[%s11726_s7 + $0xd0] sm:$0xff] }
 0x489   : > { %7631 = vmatpush3.bf16.msra.mxu0 %v7630_v58  ;;  %v7676_v43 = vpack.c.bf16 %v6085_v55, %v6084_v21  ;;  %v6055_v1 = vld [vmem:[%s11726_s7 + $0xd8] sm:$0xff]  ;;  %v6038_v22 = vld [vmem:[%s11726_s7 + $0x50] sm:$0xff]  ;;  %v6056_v58 = vld [vmem:[%s11726_s7 + $0xe0] sm:$0xff] }
 0x48a   : > { %7633 = vmatprep.subr.bf16.mxu0 %v7632_v50  ;;  %v7648_v12 = vpack.c.bf16 %v6055_v1, %v6054_v33  ;;  %v6039_v54 = vld [vmem:[%s11726_s7 + $0x58] sm:$0xff]  ;;  %v6070_v14 = vld [vmem:[%s11726_s7 + $0x150] sm:$0xff]  ;;  %v6057_v18 = vld [vmem:[%s11726_s7 + $0xe8] sm:$0xff] }
 0x48b   : > { %5730 = vmatmul.mubr.f32.gmra.mrb[46].mxu0 %v5281_v46  ;;  %7611 = vmatpush3.bf16.msra.mxu1 %v7608_v63  ;;  %v6067_v63 = vld [vmem:[%s11726_s7 + $0x138] sm:$0xff]  ;;  %v6036_v46 = vld [vmem:[%s11726_s7 + $0x40] sm:$0xff]  ;;  %v6089_v42 = vld [vmem:[%s11726_s7 + $0x1e8] sm:$0xff]  ;;  %v7652_v20 = vpack.c.bf16 %v6057_v18, %v6056_v58 }
 0x48c   : > { %7613 = vmatprep.subr.bf16.mxu1 %v7612_v9  ;;  %v7674_v56 = vpack.c.bf16 %v6067_v63, %v6066_v51  ;;  %v6088_v37 = vld [vmem:[%s11726_s7 + $0x1e0] sm:$0xff]  ;;  %v6041_v50 = vld [vmem:[%s11726_s7 + $0x68] sm:$0xff]  ;;  %v6058_v34 = vld [vmem:[%s11726_s7 + $0xf0] sm:$0xff] }
 0x48d   : > { %7635 = vmatpush3.bf16.msra.mxu0 %v7634_v36  ;;  %v6040_v35 = vld [vmem:[%s11726_s7 + $0x60] sm:$0xff]  ;;  %v7684_v10 = vpack.c.bf16 %v6089_v42, %v6088_v37  ;;  %v6073_v13 = vld [vmem:[%s11726_s7 + $0x168] sm:$0xff]  ;;  %v6059_v36 = vld [vmem:[%s11726_s7 + $0xf8] sm:$0xff] }
 0x48e   : > { %7637 = vmatprep.subr.bf16.mxu0 %v7636_v6  ;;  %v6090_v24 = vld [vmem:[%s11726_s7 + $0x1f0] sm:$0xff]  ;;  %v6091_v31 = vld [vmem:[%s11726_s7 + $0x1f8] sm:$0xff]  ;;  %v7654_v29 = vpack.c.bf16 %v6041_v50, %v6040_v35  ;;  %v7656_v6 = vpack.c.bf16 %v6059_v36, %v6058_v34  ;;  %v6108_v8 = vld [vmem:[%s11726_s7 + $0x280] sm:$0xff] }
 0x48f   : > { %7615 = vmatpush3.bf16.msra.mxu1 %v7612_v9  ;;  %v7642_v9 = vpack.c.bf16 %v6035_v5, %v6034_v19  ;;  %v6042_v59 = vld [vmem:[%s11726_s7 + $0x70] sm:$0xff]  ;;  %v6043_v32 = vld [vmem:[%s11726_s7 + $0x78] sm:$0xff]  ;;  %v6109_v2 = vld [vmem:[%s11726_s7 + $0x288] sm:$0xff] }
 0x490   : > { %7617 = vmatprep.subr.bf16.mxu1 %v7616_v53  ;;  %v6074_v16 = vld [vmem:[%s11726_s7 + $0x170] sm:$0xff]  ;;  %v6075_v0 = vld [vmem:[%s11726_s7 + $0x178] sm:$0xff]  ;;  %v6141_v40 = vld [vmem:[%s11726_s7 + $0x388] sm:$0xff]  ;;  %v7658_v38 = vpack.c.bf16 %v6043_v32, %v6042_v59 }
 0x491   : > { %7639 = vmatpush3.bf16.msra.mxu0 %v7638_v15  ;;  %v6140_v15 = vld [vmem:[%s11726_s7 + $0x380] sm:$0xff]  ;;  %v7690_v3 = vpack.c.bf16 %v6075_v0, %v6074_v16 }
 0x492   : > { %7641 = vmatprep.subr.bf16.mxu0 %v7640_v52  ;;  %v7724_v52 = vpack.c.bf16 %v6141_v40, %v6140_v15 }
 0x493   : > { %7619 = vmatpush3.bf16.msra.mxu1 %v7616_v53  ;;  %v6037_v53 = vld [vmem:[%s11726_s7 + $0x48] sm:$0xff] }
 0x494   : > { %7621 = vmatprep.subr.bf16.mxu1 %v7620_v60  ;;  %v7646_v26 = vpack.c.bf16 %v6037_v53, %v6036_v46 }
 0x495   : > { %7643 = vmatpush3.bf16.msra.mxu0 %v7642_v9 }
 0x496   : > { %7645 = vmatprep.subr.bf16.mxu0 %v7644_v57 }
 0x497   : > { %7623 = vmatpush3.bf16.msra.mxu1 %v7620_v60  ;;  %v6069_v60 = vld [vmem:[%s11726_s7 + $0x148] sm:$0xff] }
 0x498   : > { %7625 = vmatprep.subr.bf16.mxu1 %v7624_v27  ;;  %v7678_v7 = vpack.c.bf16 %v6069_v60, %v6068_v11 }
 0x499   : > { %7647 = vmatpush3.bf16.msra.mxu0 %v7646_v26 }
 0x49a   : > { %7649 = vmatprep.subr.bf16.mxu0 %v7648_v12 }
 0x49b   : > { %7627 = vmatpush3.bf16.msra.mxu1 %v7624_v27  ;;  %v6086_v27 = vld [vmem:[%s11726_s7 + $0x1d0] sm:$0xff] }
 0x49c   : > { %7661 = vmatprep.subr.bf16.mxu1 %v7660_v41  ;;  %v6071_v41 = vld [vmem:[%s11726_s7 + $0x158] sm:$0xff] }
 0x49d   : > { %v7682_v28 = vpack.c.bf16 %v6071_v41, %v6070_v14 }
 0x49e   : > { %7271 = vmatmul.mubr.f32.vlgmr.msra.gmra.mrb[40].mxu1 %v5283_v47  ;;  %v6087_v47 = vld [vmem:[%s11726_s7 + $0x1d8] sm:$0xff] }
 0x49f   : > { %7663 = vmatpush3.bf16.msra.mxu1 %v7662_v30  ;;  %v7680_v49 = vpack.c.bf16 %v6087_v47, %v6086_v27  ;;  %v7650_v30 = vpack.c.bf16 %v6039_v54, %v6038_v22 }
 0x4a0   : > { %7665 = vmatprep.subr.bf16.mxu1 %v7664_v61  ;;  %v6072_v61 = vld [vmem:[%s11726_s7 + $0x160] sm:$0xff] }
 0x4a1   : > { %7651 = vmatpush3.bf16.msra.mxu0 %v7650_v30 }
 0x4a2   : > { %7653 = vmatprep.subr.bf16.mxu0 %v7652_v20 }
 0x4a3   : > { %7667 = vmatpush3.bf16.msra.mxu1 %v7666_v62  ;;  %v7686_v62 = vpack.c.bf16 %v6073_v13, %v6072_v61 }
 0x4a4   : > { %7669 = vmatprep.subr.bf16.mxu1 %v7668_v45  ;;  %v7688_v45 = vpack.c.bf16 %v6091_v31, %v6090_v24 }
 0x4a5   : > { %7655 = vmatpush3.bf16.msra.mxu0 %v7654_v29 }
 0x4a6   : > { %7657 = vmatprep.subr.bf16.mxu0 %v7656_v6 }
 0x4a7   : > { %7671 = vmatpush3.bf16.msra.mxu1 %v7670_v23  ;;  %v7692_v23 = vpack.c.bf16 %v6109_v2, %v6108_v8 }
 0x4a8   : > { %7673 = vmatprep.subr.bf16.mxu1 %v7672_v17  ;;  %v6613_v17 = vld [vmem:[%s11725_s6] ss:$0 sm:$0xff] }
 0x4a9   : > { %7659 = vmatpush3.bf16.msra.mxu0 %v7658_v38 }
 0x4aa   : > { %7693 = vmatprep.subr.bf16.mxu0 %v7692_v23 }
 0x4ab   : > { %7675 = vmatpush3.bf16.msra.mxu1 %v7674_v56 }
 0x4ac   : > { %7677 = vmatprep.subr.bf16.mxu1 %v7676_v43 }
 0x4af   : > { %7679 = vmatpush3.bf16.msra.mxu1 %v7678_v7 }
 0x4b0   : > { %7681 = vmatprep.subr.bf16.mxu1 %v7680_v49 }
 0x4b3   : > { %7683 = vmatpush3.bf16.msra.mxu1 %v7682_v28 }
 0x4b4   : > { %7685 = vmatprep.subr.bf16.mxu1 %v7684_v10 }
 0x4b7   : > { %7687 = vmatpush3.bf16.msra.mxu1 %v7686_v62 }
 0x4b8   : > { %7689 = vmatprep.subr.bf16.mxu1 %v7688_v45 }
 0x4bb   : > { %7691 = vmatpush3.bf16.msra.mxu1 %v7690_v3 }
 0x4bc   : > { %7725 = vmatprep.subr.bf16.mxu1 %v7724_v52 }
 0x530   : > { %v6899_v48 = vpop.f32.mrb[32].mxu1 }
 0x531   : > { %v6900_v19 = vpop.f32.mrb[33].mxu1 }
 0x532   : > { %v6901_v5 = vadd.f32 %v6900_v19, %v6899_v48 }
 0x534   : > { %v5502_v44 = vadd.f32 %v6901_v5, %v6613_v17 }
 0x53a   : > { %v6937_v51 = vpop.f32.mrb[40].mxu0 }
 0x53b   : > { %v6938_v63 = vpop.f32.mrb[41].mxu0 }
 0x53c   : > { %v6939_v25 = vadd.f32 %v6938_v63, %v6937_v51 }
 0x53e   : > { %v5577_v21 = vadd.f32 %v6939_v25, %v5502_v44 }
 0x54a   : > { %v6902_v55 = vpop.f32.mrb[34].mxu1 }
 0x54b   : > { %v6903_v9 = vpop.f32.mrb[35].mxu1 }
 0x54c   : > { %v6904_v56 = vadd.f32 %v6903_v9, %v6902_v55 }
 0x54e   : > { %v5507_v60 = vadd.f32 %v6904_v56, %v6613_v17 }
 0x550   : > { %v6975_v57 = vpop.f32.mrb[36].mxu1 }
 0x551   : > { %v6976_v46 = vpop.f32.mrb[37].mxu1 }
 0x552   : > { %v6940_v53 = vpop.f32.mrb[42].mxu0  ;;  %v6977_v11 = vadd.f32 %v6976_v46, %v6975_v57 }
 0x553   : > { %v6941_v43 = vpop.f32.mrb[43].mxu0 }
 0x554   : > { %v6942_v33 = vadd.f32 %v6941_v43, %v6940_v53  ;;  %v5652_v1 = vadd.f32 %v6977_v11, %v5577_v21  ;;  %v6978_v27 = vpop.f32.mrb[38].mxu1 }
 0x555   : > { %v6979_v47 = vpop.f32.mrb[39].mxu1 }
 0x556   : > { %v5582_v26 = vadd.f32 %v6942_v33, %v5507_v60  ;;  %v6980_v7 = vadd.f32 %v6979_v47, %v6978_v27 }
 0x558   : > { %v5657_v12 = vadd.f32 %v6980_v7, %v5582_v26 }
 0x55a   : > { %v7013_v22 = vpop.f32.mrb[44].mxu0 }
 0x55b   : > { %v7014_v54 = vpop.f32.mrb[45].mxu0 }
 0x55c   : > { %v7015_v14 = vadd.f32 %v7014_v54, %v7013_v22 }
 0x55e   : > { %v7016_v49 = vpop.f32.mrb[46].mxu0  ;;  %v5727_v41 = vadd.f32 %v7015_v14, %v5652_v1 }
 0x55f   : > { %v7017_v58 = vpop.f32.mrb[47].mxu0 }
 0x560   : > { %v7018_v18 = vadd.f32 %v7017_v58, %v7016_v49  ;;  %v6093_v58 = vld [vmem:[%s11726_s7 + $0x208] sm:$0xff] }
 0x562   : > { %v5732_v37 = vadd.f32 %v7018_v18, %v5657_v12  ;;  %v6124_v18 = vld [vmem:[%s11726_s7 + $0x300] sm:$0xff] }
 0x571   : > { %v7272_v42 = vpop.f32.mrb[40].mxu1 }
 0x572   : > { %v5807_v30 = vadd.f32 %v7272_v42, %v5732_v37  ;;  %v5801_v28 = vpop.f32.mrb[41].mxu1  ;;  %v6125_v37 = vld [vmem:[%s11726_s7 + $0x308] sm:$0xff]  ;;  %v6110_v42 = vld [vmem:[%s11726_s7 + $0x290] sm:$0xff] }
 0x573   : > { %v5802_v20 = vadd.f32 %v5801_v28, %v5727_v41  ;;  %v6092_v41 = vld [vmem:[%s11726_s7 + $0x200] sm:$0xff]  ;;  %v6111_v28 = vld [vmem:[%s11726_s7 + $0x298] sm:$0xff] }
 0x574   : > { %v5813_v35 = vcombine.high %v5807_v30, %v5807_v30  ;;  %v5819_v61 = vsel %vm5116_vm12, %v5807_v30, -inf }
 0x575   : > { %v5812_v50 = vcombine.high %v5802_v20, %v5802_v20  ;;  %v5816_v34 = vsel %vm5116_vm12, %v5802_v20, -inf  ;;  %v6142_v20 = vld [vmem:[%s11726_s7 + $0x390] sm:$0xff] }
 0x576   : > { %v5820_v10 = vsel %vm5116_vm12, %v5813_v35, -inf }
 0x577   : > { %v5821_v13 = vmax.f32 %v5819_v61, %v5820_v10  ;;  %v5817_v36 = vsel %vm5116_vm12, %v5812_v50, -inf  ;;  %v7694_v61 = vpack.c.bf16 %v6093_v58, %v6092_v41  ;;  %v6143_v10 = vld [vmem:[%s11726_s7 + $0x398] sm:$0xff] }
 0x578   : > { %v5818_v24 = vmax.f32 %v5816_v34, %v5817_v36  ;;  %v7726_v36 = vpack.c.bf16 %v6125_v37, %v6124_v18  ;;  %v6151_v41 = vld [vmem:[%s11726_s7 + $0x3d8] sm:$0xff] }
 0x579   : > { %v5838_v31 = vrot.slane %v5821_v13, %v8924_v39  ;;  %v6094_v13 = vld [vmem:[%s11726_s7 + $0x210] sm:$0xff] }
 0x57a   : > { %v5830_v29 = vrot.slane %v5818_v24, %v8924_v39 }
 0x57b   : > { %v5839_v62 = vcombine.high %v5838_v31, %v5838_v31  ;;  %v5858_v6 = vsel %vm3206_vm3, %v5838_v31, -inf  ;;  %v6095_v31 = vld [vmem:[%s11726_s7 + $0x218] sm:$0xff] }
 0x57c   : > { %v5859_v59 = vrot.slane %v5858_v6, 4  ;;  %v5831_v32 = vcombine.high %v5830_v29, %v5830_v29  ;;  %v5844_v16 = vsel %vm3206_vm3, %v5830_v29, -inf  ;;  %v6126_v29 = vld [vmem:[%s11726_s7 + $0x310] sm:$0xff] }
 0x57d   : > { %v5865_v45 = vsel %vm3206_vm3, %v5839_v62, -inf  ;;  %v5845_v0 = vrot.slane %v5844_v16, 4  ;;  %v7696_v62 = vpack.c.bf16 %v6111_v28, %v6110_v42  ;;  %v6102_v42 = vld [vmem:[%s11726_s7 + $0x250] sm:$0xff] }
 0x57e   : > { %v5860_v8 = vmax.f32 %v5858_v6, %v5859_v59  ;;  %v5866_v2 = vrot.slane %v5865_v45, 4  ;;  %v5851_v15 = vsel %vm3206_vm3, %v5831_v32, -inf  ;;  %v6127_v6 = vld [vmem:[%s11726_s7 + $0x318] sm:$0xff]  ;;  %v6112_v59 = vld [vmem:[%s11726_s7 + $0x2a0] sm:$0xff]  ;;  %v6113_v32 = vld [vmem:[%s11726_s7 + $0x2a8] sm:$0xff] }
 0x57f   : > { %v5846_v40 = vmax.f32 %v5844_v16, %v5845_v0  ;;  %v5852_v38 = vrot.slane %v5851_v15, 4  ;;  %v7728_v0 = vpack.c.bf16 %v6143_v10, %v6142_v20  ;;  %v6134_v28 = vld [vmem:[%s11726_s7 + $0x350] sm:$0xff]  ;;  %v6152_v10 = vld [vmem:[%s11726_s7 + $0x3e0] sm:$0xff] }
 0x580   : > { %v5861_v3 = vrot.slane %v5860_v8, 2  ;;  %v5867_v23 = vmax.f32 %v5865_v45, %v5866_v2  ;;  %v6145_v2 = vld [vmem:[%s11726_s7 + $0x3a8] sm:$0xff] }
 0x581   : > { %v5847_v52 = vrot.slane %v5846_v40, 2  ;;  %v5853_v39 = vmax.f32 %v5851_v15, %v5852_v38  ;;  %v7730_v38 = vpack.c.bf16 %v6127_v6, %v6126_v29  ;;  %v6104_v29 = vld [vmem:[%s11726_s7 + $0x260] sm:$0xff] }
 0x582   : > { %v5862_v48 = vmax.f32 %v5860_v8, %v5861_v3  ;;  %v5868_v19 = vrot.slane %v5867_v23, 2  ;;  %v6144_v8 = vld [vmem:[%s11726_s7 + $0x3a0] sm:$0xff]  ;;  %v7700_v3 = vpack.c.bf16 %v6113_v32, %v6112_v59  ;;  %v6137_v32 = vld [vmem:[%s11726_s7 + $0x368] sm:$0xff] }
 0x583   : > { %v5848_v5 = vmax.f32 %v5846_v40, %v5847_v52  ;;  %v5854_v17 = vrot.slane %v5853_v39, 2  ;;  %v7698_v40 = vpack.c.bf16 %v6095_v31, %v6094_v13  ;;  %v6097_v52 = vld [vmem:[%s11726_s7 + $0x228] sm:$0xff]  ;;  %v6136_v6 = vld [vmem:[%s11726_s7 + $0x360] sm:$0xff] }
 0x584   : > { %v5863_v51 = vrot.slane %v5862_v48, 1  ;;  %v5869_v63 = vmax.f32 %v5867_v23, %v5868_v19  ;;  %v6096_v23 = vld [vmem:[%s11726_s7 + $0x220] sm:$0xff]  ;;  %v6129_v19 = vld [vmem:[%s11726_s7 + $0x328] sm:$0xff] }
 0x585   : > { %v5849_v44 = vrot.slane %v5848_v5, 1  ;;  %v5855_v25 = vmax.f32 %v5853_v39, %v5854_v17  ;;  %v6128_v39 = vld [vmem:[%s11726_s7 + $0x320] sm:$0xff]  ;;  %v6115_v17 = vld [vmem:[%s11726_s7 + $0x2b8] sm:$0xff]  ;;  %v6153_v13 = vld [vmem:[%s11726_s7 + $0x3e8] sm:$0xff] }
 0x586   : > { %v5864_v21 = vmax.f32 %v5862_v48, %v5863_v51  ;;  %v5870_v55 = vrot.slane %v5869_v63, 1  ;;  %v7732_v48 = vpack.c.bf16 %v6145_v2, %v6144_v8  ;;  %v6146_v51 = vld [vmem:[%s11726_s7 + $0x3b0] sm:$0xff]  ;;  %v7748_v59 = vpack.c.bf16 %v6153_v13, %v6152_v10  ;;  %v6155_v2 = vld [vmem:[%s11726_s7 + $0x3f8] sm:$0xff] }
 0x587   : > { %v5850_v9 = vmax.f32 %v5848_v5, %v5849_v44  ;;  %v5856_v56 = vrot.slane %v5855_v25, 1  ;;  %v6114_v5 = vld [vmem:[%s11726_s7 + $0x2b0] sm:$0xff]  ;;  %v7702_v44 = vpack.c.bf16 %v6097_v52, %v6096_v23  ;;  %v6107_v23 = vld [vmem:[%s11726_s7 + $0x278] sm:$0xff] }
 0x588   : > { %v5871_v57 = vmax.f32 %v5869_v63, %v5870_v55  ;;  %v5874_v53 = vmax.f32 %v5864_v21, 0.0  ;;  %v6147_v63 = vld [vmem:[%s11726_s7 + $0x3b8] sm:$0xff]  ;;  %v7704_v21 = vpack.c.bf16 %v6115_v17, %v6114_v5  ;;  %v6098_v55 = vld [vmem:[%s11726_s7 + $0x230] sm:$0xff]  ;;  %v6156_v17 = vld [vmem:[%s11726_s7 + $0x400] sm:$0xff] }
 0x589   : > { %v5857_v46 = vmax.f32 %v5855_v25, %v5856_v56  ;;  %v5872_v43 = vmax.f32 %v5850_v9, 0.0  ;;  %v7734_v25 = vpack.c.bf16 %v6129_v19, %v6128_v39  ;;  %v6099_v9 = vld [vmem:[%s11726_s7 + $0x238] sm:$0xff]  ;;  %v6130_v56 = vld [vmem:[%s11726_s7 + $0x330] sm:$0xff] }
 0x58a   : > { %v5875_v11 = vmax.f32 %v5871_v57, 0.0  ;;  %v7736_v57 = vpack.c.bf16 %v6147_v63, %v6146_v51  ;;  %v6154_v8 = vld [vmem:[%s11726_s7 + $0x3f0] sm:$0xff]  ;;  %v6157_v51 = vld [vmem:[%s11726_s7 + $0x408] sm:$0xff] }
 0x58b   : > { %v5873_v60 = vmax.f32 %v5857_v46, 0.0  ;;  %v6131_v46 = vld [vmem:[%s11726_s7 + $0x338] sm:$0xff]  ;;  %v7752_v52 = vpack.c.bf16 %v6155_v2, %v6154_v8  ;;  %v6138_v39 = vld [vmem:[%s11726_s7 + $0x370] sm:$0xff]  ;;  %v7757_v63 = vpack.c.bf16 %v6157_v51, %v6156_v17 }
 0x58c   : > { %v5885_v33 = vsel %vm3803_vm4, %v5875_v11, %v5874_v53  ;;  %v6116_v53 = vld [vmem:[%s11726_s7 + $0x2c0] sm:$0xff]  ;;  %v6117_v11 = vld [vmem:[%s11726_s7 + $0x2c8] sm:$0xff] }
 0x58d   : > { %5890 = vst.msk [vmem:[#allocation5 + $0x9] sm:$0x3] %vm3206_vm3, %v5885_v33  ;;  %v5884_v1 = vsel %vm3803_vm4, %v5873_v60, %v5872_v43  ;;  %v6148_v43 = vld [vmem:[%s11726_s7 + $0x3c0] sm:$0xff]  ;;  %v6149_v60 = vld [vmem:[%s11726_s7 + $0x3c8] sm:$0xff]  ;;  %v7706_v33 = vpack.c.bf16 %v6099_v9, %v6098_v55 }
 0x58e   : > { %5889 = vst.msk [vmem:[#allocation5 + $0x5] sm:$0x3] %vm3206_vm3, %v5884_v1  ;;  %v7738_v1 = vpack.c.bf16 %v6131_v46, %v6130_v56  ;;  %v6160_v9 = vld [vmem:[%s11726_s7 + $0x420] sm:$0xff]  ;;  %v6161_v56 = vld [vmem:[%s11726_s7 + $0x428] sm:$0xff] }
 0x594   : > { %v7844_v54 = vld.sshfl [vmem:[#allocation5 + $0x8] sm:$0xf pattern:$0x76325410] }
 0x595   : > { %v7838_v27 = vld.sshfl [vmem:[#allocation5] sm:$0xf pattern:$0x76325410]  ;;  %5994 = vst.msk [vmem:[#allocation8 + $0x18] sm:$0xf] %vm5116_vm12, %v7844_v54 }
 0x596   : > { %v7839_v47 = vld.sshfl [vmem:[#allocation5 + $0x1] sm:$0xf pattern:$0x76325410]  ;;  %5909 = vst.msk [vmem:[#allocation8] sm:$0xf] %vm5116_vm12, %v7838_v27  ;;  %v7708_v27 = vpack.c.bf16 %v6117_v11, %v6116_v53 }
 0x597   : > { %v7840_v26 = vld.sshfl [vmem:[#allocation5 + $0x2] sm:$0xf pattern:$0x76325410]  ;;  %5923 = vst.msk [vmem:[#allocation8 + $0x4] sm:$0xf] %vm5116_vm12, %v7839_v47 }
 0x598   : > { %v7841_v7 = vld.sshfl [vmem:[#allocation5 + $0x4] sm:$0xf pattern:$0x76325410]  ;;  %5937 = vst.msk [vmem:[#allocation8 + $0x8] sm:$0xf] %vm5116_vm12, %v7840_v26 }
 0x599   : > { %v7842_v12 = vld.sshfl [vmem:[#allocation5 + $0x5] sm:$0xf pattern:$0x76325410]  ;;  %5951 = vst.msk [vmem:[#allocation8 + $0xc] sm:$0xf] %vm5116_vm12, %v7841_v7 }
 0x59a   : > { %v7843_v22 = vld.sshfl [vmem:[#allocation5 + $0x6] sm:$0xf pattern:$0x76325410]  ;;  %5965 = vst.msk [vmem:[#allocation8 + $0x10] sm:$0xf] %vm5116_vm12, %v7842_v12  ;;  %v7740_v12 = vpack.c.bf16 %v6149_v60, %v6148_v43 }
 0x59b   : > { %v7845_v14 = vld.sshfl [vmem:[#allocation5 + $0x9] sm:$0xf pattern:$0x76325410]  ;;  %5979 = vst.msk [vmem:[#allocation8 + $0x14] sm:$0xf] %vm5116_vm12, %v7843_v22 }
 0x59c   : > { %v7846_v49 = vld.sshfl [vmem:[#allocation5 + $0xa] sm:$0xf pattern:$0x76325410]  ;;  %6008 = vst.msk [vmem:[#allocation8 + $0x1c] sm:$0xf] %vm5116_vm12, %v7845_v14 }
 0x59d   : > { %6022 = vst.msk [vmem:[#allocation8 + $0x20] sm:$0xf] %vm5116_vm12, %v7846_v49  ;;  %v6100_v47 = vld [vmem:[%s11726_s7 + $0x240] sm:$0xff]  ;;  %v6101_v26 = vld [vmem:[%s11726_s7 + $0x248] sm:$0xff]  ;;  %v6118_v54 = vld [vmem:[%s11726_s7 + $0x2d0] sm:$0xff] }
 0x59e   : > { %v6023_v30 = vld [vmem:[#allocation8] sm:$0xff]  ;;  %v6133_v22 = vld [vmem:[%s11726_s7 + $0x348] sm:$0xff]  ;;  %v6119_v14 = vld [vmem:[%s11726_s7 + $0x2d8] sm:$0xff]  ;;  %v7710_v58 = vpack.c.bf16 %v6101_v26, %v6100_v47 }
 0x59f   : > { %v6183_v35 = vcombine.high %v6023_v30, %v6023_v30  ;;  %v6132_v7 = vld [vmem:[%s11726_s7 + $0x340] sm:$0xff]  ;;  %v6150_v49 = vld [vmem:[%s11726_s7 + $0x3d0] sm:$0xff]  ;;  %v7712_v37 = vpack.c.bf16 %v6119_v14, %v6118_v54  ;;  %v6167_v60 = vld [vmem:[%s11726_s7 + $0x458] sm:$0xff] }
 0x5a0   : > { %v6024_v50 = vld [vmem:[#allocation8 + $0x8] sm:$0xff]  ;;  %v7742_v18 = vpack.c.bf16 %v6133_v22, %v6132_v7  ;;  %v7744_v20 = vpack.c.bf16 %v6151_v41, %v6150_v49  ;;  %v6164_v53 = vld [vmem:[%s11726_s7 + $0x440] sm:$0xff]  ;;  %v6166_v43 = vld [vmem:[%s11726_s7 + $0x450] sm:$0xff] }
 0x5a1   : > { %v6184_v34 = vcombine.high %v6024_v50, %v6024_v50  ;;  %6255 = vmatprep.mubr.f32.mxu0 %v6183_v35  ;;  %v6135_v35 = vld [vmem:[%s11726_s7 + $0x358] sm:$0xff]  ;;  %v6170_v26 = vld [vmem:[%s11726_s7 + $0x470] sm:$0xff]  ;;  %v6614_v49 = vld [vmem:[#allocation9] ss:$0 sm:$0xff] }
 0x5a2   : > { %v11500_v24 = vld [vmem:[#allocation8 + $0x10] sm:$0xff]  ;;  %6256 = vmatmul.mubr.f32.vlgmr.msra.gmra.mrb[48].mxu0 %v6023_v30  ;;  %v6103_v30 = vld [vmem:[%s11726_s7 + $0x258] sm:$0xff] }
 0x5a3   : > { %6325 = vmatprep.mubr.f32.mxu1 %v6184_v34  ;;  %v6185_v16 = vcombine.high %v11500_v24, %v11500_v24  ;;  %v11519_v45 = vld [vmem:[#allocation8 + $0x18] sm:$0xff]  ;;  %7695 = vmatpush3.bf16.msra.mxu0 %v7694_v61  ;;  %v6121_v61 = vld [vmem:[%s11726_s7 + $0x2e8] sm:$0xff]  ;;  %v7714_v34 = vpack.c.bf16 %v6103_v30, %v6102_v42 }
 0x5a4   : > { %6326 = vmatmul.mubr.f32.vlgmr.msra.gmra.mrb[42].mxu1 %v6024_v50  ;;  %v6186_v15 = vcombine.high %v11519_v45, %v11519_v45  ;;  %7697 = vmatprep.subr.bf16.mxu0 %v7696_v62  ;;  %v6120_v50 = vld [vmem:[%s11726_s7 + $0x2e0] sm:$0xff]  ;;  %v6105_v62 = vld [vmem:[%s11726_s7 + $0x268] sm:$0xff]  ;;  %v6171_v7 = vld [vmem:[%s11726_s7 + $0x478] sm:$0xff] }
 0x5a5   : > { %7727 = vmatpush3.bf16.msra.mxu1 %v7726_v36  ;;  %6395 = vmatprep.mubr.f32.mxu0 %v6185_v16  ;;  %v7746_v36 = vpack.c.bf16 %v6135_v35, %v6134_v28  ;;  %v7716_v31 = vpack.c.bf16 %v6121_v61, %v6120_v50  ;;  %v6122_v16 = vld [vmem:[%s11726_s7 + $0x2f0] sm:$0xff]  ;;  %v6027_v22 = vld [vmem:[#allocation8 + $0x20] sm:$0xf] }
 0x5a6   : > { %6465 = vmatprep.mubr.f32.mxu1 %v6186_v15  ;;  %7729 = vmatprep.subr.bf16.mxu1 %v7728_v0  ;;  %v6123_v0 = vld [vmem:[%s11726_s7 + $0x2f8] sm:$0xff]  ;;  %v7718_v15 = vpack.c.bf16 %v6105_v62, %v6104_v29 }
 0x5a7   : > { %7699 = vmatpush3.bf16.msra.mxu0 %v7698_v40  ;;  %v7750_v40 = vpack.c.bf16 %v6137_v32, %v6136_v6 }
 0x5a8   : > { %7701 = vmatprep.subr.bf16.mxu0 %v7700_v3  ;;  %v6106_v3 = vld [vmem:[%s11726_s7 + $0x270] sm:$0xff] }
 0x5a9   : > { %7731 = vmatpush3.bf16.msra.mxu1 %v7730_v38  ;;  %v7720_v38 = vpack.c.bf16 %v6123_v0, %v6122_v16  ;;  %v7722_v19 = vpack.c.bf16 %v6107_v23, %v6106_v3 }
 0x5aa   : > { %7733 = vmatprep.subr.bf16.mxu1 %v7732_v48  ;;  %v6139_v48 = vld [vmem:[%s11726_s7 + $0x378] sm:$0xff] }
 0x5ab   : > { %7703 = vmatpush3.bf16.msra.mxu0 %v7702_v44  ;;  %v7754_v5 = vpack.c.bf16 %v6139_v48, %v6138_v39  ;;  %v7858_v44 = vmov 0.0|0.0  }
 0x5ac   : > { %7705 = vmatprep.subr.bf16.mxu0 %v7704_v21  ;;  %v6159_v21 = vld [vmem:[%s11726_s7 + $0x418] sm:$0xff] }
 0x5ad   : > { %7735 = vmatpush3.bf16.msra.mxu1 %v7734_v25  ;;  %v6158_v25 = vld [vmem:[%s11726_s7 + $0x410] sm:$0xff] }
 0x5ae   : > { %7737 = vmatprep.subr.bf16.mxu1 %v7736_v57  ;;  %v7760_v55 = vpack.c.bf16 %v6159_v21, %v6158_v25  ;;  %v7763_v57 = vpack.c.bf16 %v6161_v56, %v6160_v9 }
 0x5af   : > { %7707 = vmatpush3.bf16.msra.mxu0 %v7706_v33  ;;  %v7772_v33 = vpack.c.bf16 %v6167_v60, %v6166_v43 }
 0x5b0   : > { %7709 = vmatprep.subr.bf16.mxu0 %v7708_v27  ;;  %v6169_v27 = vld [vmem:[%s11726_s7 + $0x468] sm:$0xff] }
 0x5b1   : > { %7739 = vmatpush3.bf16.msra.mxu1 %v7738_v1  ;;  %v6168_v1 = vld [vmem:[%s11726_s7 + $0x460] sm:$0xff] }
 0x5b2   : > { %7741 = vmatprep.subr.bf16.mxu1 %v7740_v12  ;;  %v7775_v47 = vpack.c.bf16 %v6169_v27, %v6168_v1  ;;  %v7778_v12 = vpack.c.bf16 %v6171_v7, %v6170_v26 }
 0x5b3   : > { %7711 = vmatpush3.bf16.msra.mxu0 %v7710_v58 }
 0x5b4   : > { %7713 = vmatprep.subr.bf16.mxu0 %v7712_v37 }
 0x5b5   : > { %7743 = vmatpush3.bf16.msra.mxu1 %v7742_v18 }
 0x5b6   : > { %7745 = vmatprep.subr.bf16.mxu1 %v7744_v20 }
 0x5b7   : > { %7715 = vmatpush3.bf16.msra.mxu0 %v7714_v34 }
 0x5b8   : > { %7717 = vmatprep.subr.bf16.mxu0 %v7716_v31 }
 0x5b9   : > { %7747 = vmatpush3.bf16.msra.mxu1 %v7746_v36 }
 0x5ba   : > { %7749 = vmatprep.subr.bf16.mxu1 %v7748_v59 }
 0x5bb   : > { %7719 = vmatpush3.bf16.msra.mxu0 %v7718_v15 }
 0x5bc   : > { %7721 = vmatprep.subr.bf16.mxu0 %v7720_v38 }
 0x5bd   : > { %7751 = vmatpush3.bf16.msra.mxu1 %v7750_v40 }
 0x5be   : > { %7753 = vmatprep.subr.bf16.mxu1 %v7752_v52 }
 0x5bf   : > { %7723 = vmatpush3.bf16.msra.mxu0 %v7722_v19 }
 0x5c0   : > { %7756 = vmatprep.subr.bf16.mxu0 %v7858_v44 }
 0x5c1   : > { %7755 = vmatpush3.bf16.msra.mxu1 %v7754_v5 }
 0x5c2   : > { %6396 = vmatmul.mubr.f32.vlgmr.msra.gmra.mrb[50].mxu0 %v11500_v24  ;;  %v6162_v24 = vld [vmem:[%s11726_s7 + $0x430] sm:$0xff] }
 0x5c3   : > { %7758 = vmatpush3.bf16.msra.mxu0 %v7757_v63  ;;  %7305 = vmatprep.mubr.msk.f32.mxu0 %vm7859_vm13, %v10677_v4  ;;  %v6165_v4 = vld [vmem:[%s11726_s7 + $0x448] sm:$0xff] }
 0x5c4   : > { %6466 = vmatmul.mubr.f32.vlgmr.msra.gmra.mrb[44].mxu1 %v11519_v45  ;;  %7759 = vmatprep.subr.bf16.mxu0 %v7858_v44  ;;  %v6163_v45 = vld [vmem:[%s11726_s7 + $0x438] sm:$0xff]  ;;  %v7769_v11 = vpack.c.bf16 %v6165_v4, %v6164_v53 }
 0x5c5   : > { %v7766_v46 = vpack.c.bf16 %v6163_v45, %v6162_v24 }
 0x5c7   : > { %7761 = vmatpush3.bf16.msra.mxu0 %v7760_v55 }
 0x5c8   : > { %7762 = vmatprep.subr.bf16.mxu0 %v7858_v44 }
 0x5cb   : > { %7764 = vmatpush3.bf16.msra.mxu0 %v7763_v57 }
 0x5cc   : > { %7765 = vmatprep.subr.bf16.mxu0 %v7858_v44 }
 0x5cf   : > { %7767 = vmatpush3.bf16.msra.mxu0 %v7766_v46 }
 0x5d0   : > { %7768 = vmatprep.subr.bf16.mxu0 %v7858_v44 }
 0x5d3   : > { %7770 = vmatpush3.bf16.msra.mxu0 %v7769_v11 }
 0x5d4   : > { %7771 = vmatprep.subr.bf16.mxu0 %v7858_v44 }
 0x5d7   : > { %7773 = vmatpush3.bf16.msra.mxu0 %v7772_v33 }
 0x5d8   : > { %7774 = vmatprep.subr.bf16.mxu0 %v7858_v44 }
 0x5db   : > { %7776 = vmatpush3.bf16.msra.mxu0 %v7775_v47 }
 0x5dc   : > { %7777 = vmatprep.subr.bf16.mxu0 %v7858_v44 }
 0x5df   : > { %7779 = vmatpush3.bf16.msra.mxu0 %v7778_v12 }
 0x5e2   : > { %7306 = vmatmul.mubr.f32.vlgmr.msra.gmra.mrb[52].mxu0 %v6027_v22 }
 0x675   : > { %v7069_v54 = vpop.f32.mrb[48].mxu0 }
 0x676   : > { %v7070_v41 = vpop.f32.mrb[49].mxu0 }
 0x677   : > { %v7104_v14 = vpop.f32.mrb[42].mxu1  ;;  %v7071_v58 = vadd.f32 %v7070_v41, %v7069_v54 }
 0x678   : > { %v7105_v18 = vpop.f32.mrb[43].mxu1 }
 0x679   : > { %v7106_v37 = vadd.f32 %v7105_v18, %v7104_v14  ;;  %v6258_v42 = vadd.f32 %v7071_v58, %v6614_v49 }
 0x67b   : > { %v6328_v30 = vadd.f32 %v7106_v37, %v6258_v42 }
 0x695   : > { %v7139_v28 = vpop.f32.mrb[50].mxu0 }
 0x696   : > { %v7140_v35 = vpop.f32.mrb[51].mxu0 }
 0x697   : > { %v7174_v20 = vpop.f32.mrb[44].mxu1  ;;  %v7141_v50 = vadd.f32 %v7140_v35, %v7139_v28 }
 0x698   : > { %v7175_v61 = vpop.f32.mrb[45].mxu1 }
 0x699   : > { %v7176_v10 = vadd.f32 %v7175_v61, %v7174_v20  ;;  %v6398_v13 = vadd.f32 %v7141_v50, %v6328_v30 }
 0x69b   : > { %v6468_v34 = vadd.f32 %v7176_v10, %v6398_v13 }
 0x6b5   : > { %v6537_v36 = vpop.f32.mrb[52].mxu0 }
 0x6b6   : > { %v6538_v31 = vadd.f32 %v6537_v36, %v6468_v34  ;;  %v7307_v29 = vpop.f32.mrb[53].mxu0 }
 0x6b8   : > { %v6615_v62 = vmul.f32 -1.442695, %v6538_v31 }
 0x6ba   : > { %7826 = vpow2.f32 %v6615_v62 }
 0x6c4   : > { %v7827_v6 = vpop.eup %7826 }
 0x6c5   : > { %v6544_v59 = vadd.f32 1.0, %v7827_v6 }
 0x6c7   : > { %7828 = vrcp.f32 %v6544_v59 }
 0x6d1   : > { %v7829_v32 = vpop.eup %7828 }
 0x6d2   : > { %6548 = vst.msk [vmem:[%s332_s14] sm:$0xf] %vm6547_vm14, %v7829_v32 }
 0x6d3 PF: > { %s21_s11 = sadd.s32 1, %s7853_s11  }
 0x6d4   : > { %p18_p4 = scmp.ge.s32.totalorder %s21_s11, 4  }
 0x6d6   :  { %20 = sbr.rel (!%p18_p4) target bundleno = 3 (0x3), region = 94 }

</bundles_post_ra>
